<compile_context>
chip_gen: v7x
topology: tpu7x:2x2x1
jax: 0.10.0
libtpu: 0.0.40
codegen_flags: <defaults>
</compile_context>

<pallas_src>
import functools

import jax
import jax.numpy as jnp
from jax.experimental import pallas as pl
from jax.experimental.pallas import tpu as pltpu


# ----------------------------------------------------------------------------
# Kernel 1: hoisted projection + attention logits (computed once per layer)
# ----------------------------------------------------------------------------
def _gat_project_kernel(x_ref, w_ref, asrc_ref, adst_ref,
                        h_ref, srcl_ref, dstl_ref):
    """x_ref : [N, F] bf16, w_ref : [F, H*C] bf16 (head h in cols [hC,(h+1)C)).
    asrc_ref / adst_ref : [H, H*C] f32, row h = a_{src,dst}_h in head-h cols.
    Outputs: h_ref [N, H*C] bf16, srcl_ref [H, N] f32, dstl_ref [N, H] f32."""
    h = jnp.dot(x_ref[...], w_ref[...],
                preferred_element_type=jnp.float32)                  # (N, HC)
    h_ref[...] = h.astype(jnp.bfloat16)
    # src_logits[h, j] = h[j] . a_src_h ;  dst_logits[i, h] = h[i] . a_dst_h
    srcl_ref[...] = jax.lax.dot_general(
        asrc_ref[...], h, (((1,), (1,)), ((), ())),
        preferred_element_type=jnp.float32)                          # (H, N)
    dstl_ref[...] = jax.lax.dot_general(
        h, adst_ref[...], (((1,), (1,)), ((), ())),
        preferred_element_type=jnp.float32)                          # (N, H)


# ----------------------------------------------------------------------------
# Kernel 2: attention + aggregation + fused epilogue (per destination block)
# ----------------------------------------------------------------------------
def _gat_attn_kernel(h_ref, srcl_ref, dstl_ref, mult_ref,
                     bias_ref, gamma_ref, beta_ref, out_ref,
                     *, heads, out_ch, concat, apply_elu, log_sm):
    """h_ref   : [N,  H*C] bf16   projected features of all source nodes
    srcl_ref   : [H,  N]   f32    source-side logits, all heads
    dstl_ref   : [TN, H]   f32    destination-side logits for this row block
    mult_ref   : [TN, N]   bf16   edge multiplicity (j -> i), diagonal == 1
    bias/gamma/beta : [1, D] f32  bias + LayerNorm affine
    out_ref    : [TN, D]          lane-dense output block."""
    C = out_ch
    sl = srcl_ref[...]                                               # (H, N)
    dl = dstl_ref[...]                                               # (TN, H)
    multf = mult_ref[...].astype(jnp.float32)                        # (TN, N)
    rmax = jnp.max(sl, axis=-1, keepdims=True)                       # (H, 1)

    parts = []
    acc = None
    for hd in range(heads):                                          # unrolled
        col = dl[:, hd:hd + 1]                                       # (TN, 1)
        row = sl[hd:hd + 1, :]                                       # (1, N)
        z = col + row                                                # (TN, N)
        e = jnp.maximum(z, 0.2 * z)                                  # LeakyReLU
        # max_j e[i,j] == leaky(col[i] + max_j row[j])  (leaky monotone)
        zm = col + rmax[hd:hd + 1, :]                                # (TN, 1)
        m = jnp.maximum(zm, 0.2 * zm)
        # TODO(synk): m is the unmasked row max; a hugely dominant non-edge
        # logit could underflow all edge terms. Not reachable at these weight
        # scales; use a masked max for trained weights if needed.
        p = multf * jnp.exp(e - m)          # zero non-edges, count duplicates
        denom = jnp.sum(p, axis=-1, keepdims=True)
        alpha = (p * pl.reciprocal(denom, approx=True)).astype(jnp.bfloat16)
        contrib = jnp.dot(alpha, h_ref[:, hd * C:(hd + 1) * C],
                          preferred_element_type=jnp.float32)        # (TN, C)
        if concat:
            parts.append(contrib)
        else:
            acc = contrib if acc is None else acc + contrib

    out = jnp.concatenate(parts, axis=-1) if concat else acc * (1.0 / heads)
    out = out + bias_ref[...]                                        # (TN, D)

    # LayerNorm (eps = 1e-5, affine)
    mean = jnp.mean(out, axis=-1, keepdims=True)
    var = jnp.mean((out - mean) ** 2, axis=-1, keepdims=True)
    y = (out - mean) * jax.lax.rsqrt(var + 1e-5)
    y = y * gamma_ref[...] + beta_ref[...]

    if apply_elu:
        y = jnp.where(y > 0, y, jnp.exp(y) - 1.0)                    # ELU(1.0)
    if log_sm:
        mm = jnp.max(y, axis=-1, keepdims=True)
        s = y - mm
        y = s - jnp.log(jnp.sum(jnp.exp(s), axis=-1, keepdims=True))

    out_ref[...] = y.astype(out_ref.dtype)


# ----------------------------------------------------------------------------
# Wrappers (glue)
# ----------------------------------------------------------------------------
def _default_row_blocks():
    """Row-split only pays off with >1 TensorCore per chip (v7x); on
    single-TC chips (v5e / v6e) it just adds per-step overhead."""
    try:
        dev = jax.devices()[0]
        n = getattr(dev, "num_cores", None)
        if n is None:
            kind = str(getattr(dev, "device_kind", "")).lower()
            n = 2 if "v7" in kind else 1
        return 2 if (n and n > 1) else 1
    except Exception:
        return 1


def gat_layer(x, adj_mult_bf16, p, gamma, beta, *, concat, apply_elu, log_sm,
              row_blocks=None):
    """Fused GATConv + bias + LayerNorm (+ELU / +log_softmax) layer."""
    W, a_src, a_dst, bias = p["W"], p["a_src"], p["a_dst"], p["bias"]
    N, Fin = x.shape
    H, _, C = W.shape
    HC = H * C
    D_out = HC if concat else C

    # Head-blocked, lane-dense parameter layouts (tiny host-side ops).
    W_all = jnp.transpose(W, (1, 0, 2)).reshape(Fin, HC).astype(jnp.bfloat16)
    eye_h = jnp.eye(H, dtype=jnp.float32)
    adst_blk = (a_dst[:, None, :] * eye_h[:, :, None]).reshape(H, HC)
    asrc_blk = (a_src[:, None, :] * eye_h[:, :, None]).reshape(H, HC)
    bias2 = bias.reshape(1, D_out)
    x_bf = x.astype(jnp.bfloat16)

    # ---- 1) projection + logits: computed exactly once per layer -----------
    h_bf, src_log, dst_log = pl.pallas_call(
        _gat_project_kernel,
        out_shape=(
            jax.ShapeDtypeStruct((N, HC), jnp.bfloat16),
            jax.ShapeDtypeStruct((H, N), jnp.float32),
            jax.ShapeDtypeStruct((N, H), jnp.float32),
        ),
        grid=(1,),
        in_specs=[
            pl.BlockSpec((N, Fin), lambda i: (0, 0)),     # x (bf16)
            pl.BlockSpec((Fin, HC), lambda i: (0, 0)),    # W_all (bf16)
            pl.BlockSpec((H, HC), lambda i: (0, 0)),      # a_src (blocked)
            pl.BlockSpec((H, HC), lambda i: (0, 0)),      # a_dst (blocked)
        ],
        out_specs=(
            pl.BlockSpec((N, HC), lambda i: (0, 0)),
            pl.BlockSpec((H, N), lambda i: (0, 0)),
            pl.BlockSpec((N, H), lambda i: (0, 0)),
        ),
    )(x_bf, W_all, asrc_blk, adst_blk)

    # ---- 2) attention + aggregation + fused epilogue ------------------------
    if row_blocks is None:
        row_blocks = _default_row_blocks()
    if N % (8 * row_blocks) != 0:
        row_blocks = 1
    TN = N // row_blocks

    kernel = functools.partial(_gat_attn_kernel, heads=H, out_ch=C,
                               concat=concat, apply_elu=apply_elu,
                               log_sm=log_sm)
    out_dtype = jnp.float32 if log_sm else jnp.bfloat16  # hidden layers bf16

    return pl.pallas_call(
        kernel,
        out_shape=jax.ShapeDtypeStruct((N, D_out), out_dtype),
        grid=(row_blocks,),
        in_specs=[
            pl.BlockSpec((N, HC), lambda i: (0, 0)),      # h (all sources)
            pl.BlockSpec((H, N), lambda i: (0, 0)),       # src logits
            pl.BlockSpec((TN, H), lambda i: (i, 0)),      # dst logits (block)
            pl.BlockSpec((TN, N), lambda i: (i, 0)),      # edge mult (bf16)
            pl.BlockSpec((1, D_out), lambda i: (0, 0)),   # bias
            pl.BlockSpec((1, D_out), lambda i: (0, 0)),   # LN gamma
            pl.BlockSpec((1, D_out), lambda i: (0, 0)),   # LN beta
        ],
        out_specs=pl.BlockSpec((TN, D_out), lambda i: (i, 0)),
        compiler_params=pltpu.CompilerParams(
            dimension_semantics=("parallel",)),            # 2 TCs on v7x only
    )(h_bf, src_log, dst_log, adj_mult_bf16, bias2, gamma, beta)


def make_adj(edge_index, num_nodes):
    """mult[i, j] = #edges j -> i, diagonal forced to 1 (PyG GATConv:
    remove_self_loops + add_self_loops).  Returned as bf16 (exact for small
    integer multiplicities) to halve HBM->VMEM traffic of the N^2 operand."""
    src, dst = edge_index[0], edge_index[1]
    mult = jnp.zeros((num_nodes, num_nodes), jnp.float32).at[dst, src].add(1.0)
    eye = jnp.eye(num_nodes, dtype=jnp.float32)
    mult = mult * (1.0 - eye) + eye
    return mult.astype(jnp.bfloat16)


def init_gat_layer(key, in_dim, out_dim, heads, *, concat):
    k1, k2, k3, k4 = jax.random.split(key, 4)
    W = 0.1 * jax.random.normal(k1, (heads, in_dim, out_dim), jnp.float32)
    a_src = 0.1 * jax.random.normal(k2, (heads, out_dim), jnp.float32)
    a_dst = 0.1 * jax.random.normal(k3, (heads, out_dim), jnp.float32)
    bias_dim = heads * out_dim if concat else out_dim
    bias = 0.01 * jax.random.normal(k4, (bias_dim,), jnp.float32)
    return dict(W=W, a_src=a_src, a_dst=a_dst, bias=bias)


def gat_forward(x, edge_index, params):
    """Transductive GAT forward (eval mode): dropout == identity."""
    N = x.shape[0]
    adj = make_adj(edge_index, N)

    # inconv -> (+bias) -> LayerNorm -> ELU
    x = gat_layer(x, adj, params["inconv"],
                  params["in_norm_g"], params["in_norm_b"],
                  concat=True, apply_elu=True, log_sm=False)

    # mid layers
    for p, g, b in zip(params["mid_convs"], params["mid_norm_g"],
                       params["mid_norm_b"]):
        x = gat_layer(x, adj, p, g, b, concat=True, apply_elu=True,
                      log_sm=False)

    # outconv (head-mean) -> LayerNorm -> log_softmax
    x = gat_layer(x, adj, params["outconv"],
                  params["out_norm_g"], params["out_norm_b"],
                  concat=False, apply_elu=False, log_sm=True)
    return x


# ----------------------------------------------------------------------------
# Main
# ----------------------------------------------------------------------------
if __name__ == "__main__":
    cfg = dict(
        task="Transductive", norm="LayerNorm", att_type="GAT",
        n_feat=32, n_hid=16, n_head=4, n_head_last=2, n_class=8,
        num_layer=3, dropout=0.5, n_layer_dropout=0.0,
    )
    N_NODES, N_EDGES = 128, 512

    key = jax.random.PRNGKey(0)
    kx, ke, k1, k2, k3 = jax.random.split(key, 5)

    x = jax.random.normal(kx, (N_NODES, cfg["n_feat"]), jnp.float32)
    edge_index = jax.random.randint(ke, (2, N_EDGES), 0, N_NODES, jnp.int32)

    hid = cfg["n_hid"] * cfg["n_head"]
    params = dict(
        inconv=init_gat_layer(k1, cfg["n_feat"], cfg["n_hid"], cfg["n_head"],
                              concat=True),
        mid_convs=[init_gat_layer(k2, hid, cfg["n_hid"], cfg["n_head"],
                                  concat=True)
                   for _ in range(cfg["num_layer"] - 2)],
        outconv=init_gat_layer(k3, hid, cfg["n_class"], cfg["n_head_last"],
                               concat=False),
        in_norm_g=jnp.ones((1, hid), jnp.float32),
        in_norm_b=jnp.zeros((1, hid), jnp.float32),
        mid_norm_g=[jnp.ones((1, hid), jnp.float32)
                    for _ in range(cfg["num_layer"] - 2)],
        mid_norm_b=[jnp.zeros((1, hid), jnp.float32)
                    for _ in range(cfg["num_layer"] - 2)],
        out_norm_g=jnp.ones((1, cfg["n_class"]), jnp.float32),
        out_norm_b=jnp.zeros((1, cfg["n_class"]), jnp.float32),
    )

    out = jax.jit(gat_forward)(x, edge_index, params)
    out = jax.block_until_ready(out)

    assert out.shape == (N_NODES, cfg["n_class"])
    assert out.dtype == jnp.float32
    assert bool(jnp.all(jnp.isfinite(out)))
    # log_softmax rows should sum to ~1 in prob space
    assert bool(jnp.allclose(jnp.sum(jnp.exp(out), axis=-1), 1.0, atol=1e-4))
    print("KERNEL_OK")
</pallas_src>

<mosaic_0001>
module attributes {stable_mosaic.version = 11 : i64} {
  func.func private @main(%arg0: i32) attributes {dimension_semantics = [#tpu.dimension_semantics<core_parallel>], iteration_bounds = array<i64: 2>, tpu.core_type = #tpu.core_type<sc_scalar_subcore>, window_params = []} {
    return
  }
}

module attributes {stable_mosaic.version = 11 : i64} {
  func.func private @main(%arg0: i32) attributes {dimension_semantics = [#tpu.dimension_semantics<core_parallel>], iteration_bounds = array<i64: 2>, tpu.core_type = #tpu.core_type<sc_scalar_subcore>, window_params = []} {
    return
  }
}

module attributes {stable_mosaic.version = 11 : i64} {
  func.func @_gat_project_kernel(%arg0: i32, %arg1: memref<128x32xbf16, #tpu.memory_space<vmem>>, %arg2: memref<32x64xbf16, #tpu.memory_space<vmem>>, %arg3: memref<4x64xf32, #tpu.memory_space<vmem>>, %arg4: memref<4x64xf32, #tpu.memory_space<vmem>>, %arg5: memref<128x64xbf16, #tpu.memory_space<vmem>>, %arg6: memref<4x128xf32, #tpu.memory_space<vmem>>, %arg7: memref<128x4xf32, #tpu.memory_space<vmem>>) attributes {dimension_semantics = [#tpu.dimension_semantics<arbitrary>], iteration_bounds = array<i64: 1>, scalar_prefetch = 0 : i64, scratch_operands = 0 : i64, tpu.core_type = #tpu.core_type<tc>, window_params = [{pipeline_mode = #tpu.pipeline_mode<synchronous>, transform_indices = @transform_0, window_bounds = array<i64: 128, 32>}, {pipeline_mode = #tpu.pipeline_mode<synchronous>, transform_indices = @transform_1, window_bounds = array<i64: 32, 64>}, {pipeline_mode = #tpu.pipeline_mode<synchronous>, transform_indices = @transform_2, window_bounds = array<i64: 4, 64>}, {pipeline_mode = #tpu.pipeline_mode<synchronous>, transform_indices = @transform_3, window_bounds = array<i64: 4, 64>}, {pipeline_mode = #tpu.pipeline_mode<synchronous>, transform_indices = @transform_4, window_bounds = array<i64: 128, 64>}, {pipeline_mode = #tpu.pipeline_mode<synchronous>, transform_indices = @transform_5, window_bounds = array<i64: 4, 128>}, {pipeline_mode = #tpu.pipeline_mode<synchronous>, transform_indices = @transform_6, window_bounds = array<i64: 128, 4>}]} {
    %c0 = arith.constant 0 : index
    %c0_0 = arith.constant 0 : index
    %0 = vector.load %arg1[%c0, %c0_0] : memref<128x32xbf16, #tpu.memory_space<vmem>>, vector<128x32xbf16>
    %c0_1 = arith.constant 0 : index
    %c0_2 = arith.constant 0 : index
    %1 = vector.load %arg2[%c0_1, %c0_2] : memref<32x64xbf16, #tpu.memory_space<vmem>>, vector<32x64xbf16>
    %cst = arith.constant dense<0.000000e+00> : vector<128x64xf32>
    %2 = tpu.matmul %0, %1, %cst {dimension_numbers = #tpu.dot_dimension_numbers<[1], [0], [0], [1], [0, 0, 1, 1], [], []>} : vector<128x32xbf16>, vector<32x64xbf16>, vector<128x64xf32> -> vector<128x64xf32>
    %3 = arith.truncf %2 : vector<128x64xf32> to vector<128x64xbf16>
    %c0_3 = arith.constant 0 : index
    %c0_4 = arith.constant 0 : index
    %4 = vector.load %arg5[%c0_3, %c0_4] : memref<128x64xbf16, #tpu.memory_space<vmem>>, vector<128x64xbf16>
    tpu.vector_store %arg5[%c0_3, %c0_4], %3 {strides = array<i32>} : memref<128x64xbf16, #tpu.memory_space<vmem>>, vector<128x64xbf16>,
    %c0_5 = arith.constant 0 : index
    %c0_6 = arith.constant 0 : index
    %5 = vector.load %arg3[%c0_5, %c0_6] : memref<4x64xf32, #tpu.memory_space<vmem>>, vector<4x64xf32>
    %cst_7 = arith.constant dense<0.000000e+00> : vector<4x128xf32>
    %6 = tpu.matmul %5, %2, %cst_7 {dimension_numbers = #tpu.dot_dimension_numbers<[1], [1], [0], [0], [0, 0, 1, 0], [], []>} : vector<4x64xf32>, vector<128x64xf32>, vector<4x128xf32> -> vector<4x128xf32>
    %c0_8 = arith.constant 0 : index
    %c0_9 = arith.constant 0 : index
    %7 = vector.load %arg6[%c0_8, %c0_9] : memref<4x128xf32, #tpu.memory_space<vmem>>, vector<4x128xf32>
    tpu.vector_store %arg6[%c0_8, %c0_9], %6 {strides = array<i32>} : memref<4x128xf32, #tpu.memory_space<vmem>>, vector<4x128xf32>,
    %c0_10 = arith.constant 0 : index
    %c0_11 = arith.constant 0 : index
    %8 = vector.load %arg4[%c0_10, %c0_11] : memref<4x64xf32, #tpu.memory_space<vmem>>, vector<4x64xf32>
    %cst_12 = arith.constant dense<0.000000e+00> : vector<128x4xf32>
    %9 = tpu.matmul %2, %8, %cst_12 {dimension_numbers = #tpu.dot_dimension_numbers<[1], [1], [0], [0], [0, 0, 1, 0], [], []>} : vector<128x64xf32>, vector<4x64xf32>, vector<128x4xf32> -> vector<128x4xf32>
    %c0_13 = arith.constant 0 : index
    %c0_14 = arith.constant 0 : index
    %10 = vector.load %arg7[%c0_13, %c0_14] : memref<128x4xf32, #tpu.memory_space<vmem>>, vector<128x4xf32>
    tpu.vector_store %arg7[%c0_13, %c0_14], %9 {strides = array<i32>} : memref<128x4xf32, #tpu.memory_space<vmem>>, vector<128x4xf32>,
    return
  }
  func.func @transform_0(%arg0: i32) -> (i32, i32) {
    %c0_i32 = arith.constant 0 : i32
    %c0_i32_0 = arith.constant 0 : i32
    %c0_i32_1 = arith.constant 0 : i32
    return %c0_i32, %c0_i32_0 : i32, i32
  }
  func.func @transform_1(%arg0: i32) -> (i32, i32) {
    %c0_i32 = arith.constant 0 : i32
    %c0_i32_0 = arith.constant 0 : i32
    %c0_i32_1 = arith.constant 0 : i32
    return %c0_i32, %c0_i32_0 : i32, i32
  }
  func.func @transform_2(%arg0: i32) -> (i32, i32) {
    %c0_i32 = arith.constant 0 : i32
    %c0_i32_0 = arith.constant 0 : i32
    %c0_i32_1 = arith.constant 0 : i32
    return %c0_i32, %c0_i32_0 : i32, i32
  }
  func.func @transform_3(%arg0: i32) -> (i32, i32) {
    %c0_i32 = arith.constant 0 : i32
    %c0_i32_0 = arith.constant 0 : i32
    %c0_i32_1 = arith.constant 0 : i32
    return %c0_i32, %c0_i32_0 : i32, i32
  }
  func.func @transform_4(%arg0: i32) -> (i32, i32) {
    %c0_i32 = arith.constant 0 : i32
    %c0_i32_0 = arith.constant 0 : i32
    %c0_i32_1 = arith.constant 0 : i32
    return %c0_i32, %c0_i32_0 : i32, i32
  }
  func.func @transform_5(%arg0: i32) -> (i32, i32) {
    %c0_i32 = arith.constant 0 : i32
    %c0_i32_0 = arith.constant 0 : i32
    %c0_i32_1 = arith.constant 0 : i32
    return %c0_i32, %c0_i32_0 : i32, i32
  }
  func.func @transform_6(%arg0: i32) -> (i32, i32) {
    %c0_i32 = arith.constant 0 : i32
    %c0_i32_0 = arith.constant 0 : i32
    %c0_i32_1 = arith.constant 0 : i32
    return %c0_i32, %c0_i32_0 : i32, i32
  }
}

module attributes {stable_mosaic.version = 11 : i64} {
  func.func @_gat_attn_kernel(%arg0: i32, %arg1: memref<128x64xbf16, #tpu.memory_space<vmem>>, %arg2: memref<4x128xf32, #tpu.memory_space<vmem>>, %arg3: memref<128x4xf32, #tpu.memory_space<vmem>>, %arg4: memref<128x128xbf16, #tpu.memory_space<vmem>>, %arg5: memref<1x64xf32, #tpu.memory_space<vmem>>, %arg6: memref<1x64xf32, #tpu.memory_space<vmem>>, %arg7: memref<1x64xf32, #tpu.memory_space<vmem>>, %arg8: memref<128x64xbf16, #tpu.memory_space<vmem>>) attributes {dimension_semantics = [#tpu.dimension_semantics<parallel>], iteration_bounds = array<i64: 1>, scalar_prefetch = 0 : i64, scratch_operands = 0 : i64, tpu.core_type = #tpu.core_type<tc>, window_params = [{pipeline_mode = #tpu.pipeline_mode<synchronous>, transform_indices = @transform_0, window_bounds = array<i64: 128, 64>}, {pipeline_mode = #tpu.pipeline_mode<synchronous>, transform_indices = @transform_1, window_bounds = array<i64: 4, 128>}, {transform_indices = @transform_2, window_bounds = array<i64: 128, 4>}, {transform_indices = @transform_3, window_bounds = array<i64: 128, 128>}, {pipeline_mode = #tpu.pipeline_mode<synchronous>, transform_indices = @transform_4, window_bounds = array<i64: 1, 64>}, {pipeline_mode = #tpu.pipeline_mode<synchronous>, transform_indices = @transform_5, window_bounds = array<i64: 1, 64>}, {pipeline_mode = #tpu.pipeline_mode<synchronous>, transform_indices = @transform_6, window_bounds = array<i64: 1, 64>}, {transform_indices = @transform_7, window_bounds = array<i64: 128, 64>}]} {
    %c0 = arith.constant 0 : index
    %c0_0 = arith.constant 0 : index
    %0 = vector.load %arg2[%c0, %c0_0] : memref<4x128xf32, #tpu.memory_space<vmem>>, vector<4x128xf32>
    %c0_1 = arith.constant 0 : index
    %c0_2 = arith.constant 0 : index
    %1 = vector.load %arg3[%c0_1, %c0_2] : memref<128x4xf32, #tpu.memory_space<vmem>>, vector<128x4xf32>
    %c0_3 = arith.constant 0 : index
    %c0_4 = arith.constant 0 : index
    %2 = vector.load %arg4[%c0_3, %c0_4] : memref<128x128xbf16, #tpu.memory_space<vmem>>, vector<128x128xbf16>
    %3 = arith.extf %2 : vector<128x128xbf16> to vector<128x128xf32>
    %cst = arith.constant dense<0xFF800000> : vector<4xf32>
    %4 = vector.multi_reduction <maximumf>, %0, %cst [1] : vector<4x128xf32> to vector<4xf32>
    %5 = vector.shape_cast %4 : vector<4xf32> to vector<4x1xf32>
    %6 = vector.extract_strided_slice %1 {offsets = [0, 0], sizes = [128, 1], strides = [1, 1]} : vector<128x4xf32> to vector<128x1xf32>
    %7 = vector.extract_strided_slice %0 {offsets = [0, 0], sizes = [1, 128], strides = [1, 1]} : vector<4x128xf32> to vector<1x128xf32>
    %8 = vector.broadcast %6 : vector<128x1xf32> to vector<128x128xf32>
    %9 = vector.broadcast %7 : vector<1x128xf32> to vector<128x128xf32>
    %10 = arith.addf %8, %9 : vector<128x128xf32>
    %cst_5 = arith.constant 2.000000e-01 : f32
    %11 = vector.broadcast %cst_5 : f32 to vector<128x128xf32>
    %12 = arith.mulf %11, %10 : vector<128x128xf32>
    %13 = arith.maximumf %10, %12 : vector<128x128xf32>
    %14 = vector.extract_strided_slice %5 {offsets = [0, 0], sizes = [1, 1], strides = [1, 1]} : vector<4x1xf32> to vector<1x1xf32>
    %15 = vector.broadcast %14 : vector<1x1xf32> to vector<128x1xf32>
    %16 = arith.addf %6, %15 : vector<128x1xf32>
    %cst_6 = arith.constant 2.000000e-01 : f32
    %17 = vector.broadcast %cst_6 : f32 to vector<128x1xf32>
    %18 = arith.mulf %17, %16 : vector<128x1xf32>
    %19 = arith.maximumf %16, %18 : vector<128x1xf32>
    %20 = vector.broadcast %19 : vector<128x1xf32> to vector<128x128xf32>
    %21 = arith.subf %13, %20 : vector<128x128xf32>
    %22 = math.exp %21 : vector<128x128xf32>
    %23 = arith.mulf %3, %22 : vector<128x128xf32>
    %cst_7 = arith.constant dense<0.000000e+00> : vector<128xf32>
    %24 = vector.multi_reduction <add>, %23, %cst_7 [1] : vector<128x128xf32> to vector<128xf32>
    %25 = vector.shape_cast %24 : vector<128xf32> to vector<128x1xf32>
    %26 = tpu.reciprocal %25 {approx = true} : vector<128x1xf32> -> vector<128x1xf32>
    %27 = vector.broadcast %26 : vector<128x1xf32> to vector<128x128xf32>
    %28 = arith.mulf %23, %27 : vector<128x128xf32>
    %29 = arith.truncf %28 : vector<128x128xf32> to vector<128x128xbf16>
    %c0_8 = arith.constant 0 : index
    %c0_9 = arith.constant 0 : index
    %30 = vector.load %arg1[%c0_8, %c0_9] : memref<128x64xbf16, #tpu.memory_space<vmem>>, vector<128x16xbf16>
    %cst_10 = arith.constant dense<0.000000e+00> : vector<128x16xf32>
    %31 = tpu.matmul %29, %30, %cst_10 {dimension_numbers = #tpu.dot_dimension_numbers<[1], [0], [0], [1], [0, 0, 1, 1], [], []>} : vector<128x128xbf16>, vector<128x16xbf16>, vector<128x16xf32> -> vector<128x16xf32>
    %32 = vector.extract_strided_slice %1 {offsets = [0, 1], sizes = [128, 1], strides = [1, 1]} : vector<128x4xf32> to vector<128x1xf32>
    %33 = vector.extract_strided_slice %0 {offsets = [1, 0], sizes = [1, 128], strides = [1, 1]} : vector<4x128xf32> to vector<1x128xf32>
    %34 = vector.broadcast %32 : vector<128x1xf32> to vector<128x128xf32>
    %35 = vector.broadcast %33 : vector<1x128xf32> to vector<128x128xf32>
    %36 = arith.addf %34, %35 : vector<128x128xf32>
    %cst_11 = arith.constant 2.000000e-01 : f32
    %37 = vector.broadcast %cst_11 : f32 to vector<128x128xf32>
    %38 = arith.mulf %37, %36 : vector<128x128xf32>
    %39 = arith.maximumf %36, %38 : vector<128x128xf32>
    %40 = vector.extract_strided_slice %5 {offsets = [1, 0], sizes = [1, 1], strides = [1, 1]} : vector<4x1xf32> to vector<1x1xf32>
    %41 = vector.broadcast %40 : vector<1x1xf32> to vector<128x1xf32>
    %42 = arith.addf %32, %41 : vector<128x1xf32>
    %cst_12 = arith.constant 2.000000e-01 : f32
    %43 = vector.broadcast %cst_12 : f32 to vector<128x1xf32>
    %44 = arith.mulf %43, %42 : vector<128x1xf32>
    %45 = arith.maximumf %42, %44 : vector<128x1xf32>
    %46 = vector.broadcast %45 : vector<128x1xf32> to vector<128x128xf32>
    %47 = arith.subf %39, %46 : vector<128x128xf32>
    %48 = math.exp %47 : vector<128x128xf32>
    %49 = arith.mulf %3, %48 : vector<128x128xf32>
    %cst_13 = arith.constant dense<0.000000e+00> : vector<128xf32>
    %50 = vector.multi_reduction <add>, %49, %cst_13 [1] : vector<128x128xf32> to vector<128xf32>
    %51 = vector.shape_cast %50 : vector<128xf32> to vector<128x1xf32>
    %52 = tpu.reciprocal %51 {approx = true} : vector<128x1xf32> -> vector<128x1xf32>
    %53 = vector.broadcast %52 : vector<128x1xf32> to vector<128x128xf32>
    %54 = arith.mulf %49, %53 : vector<128x128xf32>
    %55 = arith.truncf %54 : vector<128x128xf32> to vector<128x128xbf16>
    %c0_14 = arith.constant 0 : index
    %c16 = arith.constant 16 : index
    %56 = vector.load %arg1[%c0_14, %c16] : memref<128x64xbf16, #tpu.memory_space<vmem>>, vector<128x16xbf16>
    %cst_15 = arith.constant dense<0.000000e+00> : vector<128x16xf32>
    %57 = tpu.matmul %55, %56, %cst_15 {dimension_numbers = #tpu.dot_dimension_numbers<[1], [0], [0], [1], [0, 0, 1, 1], [], []>} : vector<128x128xbf16>, vector<128x16xbf16>, vector<128x16xf32> -> vector<128x16xf32>
    %58 = vector.extract_strided_slice %1 {offsets = [0, 2], sizes = [128, 1], strides = [1, 1]} : vector<128x4xf32> to vector<128x1xf32>
    %59 = vector.extract_strided_slice %0 {offsets = [2, 0], sizes = [1, 128], strides = [1, 1]} : vector<4x128xf32> to vector<1x128xf32>
    %60 = vector.broadcast %58 : vector<128x1xf32> to vector<128x128xf32>
    %61 = vector.broadcast %59 : vector<1x128xf32> to vector<128x128xf32>
    %62 = arith.addf %60, %61 : vector<128x128xf32>
    %cst_16 = arith.constant 2.000000e-01 : f32
    %63 = vector.broadcast %cst_16 : f32 to vector<128x128xf32>
    %64 = arith.mulf %63, %62 : vector<128x128xf32>
    %65 = arith.maximumf %62, %64 : vector<128x128xf32>
    %66 = vector.extract_strided_slice %5 {offsets = [2, 0], sizes = [1, 1], strides = [1, 1]} : vector<4x1xf32> to vector<1x1xf32>
    %67 = vector.broadcast %66 : vector<1x1xf32> to vector<128x1xf32>
    %68 = arith.addf %58, %67 : vector<128x1xf32>
    %cst_17 = arith.constant 2.000000e-01 : f32
    %69 = vector.broadcast %cst_17 : f32 to vector<128x1xf32>
    %70 = arith.mulf %69, %68 : vector<128x1xf32>
    %71 = arith.maximumf %68, %70 : vector<128x1xf32>
    %72 = vector.broadcast %71 : vector<128x1xf32> to vector<128x128xf32>
    %73 = arith.subf %65, %72 : vector<128x128xf32>
    %74 = math.exp %73 : vector<128x128xf32>
    %75 = arith.mulf %3, %74 : vector<128x128xf32>
    %cst_18 = arith.constant dense<0.000000e+00> : vector<128xf32>
    %76 = vector.multi_reduction <add>, %75, %cst_18 [1] : vector<128x128xf32> to vector<128xf32>
    %77 = vector.shape_cast %76 : vector<128xf32> to vector<128x1xf32>
    %78 = tpu.reciprocal %77 {approx = true} : vector<128x1xf32> -> vector<128x1xf32>
    %79 = vector.broadcast %78 : vector<128x1xf32> to vector<128x128xf32>
    %80 = arith.mulf %75, %79 : vector<128x128xf32>
    %81 = arith.truncf %80 : vector<128x128xf32> to vector<128x128xbf16>
    %c0_19 = arith.constant 0 : index
    %c32 = arith.constant 32 : index
    %82 = vector.load %arg1[%c0_19, %c32] : memref<128x64xbf16, #tpu.memory_space<vmem>>, vector<128x16xbf16>
    %cst_20 = arith.constant dense<0.000000e+00> : vector<128x16xf32>
    %83 = tpu.matmul %81, %82, %cst_20 {dimension_numbers = #tpu.dot_dimension_numbers<[1], [0], [0], [1], [0, 0, 1, 1], [], []>} : vector<128x128xbf16>, vector<128x16xbf16>, vector<128x16xf32> -> vector<128x16xf32>
    %84 = vector.extract_strided_slice %1 {offsets = [0, 3], sizes = [128, 1], strides = [1, 1]} : vector<128x4xf32> to vector<128x1xf32>
    %85 = vector.extract_strided_slice %0 {offsets = [3, 0], sizes = [1, 128], strides = [1, 1]} : vector<4x128xf32> to vector<1x128xf32>
    %86 = vector.broadcast %84 : vector<128x1xf32> to vector<128x128xf32>
    %87 = vector.broadcast %85 : vector<1x128xf32> to vector<128x128xf32>
    %88 = arith.addf %86, %87 : vector<128x128xf32>
    %cst_21 = arith.constant 2.000000e-01 : f32
    %89 = vector.broadcast %cst_21 : f32 to vector<128x128xf32>
    %90 = arith.mulf %89, %88 : vector<128x128xf32>
    %91 = arith.maximumf %88, %90 : vector<128x128xf32>
    %92 = vector.extract_strided_slice %5 {offsets = [3, 0], sizes = [1, 1], strides = [1, 1]} : vector<4x1xf32> to vector<1x1xf32>
    %93 = vector.broadcast %92 : vector<1x1xf32> to vector<128x1xf32>
    %94 = arith.addf %84, %93 : vector<128x1xf32>
    %cst_22 = arith.constant 2.000000e-01 : f32
    %95 = vector.broadcast %cst_22 : f32 to vector<128x1xf32>
    %96 = arith.mulf %95, %94 : vector<128x1xf32>
    %97 = arith.maximumf %94, %96 : vector<128x1xf32>
    %98 = vector.broadcast %97 : vector<128x1xf32> to vector<128x128xf32>
    %99 = arith.subf %91, %98 : vector<128x128xf32>
    %100 = math.exp %99 : vector<128x128xf32>
    %101 = arith.mulf %3, %100 : vector<128x128xf32>
    %cst_23 = arith.constant dense<0.000000e+00> : vector<128xf32>
    %102 = vector.multi_reduction <add>, %101, %cst_23 [1] : vector<128x128xf32> to vector<128xf32>
    %103 = vector.shape_cast %102 : vector<128xf32> to vector<128x1xf32>
    %104 = tpu.reciprocal %103 {approx = true} : vector<128x1xf32> -> vector<128x1xf32>
    %105 = vector.broadcast %104 : vector<128x1xf32> to vector<128x128xf32>
    %106 = arith.mulf %101, %105 : vector<128x128xf32>
    %107 = arith.truncf %106 : vector<128x128xf32> to vector<128x128xbf16>
    %c0_24 = arith.constant 0 : index
    %c48 = arith.constant 48 : index
    %108 = vector.load %arg1[%c0_24, %c48] : memref<128x64xbf16, #tpu.memory_space<vmem>>, vector<128x16xbf16>
    %cst_25 = arith.constant dense<0.000000e+00> : vector<128x16xf32>
    %109 = tpu.matmul %107, %108, %cst_25 {dimension_numbers = #tpu.dot_dimension_numbers<[1], [0], [0], [1], [0, 0, 1, 1], [], []>} : vector<128x128xbf16>, vector<128x16xbf16>, vector<128x16xf32> -> vector<128x16xf32>
    %110 = tpu.concatenate %31, %57, %83, %109 in 1 : vector<128x16xf32>, vector<128x16xf32>, vector<128x16xf32>, vector<128x16xf32> -> vector<128x64xf32>
    %c0_26 = arith.constant 0 : index
    %c0_27 = arith.constant 0 : index
    %111 = vector.load %arg5[%c0_26, %c0_27] : memref<1x64xf32, #tpu.memory_space<vmem>>, vector<1x64xf32>
    %112 = vector.broadcast %111 : vector<1x64xf32> to vector<128x64xf32>
    %113 = arith.addf %110, %112 : vector<128x64xf32>
    %cst_28 = arith.constant dense<0.000000e+00> : vector<128xf32>
    %114 = vector.multi_reduction <add>, %113, %cst_28 [1] : vector<128x64xf32> to vector<128xf32>
    %115 = vector.shape_cast %114 : vector<128xf32> to vector<128x1xf32>
    %cst_29 = arith.constant 6.400000e+01 : f32
    %116 = vector.broadcast %cst_29 : f32 to vector<128x1xf32>
    %117 = arith.divf %115, %116 : vector<128x1xf32>
    %118 = vector.broadcast %117 : vector<128x1xf32> to vector<128x64xf32>
    %119 = arith.subf %113, %118 : vector<128x64xf32>
    %120 = arith.mulf %119, %119 : vector<128x64xf32>
    %cst_30 = arith.constant dense<0.000000e+00> : vector<128xf32>
    %121 = vector.multi_reduction <add>, %120, %cst_30 [1] : vector<128x64xf32> to vector<128xf32>
    %122 = vector.shape_cast %121 : vector<128xf32> to vector<128x1xf32>
    %cst_31 = arith.constant 6.400000e+01 : f32
    %123 = vector.broadcast %cst_31 : f32 to vector<128x1xf32>
    %124 = arith.divf %122, %123 : vector<128x1xf32>
    %125 = vector.broadcast %117 : vector<128x1xf32> to vector<128x64xf32>
    %126 = arith.subf %113, %125 : vector<128x64xf32>
    %cst_32 = arith.constant 9.99999974E-6 : f32
    %127 = vector.broadcast %cst_32 : f32 to vector<128x1xf32>
    %128 = arith.addf %124, %127 : vector<128x1xf32>
    %129 = math.rsqrt %128 : vector<128x1xf32>
    %130 = vector.broadcast %129 : vector<128x1xf32> to vector<128x64xf32>
    %131 = arith.mulf %126, %130 : vector<128x64xf32>
    %c0_33 = arith.constant 0 : index
    %c0_34 = arith.constant 0 : index
    %132 = vector.load %arg6[%c0_33, %c0_34] : memref<1x64xf32, #tpu.memory_space<vmem>>, vector<1x64xf32>
    %133 = vector.broadcast %132 : vector<1x64xf32> to vector<128x64xf32>
    %134 = arith.mulf %131, %133 : vector<128x64xf32>
    %c0_35 = arith.constant 0 : index
    %c0_36 = arith.constant 0 : index
    %135 = vector.load %arg7[%c0_35, %c0_36] : memref<1x64xf32, #tpu.memory_space<vmem>>, vector<1x64xf32>
    %136 = vector.broadcast %135 : vector<1x64xf32> to vector<128x64xf32>
    %137 = arith.addf %134, %136 : vector<128x64xf32>
    %cst_37 = arith.constant 0.000000e+00 : f32
    %138 = vector.broadcast %cst_37 : f32 to vector<128x64xf32>
    %139 = arith.cmpf ogt, %137, %138 : vector<128x64xf32>
    %140 = math.exp %137 : vector<128x64xf32>
    %cst_38 = arith.constant 1.000000e+00 : f32
    %141 = vector.broadcast %cst_38 : f32 to vector<128x64xf32>
    %142 = arith.subf %140, %141 : vector<128x64xf32>
    %143 = arith.select %139, %137, %142 : vector<128x64xi1>, vector<128x64xf32>
    %144 = arith.truncf %143 : vector<128x64xf32> to vector<128x64xbf16>
    %c0_39 = arith.constant 0 : index
    %c0_40 = arith.constant 0 : index
    %145 = vector.load %arg8[%c0_39, %c0_40] : memref<128x64xbf16, #tpu.memory_space<vmem>>, vector<128x64xbf16>
    tpu.vector_store %arg8[%c0_39, %c0_40], %144 {strides = array<i32>} : memref<128x64xbf16, #tpu.memory_space<vmem>>, vector<128x64xbf16>,
    return
  }
  func.func @transform_0(%arg0: i32) -> (i32, i32) {
    %c0_i32 = arith.constant 0 : i32
    %c0_i32_0 = arith.constant 0 : i32
    %c0_i32_1 = arith.constant 0 : i32
    return %c0_i32, %c0_i32_0 : i32, i32
  }
  func.func @transform_1(%arg0: i32) -> (i32, i32) {
    %c0_i32 = arith.constant 0 : i32
    %c0_i32_0 = arith.constant 0 : i32
    %c0_i32_1 = arith.constant 0 : i32
    return %c0_i32, %c0_i32_0 : i32, i32
  }
  func.func @transform_2(%arg0: i32) -> (i32, i32) {
    %c0_i32 = arith.constant 0 : i32
    %c0_i32_0 = arith.constant 0 : i32
    return %arg0, %c0_i32 : i32, i32
  }
  func.func @transform_3(%arg0: i32) -> (i32, i32) {
    %c0_i32 = arith.constant 0 : i32
    %c0_i32_0 = arith.constant 0 : i32
    return %arg0, %c0_i32 : i32, i32
  }
  func.func @transform_4(%arg0: i32) -> (i32, i32) {
    %c0_i32 = arith.constant 0 : i32
    %c0_i32_0 = arith.constant 0 : i32
    %c0_i32_1 = arith.constant 0 : i32
    return %c0_i32, %c0_i32_0 : i32, i32
  }
  func.func @transform_5(%arg0: i32) -> (i32, i32) {
    %c0_i32 = arith.constant 0 : i32
    %c0_i32_0 = arith.constant 0 : i32
    %c0_i32_1 = arith.constant 0 : i32
    return %c0_i32, %c0_i32_0 : i32, i32
  }
  func.func @transform_6(%arg0: i32) -> (i32, i32) {
    %c0_i32 = arith.constant 0 : i32
    %c0_i32_0 = arith.constant 0 : i32
    %c0_i32_1 = arith.constant 0 : i32
    return %c0_i32, %c0_i32_0 : i32, i32
  }
  func.func @transform_7(%arg0: i32) -> (i32, i32) {
    %c0_i32 = arith.constant 0 : i32
    %c0_i32_0 = arith.constant 0 : i32
    return %arg0, %c0_i32 : i32, i32
  }
}

module attributes {stable_mosaic.version = 11 : i64} {
  func.func @_gat_project_kernel(%arg0: i32, %arg1: memref<128x64xbf16, #tpu.memory_space<vmem>>, %arg2: memref<64x64xbf16, #tpu.memory_space<vmem>>, %arg3: memref<4x64xf32, #tpu.memory_space<vmem>>, %arg4: memref<4x64xf32, #tpu.memory_space<vmem>>, %arg5: memref<128x64xbf16, #tpu.memory_space<vmem>>, %arg6: memref<4x128xf32, #tpu.memory_space<vmem>>, %arg7: memref<128x4xf32, #tpu.memory_space<vmem>>) attributes {dimension_semantics = [#tpu.dimension_semantics<arbitrary>], iteration_bounds = array<i64: 1>, scalar_prefetch = 0 : i64, scratch_operands = 0 : i64, tpu.core_type = #tpu.core_type<tc>, window_params = [{pipeline_mode = #tpu.pipeline_mode<synchronous>, transform_indices = @transform_0, window_bounds = array<i64: 128, 64>}, {pipeline_mode = #tpu.pipeline_mode<synchronous>, transform_indices = @transform_1, window_bounds = array<i64: 64, 64>}, {pipeline_mode = #tpu.pipeline_mode<synchronous>, transform_indices = @transform_2, window_bounds = array<i64: 4, 64>}, {pipeline_mode = #tpu.pipeline_mode<synchronous>, transform_indices = @transform_3, window_bounds = array<i64: 4, 64>}, {pipeline_mode = #tpu.pipeline_mode<synchronous>, transform_indices = @transform_4, window_bounds = array<i64: 128, 64>}, {pipeline_mode = #tpu.pipeline_mode<synchronous>, transform_indices = @transform_5, window_bounds = array<i64: 4, 128>}, {pipeline_mode = #tpu.pipeline_mode<synchronous>, transform_indices = @transform_6, window_bounds = array<i64: 128, 4>}]} {
    %c0 = arith.constant 0 : index
    %c0_0 = arith.constant 0 : index
    %0 = vector.load %arg1[%c0, %c0_0] : memref<128x64xbf16, #tpu.memory_space<vmem>>, vector<128x64xbf16>
    %c0_1 = arith.constant 0 : index
    %c0_2 = arith.constant 0 : index
    %1 = vector.load %arg2[%c0_1, %c0_2] : memref<64x64xbf16, #tpu.memory_space<vmem>>, vector<64x64xbf16>
    %cst = arith.constant dense<0.000000e+00> : vector<128x64xf32>
    %2 = tpu.matmul %0, %1, %cst {dimension_numbers = #tpu.dot_dimension_numbers<[1], [0], [0], [1], [0, 0, 1, 1], [], []>} : vector<128x64xbf16>, vector<64x64xbf16>, vector<128x64xf32> -> vector<128x64xf32>
    %3 = arith.truncf %2 : vector<128x64xf32> to vector<128x64xbf16>
    %c0_3 = arith.constant 0 : index
    %c0_4 = arith.constant 0 : index
    %4 = vector.load %arg5[%c0_3, %c0_4] : memref<128x64xbf16, #tpu.memory_space<vmem>>, vector<128x64xbf16>
    tpu.vector_store %arg5[%c0_3, %c0_4], %3 {strides = array<i32>} : memref<128x64xbf16, #tpu.memory_space<vmem>>, vector<128x64xbf16>,
    %c0_5 = arith.constant 0 : index
    %c0_6 = arith.constant 0 : index
    %5 = vector.load %arg3[%c0_5, %c0_6] : memref<4x64xf32, #tpu.memory_space<vmem>>, vector<4x64xf32>
    %cst_7 = arith.constant dense<0.000000e+00> : vector<4x128xf32>
    %6 = tpu.matmul %5, %2, %cst_7 {dimension_numbers = #tpu.dot_dimension_numbers<[1], [1], [0], [0], [0, 0, 1, 0], [], []>} : vector<4x64xf32>, vector<128x64xf32>, vector<4x128xf32> -> vector<4x128xf32>
    %c0_8 = arith.constant 0 : index
    %c0_9 = arith.constant 0 : index
    %7 = vector.load %arg6[%c0_8, %c0_9] : memref<4x128xf32, #tpu.memory_space<vmem>>, vector<4x128xf32>
    tpu.vector_store %arg6[%c0_8, %c0_9], %6 {strides = array<i32>} : memref<4x128xf32, #tpu.memory_space<vmem>>, vector<4x128xf32>,
    %c0_10 = arith.constant 0 : index
    %c0_11 = arith.constant 0 : index
    %8 = vector.load %arg4[%c0_10, %c0_11] : memref<4x64xf32, #tpu.memory_space<vmem>>, vector<4x64xf32>
    %cst_12 = arith.constant dense<0.000000e+00> : vector<128x4xf32>
    %9 = tpu.matmul %2, %8, %cst_12 {dimension_numbers = #tpu.dot_dimension_numbers<[1], [1], [0], [0], [0, 0, 1, 0], [], []>} : vector<128x64xf32>, vector<4x64xf32>, vector<128x4xf32> -> vector<128x4xf32>
    %c0_13 = arith.constant 0 : index
    %c0_14 = arith.constant 0 : index
    %10 = vector.load %arg7[%c0_13, %c0_14] : memref<128x4xf32, #tpu.memory_space<vmem>>, vector<128x4xf32>
    tpu.vector_store %arg7[%c0_13, %c0_14], %9 {strides = array<i32>} : memref<128x4xf32, #tpu.memory_space<vmem>>, vector<128x4xf32>,
    return
  }
  func.func @transform_0(%arg0: i32) -> (i32, i32) {
    %c0_i32 = arith.constant 0 : i32
    %c0_i32_0 = arith.constant 0 : i32
    %c0_i32_1 = arith.constant 0 : i32
    return %c0_i32, %c0_i32_0 : i32, i32
  }
  func.func @transform_1(%arg0: i32) -> (i32, i32) {
    %c0_i32 = arith.constant 0 : i32
    %c0_i32_0 = arith.constant 0 : i32
    %c0_i32_1 = arith.constant 0 : i32
    return %c0_i32, %c0_i32_0 : i32, i32
  }
  func.func @transform_2(%arg0: i32) -> (i32, i32) {
    %c0_i32 = arith.constant 0 : i32
    %c0_i32_0 = arith.constant 0 : i32
    %c0_i32_1 = arith.constant 0 : i32
    return %c0_i32, %c0_i32_0 : i32, i32
  }
  func.func @transform_3(%arg0: i32) -> (i32, i32) {
    %c0_i32 = arith.constant 0 : i32
    %c0_i32_0 = arith.constant 0 : i32
    %c0_i32_1 = arith.constant 0 : i32
    return %c0_i32, %c0_i32_0 : i32, i32
  }
  func.func @transform_4(%arg0: i32) -> (i32, i32) {
    %c0_i32 = arith.constant 0 : i32
    %c0_i32_0 = arith.constant 0 : i32
    %c0_i32_1 = arith.constant 0 : i32
    return %c0_i32, %c0_i32_0 : i32, i32
  }
  func.func @transform_5(%arg0: i32) -> (i32, i32) {
    %c0_i32 = arith.constant 0 : i32
    %c0_i32_0 = arith.constant 0 : i32
    %c0_i32_1 = arith.constant 0 : i32
    return %c0_i32, %c0_i32_0 : i32, i32
  }
  func.func @transform_6(%arg0: i32) -> (i32, i32) {
    %c0_i32 = arith.constant 0 : i32
    %c0_i32_0 = arith.constant 0 : i32
    %c0_i32_1 = arith.constant 0 : i32
    return %c0_i32, %c0_i32_0 : i32, i32
  }
}

module attributes {stable_mosaic.version = 11 : i64} {
  func.func @_gat_project_kernel(%arg0: i32, %arg1: memref<128x64xbf16, #tpu.memory_space<vmem>>, %arg2: memref<64x16xbf16, #tpu.memory_space<vmem>>, %arg3: memref<2x16xf32, #tpu.memory_space<vmem>>, %arg4: memref<2x16xf32, #tpu.memory_space<vmem>>, %arg5: memref<128x16xbf16, #tpu.memory_space<vmem>>, %arg6: memref<2x128xf32, #tpu.memory_space<vmem>>, %arg7: memref<128x2xf32, #tpu.memory_space<vmem>>) attributes {dimension_semantics = [#tpu.dimension_semantics<arbitrary>], iteration_bounds = array<i64: 1>, scalar_prefetch = 0 : i64, scratch_operands = 0 : i64, tpu.core_type = #tpu.core_type<tc>, window_params = [{pipeline_mode = #tpu.pipeline_mode<synchronous>, transform_indices = @transform_0, window_bounds = array<i64: 128, 64>}, {pipeline_mode = #tpu.pipeline_mode<synchronous>, transform_indices = @transform_1, window_bounds = array<i64: 64, 16>}, {pipeline_mode = #tpu.pipeline_mode<synchronous>, transform_indices = @transform_2, window_bounds = array<i64: 2, 16>}, {pipeline_mode = #tpu.pipeline_mode<synchronous>, transform_indices = @transform_3, window_bounds = array<i64: 2, 16>}, {pipeline_mode = #tpu.pipeline_mode<synchronous>, transform_indices = @transform_4, window_bounds = array<i64: 128, 16>}, {pipeline_mode = #tpu.pipeline_mode<synchronous>, transform_indices = @transform_5, window_bounds = array<i64: 2, 128>}, {pipeline_mode = #tpu.pipeline_mode<synchronous>, transform_indices = @transform_6, window_bounds = array<i64: 128, 2>}]} {
    %c0 = arith.constant 0 : index
    %c0_0 = arith.constant 0 : index
    %0 = vector.load %arg1[%c0, %c0_0] : memref<128x64xbf16, #tpu.memory_space<vmem>>, vector<128x64xbf16>
    %c0_1 = arith.constant 0 : index
    %c0_2 = arith.constant 0 : index
    %1 = vector.load %arg2[%c0_1, %c0_2] : memref<64x16xbf16, #tpu.memory_space<vmem>>, vector<64x16xbf16>
    %cst = arith.constant dense<0.000000e+00> : vector<128x16xf32>
    %2 = tpu.matmul %0, %1, %cst {dimension_numbers = #tpu.dot_dimension_numbers<[1], [0], [0], [1], [0, 0, 1, 1], [], []>} : vector<128x64xbf16>, vector<64x16xbf16>, vector<128x16xf32> -> vector<128x16xf32>
    %3 = arith.truncf %2 : vector<128x16xf32> to vector<128x16xbf16>
    %c0_3 = arith.constant 0 : index
    %c0_4 = arith.constant 0 : index
    %4 = vector.load %arg5[%c0_3, %c0_4] : memref<128x16xbf16, #tpu.memory_space<vmem>>, vector<128x16xbf16>
    tpu.vector_store %arg5[%c0_3, %c0_4], %3 {strides = array<i32>} : memref<128x16xbf16, #tpu.memory_space<vmem>>, vector<128x16xbf16>,
    %c0_5 = arith.constant 0 : index
    %c0_6 = arith.constant 0 : index
    %5 = vector.load %arg3[%c0_5, %c0_6] : memref<2x16xf32, #tpu.memory_space<vmem>>, vector<2x16xf32>
    %cst_7 = arith.constant dense<0.000000e+00> : vector<2x128xf32>
    %6 = tpu.matmul %5, %2, %cst_7 {dimension_numbers = #tpu.dot_dimension_numbers<[1], [1], [0], [0], [0, 0, 1, 0], [], []>} : vector<2x16xf32>, vector<128x16xf32>, vector<2x128xf32> -> vector<2x128xf32>
    %c0_8 = arith.constant 0 : index
    %c0_9 = arith.constant 0 : index
    %7 = vector.load %arg6[%c0_8, %c0_9] : memref<2x128xf32, #tpu.memory_space<vmem>>, vector<2x128xf32>
    tpu.vector_store %arg6[%c0_8, %c0_9], %6 {strides = array<i32>} : memref<2x128xf32, #tpu.memory_space<vmem>>, vector<2x128xf32>,
    %c0_10 = arith.constant 0 : index
    %c0_11 = arith.constant 0 : index
    %8 = vector.load %arg4[%c0_10, %c0_11] : memref<2x16xf32, #tpu.memory_space<vmem>>, vector<2x16xf32>
    %cst_12 = arith.constant dense<0.000000e+00> : vector<128x2xf32>
    %9 = tpu.matmul %2, %8, %cst_12 {dimension_numbers = #tpu.dot_dimension_numbers<[1], [1], [0], [0], [0, 0, 1, 0], [], []>} : vector<128x16xf32>, vector<2x16xf32>, vector<128x2xf32> -> vector<128x2xf32>
    %c0_13 = arith.constant 0 : index
    %c0_14 = arith.constant 0 : index
    %10 = vector.load %arg7[%c0_13, %c0_14] : memref<128x2xf32, #tpu.memory_space<vmem>>, vector<128x2xf32>
    tpu.vector_store %arg7[%c0_13, %c0_14], %9 {strides = array<i32>} : memref<128x2xf32, #tpu.memory_space<vmem>>, vector<128x2xf32>,
    return
  }
  func.func @transform_0(%arg0: i32) -> (i32, i32) {
    %c0_i32 = arith.constant 0 : i32
    %c0_i32_0 = arith.constant 0 : i32
    %c0_i32_1 = arith.constant 0 : i32
    return %c0_i32, %c0_i32_0 : i32, i32
  }
  func.func @transform_1(%arg0: i32) -> (i32, i32) {
    %c0_i32 = arith.constant 0 : i32
    %c0_i32_0 = arith.constant 0 : i32
    %c0_i32_1 = arith.constant 0 : i32
    return %c0_i32, %c0_i32_0 : i32, i32
  }
  func.func @transform_2(%arg0: i32) -> (i32, i32) {
    %c0_i32 = arith.constant 0 : i32
    %c0_i32_0 = arith.constant 0 : i32
    %c0_i32_1 = arith.constant 0 : i32
    return %c0_i32, %c0_i32_0 : i32, i32
  }
  func.func @transform_3(%arg0: i32) -> (i32, i32) {
    %c0_i32 = arith.constant 0 : i32
    %c0_i32_0 = arith.constant 0 : i32
    %c0_i32_1 = arith.constant 0 : i32
    return %c0_i32, %c0_i32_0 : i32, i32
  }
  func.func @transform_4(%arg0: i32) -> (i32, i32) {
    %c0_i32 = arith.constant 0 : i32
    %c0_i32_0 = arith.constant 0 : i32
    %c0_i32_1 = arith.constant 0 : i32
    return %c0_i32, %c0_i32_0 : i32, i32
  }
  func.func @transform_5(%arg0: i32) -> (i32, i32) {
    %c0_i32 = arith.constant 0 : i32
    %c0_i32_0 = arith.constant 0 : i32
    %c0_i32_1 = arith.constant 0 : i32
    return %c0_i32, %c0_i32_0 : i32, i32
  }
  func.func @transform_6(%arg0: i32) -> (i32, i32) {
    %c0_i32 = arith.constant 0 : i32
    %c0_i32_0 = arith.constant 0 : i32
    %c0_i32_1 = arith.constant 0 : i32
    return %c0_i32, %c0_i32_0 : i32, i32
  }
}

module attributes {stable_mosaic.version = 11 : i64} {
  func.func @_gat_attn_kernel(%arg0: i32, %arg1: memref<128x16xbf16, #tpu.memory_space<vmem>>, %arg2: memref<2x128xf32, #tpu.memory_space<vmem>>, %arg3: memref<128x2xf32, #tpu.memory_space<vmem>>, %arg4: memref<128x128xbf16, #tpu.memory_space<vmem>>, %arg5: memref<1x8xf32, #tpu.memory_space<vmem>>, %arg6: memref<1x8xf32, #tpu.memory_space<vmem>>, %arg7: memref<1x8xf32, #tpu.memory_space<vmem>>, %arg8: memref<128x8xf32, #tpu.memory_space<vmem>>) attributes {dimension_semantics = [#tpu.dimension_semantics<parallel>], iteration_bounds = array<i64: 1>, scalar_prefetch = 0 : i64, scratch_operands = 0 : i64, tpu.core_type = #tpu.core_type<tc>, window_params = [{pipeline_mode = #tpu.pipeline_mode<synchronous>, transform_indices = @transform_0, window_bounds = array<i64: 128, 16>}, {pipeline_mode = #tpu.pipeline_mode<synchronous>, transform_indices = @transform_1, window_bounds = array<i64: 2, 128>}, {transform_indices = @transform_2, window_bounds = array<i64: 128, 2>}, {transform_indices = @transform_3, window_bounds = array<i64: 128, 128>}, {pipeline_mode = #tpu.pipeline_mode<synchronous>, transform_indices = @transform_4, window_bounds = array<i64: 1, 8>}, {pipeline_mode = #tpu.pipeline_mode<synchronous>, transform_indices = @transform_5, window_bounds = array<i64: 1, 8>}, {pipeline_mode = #tpu.pipeline_mode<synchronous>, transform_indices = @transform_6, window_bounds = array<i64: 1, 8>}, {transform_indices = @transform_7, window_bounds = array<i64: 128, 8>}]} {
    %c0 = arith.constant 0 : index
    %c0_0 = arith.constant 0 : index
    %0 = vector.load %arg2[%c0, %c0_0] : memref<2x128xf32, #tpu.memory_space<vmem>>, vector<2x128xf32>
    %c0_1 = arith.constant 0 : index
    %c0_2 = arith.constant 0 : index
    %1 = vector.load %arg3[%c0_1, %c0_2] : memref<128x2xf32, #tpu.memory_space<vmem>>, vector<128x2xf32>
    %c0_3 = arith.constant 0 : index
    %c0_4 = arith.constant 0 : index
    %2 = vector.load %arg4[%c0_3, %c0_4] : memref<128x128xbf16, #tpu.memory_space<vmem>>, vector<128x128xbf16>
    %3 = arith.extf %2 : vector<128x128xbf16> to vector<128x128xf32>
    %cst = arith.constant dense<0xFF800000> : vector<2xf32>
    %4 = vector.multi_reduction <maximumf>, %0, %cst [1] : vector<2x128xf32> to vector<2xf32>
    %5 = vector.shape_cast %4 : vector<2xf32> to vector<2x1xf32>
    %6 = vector.extract_strided_slice %1 {offsets = [0, 0], sizes = [128, 1], strides = [1, 1]} : vector<128x2xf32> to vector<128x1xf32>
    %7 = vector.extract_strided_slice %0 {offsets = [0, 0], sizes = [1, 128], strides = [1, 1]} : vector<2x128xf32> to vector<1x128xf32>
    %8 = vector.broadcast %6 : vector<128x1xf32> to vector<128x128xf32>
    %9 = vector.broadcast %7 : vector<1x128xf32> to vector<128x128xf32>
    %10 = arith.addf %8, %9 : vector<128x128xf32>
    %cst_5 = arith.constant 2.000000e-01 : f32
    %11 = vector.broadcast %cst_5 : f32 to vector<128x128xf32>
    %12 = arith.mulf %11, %10 : vector<128x128xf32>
    %13 = arith.maximumf %10, %12 : vector<128x128xf32>
    %14 = vector.extract_strided_slice %5 {offsets = [0, 0], sizes = [1, 1], strides = [1, 1]} : vector<2x1xf32> to vector<1x1xf32>
    %15 = vector.broadcast %14 : vector<1x1xf32> to vector<128x1xf32>
    %16 = arith.addf %6, %15 : vector<128x1xf32>
    %cst_6 = arith.constant 2.000000e-01 : f32
    %17 = vector.broadcast %cst_6 : f32 to vector<128x1xf32>
    %18 = arith.mulf %17, %16 : vector<128x1xf32>
    %19 = arith.maximumf %16, %18 : vector<128x1xf32>
    %20 = vector.broadcast %19 : vector<128x1xf32> to vector<128x128xf32>
    %21 = arith.subf %13, %20 : vector<128x128xf32>
    %22 = math.exp %21 : vector<128x128xf32>
    %23 = arith.mulf %3, %22 : vector<128x128xf32>
    %cst_7 = arith.constant dense<0.000000e+00> : vector<128xf32>
    %24 = vector.multi_reduction <add>, %23, %cst_7 [1] : vector<128x128xf32> to vector<128xf32>
    %25 = vector.shape_cast %24 : vector<128xf32> to vector<128x1xf32>
    %26 = tpu.reciprocal %25 {approx = true} : vector<128x1xf32> -> vector<128x1xf32>
    %27 = vector.broadcast %26 : vector<128x1xf32> to vector<128x128xf32>
    %28 = arith.mulf %23, %27 : vector<128x128xf32>
    %29 = arith.truncf %28 : vector<128x128xf32> to vector<128x128xbf16>
    %c0_8 = arith.constant 0 : index
    %c0_9 = arith.constant 0 : index
    %30 = vector.load %arg1[%c0_8, %c0_9] : memref<128x16xbf16, #tpu.memory_space<vmem>>, vector<128x8xbf16>
    %cst_10 = arith.constant dense<0.000000e+00> : vector<128x8xf32>
    %31 = tpu.matmul %29, %30, %cst_10 {dimension_numbers = #tpu.dot_dimension_numbers<[1], [0], [0], [1], [0, 0, 1, 1], [], []>} : vector<128x128xbf16>, vector<128x8xbf16>, vector<128x8xf32> -> vector<128x8xf32>
    %32 = vector.extract_strided_slice %1 {offsets = [0, 1], sizes = [128, 1], strides = [1, 1]} : vector<128x2xf32> to vector<128x1xf32>
    %33 = vector.extract_strided_slice %0 {offsets = [1, 0], sizes = [1, 128], strides = [1, 1]} : vector<2x128xf32> to vector<1x128xf32>
    %34 = vector.broadcast %32 : vector<128x1xf32> to vector<128x128xf32>
    %35 = vector.broadcast %33 : vector<1x128xf32> to vector<128x128xf32>
    %36 = arith.addf %34, %35 : vector<128x128xf32>
    %cst_11 = arith.constant 2.000000e-01 : f32
    %37 = vector.broadcast %cst_11 : f32 to vector<128x128xf32>
    %38 = arith.mulf %37, %36 : vector<128x128xf32>
    %39 = arith.maximumf %36, %38 : vector<128x128xf32>
    %40 = vector.extract_strided_slice %5 {offsets = [1, 0], sizes = [1, 1], strides = [1, 1]} : vector<2x1xf32> to vector<1x1xf32>
    %41 = vector.broadcast %40 : vector<1x1xf32> to vector<128x1xf32>
    %42 = arith.addf %32, %41 : vector<128x1xf32>
    %cst_12 = arith.constant 2.000000e-01 : f32
    %43 = vector.broadcast %cst_12 : f32 to vector<128x1xf32>
    %44 = arith.mulf %43, %42 : vector<128x1xf32>
    %45 = arith.maximumf %42, %44 : vector<128x1xf32>
    %46 = vector.broadcast %45 : vector<128x1xf32> to vector<128x128xf32>
    %47 = arith.subf %39, %46 : vector<128x128xf32>
    %48 = math.exp %47 : vector<128x128xf32>
    %49 = arith.mulf %3, %48 : vector<128x128xf32>
    %cst_13 = arith.constant dense<0.000000e+00> : vector<128xf32>
    %50 = vector.multi_reduction <add>, %49, %cst_13 [1] : vector<128x128xf32> to vector<128xf32>
    %51 = vector.shape_cast %50 : vector<128xf32> to vector<128x1xf32>
    %52 = tpu.reciprocal %51 {approx = true} : vector<128x1xf32> -> vector<128x1xf32>
    %53 = vector.broadcast %52 : vector<128x1xf32> to vector<128x128xf32>
    %54 = arith.mulf %49, %53 : vector<128x128xf32>
    %55 = arith.truncf %54 : vector<128x128xf32> to vector<128x128xbf16>
    %c0_14 = arith.constant 0 : index
    %c8 = arith.constant 8 : index
    %56 = vector.load %arg1[%c0_14, %c8] : memref<128x16xbf16, #tpu.memory_space<vmem>>, vector<128x8xbf16>
    %cst_15 = arith.constant dense<0.000000e+00> : vector<128x8xf32>
    %57 = tpu.matmul %55, %56, %cst_15 {dimension_numbers = #tpu.dot_dimension_numbers<[1], [0], [0], [1], [0, 0, 1, 1], [], []>} : vector<128x128xbf16>, vector<128x8xbf16>, vector<128x8xf32> -> vector<128x8xf32>
    %58 = arith.addf %31, %57 : vector<128x8xf32>
    %cst_16 = arith.constant 5.000000e-01 : f32
    %59 = vector.broadcast %cst_16 : f32 to vector<128x8xf32>
    %60 = arith.mulf %58, %59 : vector<128x8xf32>
    %c0_17 = arith.constant 0 : index
    %c0_18 = arith.constant 0 : index
    %61 = vector.load %arg5[%c0_17, %c0_18] : memref<1x8xf32, #tpu.memory_space<vmem>>, vector<1x8xf32>
    %62 = vector.broadcast %61 : vector<1x8xf32> to vector<128x8xf32>
    %63 = arith.addf %60, %62 : vector<128x8xf32>
    %cst_19 = arith.constant dense<0.000000e+00> : vector<128xf32>
    %64 = vector.multi_reduction <add>, %63, %cst_19 [1] : vector<128x8xf32> to vector<128xf32>
    %65 = vector.shape_cast %64 : vector<128xf32> to vector<128x1xf32>
    %cst_20 = arith.constant 8.000000e+00 : f32
    %66 = vector.broadcast %cst_20 : f32 to vector<128x1xf32>
    %67 = arith.divf %65, %66 : vector<128x1xf32>
    %68 = vector.broadcast %67 : vector<128x1xf32> to vector<128x8xf32>
    %69 = arith.subf %63, %68 : vector<128x8xf32>
    %70 = arith.mulf %69, %69 : vector<128x8xf32>
    %cst_21 = arith.constant dense<0.000000e+00> : vector<128xf32>
    %71 = vector.multi_reduction <add>, %70, %cst_21 [1] : vector<128x8xf32> to vector<128xf32>
    %72 = vector.shape_cast %71 : vector<128xf32> to vector<128x1xf32>
    %cst_22 = arith.constant 8.000000e+00 : f32
    %73 = vector.broadcast %cst_22 : f32 to vector<128x1xf32>
    %74 = arith.divf %72, %73 : vector<128x1xf32>
    %75 = vector.broadcast %67 : vector<128x1xf32> to vector<128x8xf32>
    %76 = arith.subf %63, %75 : vector<128x8xf32>
    %cst_23 = arith.constant 9.99999974E-6 : f32
    %77 = vector.broadcast %cst_23 : f32 to vector<128x1xf32>
    %78 = arith.addf %74, %77 : vector<128x1xf32>
    %79 = math.rsqrt %78 : vector<128x1xf32>
    %80 = vector.broadcast %79 : vector<128x1xf32> to vector<128x8xf32>
    %81 = arith.mulf %76, %80 : vector<128x8xf32>
    %c0_24 = arith.constant 0 : index
    %c0_25 = arith.constant 0 : index
    %82 = vector.load %arg6[%c0_24, %c0_25] : memref<1x8xf32, #tpu.memory_space<vmem>>, vector<1x8xf32>
    %83 = vector.broadcast %82 : vector<1x8xf32> to vector<128x8xf32>
    %84 = arith.mulf %81, %83 : vector<128x8xf32>
    %c0_26 = arith.constant 0 : index
    %c0_27 = arith.constant 0 : index
    %85 = vector.load %arg7[%c0_26, %c0_27] : memref<1x8xf32, #tpu.memory_space<vmem>>, vector<1x8xf32>
    %86 = vector.broadcast %85 : vector<1x8xf32> to vector<128x8xf32>
    %87 = arith.addf %84, %86 : vector<128x8xf32>
    %cst_28 = arith.constant dense<0xFF800000> : vector<128xf32>
    %88 = vector.multi_reduction <maximumf>, %87, %cst_28 [1] : vector<128x8xf32> to vector<128xf32>
    %89 = vector.shape_cast %88 : vector<128xf32> to vector<128x1xf32>
    %90 = vector.broadcast %89 : vector<128x1xf32> to vector<128x8xf32>
    %91 = arith.subf %87, %90 : vector<128x8xf32>
    %92 = math.exp %91 : vector<128x8xf32>
    %cst_29 = arith.constant dense<0.000000e+00> : vector<128xf32>
    %93 = vector.multi_reduction <add>, %92, %cst_29 [1] : vector<128x8xf32> to vector<128xf32>
    %94 = vector.shape_cast %93 : vector<128xf32> to vector<128x1xf32>
    %95 = math.log %94 : vector<128x1xf32>
    %96 = vector.broadcast %95 : vector<128x1xf32> to vector<128x8xf32>
    %97 = arith.subf %91, %96 : vector<128x8xf32>
    %c0_30 = arith.constant 0 : index
    %c0_31 = arith.constant 0 : index
    %98 = vector.load %arg8[%c0_30, %c0_31] : memref<128x8xf32, #tpu.memory_space<vmem>>, vector<128x8xf32>
    tpu.vector_store %arg8[%c0_30, %c0_31], %97 {strides = array<i32>} : memref<128x8xf32, #tpu.memory_space<vmem>>, vector<128x8xf32>,
    return
  }
  func.func @transform_0(%arg0: i32) -> (i32, i32) {
    %c0_i32 = arith.constant 0 : i32
    %c0_i32_0 = arith.constant 0 : i32
    %c0_i32_1 = arith.constant 0 : i32
    return %c0_i32, %c0_i32_0 : i32, i32
  }
  func.func @transform_1(%arg0: i32) -> (i32, i32) {
    %c0_i32 = arith.constant 0 : i32
    %c0_i32_0 = arith.constant 0 : i32
    %c0_i32_1 = arith.constant 0 : i32
    return %c0_i32, %c0_i32_0 : i32, i32
  }
  func.func @transform_2(%arg0: i32) -> (i32, i32) {
    %c0_i32 = arith.constant 0 : i32
    %c0_i32_0 = arith.constant 0 : i32
    return %arg0, %c0_i32 : i32, i32
  }
  func.func @transform_3(%arg0: i32) -> (i32, i32) {
    %c0_i32 = arith.constant 0 : i32
    %c0_i32_0 = arith.constant 0 : i32
    return %arg0, %c0_i32 : i32, i32
  }
  func.func @transform_4(%arg0: i32) -> (i32, i32) {
    %c0_i32 = arith.constant 0 : i32
    %c0_i32_0 = arith.constant 0 : i32
    %c0_i32_1 = arith.constant 0 : i32
    return %c0_i32, %c0_i32_0 : i32, i32
  }
  func.func @transform_5(%arg0: i32) -> (i32, i32) {
    %c0_i32 = arith.constant 0 : i32
    %c0_i32_0 = arith.constant 0 : i32
    %c0_i32_1 = arith.constant 0 : i32
    return %c0_i32, %c0_i32_0 : i32, i32
  }
  func.func @transform_6(%arg0: i32) -> (i32, i32) {
    %c0_i32 = arith.constant 0 : i32
    %c0_i32_0 = arith.constant 0 : i32
    %c0_i32_1 = arith.constant 0 : i32
    return %c0_i32, %c0_i32_0 : i32, i32
  }
  func.func @transform_7(%arg0: i32) -> (i32, i32) {
    %c0_i32 = arith.constant 0 : i32
    %c0_i32_0 = arith.constant 0 : i32
    return %arg0, %c0_i32 : i32, i32
  }
}

</mosaic_0001>

<bundles_post_ra>
// kernel: gat_forward.6
= control target key start
LH: loop header
LB: loop body
LE: loop exit
PB: predicated region body
PF: predicated region fallthrough
CT: control target
= control target key end

     0   :  { %vm93_vm0 = vcmask 261120   ;;  %vm297_vm1 = vcmask 523264   ;;  %v852_v11 = vmov 0.0|0.0   ;;  %vm853_vm2 = vmmov 0   ;;  %s1114_s1 = inlined_call_operand.vmem [shape: bf16[32,64], index: 1, kind: input, shape index: {}]   ;;  %s1115_s0 = inlined_call_operand.vmem [shape: bf16[128,32], index: 0, kind: input, shape index: {}]   ;;  %s1116_s3 = inlined_call_operand.vmem [shape: f32[4,64], index: 3, kind: input, shape index: {}]   ;;  %s1117_s4 = inlined_call_operand.vmem [shape: bf16[128,64], index: 4, kind: output, shape index: {0}]   ;;  %s1118_s2 = inlined_call_operand.vmem [shape: f32[4,64], index: 2, kind: input, shape index: {}]   ;;  %s1119_s6 = inlined_call_operand.vmem [shape: f32[128,4], index: 6, kind: output, shape index: {2}]   ;;  %s1120_s5 = inlined_call_operand.vmem [shape: f32[4,128], index: 5, kind: output, shape index: {1}]  }
   0x1   :  { %v842_v0 = vld [vmem:[%s1114_s1] sm:$0xff]   ;;  %v843_v1 = vld [vmem:[%s1114_s1 + $0x8] sm:$0xff]   ;;  %v846_v4 = vld [vmem:[%s1115_s0 + $0x10] sm:$0xff]   ;;  %807 = vmatprep.subr.bf16.mxu1 %v852_v11  ;;  %v854_v12 = vmov 0.0   ;;  %vm279_vm3 = vcmask 519168   ;;  %vm569_vm5 = vcmask 31744  }
   0x2   :  { %726 = vmatprep.subr.bf16.mxu0 %v842_v0  ;;  %v844_v2 = vld [vmem:[%s1115_s0] sm:$0xff]   ;;  %v845_v3 = vld [vmem:[%s1115_s0 + $0x8] sm:$0xff]   ;;  %v847_v5 = vld [vmem:[%s1115_s0 + $0x18] sm:$0xff]   ;;  %778 = vmatprep.mubr.msk.f32.mxu1 %vm853_vm2, %v854_v12 }
   0x3   :  { %727 = vmatpush3.bf16.msra.mxu0 %v842_v0  ;;  %730 = vmatprep.mubr.msk.bf16.mxu0 %vm93_vm0, %v844_v2  ;;  %v848_v6 = vld [vmem:[%s1115_s0 + $0x20] sm:$0xff]   ;;  %v849_v7 = vld [vmem:[%s1115_s0 + $0x28] sm:$0xff]   ;;  %v850_v8 = vld [vmem:[%s1115_s0 + $0x30] sm:$0xff]  }
   0x4   :  { %728 = vmatprep.subr.bf16.mxu0 %v843_v1  ;;  %v851_v9 = vld [vmem:[%s1115_s0 + $0x38] sm:$0xff]   ;;  %v420_v10 = vld [vmem:[%s1116_s3] sm:$0xf]  ;;  %vm941_vm4 = vmpackc.low %vm297_vm1, %vm297_vm1 }
   0x5   :  { %v296_v54 = vld [vmem:[%s1118_s2] sm:$0xf] }
   0x7   :  { %729 = vmatpush3.bf16.msra.mxu0 %v843_v1 }
   0x8   :  { %781 = vmatprep.subr.msk.mxu0 %vm297_vm1, %v420_v10 }
   0xa   :  { %731 = vmatmul.mubr.msk.bf16.vlgmr.msra.gmra.mrb[0].mxu0 %vm93_vm0, %v845_v3 }
   0xb   :  { %734 = vmatprep.mubr.msk.bf16.mxu0 %vm93_vm0, %v846_v4 }
  0x10   :  { %782 = vmatpush3.xpose.msk.msra.mxu0 %vm297_vm1, %v420_v10 }
  0x12   :  { %735 = vmatmul.mubr.msk.bf16.gmra.mrb[4].mxu0 %vm93_vm0, %v847_v5 }
  0x13   :  { %738 = vmatprep.mubr.msk.bf16.mxu0 %vm93_vm0, %v848_v6 }
  0x1a   :  { %739 = vmatmul.mubr.msk.bf16.gmra.mrb[8].mxu0 %vm93_vm0, %v849_v7 }
  0x1b   :  { %742 = vmatprep.mubr.msk.bf16.mxu0 %vm93_vm0, %v850_v8 }
  0x22   :  { %743 = vmatmul.mubr.msk.bf16.gmra.mrb[12].mxu0 %vm93_vm0, %v851_v9 }
  0xdd   :  { %v732_v13 = vpop.f32.mrb[0].mxu0 }
  0xde   :  { %v668_v14 = vpack.c.bf16 %v732_v13, %v732_v13  ;;  %v152_v15 = vpop.f32.mrb[1].mxu0 }
  0xdf   :  { %v666_v16 = vpack.c.bf16 %v152_v15, %v152_v15  ;;  %v733_v17 = vpop.f32.mrb[2].mxu0  ;;  %783 = vmatprep.mubr.msk.f32.mxu0 %vm297_vm1, %v152_v15 }
  0xe0   :  { %282 = vst.msk [vmem:[%s1117_s4 + $0x8] sm:$0xf] %vm279_vm3, %v668_v14  ;;  %v669_v18 = vpack.c.bf16 %v733_v17, %v733_v17  ;;  %v812_v19 = vpack.c.bf16 %v733_v17, %v732_v13  ;;  %v155_v20 = vpop.f32.mrb[3].mxu0 }
  0xe1   :  { %280 = vst.msk [vmem:[%s1117_s4] sm:$0xf] %vm279_vm3, %v666_v16  ;;  %v667_v22 = vpack.c.bf16 %v155_v20, %v155_v20  ;;  %v808_v23 = vpack.c.bf16 %v155_v20, %v152_v15  ;;  %784 = vmatmul.mubr.msk.f32.vlgmr.msra.gmra.mrb[16].mxu0 %vm297_vm1, %v155_v20 }
  0xe2   :  { %283 = vst.msk [vmem:[%s1117_s4 + $0xc] sm:$0xf] %vm279_vm3, %v669_v18  ;;  %786 = vmatprep.mubr.msk.f32.mxu0 %vm297_vm1, %v732_v13 }
  0xe3   :  { %281 = vst.msk [vmem:[%s1117_s4 + $0x4] sm:$0xf] %vm279_vm3, %v667_v22  ;;  %810 = vmatpush3.bf16.xpose.msk.msra.mxu1 %vm941_vm4, %v808_v23 }
  0xe4   :  { %811 = vmatprep.subr.bf16.mxu1 %v852_v11 }
  0xe5   :  { %v736_v24 = vpop.f32.mrb[4].mxu0  ;;  %787 = vmatmul.mubr.msk.f32.gmra.mrb[18].mxu0 %vm297_vm1, %v733_v17 }
  0xe6   :  { %v672_v25 = vpack.c.bf16 %v736_v24, %v736_v24  ;;  %v168_v26 = vpop.f32.mrb[5].mxu0 }
  0xe7   :  { %v670_v27 = vpack.c.bf16 %v168_v26, %v168_v26  ;;  %v737_v28 = vpop.f32.mrb[6].mxu0  ;;  %789 = vmatprep.mubr.msk.f32.mxu0 %vm297_vm1, %v168_v26 }
  0xe8   :  { %286 = vst.msk [vmem:[%s1117_s4 + $0x18] sm:$0xf] %vm279_vm3, %v672_v25  ;;  %v673_v29 = vpack.c.bf16 %v737_v28, %v737_v28  ;;  %v820_v30 = vpack.c.bf16 %v737_v28, %v736_v24  ;;  %v171_v31 = vpop.f32.mrb[7].mxu0 }
  0xe9   :  { %284 = vst.msk [vmem:[%s1117_s4 + $0x10] sm:$0xf] %vm279_vm3, %v670_v27  ;;  %v671_v32 = vpack.c.bf16 %v171_v31, %v171_v31  ;;  %v816_v33 = vpack.c.bf16 %v171_v31, %v168_v26  ;;  %790 = vmatmul.mubr.msk.f32.gmra.mrb[20].mxu0 %vm297_vm1, %v171_v31 }
  0xea   :  { %287 = vst.msk [vmem:[%s1117_s4 + $0x1c] sm:$0xf] %vm279_vm3, %v673_v29  ;;  %792 = vmatprep.mubr.msk.f32.mxu0 %vm297_vm1, %v736_v24 }
  0xeb   :  { %285 = vst.msk [vmem:[%s1117_s4 + $0x14] sm:$0xf] %vm279_vm3, %v671_v32  ;;  %814 = vmatpush3.bf16.xpose.msk.msra.mxu1 %vm941_vm4, %v812_v19 }
  0xec   :  { %815 = vmatprep.subr.bf16.mxu1 %v852_v11 }
  0xed   :  { %793 = vmatmul.mubr.msk.f32.gmra.mrb[22].mxu0 %vm297_vm1, %v737_v28  ;;  %v740_v34 = vpop.f32.mrb[8].mxu0 }
  0xee   :  { %v676_v35 = vpack.c.bf16 %v740_v34, %v740_v34  ;;  %v184_v36 = vpop.f32.mrb[9].mxu0 }
  0xef   :  { %v674_v37 = vpack.c.bf16 %v184_v36, %v184_v36  ;;  %v741_v38 = vpop.f32.mrb[10].mxu0  ;;  %795 = vmatprep.mubr.msk.f32.mxu0 %vm297_vm1, %v184_v36 }
  0xf0   :  { %290 = vst.msk [vmem:[%s1117_s4 + $0x28] sm:$0xf] %vm279_vm3, %v676_v35  ;;  %v677_v39 = vpack.c.bf16 %v741_v38, %v741_v38  ;;  %v828_v40 = vpack.c.bf16 %v741_v38, %v740_v34  ;;  %v187_v41 = vpop.f32.mrb[11].mxu0 }
  0xf1   :  { %288 = vst.msk [vmem:[%s1117_s4 + $0x20] sm:$0xf] %vm279_vm3, %v674_v37  ;;  %v675_v42 = vpack.c.bf16 %v187_v41, %v187_v41  ;;  %v824_v43 = vpack.c.bf16 %v187_v41, %v184_v36  ;;  %796 = vmatmul.mubr.msk.f32.gmra.mrb[24].mxu0 %vm297_vm1, %v187_v41 }
  0xf2   :  { %291 = vst.msk [vmem:[%s1117_s4 + $0x2c] sm:$0xf] %vm279_vm3, %v677_v39  ;;  %798 = vmatprep.mubr.msk.f32.mxu0 %vm297_vm1, %v740_v34 }
  0xf3   :  { %818 = vmatpush3.bf16.xpose.msk.msra.mxu1 %vm941_vm4, %v816_v33  ;;  %289 = vst.msk [vmem:[%s1117_s4 + $0x24] sm:$0xf] %vm279_vm3, %v675_v42 }
  0xf4   :  { %819 = vmatprep.subr.bf16.mxu1 %v852_v11 }
  0xf5   :  { %799 = vmatmul.mubr.msk.f32.gmra.mrb[26].mxu0 %vm297_vm1, %v741_v38  ;;  %v744_v44 = vpop.f32.mrb[12].mxu0 }
  0xf6   :  { %v680_v45 = vpack.c.bf16 %v744_v44, %v744_v44  ;;  %v200_v46 = vpop.f32.mrb[13].mxu0 }
  0xf7   :  { %v678_v47 = vpack.c.bf16 %v200_v46, %v200_v46  ;;  %v745_v48 = vpop.f32.mrb[14].mxu0  ;;  %801 = vmatprep.mubr.msk.f32.mxu0 %vm297_vm1, %v200_v46 }
  0xf8   :  { %294 = vst.msk [vmem:[%s1117_s4 + $0x38] sm:$0xf] %vm279_vm3, %v680_v45  ;;  %v681_v49 = vpack.c.bf16 %v745_v48, %v745_v48  ;;  %v836_v50 = vpack.c.bf16 %v745_v48, %v744_v44  ;;  %v203_v51 = vpop.f32.mrb[15].mxu0 }
  0xf9   :  { %292 = vst.msk [vmem:[%s1117_s4 + $0x30] sm:$0xf] %vm279_vm3, %v678_v47  ;;  %v679_v52 = vpack.c.bf16 %v203_v51, %v203_v51  ;;  %v832_v53 = vpack.c.bf16 %v203_v51, %v200_v46  ;;  %802 = vmatmul.mubr.msk.f32.gmra.mrb[28].mxu0 %vm297_vm1, %v203_v51 }
  0xfa   :  { %295 = vst.msk [vmem:[%s1117_s4 + $0x3c] sm:$0xf] %vm279_vm3, %v681_v49  ;;  %804 = vmatprep.mubr.msk.f32.mxu0 %vm297_vm1, %v744_v44 }
  0xfb   :  { %822 = vmatpush3.bf16.xpose.msk.msra.mxu1 %vm941_vm4, %v820_v30  ;;  %293 = vst.msk [vmem:[%s1117_s4 + $0x34] sm:$0xf] %vm279_vm3, %v679_v52 }
  0xfc   :  { %823 = vmatprep.subr.bf16.mxu1 %v852_v11 }
  0xfd   :  { %805 = vmatmul.mubr.msk.f32.gmra.mrb[30].mxu0 %vm297_vm1, %v745_v48 }
 0x103   :  { %826 = vmatpush3.bf16.xpose.msk.msra.mxu1 %vm941_vm4, %v824_v43 }
 0x104   :  { %827 = vmatprep.subr.bf16.mxu1 %v852_v11 }
 0x10b   :  { %830 = vmatpush3.bf16.xpose.msk.msra.mxu1 %vm941_vm4, %v828_v40 }
 0x10c   :  { %831 = vmatprep.subr.bf16.mxu1 %v852_v11 }
 0x113   :  { %834 = vmatpush3.bf16.xpose.msk.msra.mxu1 %vm941_vm4, %v832_v53 }
 0x114   :  { %835 = vmatprep.subr.bf16.mxu1 %v852_v11 }
 0x11b   :  { %838 = vmatpush3.bf16.xpose.msk.msra.mxu1 %vm941_vm4, %v836_v50 }
 0x122   :  { %779 = vmatmul.mubr.msk.f32.vlgmr.msra.gmra.mrb[0].mxu1 %vm297_vm1, %v296_v54 }
 0x1b4   :  { %v785_v55 = vpop.f32.mrb[16].mxu0 }
 0x1b5   :  { %571 = vst.msk [vmem:[%s1119_s6 + $0x8] sm:$0xff] %vm569_vm5, %v785_v55  ;;  %v490_v56 = vpop.f32.mrb[17].mxu0 }
 0x1b6   :  { %570 = vst.msk [vmem:[%s1119_s6] sm:$0xff] %vm569_vm5, %v490_v56 }
 0x1b8   :  { %v788_v57 = vpop.f32.mrb[18].mxu0 }
 0x1b9   :  { %573 = vst.msk [vmem:[%s1119_s6 + $0x18] sm:$0xff] %vm569_vm5, %v788_v57  ;;  %v500_v58 = vpop.f32.mrb[19].mxu0 }
 0x1ba   :  { %572 = vst.msk [vmem:[%s1119_s6 + $0x10] sm:$0xff] %vm569_vm5, %v500_v58 }
 0x1bc   :  { %v791_v59 = vpop.f32.mrb[20].mxu0 }
 0x1bd   :  { %575 = vst.msk [vmem:[%s1119_s6 + $0x28] sm:$0xff] %vm569_vm5, %v791_v59  ;;  %v510_v60 = vpop.f32.mrb[21].mxu0 }
 0x1be   :  { %574 = vst.msk [vmem:[%s1119_s6 + $0x20] sm:$0xff] %vm569_vm5, %v510_v60 }
 0x1c0   :  { %v794_v61 = vpop.f32.mrb[22].mxu0 }
 0x1c1   :  { %577 = vst.msk [vmem:[%s1119_s6 + $0x38] sm:$0xff] %vm569_vm5, %v794_v61  ;;  %v520_v62 = vpop.f32.mrb[23].mxu0 }
 0x1c2   :  { %576 = vst.msk [vmem:[%s1119_s6 + $0x30] sm:$0xff] %vm569_vm5, %v520_v62 }
 0x1c4   :  { %v797_v63 = vpop.f32.mrb[24].mxu0 }
 0x1c5   :  { %579 = vst.msk [vmem:[%s1119_s6 + $0x48] sm:$0xff] %vm569_vm5, %v797_v63  ;;  %v530_v0 = vpop.f32.mrb[25].mxu0 }
 0x1c6   :  { %578 = vst.msk [vmem:[%s1119_s6 + $0x40] sm:$0xff] %vm569_vm5, %v530_v0 }
 0x1c8   :  { %v800_v1 = vpop.f32.mrb[26].mxu0 }
 0x1c9   :  { %581 = vst.msk [vmem:[%s1119_s6 + $0x58] sm:$0xff] %vm569_vm5, %v800_v1  ;;  %v540_v2 = vpop.f32.mrb[27].mxu0 }
 0x1ca   :  { %580 = vst.msk [vmem:[%s1119_s6 + $0x50] sm:$0xff] %vm569_vm5, %v540_v2 }
 0x1cc   :  { %v803_v3 = vpop.f32.mrb[28].mxu0 }
 0x1cd   :  { %583 = vst.msk [vmem:[%s1119_s6 + $0x68] sm:$0xff] %vm569_vm5, %v803_v3  ;;  %v550_v4 = vpop.f32.mrb[29].mxu0 }
 0x1ce   :  { %582 = vst.msk [vmem:[%s1119_s6 + $0x60] sm:$0xff] %vm569_vm5, %v550_v4 }
 0x1d0   :  { %v806_v5 = vpop.f32.mrb[30].mxu0 }
 0x1d1   :  { %585 = vst.msk [vmem:[%s1119_s6 + $0x78] sm:$0xff] %vm569_vm5, %v806_v5  ;;  %v560_v6 = vpop.f32.mrb[31].mxu0 }
 0x1d2   :  { %584 = vst.msk [vmem:[%s1119_s6 + $0x70] sm:$0xff] %vm569_vm5, %v560_v6 }
 0x1f5   :  { %v415_v7 = vpop.f32.mrb[0].mxu1 }
 0x1f6   :  { %419 = vst [vmem:[%s1120_s5] sm:$0xf] %v415_v7  ;;  %v780_v8 = vpop.f32.mrb[1].mxu1 }

// kernel: gat_forward.8
= control target key start
LH: loop header
LB: loop body
LE: loop exit
PB: predicated region body
PF: predicated region fallthrough
CT: control target
= control target key end

     0   :  { %vm109_vm0 = vcmask 523264   ;;  %v879_v13 = vmov 0.0|0.0   ;;  %vm880_vm1 = vmmov 0   ;;  %v881_v14 = vmov 0.0   ;;  %s1155_s1 = inlined_call_operand.vmem [shape: bf16[64,64], index: 1, kind: input, shape index: {}]   ;;  %s1156_s0 = inlined_call_operand.vmem [shape: bf16[128,64], index: 0, kind: input, shape index: {}]   ;;  %s1157_s3 = inlined_call_operand.vmem [shape: f32[4,64], index: 3, kind: input, shape index: {}]   ;;  %s1158_s4 = inlined_call_operand.vmem [shape: bf16[128,64], index: 4, kind: output, shape index: {0}]   ;;  %s1159_s2 = inlined_call_operand.vmem [shape: f32[4,64], index: 2, kind: input, shape index: {}]   ;;  %s1160_s6 = inlined_call_operand.vmem [shape: f32[128,4], index: 6, kind: output, shape index: {2}]   ;;  %s1161_s5 = inlined_call_operand.vmem [shape: f32[4,128], index: 5, kind: output, shape index: {1}]  }
   0x1   :  { %v867_v0 = vld [vmem:[%s1155_s1] sm:$0xff]   ;;  %v868_v1 = vld [vmem:[%s1155_s1 + $0x8] sm:$0xff]   ;;  %v869_v2 = vld [vmem:[%s1155_s1 + $0x10] sm:$0xff]   ;;  %830 = vmatprep.subr.bf16.mxu1 %v879_v13  ;;  %801 = vmatprep.mubr.msk.f32.mxu1 %vm880_vm1, %v881_v14  ;;  %vm295_vm2 = vcmask 519168   ;;  %vm584_vm4 = vcmask 31744  }
   0x2   :  { %745 = vmatprep.subr.bf16.mxu0 %v867_v0  ;;  %v871_v3 = vld [vmem:[%s1156_s0] sm:$0xff]   ;;  %v870_v4 = vld [vmem:[%s1155_s1 + $0x18] sm:$0xff]   ;;  %v872_v5 = vld [vmem:[%s1156_s0 + $0x8] sm:$0xff]  }
   0x3   :  { %746 = vmatpush3.bf16.msra.mxu0 %v867_v0  ;;  %753 = vmatprep.mubr.msk.bf16.mxu0 %vm109_vm0, %v871_v3  ;;  %v873_v6 = vld [vmem:[%s1156_s0 + $0x10] sm:$0xff]   ;;  %v874_v7 = vld [vmem:[%s1156_s0 + $0x18] sm:$0xff]   ;;  %v875_v8 = vld [vmem:[%s1156_s0 + $0x20] sm:$0xff]  }
   0x4   :  { %747 = vmatprep.subr.bf16.mxu0 %v868_v1  ;;  %v876_v9 = vld [vmem:[%s1156_s0 + $0x28] sm:$0xff]   ;;  %v877_v10 = vld [vmem:[%s1156_s0 + $0x30] sm:$0xff]   ;;  %v878_v11 = vld [vmem:[%s1156_s0 + $0x38] sm:$0xff]  }
   0x5   :  { %v964_v12 = vld [vmem:[%s1157_s3] sm:$0xf]  ;;  %vm978_vm3 = vmpackc.low %vm109_vm0, %vm109_vm0 }
   0x6   :  { %v312_v56 = vld [vmem:[%s1159_s2] sm:$0xf] }
   0x7   :  { %748 = vmatpush3.bf16.msra.mxu0 %v868_v1 }
   0x8   :  { %749 = vmatprep.subr.bf16.mxu0 %v869_v2 }
   0xb   :  { %750 = vmatpush3.bf16.msra.mxu0 %v869_v2 }
   0xc   :  { %751 = vmatprep.subr.bf16.mxu0 %v870_v4 }
   0xf   :  { %752 = vmatpush3.bf16.msra.mxu0 %v870_v4 }
  0x10   :  { %804 = vmatprep.subr.msk.mxu0 %vm109_vm0, %v964_v12 }
  0x12   :  { %754 = vmatmul.mubr.msk.bf16.vlgmr.msra.gmra.mrb[0].mxu0 %vm109_vm0, %v872_v5 }
  0x13   :  { %757 = vmatprep.mubr.msk.bf16.mxu0 %vm109_vm0, %v873_v6 }
  0x18   :  { %805 = vmatpush3.xpose.msk.msra.mxu0 %vm109_vm0, %v964_v12 }
  0x1a   :  { %758 = vmatmul.mubr.msk.bf16.gmra.mrb[4].mxu0 %vm109_vm0, %v874_v7 }
  0x1b   :  { %761 = vmatprep.mubr.msk.bf16.mxu0 %vm109_vm0, %v875_v8 }
  0x22   :  { %762 = vmatmul.mubr.msk.bf16.gmra.mrb[8].mxu0 %vm109_vm0, %v876_v9 }
  0x23   :  { %765 = vmatprep.mubr.msk.bf16.mxu0 %vm109_vm0, %v877_v10 }
  0x2a   :  { %766 = vmatmul.mubr.msk.bf16.gmra.mrb[12].mxu0 %vm109_vm0, %v878_v11 }
  0xe5   :  { %v755_v15 = vpop.f32.mrb[0].mxu0 }
  0xe6   :  { %v685_v16 = vpack.c.bf16 %v755_v15, %v755_v15  ;;  %v168_v17 = vpop.f32.mrb[1].mxu0 }
  0xe7   :  { %v683_v18 = vpack.c.bf16 %v168_v17, %v168_v17  ;;  %v756_v19 = vpop.f32.mrb[2].mxu0  ;;  %806 = vmatprep.mubr.msk.f32.mxu0 %vm109_vm0, %v168_v17 }
  0xe8   :  { %298 = vst.msk [vmem:[%s1158_s4 + $0x8] sm:$0xf] %vm295_vm2, %v685_v16  ;;  %v686_v20 = vpack.c.bf16 %v756_v19, %v756_v19  ;;  %v835_v21 = vpack.c.bf16 %v756_v19, %v755_v15  ;;  %v171_v22 = vpop.f32.mrb[3].mxu0 }
  0xe9   :  { %296 = vst.msk [vmem:[%s1158_s4] sm:$0xf] %vm295_vm2, %v683_v18  ;;  %v684_v24 = vpack.c.bf16 %v171_v22, %v171_v22  ;;  %v831_v25 = vpack.c.bf16 %v171_v22, %v168_v17  ;;  %807 = vmatmul.mubr.msk.f32.vlgmr.msra.gmra.mrb[16].mxu0 %vm109_vm0, %v171_v22 }
  0xea   :  { %299 = vst.msk [vmem:[%s1158_s4 + $0xc] sm:$0xf] %vm295_vm2, %v686_v20  ;;  %809 = vmatprep.mubr.msk.f32.mxu0 %vm109_vm0, %v755_v15 }
  0xeb   :  { %297 = vst.msk [vmem:[%s1158_s4 + $0x4] sm:$0xf] %vm295_vm2, %v684_v24  ;;  %833 = vmatpush3.bf16.xpose.msk.msra.mxu1 %vm978_vm3, %v831_v25 }
  0xec   :  { %834 = vmatprep.subr.bf16.mxu1 %v879_v13 }
  0xed   :  { %v759_v26 = vpop.f32.mrb[4].mxu0  ;;  %810 = vmatmul.mubr.msk.f32.gmra.mrb[18].mxu0 %vm109_vm0, %v756_v19 }
  0xee   :  { %v689_v27 = vpack.c.bf16 %v759_v26, %v759_v26  ;;  %v184_v28 = vpop.f32.mrb[5].mxu0 }
  0xef   :  { %v687_v29 = vpack.c.bf16 %v184_v28, %v184_v28  ;;  %v760_v30 = vpop.f32.mrb[6].mxu0  ;;  %812 = vmatprep.mubr.msk.f32.mxu0 %vm109_vm0, %v184_v28 }
  0xf0   :  { %302 = vst.msk [vmem:[%s1158_s4 + $0x18] sm:$0xf] %vm295_vm2, %v689_v27  ;;  %v690_v31 = vpack.c.bf16 %v760_v30, %v760_v30  ;;  %v843_v32 = vpack.c.bf16 %v760_v30, %v759_v26  ;;  %v187_v33 = vpop.f32.mrb[7].mxu0 }
  0xf1   :  { %300 = vst.msk [vmem:[%s1158_s4 + $0x10] sm:$0xf] %vm295_vm2, %v687_v29  ;;  %v688_v34 = vpack.c.bf16 %v187_v33, %v187_v33  ;;  %v839_v35 = vpack.c.bf16 %v187_v33, %v184_v28  ;;  %813 = vmatmul.mubr.msk.f32.gmra.mrb[20].mxu0 %vm109_vm0, %v187_v33 }
  0xf2   :  { %303 = vst.msk [vmem:[%s1158_s4 + $0x1c] sm:$0xf] %vm295_vm2, %v690_v31  ;;  %815 = vmatprep.mubr.msk.f32.mxu0 %vm109_vm0, %v759_v26 }
  0xf3   :  { %301 = vst.msk [vmem:[%s1158_s4 + $0x14] sm:$0xf] %vm295_vm2, %v688_v34  ;;  %837 = vmatpush3.bf16.xpose.msk.msra.mxu1 %vm978_vm3, %v835_v21 }
  0xf4   :  { %838 = vmatprep.subr.bf16.mxu1 %v879_v13 }
  0xf5   :  { %816 = vmatmul.mubr.msk.f32.gmra.mrb[22].mxu0 %vm109_vm0, %v760_v30  ;;  %v763_v36 = vpop.f32.mrb[8].mxu0 }
  0xf6   :  { %v693_v37 = vpack.c.bf16 %v763_v36, %v763_v36  ;;  %v200_v38 = vpop.f32.mrb[9].mxu0 }
  0xf7   :  { %v691_v39 = vpack.c.bf16 %v200_v38, %v200_v38  ;;  %v764_v40 = vpop.f32.mrb[10].mxu0  ;;  %818 = vmatprep.mubr.msk.f32.mxu0 %vm109_vm0, %v200_v38 }
  0xf8   :  { %306 = vst.msk [vmem:[%s1158_s4 + $0x28] sm:$0xf] %vm295_vm2, %v693_v37  ;;  %v694_v41 = vpack.c.bf16 %v764_v40, %v764_v40  ;;  %v851_v42 = vpack.c.bf16 %v764_v40, %v763_v36  ;;  %v203_v43 = vpop.f32.mrb[11].mxu0 }
  0xf9   :  { %304 = vst.msk [vmem:[%s1158_s4 + $0x20] sm:$0xf] %vm295_vm2, %v691_v39  ;;  %v692_v44 = vpack.c.bf16 %v203_v43, %v203_v43  ;;  %v847_v45 = vpack.c.bf16 %v203_v43, %v200_v38  ;;  %819 = vmatmul.mubr.msk.f32.gmra.mrb[24].mxu0 %vm109_vm0, %v203_v43 }
  0xfa   :  { %307 = vst.msk [vmem:[%s1158_s4 + $0x2c] sm:$0xf] %vm295_vm2, %v694_v41  ;;  %821 = vmatprep.mubr.msk.f32.mxu0 %vm109_vm0, %v763_v36 }
  0xfb   :  { %841 = vmatpush3.bf16.xpose.msk.msra.mxu1 %vm978_vm3, %v839_v35  ;;  %305 = vst.msk [vmem:[%s1158_s4 + $0x24] sm:$0xf] %vm295_vm2, %v692_v44 }
  0xfc   :  { %842 = vmatprep.subr.bf16.mxu1 %v879_v13 }
  0xfd   :  { %822 = vmatmul.mubr.msk.f32.gmra.mrb[26].mxu0 %vm109_vm0, %v764_v40  ;;  %v767_v46 = vpop.f32.mrb[12].mxu0 }
  0xfe   :  { %v697_v47 = vpack.c.bf16 %v767_v46, %v767_v46  ;;  %v216_v48 = vpop.f32.mrb[13].mxu0 }
  0xff   :  { %v695_v49 = vpack.c.bf16 %v216_v48, %v216_v48  ;;  %v768_v50 = vpop.f32.mrb[14].mxu0  ;;  %824 = vmatprep.mubr.msk.f32.mxu0 %vm109_vm0, %v216_v48 }
 0x100   :  { %310 = vst.msk [vmem:[%s1158_s4 + $0x38] sm:$0xf] %vm295_vm2, %v697_v47  ;;  %v698_v51 = vpack.c.bf16 %v768_v50, %v768_v50  ;;  %v859_v52 = vpack.c.bf16 %v768_v50, %v767_v46  ;;  %v219_v53 = vpop.f32.mrb[15].mxu0 }
 0x101   :  { %308 = vst.msk [vmem:[%s1158_s4 + $0x30] sm:$0xf] %vm295_vm2, %v695_v49  ;;  %v696_v54 = vpack.c.bf16 %v219_v53, %v219_v53  ;;  %v855_v55 = vpack.c.bf16 %v219_v53, %v216_v48  ;;  %825 = vmatmul.mubr.msk.f32.gmra.mrb[28].mxu0 %vm109_vm0, %v219_v53 }
 0x102   :  { %311 = vst.msk [vmem:[%s1158_s4 + $0x3c] sm:$0xf] %vm295_vm2, %v698_v51 }
 0x103   :  { %845 = vmatpush3.bf16.xpose.msk.msra.mxu1 %vm978_vm3, %v843_v32  ;;  %309 = vst.msk [vmem:[%s1158_s4 + $0x34] sm:$0xf] %vm295_vm2, %v696_v54 }
 0x104   :  { %846 = vmatprep.subr.bf16.mxu1 %v879_v13 }
 0x10b   :  { %849 = vmatpush3.bf16.xpose.msk.msra.mxu1 %vm978_vm3, %v847_v45 }
 0x10c   :  { %850 = vmatprep.subr.bf16.mxu1 %v879_v13 }
 0x113   :  { %853 = vmatpush3.bf16.xpose.msk.msra.mxu1 %vm978_vm3, %v851_v42 }
 0x114   :  { %854 = vmatprep.subr.bf16.mxu1 %v879_v13 }
 0x11b   :  { %857 = vmatpush3.bf16.xpose.msk.msra.mxu1 %vm978_vm3, %v855_v55 }
 0x11c   :  { %858 = vmatprep.subr.bf16.mxu1 %v879_v13 }
 0x123   :  { %861 = vmatpush3.bf16.xpose.msk.msra.mxu1 %vm978_vm3, %v859_v52 }
 0x124   :  { %862 = vmatprep.subr.msk.mxu1 %vm109_vm0, %v964_v12 }
 0x12a   :  { %802 = vmatmul.mubr.msk.f32.vlgmr.msra.gmra.mrb[0].mxu1 %vm109_vm0, %v312_v56 }
 0x12b   :  { %863 = vmatpush3.xpose.msk.msra.mxu1 %vm109_vm0, %v964_v12  ;;  %827 = vmatprep.mubr.msk.f32.mxu1 %vm109_vm0, %v767_v46 }
 0x12e   :  { %828 = vmatmul.mubr.msk.f32.vlgmr.msra.gmra.mrb[2].mxu1 %vm109_vm0, %v768_v50 }
 0x1bc   :  { %v808_v57 = vpop.f32.mrb[16].mxu0 }
 0x1bd   :  { %586 = vst.msk [vmem:[%s1160_s6 + $0x8] sm:$0xff] %vm584_vm4, %v808_v57  ;;  %v505_v58 = vpop.f32.mrb[17].mxu0 }
 0x1be   :  { %585 = vst.msk [vmem:[%s1160_s6] sm:$0xff] %vm584_vm4, %v505_v58 }
 0x1c0   :  { %v811_v59 = vpop.f32.mrb[18].mxu0 }
 0x1c1   :  { %588 = vst.msk [vmem:[%s1160_s6 + $0x18] sm:$0xff] %vm584_vm4, %v811_v59  ;;  %v515_v60 = vpop.f32.mrb[19].mxu0 }
 0x1c2   :  { %587 = vst.msk [vmem:[%s1160_s6 + $0x10] sm:$0xff] %vm584_vm4, %v515_v60 }
 0x1c4   :  { %v814_v61 = vpop.f32.mrb[20].mxu0 }
 0x1c5   :  { %590 = vst.msk [vmem:[%s1160_s6 + $0x28] sm:$0xff] %vm584_vm4, %v814_v61  ;;  %v525_v62 = vpop.f32.mrb[21].mxu0 }
 0x1c6   :  { %589 = vst.msk [vmem:[%s1160_s6 + $0x20] sm:$0xff] %vm584_vm4, %v525_v62 }
 0x1c8   :  { %v817_v63 = vpop.f32.mrb[22].mxu0 }
 0x1c9   :  { %592 = vst.msk [vmem:[%s1160_s6 + $0x38] sm:$0xff] %vm584_vm4, %v817_v63  ;;  %v535_v0 = vpop.f32.mrb[23].mxu0 }
 0x1ca   :  { %591 = vst.msk [vmem:[%s1160_s6 + $0x30] sm:$0xff] %vm584_vm4, %v535_v0 }
 0x1cc   :  { %v820_v1 = vpop.f32.mrb[24].mxu0 }
 0x1cd   :  { %594 = vst.msk [vmem:[%s1160_s6 + $0x48] sm:$0xff] %vm584_vm4, %v820_v1  ;;  %v545_v2 = vpop.f32.mrb[25].mxu0 }
 0x1ce   :  { %593 = vst.msk [vmem:[%s1160_s6 + $0x40] sm:$0xff] %vm584_vm4, %v545_v2 }
 0x1d0   :  { %v823_v3 = vpop.f32.mrb[26].mxu0 }
 0x1d1   :  { %596 = vst.msk [vmem:[%s1160_s6 + $0x58] sm:$0xff] %vm584_vm4, %v823_v3  ;;  %v555_v4 = vpop.f32.mrb[27].mxu0 }
 0x1d2   :  { %595 = vst.msk [vmem:[%s1160_s6 + $0x50] sm:$0xff] %vm584_vm4, %v555_v4 }
 0x1d4   :  { %v826_v5 = vpop.f32.mrb[28].mxu0 }
 0x1d5   :  { %598 = vst.msk [vmem:[%s1160_s6 + $0x68] sm:$0xff] %vm584_vm4, %v826_v5  ;;  %v565_v6 = vpop.f32.mrb[29].mxu0 }
 0x1d6   :  { %597 = vst.msk [vmem:[%s1160_s6 + $0x60] sm:$0xff] %vm584_vm4, %v565_v6 }
 0x1fd   :  { %v430_v7 = vpop.f32.mrb[0].mxu1 }
 0x1fe   :  { %434 = vst [vmem:[%s1161_s5] sm:$0xf] %v430_v7  ;;  %v803_v8 = vpop.f32.mrb[1].mxu1 }
 0x201   :  { %v829_v9 = vpop.f32.mrb[2].mxu1 }
 0x202   :  { %600 = vst.msk [vmem:[%s1160_s6 + $0x78] sm:$0xff] %vm584_vm4, %v829_v9  ;;  %v575_v10 = vpop.f32.mrb[3].mxu1 }
 0x203   :  { %599 = vst.msk [vmem:[%s1160_s6 + $0x70] sm:$0xff] %vm584_vm4, %v575_v10 }

// kernel: gat_forward.10
= control target key start
LH: loop header
LB: loop body
LE: loop exit
PB: predicated region body
PF: predicated region fallthrough
CT: control target
= control target key end

     0   :  { %vm109_vm0 = vcmask 523264   ;;  %vm313_vm1 = vcmask 130048   ;;  %v880_v13 = vmov 0.0|0.0   ;;  %vm881_vm2 = vmmov 0   ;;  %s1156_s1 = inlined_call_operand.vmem [shape: bf16[64,16], index: 1, kind: input, shape index: {}]   ;;  %s1157_s0 = inlined_call_operand.vmem [shape: bf16[128,64], index: 0, kind: input, shape index: {}]   ;;  %s1158_s3 = inlined_call_operand.vmem [shape: f32[2,16], index: 3, kind: input, shape index: {}]   ;;  %s1159_s4 = inlined_call_operand.vmem [shape: bf16[128,16], index: 4, kind: output, shape index: {0}]   ;;  %s1160_s2 = inlined_call_operand.vmem [shape: f32[2,16], index: 2, kind: input, shape index: {}]   ;;  %s1161_s6 = inlined_call_operand.vmem [shape: f32[128,2], index: 6, kind: output, shape index: {2}]   ;;  %s1162_s5 = inlined_call_operand.vmem [shape: f32[2,128], index: 5, kind: output, shape index: {1}]  }
   0x1   :  { %v868_v0 = vld [vmem:[%s1156_s1] sm:$0xff]   ;;  %v869_v1 = vld [vmem:[%s1156_s1 + $0x8] sm:$0xff]   ;;  %v870_v2 = vld [vmem:[%s1156_s1 + $0x10] sm:$0xff]   ;;  %831 = vmatprep.subr.bf16.mxu1 %v880_v13  ;;  %v882_v14 = vmov 0.0   ;;  %vm295_vm3 = vcmask 125952   ;;  %vm585_vm5 = vcmask 15360  }
   0x2   :  { %746 = vmatprep.subr.bf16.mxu0 %v868_v0  ;;  %v872_v3 = vld [vmem:[%s1157_s0] sm:$0xff]   ;;  %v871_v4 = vld [vmem:[%s1156_s1 + $0x18] sm:$0xff]   ;;  %v873_v5 = vld [vmem:[%s1157_s0 + $0x8] sm:$0xff]   ;;  %802 = vmatprep.mubr.msk.f32.mxu1 %vm881_vm2, %v882_v14 }
   0x3   :  { %747 = vmatpush3.bf16.msra.mxu0 %v868_v0  ;;  %754 = vmatprep.mubr.msk.bf16.mxu0 %vm109_vm0, %v872_v3  ;;  %v874_v6 = vld [vmem:[%s1157_s0 + $0x10] sm:$0xff]   ;;  %v875_v7 = vld [vmem:[%s1157_s0 + $0x18] sm:$0xff]   ;;  %v876_v8 = vld [vmem:[%s1157_s0 + $0x20] sm:$0xff]  }
   0x4   :  { %748 = vmatprep.subr.bf16.mxu0 %v869_v1  ;;  %v877_v9 = vld [vmem:[%s1157_s0 + $0x28] sm:$0xff]   ;;  %v878_v10 = vld [vmem:[%s1157_s0 + $0x30] sm:$0xff]   ;;  %v879_v11 = vld [vmem:[%s1157_s0 + $0x38] sm:$0xff]  }
   0x5   :  { %v965_v12 = vld [vmem:[%s1158_s3] sm:$0x3]  ;;  %vm979_vm4 = vmpackc.low %vm313_vm1, %vm313_vm1 }
   0x6   :  { %v312_v56 = vld [vmem:[%s1160_s2] sm:$0x3] }
   0x7   :  { %749 = vmatpush3.bf16.msra.mxu0 %v869_v1 }
   0x8   :  { %750 = vmatprep.subr.bf16.mxu0 %v870_v2 }
   0xb   :  { %751 = vmatpush3.bf16.msra.mxu0 %v870_v2 }
   0xc   :  { %752 = vmatprep.subr.bf16.mxu0 %v871_v4 }
   0xf   :  { %753 = vmatpush3.bf16.msra.mxu0 %v871_v4 }
  0x10   :  { %805 = vmatprep.subr.msk.mxu0 %vm313_vm1, %v965_v12 }
  0x12   :  { %755 = vmatmul.mubr.msk.bf16.vlgmr.msra.gmra.mrb[0].mxu0 %vm109_vm0, %v873_v5 }
  0x13   :  { %758 = vmatprep.mubr.msk.bf16.mxu0 %vm109_vm0, %v874_v6 }
  0x18   :  { %806 = vmatpush3.xpose.msk.msra.mxu0 %vm313_vm1, %v965_v12 }
  0x1a   :  { %759 = vmatmul.mubr.msk.bf16.gmra.mrb[4].mxu0 %vm109_vm0, %v875_v7 }
  0x1b   :  { %762 = vmatprep.mubr.msk.bf16.mxu0 %vm109_vm0, %v876_v8 }
  0x22   :  { %763 = vmatmul.mubr.msk.bf16.gmra.mrb[8].mxu0 %vm109_vm0, %v877_v9 }
  0x23   :  { %766 = vmatprep.mubr.msk.bf16.mxu0 %vm109_vm0, %v878_v10 }
  0x2a   :  { %767 = vmatmul.mubr.msk.bf16.gmra.mrb[12].mxu0 %vm109_vm0, %v879_v11 }
  0xe5   :  { %v756_v15 = vpop.f32.mrb[0].mxu0 }
  0xe6   :  { %v686_v16 = vpack.c.bf16 %v756_v15, %v756_v15  ;;  %v168_v17 = vpop.f32.mrb[1].mxu0 }
  0xe7   :  { %v684_v18 = vpack.c.bf16 %v168_v17, %v168_v17  ;;  %v757_v19 = vpop.f32.mrb[2].mxu0  ;;  %807 = vmatprep.mubr.msk.f32.mxu0 %vm313_vm1, %v168_v17 }
  0xe8   :  { %298 = vst.msk [vmem:[%s1159_s4 + $0x8] sm:$0xf] %vm295_vm3, %v686_v16  ;;  %v687_v20 = vpack.c.bf16 %v757_v19, %v757_v19  ;;  %v836_v21 = vpack.c.bf16 %v757_v19, %v756_v15  ;;  %v171_v22 = vpop.f32.mrb[3].mxu0 }
  0xe9   :  { %296 = vst.msk [vmem:[%s1159_s4] sm:$0xf] %vm295_vm3, %v684_v18  ;;  %v685_v24 = vpack.c.bf16 %v171_v22, %v171_v22  ;;  %v832_v25 = vpack.c.bf16 %v171_v22, %v168_v17  ;;  %808 = vmatmul.mubr.msk.f32.vlgmr.msra.gmra.mrb[16].mxu0 %vm313_vm1, %v171_v22 }
  0xea   :  { %299 = vst.msk [vmem:[%s1159_s4 + $0xc] sm:$0xf] %vm295_vm3, %v687_v20  ;;  %810 = vmatprep.mubr.msk.f32.mxu0 %vm313_vm1, %v756_v15 }
  0xeb   :  { %297 = vst.msk [vmem:[%s1159_s4 + $0x4] sm:$0xf] %vm295_vm3, %v685_v24  ;;  %834 = vmatpush3.bf16.xpose.msk.msra.mxu1 %vm979_vm4, %v832_v25 }
  0xec   :  { %835 = vmatprep.subr.bf16.mxu1 %v880_v13 }
  0xed   :  { %v760_v26 = vpop.f32.mrb[4].mxu0  ;;  %811 = vmatmul.mubr.msk.f32.gmra.mrb[18].mxu0 %vm313_vm1, %v757_v19 }
  0xee   :  { %v690_v27 = vpack.c.bf16 %v760_v26, %v760_v26  ;;  %v184_v28 = vpop.f32.mrb[5].mxu0 }
  0xef   :  { %v688_v29 = vpack.c.bf16 %v184_v28, %v184_v28  ;;  %v761_v30 = vpop.f32.mrb[6].mxu0  ;;  %813 = vmatprep.mubr.msk.f32.mxu0 %vm313_vm1, %v184_v28 }
  0xf0   :  { %302 = vst.msk [vmem:[%s1159_s4 + $0x18] sm:$0xf] %vm295_vm3, %v690_v27  ;;  %v691_v31 = vpack.c.bf16 %v761_v30, %v761_v30  ;;  %v844_v32 = vpack.c.bf16 %v761_v30, %v760_v26  ;;  %v187_v33 = vpop.f32.mrb[7].mxu0 }
  0xf1   :  { %300 = vst.msk [vmem:[%s1159_s4 + $0x10] sm:$0xf] %vm295_vm3, %v688_v29  ;;  %v689_v34 = vpack.c.bf16 %v187_v33, %v187_v33  ;;  %v840_v35 = vpack.c.bf16 %v187_v33, %v184_v28  ;;  %814 = vmatmul.mubr.msk.f32.gmra.mrb[20].mxu0 %vm313_vm1, %v187_v33 }
  0xf2   :  { %303 = vst.msk [vmem:[%s1159_s4 + $0x1c] sm:$0xf] %vm295_vm3, %v691_v31  ;;  %816 = vmatprep.mubr.msk.f32.mxu0 %vm313_vm1, %v760_v26 }
  0xf3   :  { %301 = vst.msk [vmem:[%s1159_s4 + $0x14] sm:$0xf] %vm295_vm3, %v689_v34  ;;  %838 = vmatpush3.bf16.xpose.msk.msra.mxu1 %vm979_vm4, %v836_v21 }
  0xf4   :  { %839 = vmatprep.subr.bf16.mxu1 %v880_v13 }
  0xf5   :  { %817 = vmatmul.mubr.msk.f32.gmra.mrb[22].mxu0 %vm313_vm1, %v761_v30  ;;  %v764_v36 = vpop.f32.mrb[8].mxu0 }
  0xf6   :  { %v694_v37 = vpack.c.bf16 %v764_v36, %v764_v36  ;;  %v200_v38 = vpop.f32.mrb[9].mxu0 }
  0xf7   :  { %v692_v39 = vpack.c.bf16 %v200_v38, %v200_v38  ;;  %v765_v40 = vpop.f32.mrb[10].mxu0  ;;  %819 = vmatprep.mubr.msk.f32.mxu0 %vm313_vm1, %v200_v38 }
  0xf8   :  { %306 = vst.msk [vmem:[%s1159_s4 + $0x28] sm:$0xf] %vm295_vm3, %v694_v37  ;;  %v695_v41 = vpack.c.bf16 %v765_v40, %v765_v40  ;;  %v852_v42 = vpack.c.bf16 %v765_v40, %v764_v36  ;;  %v203_v43 = vpop.f32.mrb[11].mxu0 }
  0xf9   :  { %304 = vst.msk [vmem:[%s1159_s4 + $0x20] sm:$0xf] %vm295_vm3, %v692_v39  ;;  %v693_v44 = vpack.c.bf16 %v203_v43, %v203_v43  ;;  %v848_v45 = vpack.c.bf16 %v203_v43, %v200_v38  ;;  %820 = vmatmul.mubr.msk.f32.gmra.mrb[24].mxu0 %vm313_vm1, %v203_v43 }
  0xfa   :  { %307 = vst.msk [vmem:[%s1159_s4 + $0x2c] sm:$0xf] %vm295_vm3, %v695_v41  ;;  %822 = vmatprep.mubr.msk.f32.mxu0 %vm313_vm1, %v764_v36 }
  0xfb   :  { %842 = vmatpush3.bf16.xpose.msk.msra.mxu1 %vm979_vm4, %v840_v35  ;;  %305 = vst.msk [vmem:[%s1159_s4 + $0x24] sm:$0xf] %vm295_vm3, %v693_v44 }
  0xfc   :  { %843 = vmatprep.subr.bf16.mxu1 %v880_v13 }
  0xfd   :  { %823 = vmatmul.mubr.msk.f32.gmra.mrb[26].mxu0 %vm313_vm1, %v765_v40  ;;  %v768_v46 = vpop.f32.mrb[12].mxu0 }
  0xfe   :  { %v698_v47 = vpack.c.bf16 %v768_v46, %v768_v46  ;;  %v216_v48 = vpop.f32.mrb[13].mxu0 }
  0xff   :  { %v696_v49 = vpack.c.bf16 %v216_v48, %v216_v48  ;;  %v769_v50 = vpop.f32.mrb[14].mxu0  ;;  %825 = vmatprep.mubr.msk.f32.mxu0 %vm313_vm1, %v216_v48 }
 0x100   :  { %310 = vst.msk [vmem:[%s1159_s4 + $0x38] sm:$0xf] %vm295_vm3, %v698_v47  ;;  %v699_v51 = vpack.c.bf16 %v769_v50, %v769_v50  ;;  %v860_v52 = vpack.c.bf16 %v769_v50, %v768_v46  ;;  %v219_v53 = vpop.f32.mrb[15].mxu0 }
 0x101   :  { %308 = vst.msk [vmem:[%s1159_s4 + $0x30] sm:$0xf] %vm295_vm3, %v696_v49  ;;  %v697_v54 = vpack.c.bf16 %v219_v53, %v219_v53  ;;  %v856_v55 = vpack.c.bf16 %v219_v53, %v216_v48  ;;  %826 = vmatmul.mubr.msk.f32.gmra.mrb[28].mxu0 %vm313_vm1, %v219_v53 }
 0x102   :  { %311 = vst.msk [vmem:[%s1159_s4 + $0x3c] sm:$0xf] %vm295_vm3, %v699_v51 }
 0x103   :  { %846 = vmatpush3.bf16.xpose.msk.msra.mxu1 %vm979_vm4, %v844_v32  ;;  %309 = vst.msk [vmem:[%s1159_s4 + $0x34] sm:$0xf] %vm295_vm3, %v697_v54 }
 0x104   :  { %847 = vmatprep.subr.bf16.mxu1 %v880_v13 }
 0x10b   :  { %850 = vmatpush3.bf16.xpose.msk.msra.mxu1 %vm979_vm4, %v848_v45 }
 0x10c   :  { %851 = vmatprep.subr.bf16.mxu1 %v880_v13 }
 0x113   :  { %854 = vmatpush3.bf16.xpose.msk.msra.mxu1 %vm979_vm4, %v852_v42 }
 0x114   :  { %855 = vmatprep.subr.bf16.mxu1 %v880_v13 }
 0x11b   :  { %858 = vmatpush3.bf16.xpose.msk.msra.mxu1 %vm979_vm4, %v856_v55 }
 0x11c   :  { %859 = vmatprep.subr.bf16.mxu1 %v880_v13 }
 0x123   :  { %862 = vmatpush3.bf16.xpose.msk.msra.mxu1 %vm979_vm4, %v860_v52 }
 0x124   :  { %863 = vmatprep.subr.msk.mxu1 %vm313_vm1, %v965_v12 }
 0x12a   :  { %803 = vmatmul.mubr.msk.f32.vlgmr.msra.gmra.mrb[0].mxu1 %vm313_vm1, %v312_v56 }
 0x12b   :  { %864 = vmatpush3.xpose.msk.msra.mxu1 %vm313_vm1, %v965_v12  ;;  %828 = vmatprep.mubr.msk.f32.mxu1 %vm313_vm1, %v768_v46 }
 0x12e   :  { %829 = vmatmul.mubr.msk.f32.vlgmr.msra.gmra.mrb[2].mxu1 %vm313_vm1, %v769_v50 }
 0x1bc   :  { %v809_v57 = vpop.f32.mrb[16].mxu0 }
 0x1bd   :  { %587 = vst.msk [vmem:[%s1161_s6 + $0x8] sm:$0xff] %vm585_vm5, %v809_v57  ;;  %v506_v58 = vpop.f32.mrb[17].mxu0 }
 0x1be   :  { %586 = vst.msk [vmem:[%s1161_s6] sm:$0xff] %vm585_vm5, %v506_v58 }
 0x1c0   :  { %v812_v59 = vpop.f32.mrb[18].mxu0 }
 0x1c1   :  { %589 = vst.msk [vmem:[%s1161_s6 + $0x18] sm:$0xff] %vm585_vm5, %v812_v59  ;;  %v516_v60 = vpop.f32.mrb[19].mxu0 }
 0x1c2   :  { %588 = vst.msk [vmem:[%s1161_s6 + $0x10] sm:$0xff] %vm585_vm5, %v516_v60 }
 0x1c4   :  { %v815_v61 = vpop.f32.mrb[20].mxu0 }
 0x1c5   :  { %591 = vst.msk [vmem:[%s1161_s6 + $0x28] sm:$0xff] %vm585_vm5, %v815_v61  ;;  %v526_v62 = vpop.f32.mrb[21].mxu0 }
 0x1c6   :  { %590 = vst.msk [vmem:[%s1161_s6 + $0x20] sm:$0xff] %vm585_vm5, %v526_v62 }
 0x1c8   :  { %v818_v63 = vpop.f32.mrb[22].mxu0 }
 0x1c9   :  { %593 = vst.msk [vmem:[%s1161_s6 + $0x38] sm:$0xff] %vm585_vm5, %v818_v63  ;;  %v536_v0 = vpop.f32.mrb[23].mxu0 }
 0x1ca   :  { %592 = vst.msk [vmem:[%s1161_s6 + $0x30] sm:$0xff] %vm585_vm5, %v536_v0 }
 0x1cc   :  { %v821_v1 = vpop.f32.mrb[24].mxu0 }
 0x1cd   :  { %595 = vst.msk [vmem:[%s1161_s6 + $0x48] sm:$0xff] %vm585_vm5, %v821_v1  ;;  %v546_v2 = vpop.f32.mrb[25].mxu0 }
 0x1ce   :  { %594 = vst.msk [vmem:[%s1161_s6 + $0x40] sm:$0xff] %vm585_vm5, %v546_v2 }
 0x1d0   :  { %v824_v3 = vpop.f32.mrb[26].mxu0 }
 0x1d1   :  { %597 = vst.msk [vmem:[%s1161_s6 + $0x58] sm:$0xff] %vm585_vm5, %v824_v3  ;;  %v556_v4 = vpop.f32.mrb[27].mxu0 }
 0x1d2   :  { %596 = vst.msk [vmem:[%s1161_s6 + $0x50] sm:$0xff] %vm585_vm5, %v556_v4 }
 0x1d4   :  { %v827_v5 = vpop.f32.mrb[28].mxu0 }
 0x1d5   :  { %599 = vst.msk [vmem:[%s1161_s6 + $0x68] sm:$0xff] %vm585_vm5, %v827_v5  ;;  %v566_v6 = vpop.f32.mrb[29].mxu0 }
 0x1d6   :  { %598 = vst.msk [vmem:[%s1161_s6 + $0x60] sm:$0xff] %vm585_vm5, %v566_v6 }
 0x1fd   :  { %v431_v7 = vpop.f32.mrb[0].mxu1 }
 0x1fe   :  { %435 = vst [vmem:[%s1162_s5] sm:$0x3] %v431_v7  ;;  %v804_v8 = vpop.f32.mrb[1].mxu1 }
 0x201   :  { %v830_v9 = vpop.f32.mrb[2].mxu1 }
 0x202   :  { %601 = vst.msk [vmem:[%s1161_s6 + $0x78] sm:$0xff] %vm585_vm5, %v830_v9  ;;  %v576_v10 = vpop.f32.mrb[3].mxu1 }
 0x203   :  { %600 = vst.msk [vmem:[%s1161_s6 + $0x70] sm:$0xff] %vm585_vm5, %v576_v10 }

// kernel: gat_forward.7
= control target key start
LH: loop header
LB: loop body
LE: loop exit
PB: predicated region body
PF: predicated region fallthrough
CT: control target
= control target key end

     0   :  { %vm76_vm0 = vcmask 1043456   ;;  %v3525_v1 = vmov 0   ;;  %v3526_v3 = vmov 1   ;;  %v160_v20 = vlaneseq  ;;  %s3530_s25 = smov 96   ;;  %s3533_s19 = smov 32   ;;  %s5524_s1 = inlined_call_operand.vmem [shape: f32[4,128], index: 1, kind: input, shape index: {}]   ;;  %s5525_s2 = inlined_call_operand.vmem [shape: f32[128,4], index: 2, kind: input, shape index: {}]   ;;  %s5526_s3 = inlined_call_operand.vmem [shape: bf16[128,128], index: 3, kind: input, shape index: {}]   ;;  %s5527_s0 = inlined_call_operand.vmem [shape: bf16[128,64], index: 0, kind: input, shape index: {}]   ;;  %s5528_s4 = inlined_call_operand.vmem [shape: f32[1,64], index: 4, kind: input, shape index: {}]   ;;  %s5529_s5 = inlined_call_operand.vmem [shape: f32[1,64], index: 5, kind: input, shape index: {}]   ;;  %s5530_s6 = inlined_call_operand.vmem [shape: f32[1,64], index: 6, kind: input, shape index: {}]   ;;  %s5531_s7 = inlined_call_operand.vmem [shape: bf16[128,64], index: 7, kind: output, shape index: {}]  }
   0x1   :  { %v3578_v0 = vld [vmem:[%s5524_s1] sm:$0xf]  ;;  %3143 = vset.pattern.permute.xlu1 %v3525_v1  ;;  %v3583_v2 = vld [vmem:[%s5525_s2 + $0x8] sm:$0xff]  ;;  %3144 = vset.pattern.permute.xlu0 %v3526_v3  ;;  %v3591_v5 = vld [vmem:[%s5525_s2 + $0x10] sm:$0xff]  ;;  %vm2348_vm1 = vcmask 130048   ;;  %s3534_s20 = smov 48  }
   0x2   :  { %v77_v4 = vsel %vm76_vm0, %v3578_v0, -inf  ;;  %87 = vperm.xlu1 %3143, %v3583_v2   ;;  %v3597_v6 = vld [vmem:[%s5525_s2 + $0x18] sm:$0xff]  ;;  %v3603_v7 = vld [vmem:[%s5525_s2 + $0x20] sm:$0xff]  ;;  %v3609_v8 = vld [vmem:[%s5525_s2 + $0x28] sm:$0xff]  ;;  %v3695_v21 = vshrl.u32 %v160_v20, 7  ;;  %vm2365_vm2 = vcmask 261120  }
   0x3   :  { %78 = vmax.xlane.f32.xlu0 %v77_v4  ;;  %v3615_v9 = vld [vmem:[%s5525_s2 + $0x30] sm:$0xff]  ;;  %v3621_v10 = vld [vmem:[%s5525_s2] sm:$0xff]  ;;  %v3626_v11 = vld [vmem:[%s5525_s2 + $0x38] sm:$0xff]  ;;  %vm2382_vm3 = vcmask 392192   ;;  %vm2422_vm4 = vcmask 523264   ;;  %vm2822_vm5 = vcmask 519168  }
   0x4   :  { %v3633_v12 = vld [vmem:[%s5525_s2 + $0x40] sm:$0xff]  ;;  %v3638_v13 = vld [vmem:[%s5525_s2 + $0x48] sm:$0xff]  ;;  %v3645_v14 = vld [vmem:[%s5525_s2 + $0x58] sm:$0xff]  ;;  %v162_v23 = vsub.s32 0, %v3695_v21  ;;  %v5534_v20 = vsub.s32 1, %v3695_v21 }
   0x5   :  { %v3652_v15 = vld [vmem:[%s5525_s2 + $0x68] sm:$0xff]  ;;  %v3657_v16 = vld [vmem:[%s5525_s2 + $0x50] sm:$0xff]  ;;  %v3664_v17 = vld [vmem:[%s5525_s2 + $0x78] sm:$0xff] }
   0x6   :  { %92 = vperm.xlu1 %3143, %v3591_v5   ;;  %v3671_v18 = vld [vmem:[%s5525_s2 + $0x60] sm:$0xff]  ;;  %v3678_v19 = vld [vmem:[%s5525_s2 + $0x70] sm:$0xff] }
   0xa   :  { %97 = vperm.xlu1 %3143, %v3597_v6  }
   0xe   :  { %102 = vperm.xlu1 %3143, %v3603_v7  }
  0x12   :  { %107 = vperm.xlu1 %3143, %v3609_v8  }
  0x16   :  { %112 = vperm.xlu1 %3143, %v3615_v9  }
  0x19   :  { %642 = vperm.xlu0 %3144, %v3621_v10  }
  0x1a   :  { %117 = vperm.xlu1 %3143, %v3626_v11  }
  0x1d   :  { %678 = vperm.xlu0 %3144, %v3638_v13  }
  0x1e   :  { %122 = vperm.xlu1 %3143, %v3633_v12  }
  0x21   :  { %686 = vperm.xlu0 %3144, %v3645_v14  }
  0x22   :  { %127 = vperm.xlu1 %3143, %v3638_v13  }
  0x25   :  { %694 = vperm.xlu0 %3144, %v3652_v15  }
  0x26   :  { %132 = vperm.xlu1 %3143, %v3657_v16  }
  0x29   :  { %702 = vperm.xlu0 %3144, %v3664_v17  }
  0x2a   :  { %137 = vperm.xlu1 %3143, %v3645_v14  }
  0x2d   :  { %3146 = vset.pattern.permute.xlu0 %v3525_v1 }
  0x2e   :  { %142 = vperm.xlu1 %3143, %v3671_v18   ;;  %82 = vperm.xlu0 %3146, %v3621_v10  }
  0x32   :  { %152 = vperm.xlu1 %3143, %v3678_v19   ;;  %147 = vperm.xlu0 %3146, %v3652_v15  }
  0x36   :  { %3145 = vset.pattern.permute.xlu1 %v3526_v3  ;;  %157 = vperm.xlu0 %3146, %v3664_v17  }
  0x37   :  { %646 = vperm.xlu1 %3145, %v3583_v2  }
  0x3b   :  { %650 = vperm.xlu1 %3145, %v3591_v5  }
  0x3f   :  { %654 = vperm.xlu1 %3145, %v3597_v6  }
  0x43   :  { %658 = vperm.xlu1 %3145, %v3603_v7  }
  0x47   :  { %662 = vperm.xlu1 %3145, %v3609_v8  }
  0x4b   :  { %666 = vperm.xlu1 %3145, %v3615_v9  }
  0x4f   :  { %670 = vperm.xlu1 %3145, %v3626_v11  }
  0x53   :  { %674 = vperm.xlu1 %3145, %v3633_v12  }
  0x57   :  { %682 = vperm.xlu1 %3145, %v3657_v16  }
  0x5b   :  { %690 = vperm.xlu1 %3145, %v3671_v18  }
  0x5f   :  { %698 = vperm.xlu1 %3145, %v3678_v19  }
  0x63   :  { %3147 = vset.pattern.permute.xlu1 %v3525_v1 }
  0x81   :  { %v3697_v22 = vpop.permute.xlu1 %87 }
  0x85   :  { %v3705_v26 = vpop.permute.xlu1 %92 }
  0x89   :  { %v3713_v39 = vpop.permute.xlu1 %97 }
  0x8d   :  { %v3717_v46 = vpop.permute.xlu1 %102 }
  0x90   :  { %v3700_v24 = vpop.xlane.xlu0 %78 }
  0x91   :  { %v215_v25 = vrot.slane %v3700_v24, %v162_v23  ;;  %v3723_v59 = vpop.permute.xlu1 %107 }
  0x93   :  { %v217_v27 = vadd.f32 %v215_v25, %v3583_v2  ;;  %v216_v28 = vadd.f32 %v215_v25, %v3621_v10  ;;  %v219_v29 = vadd.f32 %v215_v25, %v3597_v6  ;;  %v218_v30 = vadd.f32 %v215_v25, %v3591_v5 }
  0x94   :  { %v221_v33 = vadd.f32 %v215_v25, %v3609_v8  ;;  %v220_v34 = vadd.f32 %v215_v25, %v3603_v7  ;;  %v223_v41 = vadd.f32 %v215_v25, %v3626_v11  ;;  %v222_v45 = vadd.f32 %v215_v25, %v3615_v9 }
  0x95   :  { %v233_v31 = vmul.f32 0.2, %v217_v27  ;;  %v232_v32 = vmul.f32 0.2, %v216_v28  ;;  %v235_v37 = vmul.f32 0.2, %v219_v29  ;;  %v225_v51 = vadd.f32 %v215_v25, %v3638_v13 }
  0x96   :  { %v234_v38 = vmul.f32 0.2, %v218_v30  ;;  %v237_v40 = vmul.f32 0.2, %v221_v33  ;;  %v236_v44 = vmul.f32 0.2, %v220_v34  ;;  %v224_v52 = vadd.f32 %v215_v25, %v3633_v12 }
  0x97   :  { %v249_v35 = vmax.f32 %v217_v27, %v233_v31  ;;  %v248_v36 = vmax.f32 %v216_v28, %v232_v32  ;;  %v251_v42 = vmax.f32 %v219_v29, %v235_v37  ;;  %v239_v48 = vmul.f32 0.2, %v223_v41  ;;  %v3728_v27 = vpop.permute.xlu1 %112 }
  0x98   :  { %v250_v43 = vmax.f32 %v218_v30, %v234_v38  ;;  %v253_v47 = vmax.f32 %v221_v33, %v237_v40  ;;  %v252_v49 = vmax.f32 %v220_v34, %v236_v44  ;;  %v238_v50 = vmul.f32 0.2, %v222_v45 }
  0x99   :  { %271 = vperm.xlu0 %3146, %v249_v35   ;;  %266 = vperm.xlu1 %3147, %v248_v36   ;;  %v255_v53 = vmax.f32 %v223_v41, %v239_v48  ;;  %v227_v54 = vadd.f32 %v215_v25, %v3645_v14  ;;  %v241_v56 = vmul.f32 0.2, %v225_v51  ;;  %v240_v57 = vmul.f32 0.2, %v224_v52 }
  0x9a   :  { %v254_v55 = vmax.f32 %v222_v45, %v238_v50  ;;  %v226_v58 = vadd.f32 %v215_v25, %v3657_v16  ;;  %v229_v60 = vadd.f32 %v215_v25, %v3652_v15  ;;  %v228_v61 = vadd.f32 %v215_v25, %v3671_v18 }
  0x9b   :  { %v257_v62 = vmax.f32 %v225_v51, %v241_v56  ;;  %v256_v63 = vmax.f32 %v224_v52, %v240_v57  ;;  %v243_v1 = vmul.f32 0.2, %v227_v54  ;;  %v231_v29 = vadd.f32 %v215_v25, %v3664_v17  ;;  %v3737_v40 = vpop.permute.xlu1 %117 }
  0x9c   :  { %v242_v4 = vmul.f32 0.2, %v226_v58  ;;  %v245_v28 = vmul.f32 0.2, %v229_v60  ;;  %v244_v32 = vmul.f32 0.2, %v228_v61  ;;  %v230_v33 = vadd.f32 %v215_v25, %v3678_v19 }
  0x9d   :  { %281 = vperm.xlu0 %3146, %v251_v42   ;;  %276 = vperm.xlu1 %3147, %v250_v43   ;;  %v259_v30 = vmax.f32 %v227_v54, %v243_v1  ;;  %v3735_v34 = vrot.slane %v3700_v24, %v5534_v20  ;;  %v247_v37 = vmul.f32 0.2, %v231_v29 }
  0x9e   :  { %v258_v31 = vmax.f32 %v226_v58, %v242_v4  ;;  %v261_v35 = vmax.f32 %v229_v60, %v245_v28  ;;  %v260_v36 = vmax.f32 %v228_v61, %v244_v32  ;;  %v246_v38 = vmul.f32 0.2, %v230_v33 }
  0x9f   :  { %v762_v41 = vadd.f32 %v3735_v34, %v3583_v2  ;;  %v761_v42 = vadd.f32 %v3735_v34, %v3621_v10  ;;  %v263_v25 = vmax.f32 %v231_v29, %v247_v37  ;;  %v763_v48 = vadd.f32 %v3735_v34, %v3591_v5 }
  0xa0   :  { %v262_v43 = vmax.f32 %v230_v33, %v246_v38  ;;  %v766_v50 = vadd.f32 %v3735_v34, %v3609_v8  ;;  %v765_v51 = vadd.f32 %v3735_v34, %v3603_v7  ;;  %v770_v29 = vadd.f32 %v3735_v34, %v3638_v13 }
  0xa1   :  { %291 = vperm.xlu0 %3146, %v253_v47   ;;  %286 = vperm.xlu1 %3147, %v252_v49   ;;  %v778_v44 = vmul.f32 0.2, %v762_v41  ;;  %v777_v45 = vmul.f32 0.2, %v761_v42  ;;  %v764_v47 = vadd.f32 %v3735_v34, %v3597_v6  ;;  %v3747_v49 = vpop.permute.xlu1 %122  ;;  %v772_v32 = vadd.f32 %v3735_v34, %v3645_v14 }
  0xa2   :  { %v782_v56 = vmul.f32 0.2, %v766_v50  ;;  %v781_v57 = vmul.f32 0.2, %v765_v51  ;;  %v771_v33 = vadd.f32 %v3735_v34, %v3657_v16  ;;  %v786_v37 = vmul.f32 0.2, %v770_v29 }
  0xa3   :  { %v794_v52 = vmax.f32 %v762_v41, %v778_v44  ;;  %v780_v54 = vmul.f32 0.2, %v764_v47  ;;  %v788_v41 = vmul.f32 0.2, %v772_v32  ;;  %v773_v14 = vadd.f32 %v3735_v34, %v3671_v18 }
  0xa4   :  { %v798_v1 = vmax.f32 %v766_v50, %v782_v56  ;;  %v797_v4 = vmax.f32 %v765_v51, %v781_v57  ;;  %v787_v44 = vmul.f32 0.2, %v771_v33  ;;  %v776_v51 = vadd.f32 %v3735_v34, %v3664_v17 }
  0xa5   :  { %301 = vperm.xlu0 %3146, %v255_v53   ;;  %296 = vperm.xlu1 %3147, %v254_v55   ;;  %v793_v53 = vmax.f32 %v761_v42, %v777_v45  ;;  %v779_v55 = vmul.f32 0.2, %v763_v48  ;;  %v3755_v58 = vpop.permute.xlu1 %127  ;;  %v796_v60 = vmax.f32 %v764_v47, %v780_v54  ;;  %v804_v45 = vmax.f32 %v772_v32, %v788_v41 }
  0xa6   :  { %v789_v50 = vmul.f32 0.2, %v773_v14  ;;  %v792_v56 = vmul.f32 0.2, %v776_v51 }
  0xa7   :  { %v795_v61 = vmax.f32 %v763_v48, %v779_v55  ;;  %v803_v48 = vmax.f32 %v771_v33, %v787_v44  ;;  %v5537_v33 = vmov 3  }
  0xa8   :  { %v805_v18 = vmax.f32 %v773_v14, %v789_v50 }
  0xa9   :  { %311 = vperm.xlu0 %3146, %v257_v62   ;;  %306 = vperm.xlu1 %3147, %v256_v63   ;;  %v768_v62 = vadd.f32 %v3735_v34, %v3626_v11  ;;  %v767_v63 = vadd.f32 %v3735_v34, %v3615_v9 }
  0xab   :  { %v784_v28 = vmul.f32 0.2, %v768_v62 }
  0xad   :  { %321 = vperm.xlu0 %3146, %v259_v30   ;;  %316 = vperm.xlu1 %3147, %v258_v31   ;;  %v769_v30 = vadd.f32 %v3735_v34, %v3633_v12  ;;  %v3765_v31 = vpop.permute.xlu1 %132  ;;  %v774_v12 = vadd.f32 %v3735_v34, %v3652_v15 }
  0xaf   :  { %v785_v38 = vmul.f32 0.2, %v769_v30  ;;  %v790_v47 = vmul.f32 0.2, %v774_v12 }
  0xb1   :  { %331 = vperm.xlu0 %3146, %v261_v35   ;;  %326 = vperm.xlu1 %3147, %v260_v36   ;;  %v800_v35 = vmax.f32 %v768_v62, %v784_v28  ;;  %v3773_v42 = vpop.permute.xlu1 %137  ;;  %v806_v55 = vmax.f32 %v774_v12, %v790_v47 }
  0xb5   :  { %341 = vperm.xlu0 %3146, %v263_v25   ;;  %336 = vperm.xlu1 %3147, %v262_v43   ;;  %v802_v25 = vmax.f32 %v770_v29, %v786_v37  ;;  %v801_v43 = vmax.f32 %v769_v30, %v785_v38  ;;  %v3782_v54 = vpop.permute.xlu1 %142 }
  0xb9   :  { %3149 = vset.pattern.permute.xlu0 %v3526_v3  ;;  %3148 = vset.pattern.permute.xlu1 %v3526_v3  ;;  %v783_v3 = vmul.f32 0.2, %v767_v63  ;;  %v3789_v17 = vpop.permute.xlu1 %152 }
  0xba   :  { %816 = vperm.xlu0 %3149, %v794_v52   ;;  %811 = vperm.xlu1 %3148, %v793_v53   ;;  %v775_v52 = vadd.f32 %v3735_v34, %v3678_v19  ;;  %v5533_v53 = vsub.s32 2, %v3695_v21  ;;  %v808_v34 = vmax.f32 %v776_v51, %v792_v56 }
  0xbb   :  { %v799_v36 = vmax.f32 %v767_v63, %v783_v3 }
  0xbc   :  { %v791_v57 = vmul.f32 0.2, %v775_v52 }
  0xbd   :  { %v3793_v63 = vpop.permute.xlu1 %646 }
  0xbe   :  { %826 = vperm.xlu0 %3149, %v796_v60   ;;  %821 = vperm.xlu1 %3148, %v795_v61   ;;  %v3787_v60 = vrot.slane %v3700_v24, %v5533_v53  ;;  %v807_v61 = vmax.f32 %v775_v52, %v791_v57 }
  0xc0   :  { %v1267_v62 = vadd.f32 %v3787_v60, %v3583_v2  ;;  %v1271_v29 = vadd.f32 %v3787_v60, %v3609_v8  ;;  %v1268_v12 = vadd.f32 %v3787_v60, %v3591_v5  ;;  %v1269_v14 = vadd.f32 %v3787_v60, %v3597_v6 }
  0xc1   :  { %v3799_v3 = vpop.permute.xlu1 %650 }
  0xc2   :  { %836 = vperm.xlu0 %3149, %v798_v1   ;;  %831 = vperm.xlu1 %3148, %v797_v4   ;;  %v1283_v1 = vmul.f32 0.2, %v1267_v62  ;;  %v5535_v4 = vmov 2   ;;  %v1287_v32 = vmul.f32 0.2, %v1271_v29 }
  0xc3   :  { %v1285_v50 = vmul.f32 0.2, %v1269_v14 }
  0xc4   :  { %v1299_v28 = vmax.f32 %v1267_v62, %v1283_v1  ;;  %v1303_v37 = vmax.f32 %v1271_v29, %v1287_v32 }
  0xc5   :  { %v3806_v30 = vpop.permute.xlu1 %654 }
  0xc6   :  { %846 = vperm.xlu0 %3149, %v800_v35   ;;  %841 = vperm.xlu1 %3148, %v799_v36   ;;  %v1266_v35 = vadd.f32 %v3787_v60, %v3621_v10  ;;  %v3813_v36 = vpop.permute.xlu0 %642 }
  0xc8   :  { %v1282_v41 = vmul.f32 0.2, %v1266_v35 }
  0xc9   :  { %v3815_v38 = vpop.permute.xlu1 %658 }
  0xca   :  { %856 = vperm.xlu0 %3149, %v802_v25   ;;  %851 = vperm.xlu1 %3148, %v801_v43   ;;  %v5532_v25 = vsub.s32 3, %v3695_v21  ;;  %v3821_v43 = vpop.permute.xlu0 %678  ;;  %v1298_v44 = vmax.f32 %v1266_v35, %v1282_v41  ;;  %v3860_v41 = vrot.slane %v3578_v0, %v162_v23  ;;  %v1270_v23 = vadd.f32 %v3787_v60, %v3603_v7 }
  0xcb   :  { %5581 = vst [vmem:[#allocation2_spill] sm:$0xff] %v3821_v43 }
  0xcd   :  { %v3830_v47 = vpop.permute.xlu1 %662 }
  0xce   :  { %866 = vperm.xlu0 %3149, %v804_v45   ;;  %861 = vperm.xlu1 %3148, %v803_v48   ;;  %v3828_v45 = vrot.slane %v3700_v24, %v5532_v25  ;;  %v3835_v52 = vpop.permute.xlu0 %686 }
  0xcf   :  { %5582 = vst [vmem:[#allocation3_spill] sm:$0xff] %v3835_v52 }
  0xd0   :  { %v1772_v51 = vadd.f32 %v3828_v45, %v3583_v2 }
  0xd2   :  { %876 = vperm.xlu0 %3149, %v806_v55   ;;  %871 = vperm.xlu1 %3148, %v805_v18   ;;  %v3837_v55 = vpop.permute.xlu1 %666  ;;  %v1301_v18 = vmax.f32 %v1269_v14, %v1285_v50  ;;  %v1788_v56 = vmul.f32 0.2, %v1772_v51  ;;  %v3839_v24 = vpop.permute.xlu0 %694  ;;  %v168_v50 = vadd.f32 %v3860_v41, %v3717_v46 }
  0xd3   :  { %5583 = vst [vmem:[#allocation4_spill] sm:$0xff] %v3839_v24  ;;  %v3504_v24 = vld [vmem:[%s5525_s2 + $0x28] sm:$0xff] }
  0xd6   :  { %886 = vperm.xlu0 %3149, %v808_v34   ;;  %881 = vperm.xlu1 %3148, %v807_v61   ;;  %v3841_v57 = vpop.permute.xlu1 %670  ;;  %v1804_v34 = vmax.f32 %v1772_v51, %v1788_v56  ;;  %v1773_v61 = vadd.f32 %v3828_v45, %v3591_v5 }
  0xd8   :  { %v1789_v1 = vmul.f32 0.2, %v1773_v61 }
  0xda   :  { %3151 = vset.pattern.permute.xlu0 %v5535_v4  ;;  %3150 = vset.pattern.permute.xlu1 %v5535_v4  ;;  %v3848_v62 = vpop.permute.xlu1 %674  ;;  %v1805_v29 = vmax.f32 %v1773_v61, %v1789_v1  ;;  %v170_v61 = vadd.f32 %v3860_v41, %v3728_v27 }
  0xdb   :  { %1151 = vperm.xlu0 %3151, %v3583_v2   ;;  %1147 = vperm.xlu1 %3150, %v3621_v10   ;;  %v1284_v10 = vmul.f32 0.2, %v1268_v12  ;;  %5585 = vst [vmem:[#allocation6_spill] sm:$0xff] %v3848_v62 }
  0xdc   :  { %v186_v46 = vmul.f32 0.2, %v170_v61 }
  0xdd   :  { %v1300_v48 = vmax.f32 %v1268_v12, %v1284_v10 }
  0xdf   :  { %1321 = vperm.xlu0 %3151, %v1299_v28   ;;  %1155 = vperm.xlu1 %3150, %v3591_v5   ;;  %v1774_v28 = vadd.f32 %v3828_v45, %v3597_v6 }
  0xe1   :  { %v1790_v32 = vmul.f32 0.2, %v1774_v28 }
  0xe3   :  { %1167 = vperm.xlu0 %3151, %v3609_v8   ;;  %1159 = vperm.xlu1 %3150, %v3597_v6  }
  0xe7   :  { %1171 = vperm.xlu0 %3151, %v3615_v9   ;;  %3152 = vset.pattern.permute.xlu1 %v5537_v33 }
  0xe8   :  { %1656 = vperm.xlu1 %3152, %v3583_v2   ;;  %v3846_v2 = vpop.permute.xlu0 %702 }
  0xe9   :  { %5584 = vst [vmem:[#allocation5_spill] sm:$0xff] %v3846_v2 }
  0xeb   :  { %1341 = vperm.xlu0 %3151, %v1303_v37   ;;  %v3855_v37 = vpop.permute.xlu1 %682 }
  0xec   :  { %1660 = vperm.xlu1 %3152, %v3591_v5   ;;  %v83_v35 = vpop.permute.xlu0 %82  ;;  %5586 = vst [vmem:[#allocation7_spill] sm:$0xff] %v3855_v37  ;;  %v1806_v5 = vmax.f32 %v1774_v28, %v1790_v32  ;;  %v172_v32 = vadd.f32 %v3860_v41, %v3747_v49  ;;  %v202_v49 = vmax.f32 %v170_v61, %v186_v46 }
  0xef   :  { %v3864_v6 = vpop.permute.xlu1 %690 }
  0xf0   :  { %3153 = vset.pattern.permute.xlu1 %v5535_v4  ;;  %v3862_v12 = vpop.permute.xlu0 %147  ;;  %5587 = vst [vmem:[#allocation8_spill] sm:$0xff] %v3864_v6 }
  0xf1   :  { %1316 = vperm.xlu1 %3153, %v1298_v44   ;;  %v165_v44 = vadd.f32 %v3860_v41, %v3697_v22 }
  0xf3   :  { %v181_v14 = vmul.f32 0.2, %v165_v44  ;;  %v3874_v0 = vpop.permute.xlu1 %698 }
  0xf4   :  { %v3870_v10 = vpop.permute.xlu0 %157  ;;  %5588 = vst [vmem:[#allocation9_spill] sm:$0xff] %v3874_v0 }
  0xf5   :  { %1326 = vperm.xlu1 %3153, %v1300_v48   ;;  %v166_v48 = vadd.f32 %v3860_v41, %v3705_v26  ;;  %v184_v26 = vmul.f32 0.2, %v168_v50 }
  0xf7   :  { %v182_v22 = vmul.f32 0.2, %v166_v48 }
  0xf9   :  { %1331 = vperm.xlu1 %3153, %v1301_v18   ;;  %v198_v28 = vmax.f32 %v166_v48, %v182_v22  ;;  %v3892_v48 = vld [vmem:[%s5526_s3] sm:$0xff]   ;;  %v174_v22 = vadd.f32 %v3860_v41, %v3765_v31  ;;  %v176_v31 = vadd.f32 %v3860_v41, %v3782_v54 }
  0xfd   :  { %3154 = vset.pattern.permute.xlu1 %v5537_v33 }
  0xfe   :  { %1826 = vperm.xlu1 %3154, %v1804_v34   ;;  %v1286_v34 = vmul.f32 0.2, %v1270_v23 }
 0x102   :  { %3155 = vset.pattern.permute.xlu1 %v5535_v4 }
 0x103   :  { %1163 = vperm.xlu1 %3155, %v3603_v7  }
 0x107   :  { %3156 = vset.pattern.permute.xlu1 %v5537_v33 }
 0x108   :  { %1831 = vperm.xlu1 %3156, %v1805_v29  }
 0x10c   :  { %1836 = vperm.xlu1 %3156, %v1806_v5  }
 0x110   :  { %3157 = vset.pattern.permute.xlu1 %v5535_v4 }
 0x111   :  { %1175 = vperm.xlu1 %3157, %v3626_v11   ;;  %v197_v11 = vmax.f32 %v165_v44, %v181_v14  ;;  %v200_v44 = vmax.f32 %v168_v50, %v184_v26  ;;  %v3902_v26 = vld [vmem:[%s5526_s3 + $0x8] sm:$0xff]  }
 0x115   :  { %3158 = vset.pattern.permute.xlu1 %v5537_v33 }
 0x116   :  { %1672 = vperm.xlu1 %3158, %v3609_v8   ;;  %v1302_v8 = vmax.f32 %v1270_v23, %v1286_v34  ;;  %v188_v23 = vmul.f32 0.2, %v172_v32 }
 0x118   :  { %v267_v51 = vpop.permute.xlu1 %266  ;;  %v272_v18 = vpop.permute.xlu0 %271 }
 0x119   :  { %v345_v56 = vsub.f32 %v197_v11, %v272_v18 }
 0x11a   :  { %1676 = vperm.xlu1 %3158, %v3615_v9   ;;  %v164_v9 = vadd.f32 %v3860_v41, %v83_v35  ;;  %v3897_v35 = vunpack.c.h.bf16 %v3892_v48 }
 0x11b   :  { %v362_v1 = vmul.f32 1.442695, %v345_v56 }
 0x11c   :  { %v277_v7 = vpop.permute.xlu1 %276  ;;  %v282_v27 = vpop.permute.xlu0 %281  ;;  %v180_v56 = vmul.f32 0.2, %v164_v9 }
 0x11d   :  { %v346_v29 = vsub.f32 %v198_v28, %v277_v7  ;;  %3182 = vpow2.f32 %v362_v1  ;;  %v167_v1 = vadd.f32 %v3860_v41, %v3713_v39  ;;  %v190_v28 = vmul.f32 0.2, %v174_v22  ;;  %v3917_v39 = vld [vmem:[%s5526_s3 + $0x10] sm:$0xff]  }
 0x11e   :  { %3159 = vset.pattern.permute.xlu1 %v5535_v4  ;;  %v196_v46 = vmax.f32 %v164_v9, %v180_v56  ;;  %v192_v9 = vmul.f32 0.2, %v176_v31 }
 0x11f   :  { %v364_v5 = vmul.f32 1.442695, %v346_v29  ;;  %1336 = vperm.xlu1 %3159, %v1302_v8   ;;  %v204_v29 = vmax.f32 %v172_v32, %v188_v23  ;;  %v183_v54 = vmul.f32 0.2, %v167_v1  ;;  %v169_v32 = vadd.f32 %v3860_v41, %v3723_v59 }
 0x120   :  { %v287_v14 = vpop.permute.xlu1 %286  ;;  %v292_v61 = vpop.permute.xlu0 %291  ;;  %v206_v56 = vmax.f32 %v174_v22, %v190_v28  ;;  %v171_v22 = vadd.f32 %v3860_v41, %v3737_v40  ;;  %v3947_v40 = vld [vmem:[%s5526_s3 + $0x20] sm:$0xff]  }
 0x121   :  { %3184 = vpow2.f32 %v364_v5  ;;  %v348_v11 = vsub.f32 %v200_v44, %v287_v14  ;;  %v3909_v44 = vunpack.c.l.bf16 %v3902_v26 }
 0x123   :  { %v368_v18 = vmul.f32 1.442695, %v348_v11 }
 0x124   :  { %v297_v34 = vpop.permute.xlu1 %296 }
 0x125   :  { %3186 = vpow2.f32 %v368_v18  ;;  %v350_v50 = vsub.f32 %v202_v49, %v297_v34  ;;  %v178_v18 = vadd.f32 %v3860_v41, %v3789_v17  ;;  %v344_v34 = vsub.f32 %v196_v46, %v267_v51 }
 0x126   :  { %v185_v17 = vmul.f32 0.2, %v169_v32  ;;  %v199_v51 = vmax.f32 %v167_v1, %v183_v54  ;;  %v187_v54 = vmul.f32 0.2, %v171_v22 }
 0x127   :  { %v372_v7 = vmul.f32 1.442695, %v350_v50  ;;  %v3183_v8 = vpop.eup %3182  ;;  %v194_v46 = vmul.f32 0.2, %v178_v18  ;;  %v360_v25 = vmul.f32 1.442695, %v344_v34 }
 0x128   :  { %v307_v5 = vpop.permute.xlu1 %306  ;;  %v3912_v11 = vmul.f32 %v3183_v8, %v3897_v35  ;;  %v302_v8 = vpop.permute.xlu0 %301  ;;  %v347_v53 = vsub.f32 %v199_v51, %v282_v27 }
 0x129   :  { %3188 = vpow2.f32 %v372_v7  ;;  %v352_v14 = vsub.f32 %v204_v29, %v307_v5  ;;  %v3928_v29 = vunpack.c.l.bf16 %v3917_v39  ;;  %v3933_v5 = vld [vmem:[%s5526_s3 + $0x18] sm:$0xff]   ;;  %v210_v51 = vmax.f32 %v178_v18, %v194_v46 }
 0x12a   :  { %410 = vadd.xlane.f32.xlu0 %v3912_v11  ;;  %v366_v20 = vmul.f32 1.442695, %v347_v53  ;;  %v175_v18 = vadd.f32 %v3860_v41, %v3773_v42  ;;  %v203_v46 = vmax.f32 %v171_v22, %v187_v54  ;;  %v177_v54 = vadd.f32 %v3860_v41, %v3862_v12 }
 0x12b   :  { %v3185_v23 = vpop.eup %3184  ;;  %v376_v49 = vmul.f32 1.442695, %v352_v14  ;;  %5589 = vst [vmem:[#allocation10_spill] sm:$0xff] %v3928_v29  ;;  %v3992_v12 = vunpack.c.l.bf16 %v3892_v48  ;;  %v4004_v48 = vunpack.c.h.bf16 %v3902_v26  ;;  %v4017_v26 = vunpack.c.h.bf16 %v3917_v39 }
 0x12c   :  { %v317_v50 = vpop.permute.xlu1 %316  ;;  %v3925_v7 = vmul.f32 %v3185_v23, %v3909_v44  ;;  %v208_v23 = vmax.f32 %v176_v31, %v192_v9  ;;  %v173_v31 = vadd.f32 %v3860_v41, %v3755_v58  ;;  %v201_v9 = vmax.f32 %v169_v32, %v185_v17  ;;  %v312_v34 = vpop.permute.xlu0 %311  ;;  %v3961_v58 = vld [vmem:[%s5526_s3 + $0x28] sm:$0xff]  }
 0x12d   :  { %3190 = vpow2.f32 %v376_v49  ;;  %v354_v59 = vsub.f32 %v206_v56, %v317_v50  ;;  %v3942_v50 = vunpack.c.l.bf16 %v3933_v5  ;;  %v3967_v53 = vunpack.c.l.bf16 %v3961_v58 }
 0x12e   :  { %412 = vadd.xlane.f32.xlu0 %v3925_v7  ;;  %v349_v4 = vsub.f32 %v201_v9, %v292_v61  ;;  %v189_v17 = vmul.f32 0.2, %v173_v31  ;;  %v191_v22 = vmul.f32 0.2, %v175_v18 }
 0x12f   :  { %v3187_v28 = vpop.eup %3186  ;;  %v380_v14 = vmul.f32 1.442695, %v354_v59  ;;  %5590 = vst [vmem:[#allocation11_spill] sm:$0xff] %v3942_v50  ;;  %5592 = vst [vmem:[#allocation13_spill] sm:$0xff] %v3967_v53 }
 0x130   :  { %v327_v49 = vpop.permute.xlu1 %326  ;;  %v3939_v56 = vmul.f32 %v3187_v28, %v3928_v29  ;;  %v3953_v28 = vunpack.c.l.bf16 %v3947_v40  ;;  %v370_v61 = vmul.f32 1.442695, %v349_v4  ;;  %v322_v42 = vpop.permute.xlu0 %321  ;;  %v205_v9 = vmax.f32 %v173_v31, %v189_v17 }
 0x131   :  { %3192 = vpow2.f32 %v380_v14  ;;  %v356_v1 = vsub.f32 %v208_v23, %v327_v49  ;;  %v351_v49 = vsub.f32 %v203_v46, %v302_v8  ;;  %v179_v17 = vadd.f32 %v3860_v41, %v3870_v10 }
 0x132   :  { %416 = vadd.xlane.f32.xlu0 %v3939_v56  ;;  %5591 = vst [vmem:[#allocation12_spill] sm:$0xff] %v3953_v28  ;;  %3194 = vpow2.f32 %v360_v25  ;;  %v353_v8 = vsub.f32 %v205_v9, %v312_v34  ;;  %v207_v46 = vmax.f32 %v175_v18, %v191_v22 }
 0x133   :  { %v3189_v27 = vpop.eup %3188  ;;  %v384_v59 = vmul.f32 1.442695, %v356_v1  ;;  %v374_v4 = vmul.f32 1.442695, %v351_v49  ;;  %v195_v10 = vmul.f32 0.2, %v179_v17 }
 0x134   :  { %v337_v33 = vpop.permute.xlu1 %336  ;;  %v3956_v14 = vmul.f32 %v3189_v27, %v3942_v50  ;;  %v355_v49 = vsub.f32 %v207_v46, %v322_v42 }
 0x135   :  { %3196 = vpow2.f32 %v384_v59  ;;  %v358_v32 = vsub.f32 %v210_v51, %v337_v33  ;;  %v3975_v33 = vld [vmem:[%s5526_s3 + $0x30] sm:$0xff]   ;;  %v3989_v51 = vld [vmem:[%s5526_s3 + $0x38] sm:$0xff]   ;;  %s3531_s3 = smov 80  }
 0x136   :  { %420 = vadd.xlane.f32.xlu0 %v3956_v14  ;;  %3198 = vpow2.f32 %v366_v20  ;;  %v3981_v20 = vunpack.c.l.bf16 %v3975_v33  ;;  %v3998_v34 = vunpack.c.l.bf16 %v3989_v51  ;;  %v382_v42 = vmul.f32 1.442695, %v355_v49  ;;  %v4042_v49 = vld [vmem:[%s5527_s0 + $0x8] sm:$0xff]  }
 0x137   :  { %v3191_v23 = vpop.eup %3190  ;;  %v388_v25 = vmul.f32 1.442695, %v358_v32  ;;  %v193_v32 = vmul.f32 0.2, %v177_v54 }
 0x138   :  { %v3970_v1 = vmul.f32 %v3191_v23, %v3953_v28  ;;  %5593 = vst [vmem:[#allocation14_spill] sm:$0xff] %v3981_v20  ;;  %5594 = vst [vmem:[#allocation15_spill] sm:$0xff] %v3998_v34 }
 0x139   :  { %3200 = vpow2.f32 %v388_v25  ;;  %v332_v25 = vpop.permute.xlu0 %331  ;;  %v209_v18 = vmax.f32 %v177_v54, %v193_v32  ;;  %v4009_v22 = vpop.permute.xlu1 %811  ;;  %v211_v32 = vmax.f32 %v179_v17, %v195_v10 }
 0x13a   :  { %424 = vadd.xlane.f32.xlu0 %v3970_v1  ;;  %3202 = vpow2.f32 %v370_v61  ;;  %v378_v61 = vmul.f32 1.442695, %v353_v8 }
 0x13b   :  { %v3193_v27 = vpop.eup %3192  ;;  %3204 = vpow2.f32 %v374_v4  ;;  %v357_v4 = vsub.f32 %v209_v18, %v332_v25 }
 0x13c   :  { %v3984_v59 = vmul.f32 %v3193_v27, %v3967_v53  ;;  %v3195_v31 = vpop.eup %3194  ;;  %3206 = vpow2.f32 %v378_v61  ;;  %v4033_v61 = vunpack.c.h.bf16 %v3933_v5  ;;  %v4047_v5 = vunpack.c.h.bf16 %v3947_v40 }
 0x13d   :  { %v4007_v27 = vmul.f32 %v3195_v31, %v3992_v12  ;;  %v342_v31 = vpop.permute.xlu0 %341  ;;  %3208 = vpow2.f32 %v382_v42  ;;  %v4029_v39 = vpop.permute.xlu1 %821  ;;  %v4056_v42 = vld [vmem:[%s5527_s0 + $0x10] sm:$0xff]   ;;  %v4063_v40 = vunpack.c.h.bf16 %v3961_v58  ;;  %v4079_v58 = vunpack.c.h.bf16 %v3975_v33 }
 0x13e   :  { %428 = vadd.xlane.f32.xlu0 %v3984_v59  ;;  %v359_v25 = vsub.f32 %v211_v32, %v342_v31  ;;  %5595 = vst [vmem:[#allocation16_spill] sm:$0xff] %v4047_v5  ;;  %v1275_v53 = vadd.f32 %v3787_v60, %v3638_v13 }
 0x13f   :  { %v3197_v23 = vpop.eup %3196  ;;  %5597 = vst [vmem:[#allocation18_spill] sm:$0xff] %v4063_v40  ;;  %5600 = vst [vmem:[#allocation21_spill] sm:$0xff] %v4079_v58 }
 0x140   :  { %v4001_v9 = vmul.f32 %v3197_v23, %v3981_v20  ;;  %v3199_v41 = vpop.eup %3198  ;;  %v4025_v23 = vld [vmem:[%s5527_s0] sm:$0xff]   ;;  %v390_v10 = vmul.f32 1.442695, %v359_v25 }
 0x141   :  { %v4020_v46 = vmul.f32 %v3199_v41, %v4004_v48  ;;  %3005 = vmatprep.subr.bf16.mxu0 %v4025_v23  ;;  %v4058_v31 = vpop.permute.xlu1 %831  ;;  %v4153_v37 = vpop.permute.xlu0 %816 }
 0x142   :  { %432 = vadd.xlane.f32.xlu0 %v4001_v9  ;;  %3006 = vmatpush3.bf16.msra.mxu0 %v4025_v23  ;;  %5596 = vst [vmem:[#allocation17_spill] sm:$0xff] %v4058_v31 }
 0x143   :  { %v3201_v0 = vpop.eup %3200  ;;  %408 = vadd.xlane.f32.xlu1 %v4007_v27  ;;  %3007 = vmatprep.subr.bf16.mxu0 %v4042_v49 }
 0x144   :  { %v4014_v8 = vmul.f32 %v3201_v0, %v3998_v34  ;;  %v3203_v54 = vpop.eup %3202  ;;  %v386_v0 = vmul.f32 1.442695, %v357_v4  ;;  %v4093_v34 = vunpack.c.h.bf16 %v3989_v51 }
 0x145   :  { %v4036_v17 = vmul.f32 %v3203_v54, %v4017_v26  ;;  %v3205_v41 = vpop.eup %3204  ;;  %v4075_v25 = vpop.permute.xlu1 %841 }
 0x146   :  { %436 = vadd.xlane.f32.xlu0 %v4014_v8  ;;  %3210 = vpow2.f32 %v386_v0  ;;  %v4050_v18 = vmul.f32 %v3205_v41, %v4033_v61  ;;  %3008 = vmatpush3.bf16.msra.mxu0 %v4042_v49  ;;  %v3207_v4 = vpop.eup %3206  ;;  %v4072_v0 = vld [vmem:[%s5527_s0 + $0x18] sm:$0xff]   ;;  %5599 = vst [vmem:[#allocation20_spill] sm:$0xff] %v4075_v25  ;;  %5602 = vst [vmem:[#allocation23_spill] sm:$0xff] %v4093_v34 }
 0x147   :  { %414 = vadd.xlane.f32.xlu1 %v4020_v46  ;;  %3009 = vmatprep.subr.bf16.mxu0 %v4056_v42  ;;  %3212 = vpow2.f32 %v390_v10  ;;  %v4066_v54 = vmul.f32 %v3207_v4, %v4047_v5  ;;  %v3209_v32 = vpop.eup %3208  ;;  %5598 = vst [vmem:[#allocation19_spill] sm:$0xff] %v4072_v0  ;;  %v4088_v4 = vld [vmem:[%s5527_s0 + $0x20] sm:$0xff]  }
 0x148   :  { %v4082_v41 = vmul.f32 %v3209_v32, %v4063_v40  ;;  %5601 = vst [vmem:[#allocation22_spill] sm:$0xff] %v4088_v4  ;;  %v4102_v32 = vld [vmem:[%s5527_s0 + $0x28] sm:$0xff]  }
 0x149   :  { %5603 = vst [vmem:[#allocation24_spill] sm:$0xff] %v4102_v32  ;;  %v4104_v6 = vpop.permute.xlu1 %851 }
 0x14a   :  { %3010 = vmatpush3.bf16.msra.mxu0 %v4056_v42  ;;  %5604 = vst [vmem:[#allocation25_spill] sm:$0xff] %v4104_v6 }
 0x14b   :  { %418 = vadd.xlane.f32.xlu1 %v4036_v17  ;;  %3011 = vmatprep.subr.bf16.mxu0 %v4072_v0 }
 0x14d   :  { %v4121_v28 = vpop.permute.xlu1 %861 }
 0x14e   :  { %3012 = vmatpush3.bf16.msra.mxu0 %v4072_v0  ;;  %5606 = vst [vmem:[#allocation27_spill] sm:$0xff] %v4121_v28 }
 0x14f   :  { %422 = vadd.xlane.f32.xlu1 %v4050_v18  ;;  %3013 = vmatprep.subr.bf16.mxu0 %v4088_v4 }
 0x150   :  { %v3211_v10 = vpop.eup %3210 }
 0x151   :  { %v4096_v33 = vmul.f32 %v3211_v10, %v4079_v58  ;;  %v3213_v20 = vpop.eup %3212  ;;  %v1291_v10 = vmul.f32 0.2, %v1275_v53  ;;  %v4119_v58 = vld [vmem:[%s5527_s0 + $0x30] sm:$0xff]  }
 0x152   :  { %3014 = vmatpush3.bf16.msra.mxu0 %v4088_v4  ;;  %v4112_v51 = vmul.f32 %v3213_v20, %v4093_v34  ;;  %5605 = vst [vmem:[#allocation26_spill] sm:$0xff] %v4119_v58  ;;  %v4129_v20 = vld [vmem:[%s5527_s0 + $0x38] sm:$0xff]   ;;  %v3502_v34 = vld [vmem:[%s5525_s2 + $0x30] sm:$0xff] }
 0x153   :  { %426 = vadd.xlane.f32.xlu1 %v4066_v54  ;;  %3015 = vmatprep.subr.bf16.mxu0 %v4102_v32  ;;  %5607 = vst [vmem:[#allocation28_spill] sm:$0xff] %v4129_v20 }
 0x156   :  { %3016 = vmatpush3.bf16.msra.mxu0 %v4102_v32  ;;  %v4132_v32 = vpop.permute.xlu1 %871 }
 0x157   :  { %430 = vadd.xlane.f32.xlu1 %v4082_v41  ;;  %3017 = vmatprep.subr.bf16.mxu0 %v4119_v58  ;;  %5608 = vst [vmem:[#allocation29_spill] sm:$0xff] %v4132_v32 }
 0x15a   :  { %3018 = vmatpush3.bf16.msra.mxu0 %v4119_v58  ;;  %v4146_v6 = vpop.permute.xlu1 %881 }
 0x15b   :  { %434 = vadd.xlane.f32.xlu1 %v4096_v33  ;;  %3019 = vmatprep.subr.bf16.mxu0 %v4129_v20  ;;  %5609 = vst [vmem:[#allocation30_spill] sm:$0xff] %v4146_v6 }
 0x15c   :  { %1183 = vperm.xlu0 %3151, %v3638_v13   ;;  %v1307_v13 = vmax.f32 %v1275_v53, %v1291_v10  ;;  %v1279_v53 = vadd.f32 %v3787_v60, %v3652_v15 }
 0x15e   :  { %3020 = vmatpush3.bf16.msra.mxu0 %v4129_v20  ;;  %v1295_v28 = vmul.f32 0.2, %v1279_v53  ;;  %v4155_v62 = vpop.permute.xlu1 %1147 }
 0x15f   :  { %438 = vadd.xlane.f32.xlu1 %v4112_v51  ;;  %5610 = vst [vmem:[#allocation31_spill] sm:$0xff] %v4155_v62 }
 0x160   :  { %1187 = vperm.xlu0 %3151, %v3657_v16   ;;  %v1272_v16 = vadd.f32 %v3502_v34, %v3787_v60  ;;  %v1311_v20 = vmax.f32 %v1279_v53, %v1295_v28 }
 0x162   :  { %v1288_v10 = vmul.f32 0.2, %v1272_v16 }
 0x164   :  { %1361 = vperm.xlu0 %3151, %v1307_v13   ;;  %v3503_v13 = vld [vmem:[%s5525_s2 + $0x38] sm:$0xff]  ;;  %v1304_v2 = vmax.f32 %v1272_v16, %v1288_v10  ;;  %v5611_v16 = vmov 3   ;;  %v5613_v10 = vmov 2  }
 0x165   :  { %v1273_v32 = vadd.f32 %v3503_v13, %v3787_v60 }
 0x167   :  { %v1289_v58 = vmul.f32 0.2, %v1273_v32 }
 0x168   :  { %1199 = vperm.xlu0 %3151, %v3652_v15   ;;  %v1776_v15 = vadd.f32 %v3504_v24, %v3828_v45  ;;  %v4162_v24 = vpop.permute.xlu0 %826 }
 0x169   :  { %v1305_v0 = vmax.f32 %v1273_v32, %v1289_v58  ;;  %v3506_v58 = vld [vmem:[%s5525_s2 + $0x18] sm:$0xff] }
 0x16a   :  { %v1792_v40 = vmul.f32 0.2, %v1776_v15 }
 0x16c   :  { %1203 = vperm.xlu0 %3151, %v3678_v19   ;;  %v3505_v19 = vld [vmem:[%s5525_s2] sm:$0xff]  ;;  %v1808_v53 = vmax.f32 %v1776_v15, %v1792_v40  ;;  %v1778_v40 = vadd.f32 %v3503_v13, %v3828_v45  ;;  %v4173_v15 = vpop.permute.xlu0 %836 }
 0x16d   :  { %v1771_v28 = vadd.f32 %v3505_v19, %v3828_v45 }
 0x170   :  { %1346 = vperm.xlu1 %3159, %v1304_v2   ;;  %1381 = vperm.xlu0 %3151, %v1311_v20   ;;  %v4164_v2 = vpop.permute.xlu1 %1155  ;;  %v1787_v20 = vmul.f32 0.2, %v1771_v28  ;;  %v4185_v6 = vpop.permute.xlu0 %846 }
 0x171   :  { %5612 = vst [vmem:[#allocation32_spill] sm:$0xff] %v4164_v2 }
 0x172   :  { %v1803_v32 = vmax.f32 %v1771_v28, %v1787_v20 }
 0x174   :  { %1351 = vperm.xlu1 %3159, %v1305_v0   ;;  %3172 = vset.pattern.permute.xlu0 %v5611_v16  ;;  %v1777_v0 = vadd.f32 %v3502_v34, %v3828_v45  ;;  %v4175_v62 = vpop.permute.xlu1 %1159  ;;  %v3507_v34 = vld [vmem:[%s5525_s2 + $0x40] sm:$0xff]  ;;  %v4189_v50 = vpop.permute.xlu0 %856 }
 0x175   :  { %1652 = vperm.xlu0 %3172, %v3505_v19   ;;  %5614 = vst [vmem:[#allocation33_spill] sm:$0xff] %v4175_v62  ;;  %5616 = vst [vmem:[#allocation35_spill] sm:$0xff] %v4189_v50  ;;  %v4232_v50 = vld [vmem:[%s5525_s2 + $0x78] sm:$0xff] }
 0x176   :  { %v1793_v19 = vmul.f32 0.2, %v1777_v0  ;;  %v1786_v25 = vadd.f32 %v4232_v50, %v3828_v45 }
 0x178   :  { %3160 = vset.pattern.permute.xlu1 %v5611_v16  ;;  %v1809_v20 = vmax.f32 %v1777_v0, %v1793_v19  ;;  %v3509_v0 = vld [vmem:[%s5525_s2 + $0x58] sm:$0xff]  ;;  %v1779_v19 = vadd.f32 %v3507_v34, %v3828_v45  ;;  %v1802_v52 = vmul.f32 0.2, %v1786_v25 }
 0x179   :  { %1846 = vperm.xlu1 %3160, %v1808_v53   ;;  %1664 = vperm.xlu0 %3172, %v3506_v58   ;;  %v3508_v53 = vld [vmem:[%s5525_s2 + $0x20] sm:$0xff]  ;;  %v1794_v58 = vmul.f32 0.2, %v1778_v40 }
 0x17a   :  { %v1775_v28 = vadd.f32 %v3508_v53, %v3828_v45 }
 0x17b   :  { %v1810_v2 = vmax.f32 %v1778_v40, %v1794_v58 }
 0x17c   :  { %v1791_v62 = vmul.f32 0.2, %v1775_v28 }
 0x17d   :  { %3161 = vset.pattern.permute.xlu1 %v5613_v10  ;;  %1821 = vperm.xlu0 %3172, %v1803_v32   ;;  %v4187_v32 = vpop.permute.xlu1 %1656 }
 0x17e   :  { %1179 = vperm.xlu1 %3161, %v3507_v34   ;;  %5615 = vst [vmem:[#allocation34_spill] sm:$0xff] %v4187_v32  ;;  %v1807_v5 = vmax.f32 %v1775_v28, %v1791_v62  ;;  %v1795_v62 = vmul.f32 0.2, %v1779_v19 }
 0x180   :  { %v1811_v40 = vmax.f32 %v1779_v19, %v1795_v62  ;;  %v1277_v62 = vadd.f32 %v3509_v0, %v3787_v60 }
 0x181   :  { %1668 = vperm.xlu0 %3172, %v3508_v53   ;;  %v4191_v29 = vpop.permute.xlu1 %1660  ;;  %v4198_v53 = vpop.permute.xlu0 %866 }
 0x182   :  { %3162 = vset.pattern.permute.xlu1 %v5611_v16  ;;  %5617 = vst [vmem:[#allocation36_spill] sm:$0xff] %v4191_v29  ;;  %5618 = vst [vmem:[#allocation37_spill] sm:$0xff] %v4198_v53  ;;  %v4218_v53 = vld [vmem:[%s5525_s2 + $0x60] sm:$0xff] }
 0x183   :  { %1851 = vperm.xlu1 %3162, %v1809_v20   ;;  %v3511_v20 = vld [vmem:[%s5525_s2 + $0x50] sm:$0xff]  ;;  %v1783_v19 = vadd.f32 %v4218_v53, %v3828_v45 }
 0x184   :  { %v1276_v58 = vadd.f32 %v3511_v20, %v3787_v60 }
 0x185   :  { %1680 = vperm.xlu0 %3172, %v3503_v13   ;;  %v4200_v13 = vpop.permute.xlu1 %1316  ;;  %v4211_v29 = vpop.permute.xlu0 %876 }
 0x186   :  { %5619 = vst [vmem:[#allocation38_spill] sm:$0xff] %v4200_v13  ;;  %5620 = vst [vmem:[#allocation39_spill] sm:$0xff] %v4211_v29  ;;  %v1292_v32 = vmul.f32 0.2, %v1276_v58 }
 0x187   :  { %1856 = vperm.xlu1 %3162, %v1810_v2   ;;  %v1274_v2 = vadd.f32 %v3507_v34, %v3787_v60 }
 0x189   :  { %1841 = vperm.xlu0 %3172, %v1807_v5   ;;  %v3510_v5 = vld [vmem:[%s5525_s2 + $0x48] sm:$0xff]  ;;  %v1290_v28 = vmul.f32 0.2, %v1274_v2  ;;  %v4213_v13 = vpop.permute.xlu1 %1326  ;;  %v4225_v29 = vpop.permute.xlu0 %886 }
 0x18a   :  { %5621 = vst [vmem:[#allocation40_spill] sm:$0xff] %v4213_v13  ;;  %5622 = vst [vmem:[#allocation41_spill] sm:$0xff] %v4225_v29  ;;  %v1293_v13 = vmul.f32 0.2, %v1277_v62  ;;  %v1780_v31 = vadd.f32 %v3510_v5, %v3828_v45 }
 0x18b   :  { %3163 = vset.pattern.permute.xlu1 %v5613_v10 }
 0x18c   :  { %1191 = vperm.xlu1 %3163, %v3509_v0   ;;  %v1309_v29 = vmax.f32 %v1277_v62, %v1293_v13 }
 0x18d   :  { %1684 = vperm.xlu0 %3172, %v3507_v34   ;;  %v1306_v34 = vmax.f32 %v1274_v2, %v1290_v28  ;;  %v1308_v2 = vmax.f32 %v1276_v58, %v1292_v32  ;;  %v1799_v28 = vmul.f32 0.2, %v1783_v19  ;;  %v4241_v32 = vld [vmem:[%s5524_s1] sm:$0xf]  ;;  %v5625_v58 = vsub.s32 1, %v3695_v21  ;;  %v4248_v43 = vpop.permute.xlu0 %1151 }
 0x18e   :  { %5624 = vst [vmem:[#allocation43_spill] sm:$0xff] %v4241_v32  ;;  %5626 = vst [vmem:[#allocation44_spill] sm:$0xff] %v4248_v43 }
 0x18f   :  { %v4246_v4 = vrot.slane %v4241_v32, %v5625_v58 }
 0x190   :  { %3164 = vset.pattern.permute.xlu1 %v5611_v16 }
 0x191   :  { %1688 = vperm.xlu1 %3164, %v3510_v5   ;;  %1696 = vperm.xlu0 %3172, %v3509_v0   ;;  %v709_v13 = vadd.f32 %v4246_v4, %v3813_v36  ;;  %v4258_v43 = vpop.permute.xlu0 %1321  ;;  %v1782_v36 = vadd.f32 %v3509_v0, %v3828_v45 }
 0x192   :  { %5628 = vst [vmem:[#allocation46_spill] sm:$0xff] %v4258_v43 }
 0x193   :  { %v725_v58 = vmul.f32 0.2, %v709_v13 }
 0x195   :  { %1692 = vperm.xlu1 %3164, %v3511_v20   ;;  %1861 = vperm.xlu0 %3172, %v1811_v40   ;;  %v4227_v40 = vpop.permute.xlu1 %1331 }
 0x196   :  { %5623 = vst [vmem:[#allocation42_spill] sm:$0xff] %v4227_v40  ;;  %v1796_v40 = vmul.f32 0.2, %v1780_v31 }
 0x198   :  { %v1812_v62 = vmax.f32 %v1780_v31, %v1796_v40  ;;  %v712_v31 = vadd.f32 %v4246_v4, %v3806_v30 }
 0x199   :  { %3165 = vset.pattern.permute.xlu1 %v5613_v10  ;;  %1700 = vperm.xlu0 %3172, %v4218_v53   ;;  %v4250_v5 = vpop.permute.xlu1 %1826 }
 0x19a   :  { %1356 = vperm.xlu1 %3165, %v1306_v34   ;;  %v1815_v34 = vmax.f32 %v1783_v19, %v1799_v28  ;;  %5627 = vst [vmem:[#allocation45_spill] sm:$0xff] %v4250_v5  ;;  %v1818_v19 = vmax.f32 %v1786_v25, %v1802_v52  ;;  %v711_v28 = vadd.f32 %v4246_v4, %v3799_v3  ;;  %v4268_v3 = vpop.permute.xlu0 %1167 }
 0x19b   :  { %v741_v25 = vmax.f32 %v709_v13, %v725_v58 }
 0x19c   :  { %v727_v52 = vmul.f32 0.2, %v711_v28 }
 0x19d   :  { %1712 = vperm.xlu0 %3172, %v4232_v50   ;;  %v4260_v5 = vpop.permute.xlu1 %1163 }
 0x19e   :  { %1366 = vperm.xlu1 %3165, %v1308_v2   ;;  %v1781_v2 = vadd.f32 %v3511_v20, %v3828_v45  ;;  %5629 = vst [vmem:[#allocation47_spill] sm:$0xff] %v4260_v5  ;;  %v889_v20 = vsub.f32 %v741_v25, %v4009_v22  ;;  %v743_v5 = vmax.f32 %v711_v28, %v727_v52  ;;  %v4274_v58 = vpop.permute.xlu0 %1171  ;;  %v3516_v25 = vld [vmem:[%s5525_s2 + $0x70] sm:$0xff] }
 0x1a0   :  { %v905_v0 = vmul.f32 1.442695, %v889_v20  ;;  %v891_v43 = vsub.f32 %v743_v5, %v4029_v39  ;;  %v1278_v5 = vadd.f32 %v4218_v53, %v3787_v60  ;;  %v1280_v20 = vadd.f32 %v3516_v25, %v3787_v60 }
 0x1a1   :  { %1881 = vperm.xlu0 %3172, %v1815_v34   ;;  %v4270_v40 = vpop.permute.xlu1 %1831 }
 0x1a2   :  { %1371 = vperm.xlu1 %3165, %v1309_v29   ;;  %v1797_v29 = vmul.f32 0.2, %v1781_v2  ;;  %3214 = vpow2.f32 %v905_v0  ;;  %v909_v22 = vmul.f32 1.442695, %v891_v43  ;;  %v3515_v43 = vld [vmem:[%s5525_s2 + $0x68] sm:$0xff]  ;;  %s3529_s2 = smov 112  }
 0x1a4   :  { %v1813_v34 = vmax.f32 %v1781_v2, %v1797_v29  ;;  %3216 = vpow2.f32 %v909_v22  ;;  %v4280_v29 = vpop.permute.xlu0 %1341 }
 0x1a5   :  { %1896 = vperm.xlu0 %3172, %v1818_v19   ;;  %v1798_v19 = vmul.f32 0.2, %v1782_v36  ;;  %v4276_v32 = vpop.permute.xlu1 %1836 }
 0x1a6   :  { %3166 = vset.pattern.permute.xlu1 %v5611_v16 }
 0x1a7   :  { %1866 = vperm.xlu1 %3166, %v1812_v62   ;;  %v728_v62 = vmul.f32 0.2, %v712_v31  ;;  %v1814_v30 = vmax.f32 %v1782_v36, %v1798_v19 }
 0x1a9   :  { %v744_v13 = vmax.f32 %v712_v31, %v728_v62  ;;  %v4282_v52 = vpop.permute.xlu1 %1175  ;;  %v1294_v31 = vmul.f32 0.2, %v1278_v5 }
 0x1aa   :  { %5630 = vst [vmem:[#allocation48_spill] sm:$0xff] %v4282_v52 }
 0x1ab   :  { %3167 = vset.pattern.permute.xlu1 %v5613_v10  ;;  %v892_v2 = vsub.f32 %v744_v13, %v4162_v24  ;;  %v1310_v0 = vmax.f32 %v1278_v5, %v1294_v31  ;;  %v1281_v13 = vadd.f32 %v4232_v50, %v3787_v60  ;;  %v1784_v5 = vadd.f32 %v3515_v43, %v3828_v45 }
 0x1ac   :  { %1195 = vperm.xlu1 %3167, %v4218_v53   ;;  %v3215_v24 = vpop.eup %3214 }
 0x1ad   :  { %v911_v28 = vmul.f32 1.442695, %v892_v2  ;;  %v4291_v36 = vpop.permute.xlu1 %1672 }
 0x1ae   :  { %5631 = vst [vmem:[#allocation49_spill] sm:$0xff] %v4291_v36  ;;  %v3217_v53 = vpop.eup %3216  ;;  %v1297_v36 = vmul.f32 0.2, %v1281_v13 }
 0x1af   :  { %3218 = vpow2.f32 %v911_v28  ;;  %v4307_v22 = vmul.f32 %v3217_v53, %v3909_v44 }
 0x1b0   :  { %3168 = vset.pattern.permute.xlu1 %v5611_v16  ;;  %v1313_v60 = vmax.f32 %v1281_v13, %v1297_v36 }
 0x1b1   :  { %1871 = vperm.xlu1 %3168, %v1813_v34   ;;  %v4298_v34 = vmul.f32 %v3215_v24, %v3992_v12  ;;  %v4301_v62 = vpop.permute.xlu1 %1676  ;;  %5632 = vst [vmem:[#allocation50_spill] sm:$0xff] %v4307_v22 }
 0x1b5   :  { %1876 = vperm.xlu1 %3168, %v1814_v30   ;;  %v1296_v30 = vmul.f32 0.2, %v1280_v20  ;;  %v4314_v31 = vpop.permute.xlu1 %1336 }
 0x1b7   :  { %v411_v39 = vpop.xlane.xlu0 %410  ;;  %v1312_v24 = vmax.f32 %v1280_v20, %v1296_v30 }
 0x1b8   :  { %3220 = vrcp.f32 %v411_v39 }
 0x1b9   :  { %3169 = vset.pattern.permute.xlu1 %v5613_v10  ;;  %v3219_v2 = vpop.eup %3218 }
 0x1ba   :  { %1207 = vperm.xlu1 %3169, %v4232_v50   ;;  %v4311_v52 = vmul.f32 %v3219_v2, %v4004_v48  ;;  %v1800_v50 = vmul.f32 0.2, %v1784_v5 }
 0x1bb   :  { %v413_v19 = vpop.xlane.xlu0 %412 }
 0x1bc   :  { %v1816_v20 = vmax.f32 %v1784_v5, %v1800_v50  ;;  %v710_v50 = vadd.f32 %v4246_v4, %v3793_v63 }
 0x1be   :  { %3170 = vset.pattern.permute.xlu1 %v5611_v16 }
 0x1bf   :  { %1704 = vperm.xlu1 %3170, %v3515_v43   ;;  %v417_v28 = vpop.xlane.xlu0 %416 }
 0x1c3   :  { %1708 = vperm.xlu1 %3170, %v3516_v25   ;;  %v421_v53 = vpop.xlane.xlu0 %420 }
 0x1c4   :  { %953 = vadd.xlane.f32.xlu0 %v4298_v34 }
 0x1c7   :  { %3171 = vset.pattern.permute.xlu1 %v5613_v10  ;;  %v1785_v10 = vadd.f32 %v3516_v25, %v3828_v45  ;;  %v425_v43 = vpop.xlane.xlu0 %424  ;;  %v3221_v45 = vpop.eup %3220 }
 0x1c8   :  { %1376 = vperm.xlu1 %3171, %v1310_v0   ;;  %957 = vadd.xlane.f32.xlu0 %v4307_v22 }
 0x1c9   :  { %v1801_v30 = vmul.f32 0.2, %v1785_v10 }
 0x1cb   :  { %v429_v25 = vpop.xlane.xlu0 %428 }
 0x1cc   :  { %1386 = vperm.xlu1 %3171, %v1312_v24   ;;  %959 = vadd.xlane.f32.xlu0 %v4311_v52  ;;  %v1817_v24 = vmax.f32 %v1785_v10, %v1801_v30 }
 0x1cf   :  { %v433_v30 = vpop.xlane.xlu0 %432 }
 0x1d0   :  { %v409_v0 = vpop.xlane.xlu1 %408  ;;  %1391 = vperm.xlu1 %3171, %v1313_v60  }
 0x1d1   :  { %3222 = vrcp.f32 %v409_v0  ;;  %v714_v0 = vadd.f32 %v4246_v4, %v3830_v47 }
 0x1d2   :  { %3224 = vrcp.f32 %v413_v19  ;;  %v457_v19 = vmul.f32 %v3221_v45, %v3912_v11 }
 0x1d3   :  { %v730_v45 = vmul.f32 0.2, %v714_v0 }
 0x1d4   :  { %v415_v2 = vpop.xlane.xlu1 %414  ;;  %3173 = vset.pattern.permute.xlu1 %v5611_v16 }
 0x1d5   :  { %1886 = vperm.xlu1 %3173, %v1816_v20   ;;  %3226 = vrcp.f32 %v415_v2 }
 0x1d6   :  { %3228 = vrcp.f32 %v417_v28 }
 0x1d8   :  { %v419_v36 = vpop.xlane.xlu1 %418 }
 0x1d9   :  { %3230 = vrcp.f32 %v419_v36  ;;  %1891 = vperm.xlu1 %3173, %v1817_v24  }
 0x1da   :  { %3232 = vrcp.f32 %v421_v53 }
 0x1db   :  { %v3223_v39 = vpop.eup %3222 }
 0x1dc   :  { %v423_v13 = vpop.xlane.xlu1 %422  ;;  %v456_v16 = vmul.f32 %v3223_v39, %v4007_v27  ;;  %v3225_v5 = vpop.eup %3224 }
 0x1dd   :  { %3234 = vrcp.f32 %v423_v13  ;;  %1025 = vrot.lane.b32.xlu1 %v4025_v23, %s3529_s2  ;;  %v458_v20 = vmul.f32 %v3225_v5, %v3925_v7  ;;  %v716_v7 = vadd.f32 %v4246_v4, %v3841_v57  ;;  %v437_v13 = vpop.xlane.xlu0 %436  ;;  %v746_v5 = vmax.f32 %v714_v0, %v730_v45 }
 0x1de   :  { %3236 = vrcp.f32 %v425_v43  ;;  %v472_v28 = vpack.c.bf16 %v457_v19, %v456_v16  ;;  %v726_v43 = vmul.f32 0.2, %v710_v50 }
 0x1df   :  { %v3227_v60 = vpop.eup %3226 }
 0x1e0   :  { %v427_v10 = vpop.xlane.xlu1 %426  ;;  %v3229_v53 = vpop.eup %3228  ;;  %3021 = vmatprep.mubr.bf16.mxu0 %v472_v28  ;;  %v459_v27 = vmul.f32 %v3227_v60, %v4020_v46 }
 0x1e1   :  { %3238 = vrcp.f32 %v427_v10  ;;  %v460_v24 = vmul.f32 %v3229_v53, %v3939_v56  ;;  %v894_v10 = vsub.f32 %v746_v5, %v4173_v15 }
 0x1e2   :  { %3240 = vrcp.f32 %v429_v25  ;;  %1029 = vrot.lane.b32.xlu0 %v4056_v42, %s3529_s2  ;;  %v473_v2 = vpack.c.bf16 %v459_v27, %v458_v20  ;;  %v742_v25 = vmax.f32 %v710_v50, %v726_v43 }
 0x1e3   :  { %v3231_v11 = vpop.eup %3230 }
 0x1e4   :  { %v431_v63 = vpop.xlane.xlu1 %430  ;;  %v461_v36 = vmul.f32 %v3231_v11, %v4036_v17  ;;  %v3233_v47 = vpop.eup %3232  ;;  %3022 = vmatmul.mubr.bf16.vlgmr.msra.gmra.mrb[0].mxu0 %v473_v2  ;;  %v732_v17 = vmul.f32 0.2, %v716_v7  ;;  %v890_v28 = vsub.f32 %v742_v25, %v4153_v37  ;;  %v915_v11 = vmul.f32 1.442695, %v894_v10 }
 0x1e5   :  { %3242 = vrcp.f32 %v431_v63  ;;  %v462_v16 = vmul.f32 %v3233_v47, %v3956_v14 }
 0x1e6   :  { %v474_v46 = vpack.c.bf16 %v461_v36, %v460_v24  ;;  %3244 = vrcp.f32 %v433_v30  ;;  %v748_v14 = vmax.f32 %v716_v7, %v732_v17 }
 0x1e7   :  { %v3235_v39 = vpop.eup %3234 }
 0x1e8   :  { %v435_v42 = vpop.xlane.xlu1 %434  ;;  %3025 = vmatprep.mubr.bf16.mxu0 %v474_v46  ;;  %v463_v56 = vmul.f32 %v3235_v39, %v4050_v18  ;;  %v3237_v19 = vpop.eup %3236  ;;  %v907_v18 = vmul.f32 1.442695, %v890_v28  ;;  %v896_v37 = vsub.f32 %v748_v14, %v4185_v6 }
 0x1e9   :  { %3246 = vrcp.f32 %v435_v42  ;;  %v464_v53 = vmul.f32 %v3237_v19, %v3970_v1  ;;  %v4378_v28 = vpop.permute.xlu0 %1183 }
 0x1ea   :  { %v475_v57 = vpack.c.bf16 %v463_v56, %v462_v16  ;;  %3248 = vrcp.f32 %v437_v13  ;;  %v919_v63 = vmul.f32 1.442695, %v896_v37 }
 0x1eb   :  { %v3239_v60 = vpop.eup %3238 }
 0x1ec   :  { %v439_v50 = vpop.xlane.xlu1 %438  ;;  %v465_v20 = vmul.f32 %v3239_v60, %v4066_v54  ;;  %v3241_v27 = vpop.eup %3240  ;;  %3026 = vmatmul.mubr.bf16.gmra.mrb[4].mxu0 %v475_v57  ;;  %v713_v60 = vadd.f32 %v4246_v4, %v3815_v38  ;;  %v5642_v38 = vld [vmem:[#allocation3_spill] sm:$0xff] }
 0x1ed   :  { %3250 = vrcp.f32 %v439_v50  ;;  %v466_v15 = vmul.f32 %v3241_v27, %v3984_v59  ;;  %v715_v50 = vadd.f32 %v4246_v4, %v3837_v55  ;;  %v4390_v14 = vpop.permute.xlu0 %1187  ;;  %v720_v37 = vadd.f32 %v4246_v4, %v5642_v38 }
 0x1ee   :  { %v476_v30 = vpack.c.bf16 %v465_v20, %v464_v53  ;;  %3252 = vpow2.f32 %v907_v18  ;;  %v729_v10 = vmul.f32 0.2, %v713_v60  ;;  %v5640_v20 = vld [vmem:[#allocation2_spill] sm:$0xff] }
 0x1ef   :  { %v3243_v0 = vpop.eup %3242  ;;  %3254 = vpow2.f32 %v915_v11  ;;  %v718_v27 = vadd.f32 %v4246_v4, %v5640_v20  ;;  %v731_v18 = vmul.f32 0.2, %v715_v50 }
 0x1f0   :  { %v4342_v2 = vpop.permute.xlu1 %1346  ;;  %3029 = vmatprep.mubr.bf16.mxu0 %v476_v30  ;;  %v467_v43 = vmul.f32 %v3243_v0, %v4082_v41  ;;  %v3245_v1 = vpop.eup %3244  ;;  %3256 = vpow2.f32 %v919_v63  ;;  %v745_v30 = vmax.f32 %v713_v60, %v729_v10  ;;  %v736_v63 = vmul.f32 0.2, %v720_v37 }
 0x1f1   :  { %v468_v45 = vmul.f32 %v3245_v1, %v4001_v9  ;;  %v734_v11 = vmul.f32 0.2, %v718_v27  ;;  %v747_v1 = vmax.f32 %v715_v50, %v731_v18 }
 0x1f2   :  { %v477_v54 = vpack.c.bf16 %v467_v43, %v466_v15  ;;  %v5643_v15 = vld [vmem:[#allocation17_spill] sm:$0xff]  ;;  %v4399_v43 = vpop.permute.xlu0 %1361 }
 0x1f3   :  { %v3247_v24 = vpop.eup %3246  ;;  %v893_v55 = vsub.f32 %v745_v30, %v5643_v15 }
 0x1f4   :  { %v4346_v36 = vpop.permute.xlu1 %1351  ;;  %v3249_v47 = vpop.eup %3248  ;;  %3030 = vmatmul.mubr.bf16.gmra.mrb[8].mxu0 %v477_v54  ;;  %v469_v6 = vmul.f32 %v3247_v24, %v4096_v33  ;;  %v750_v24 = vmax.f32 %v718_v27, %v734_v11  ;;  %v5655_v11 = vld [vmem:[#allocation10_spill] sm:$0xff] }
 0x1f5   :  { %v470_v41 = vmul.f32 %v3249_v47, %v4014_v8  ;;  %v913_v47 = vmul.f32 1.442695, %v893_v55 }
 0x1f6   :  { %v478_v46 = vpack.c.bf16 %v469_v6, %v468_v45  ;;  %v5645_v45 = vld [vmem:[#allocation20_spill] sm:$0xff] }
 0x1f7   :  { %v3251_v7 = vpop.eup %3250  ;;  %v895_v6 = vsub.f32 %v747_v1, %v5645_v45  ;;  %3258 = vpow2.f32 %v913_v47  ;;  %v5657_v1 = vld [vmem:[#allocation11_spill] sm:$0xff]  ;;  %v5660_v47 = vld [vmem:[#allocation16_spill] sm:$0xff] }
 0x1f8   :  { %v4350_v59 = vpop.permute.xlu1 %1846  ;;  %v471_v39 = vmul.f32 %v3251_v7, %v4112_v51  ;;  %3033 = vmatprep.mubr.bf16.mxu0 %v478_v46  ;;  %v3253_v13 = vpop.eup %3252  ;;  %v5646_v7 = vld [vmem:[#allocation35_spill] sm:$0xff] }
 0x1f9   :  { %v3255_v42 = vpop.eup %3254  ;;  %v4357_v9 = vmul.f32 %v3253_v13, %v3897_v35  ;;  %v898_v46 = vsub.f32 %v750_v24, %v5646_v7  ;;  %v917_v13 = vmul.f32 1.442695, %v895_v6  ;;  %v5662_v7 = vld [vmem:[#allocation18_spill] sm:$0xff] }
 0x1fa   :  { %v479_v25 = vpack.c.bf16 %v471_v39, %v470_v41  ;;  %v4360_v33 = vmul.f32 %v3255_v42, %v4017_v26  ;;  %v3257_v56 = vpop.eup %3256  ;;  %v752_v41 = vmax.f32 %v720_v37, %v736_v63  ;;  %v4405_v39 = vpop.permute.xlu0 %1199 }
 0x1fb   :  { %v4367_v51 = vmul.f32 %v3257_v56, %v4033_v61  ;;  %v923_v42 = vmul.f32 1.442695, %v898_v46  ;;  %v5649_v56 = vld [vmem:[#allocation37_spill] sm:$0xff]  ;;  %3260 = vpow2.f32 %v917_v13 }
 0x1fc   :  { %3034 = vmatmul.mubr.bf16.gmra.mrb[12].mxu0 %v479_v25  ;;  %5634 = vst [vmem:[#allocation52_spill] sm:$0xff] %v4360_v33  ;;  %v900_v60 = vsub.f32 %v752_v41, %v5649_v56 }
 0x1fd   :  { %v4354_v16 = vpop.permute.xlu1 %1179  ;;  %5635 = vst [vmem:[#allocation53_spill] sm:$0xff] %v4367_v51  ;;  %3262 = vpow2.f32 %v923_v42 }
 0x1fe   :  { %5633 = vst [vmem:[#allocation51_spill] sm:$0xff] %v4354_v16  ;;  %v927_v50 = vmul.f32 1.442695, %v900_v60  ;;  %v4412_v20 = vpop.permute.xlu0 %1203 }
 0x1ff   :  { %5651 = vst [vmem:[#allocation20_spill] sm:$0xff] %v4412_v20 }
 0x200   :  { %3264 = vpow2.f32 %v927_v50 }
 0x201   :  { %955 = vadd.xlane.f32.xlu1 %v4357_v9  ;;  %963 = vadd.xlane.f32.xlu0 %v4360_v33 }
 0x202   :  { %v4364_v8 = vpop.permute.xlu1 %1851  ;;  %v4416_v18 = vpop.permute.xlu0 %1381 }
 0x203   :  { %5653 = vst [vmem:[#allocation37_spill] sm:$0xff] %v4416_v18 }
 0x205   :  { %967 = vadd.xlane.f32.xlu0 %v4367_v51 }
 0x206   :  { %v4370_v19 = vpop.permute.xlu1 %1856  ;;  %v4424_v55 = vpop.permute.xlu0 %1652 }
 0x20a   :  { %v4439_v41 = vpop.permute.xlu0 %1664 }
 0x20b   :  { %v4372_v17 = vpop.permute.xlu1 %1191 }
 0x20c   :  { %5636 = vst [vmem:[#allocation54_spill] sm:$0xff] %v4372_v17 }
 0x20e   :  { %v4446_v56 = vpop.permute.xlu0 %1821 }
 0x210   :  { %v4374_v5 = vpop.permute.xlu1 %1688 }
 0x211   :  { %5637 = vst [vmem:[#allocation55_spill] sm:$0xff] %v4374_v5 }
 0x212   :  { %1027 = vrot.lane.b32.xlu1 %v4042_v49, %s3529_s2  ;;  %v5641_v49 = vld [vmem:[#allocation22_spill] sm:$0xff]  ;;  %v4450_v50 = vpop.permute.xlu0 %1668 }
 0x213   :  { %5647 = vst [vmem:[#allocation22_spill] sm:$0xff] %v4405_v39 }
 0x214   :  { %v4380_v57 = vpop.permute.xlu1 %1692 }
 0x215   :  { %5638 = vst [vmem:[#allocation56_spill] sm:$0xff] %v4380_v57 }
 0x219   :  { %v4386_v53 = vpop.permute.xlu1 %1356 }
 0x21a   :  { %5639 = vst [vmem:[#allocation57_spill] sm:$0xff] %v4386_v53 }
 0x21b   :  { %1033 = vrot.lane.b32.xlu0 %v5641_v49, %s3529_s2  ;;  %v3259_v49 = vpop.eup %3258 }
 0x21c   :  { %v4421_v38 = vmul.f32 %v3259_v49, %v5655_v11  ;;  %v3261_v37 = vpop.eup %3260 }
 0x21d   :  { %v4394_v0 = vpop.permute.xlu1 %1366  ;;  %v3263_v15 = vpop.eup %3262  ;;  %v4427_v63 = vmul.f32 %v3261_v37, %v5657_v1  ;;  %v5668_v37 = vld [vmem:[#allocation19_spill] sm:$0xff] }
 0x21e   :  { %5656 = vst [vmem:[#allocation10_spill] sm:$0xff] %v4421_v38  ;;  %v4432_v45 = vmul.f32 %v3263_v15, %v5660_v47  ;;  %v3265_v6 = vpop.eup %3264  ;;  %v5669_v15 = vld [vmem:[#allocation6_spill] sm:$0xff] }
 0x21f   :  { %5658 = vst [vmem:[#allocation11_spill] sm:$0xff] %v4427_v63  ;;  %v4437_v46 = vmul.f32 %v3265_v6, %v5662_v7  ;;  %v717_v6 = vadd.f32 %v4246_v4, %v5669_v15 }
 0x220   :  { %5661 = vst [vmem:[#allocation16_spill] sm:$0xff] %v4432_v45 }
 0x221   :  { %v4401_v54 = vpop.permute.xlu1 %1371  ;;  %5663 = vst [vmem:[#allocation60_spill] sm:$0xff] %v4437_v46 }
 0x222   :  { %5644 = vst [vmem:[#allocation2_spill] sm:$0xff] %v4401_v54  ;;  %v5676_v54 = vld [vmem:[#allocation25_spill] sm:$0xff] }
 0x226   :  { %v4407_v25 = vpop.permute.xlu1 %1866 }
 0x227   :  { %5648 = vst [vmem:[#allocation3_spill] sm:$0xff] %v4407_v25 }
 0x22b   :  { %v4410_v10 = vpop.permute.xlu1 %1195 }
 0x22c   :  { %5650 = vst [vmem:[#allocation17_spill] sm:$0xff] %v4410_v10  ;;  %v733_v10 = vmul.f32 0.2, %v717_v6 }
 0x230   :  { %v4414_v27 = vpop.permute.xlu1 %1871 }
 0x231   :  { %5652 = vst [vmem:[#allocation35_spill] sm:$0xff] %v4414_v27  ;;  %v749_v27 = vmax.f32 %v717_v6, %v733_v10  ;;  %v5679_v10 = vld [vmem:[#allocation39_spill] sm:$0xff] }
 0x233   :  { %v897_v39 = vsub.f32 %v749_v27, %v5676_v54  ;;  %v5680_v54 = vld [vmem:[#allocation41_spill] sm:$0xff] }
 0x234   :  { %v4418_v30 = vpop.permute.xlu1 %1876 }
 0x235   :  { %5654 = vst [vmem:[#allocation58_spill] sm:$0xff] %v4418_v30  ;;  %v5672_v30 = vld [vmem:[#allocation4_spill] sm:$0xff]  ;;  %v921_v5 = vmul.f32 1.442695, %v897_v39 }
 0x236   :  { %961 = vadd.xlane.f32.xlu1 %v4421_v38 }
 0x237   :  { %3266 = vpow2.f32 %v921_v5 }
 0x239   :  { %v4429_v24 = vpop.permute.xlu1 %1207 }
 0x23a   :  { %5659 = vst [vmem:[#allocation59_spill] sm:$0xff] %v4429_v24  ;;  %965 = vadd.xlane.f32.xlu1 %v4427_v63  ;;  %971 = vadd.xlane.f32.xlu0 %v4432_v45 }
 0x23e   :  { %v4441_v13 = vpop.permute.xlu1 %1704  ;;  %975 = vadd.xlane.f32.xlu0 %v4437_v46 }
 0x23f   :  { %5664 = vst [vmem:[#allocation61_spill] sm:$0xff] %v4441_v13  ;;  %v4460_v13 = vpop.permute.xlu0 %1680 }
 0x242   :  { %v4444_v42 = vpop.permute.xlu1 %1708 }
 0x243   :  { %5665 = vst [vmem:[#allocation62_spill] sm:$0xff] %v4444_v42  ;;  %v5671_v42 = vld [vmem:[#allocation7_spill] sm:$0xff]  ;;  %v4470_v25 = vpop.permute.xlu0 %1841 }
 0x244   :  { %v719_v7 = vadd.f32 %v4246_v4, %v5671_v42 }
 0x247   :  { %v4448_v60 = vpop.permute.xlu1 %1376  ;;  %v4478_v46 = vpop.permute.xlu0 %1684 }
 0x248   :  { %5666 = vst [vmem:[#allocation63_spill] sm:$0xff] %v4448_v60  ;;  %v722_v60 = vadd.f32 %v4246_v4, %v5672_v30 }
 0x24a   :  { %v738_v15 = vmul.f32 0.2, %v722_v60 }
 0x24b   :  { %v4452_v49 = vpop.permute.xlu1 %1386  ;;  %1031 = vrot.lane.b32.xlu1 %v5668_v37, %s3529_s2  ;;  %v735_v37 = vmul.f32 0.2, %v719_v7 }
 0x24c   :  { %5667 = vst [vmem:[#allocation64_spill] sm:$0xff] %v4452_v49  ;;  %v5674_v49 = vld [vmem:[#allocation26_spill] sm:$0xff]  ;;  %v754_v30 = vmax.f32 %v722_v60, %v738_v15  ;;  %v5682_v60 = vld [vmem:[#allocation12_spill] sm:$0xff] }
 0x24d   :  { %v751_v42 = vmax.f32 %v719_v7, %v735_v37 }
 0x24e   :  { %v902_v6 = vsub.f32 %v754_v30, %v5679_v10 }
 0x24f   :  { %v4458_v24 = vpop.permute.xlu1 %1391 }
 0x250   :  { %5670 = vst [vmem:[#allocation19_spill] sm:$0xff] %v4458_v24  ;;  %v5675_v24 = vld [vmem:[#allocation5_spill] sm:$0xff]  ;;  %v931_v45 = vmul.f32 1.442695, %v902_v6 }
 0x251   :  { %v724_v20 = vadd.f32 %v4246_v4, %v5675_v24 }
 0x253   :  { %v740_v53 = vmul.f32 0.2, %v724_v20 }
 0x254   :  { %v4466_v18 = vpop.permute.xlu1 %1886  ;;  %1037 = vrot.lane.b32.xlu0 %v5674_v49, %s3529_s2 }
 0x255   :  { %5673 = vst [vmem:[#allocation6_spill] sm:$0xff] %v4466_v18  ;;  %v5678_v18 = vld [vmem:[#allocation27_spill] sm:$0xff]  ;;  %v756_v16 = vmax.f32 %v724_v20, %v740_v53  ;;  %v5687_v53 = vld [vmem:[#allocation21_spill] sm:$0xff] }
 0x256   :  { %v899_v17 = vsub.f32 %v751_v42, %v5678_v18  ;;  %v3267_v18 = vpop.eup %3266 }
 0x257   :  { %v904_v27 = vsub.f32 %v756_v16, %v5680_v54  ;;  %v4487_v37 = vmul.f32 %v3267_v18, %v5682_v60  ;;  %v5696_v18 = vld [vmem:[#allocation43_spill] sm:$0xff] }
 0x258   :  { %v4475_v57 = vpop.permute.xlu1 %1891  ;;  %v925_v24 = vmul.f32 1.442695, %v899_v17  ;;  %v5685_v17 = vld [vmem:[#allocation13_spill] sm:$0xff] }
 0x259   :  { %5677 = vst [vmem:[#allocation7_spill] sm:$0xff] %v4475_v57  ;;  %v4482_v57 = vpop.permute.xlu0 %1696  ;;  %v935_v39 = vmul.f32 1.442695, %v904_v27  ;;  %5683 = vst [vmem:[#allocation26_spill] sm:$0xff] %v4487_v37  ;;  %v5694_v27 = vld [vmem:[#allocation24_spill] sm:$0xff] }
 0x25a   :  { %5681 = vst [vmem:[#allocation4_spill] sm:$0xff] %v4482_v57  ;;  %3268 = vpow2.f32 %v925_v24 }
 0x25b   :  { %3270 = vpow2.f32 %v931_v45 }
 0x25c   :  { %v1026_v49 = vpop.permute.xlu1 %1025  ;;  %3272 = vpow2.f32 %v935_v39  ;;  %v5695_v39 = vsub.s32 2, %v3695_v21 }
 0x25d   :  { %3037 = vmatprep.subr.bf16.mxu1 %v1026_v49  ;;  %v4484_v7 = vpop.permute.xlu0 %1861 }
 0x25e   :  { %3038 = vmatpush3.bf16.msra.mxu1 %v1026_v49  ;;  %v5690_v49 = vld [vmem:[#allocation23_spill] sm:$0xff] }
 0x261   :  { %v4489_v42 = vpop.permute.xlu0 %1700 }
 0x262   :  { %5684 = vst [vmem:[#allocation5_spill] sm:$0xff] %v4489_v42  ;;  %v5699_v42 = vld [vmem:[#allocation9_spill] sm:$0xff] }
 0x264   :  { %v3269_v15 = vpop.eup %3268 }
 0x265   :  { %v3271_v5 = vpop.eup %3270  ;;  %v4493_v16 = vmul.f32 %v3269_v15, %v5685_v17  ;;  %v4499_v30 = vpop.permute.xlu0 %1712  ;;  %v4515_v15 = vrot.slane %v5696_v18, %v5695_v39 }
 0x266   :  { %v4496_v20 = vmul.f32 %v3271_v5, %v5687_v53  ;;  %v3273_v45 = vpop.eup %3272  ;;  %5689 = vst [vmem:[#allocation39_spill] sm:$0xff] %v4499_v30  ;;  %v5697_v5 = vld [vmem:[#allocation8_spill] sm:$0xff] }
 0x267   :  { %5686 = vst [vmem:[#allocation25_spill] sm:$0xff] %v4493_v16  ;;  %v4503_v10 = vmul.f32 %v3273_v45, %v5690_v49  ;;  %v721_v30 = vadd.f32 %v4246_v4, %v5697_v5  ;;  %v5698_v45 = vld [vmem:[#allocation44_spill] sm:$0xff]  ;;  %v5700_v5 = vsub.s32 3, %v3695_v21 }
 0x268   :  { %5688 = vst [vmem:[#allocation27_spill] sm:$0xff] %v4496_v20  ;;  %v1215_v49 = vadd.f32 %v4515_v15, %v5698_v45 }
 0x269   :  { %5691 = vst [vmem:[#allocation41_spill] sm:$0xff] %v4503_v10  ;;  %v4506_v6 = vpop.permute.xlu0 %1881  ;;  %v4530_v45 = vrot.slane %v5696_v18, %v5700_v5  ;;  %v5703_v18 = vld [vmem:[#allocation30_spill] sm:$0xff] }
 0x26a   :  { %5692 = vst [vmem:[#allocation12_spill] sm:$0xff] %v4506_v6  ;;  %v737_v6 = vmul.f32 0.2, %v721_v30  ;;  %v1231_v57 = vmul.f32 0.2, %v1215_v49  ;;  %v5704_v5 = vld [vmem:[#allocation46_spill] sm:$0xff] }
 0x26d   :  { %v4508_v24 = vpop.permute.xlu0 %1896 }
 0x26e   :  { %5693 = vst [vmem:[#allocation13_spill] sm:$0xff] %v4508_v24  ;;  %v723_v24 = vadd.f32 %v4246_v4, %v5699_v42  ;;  %v5702_v4 = vld [vmem:[#allocation29_spill] sm:$0xff] }
 0x26f   :  { %969 = vadd.xlane.f32.xlu1 %v4487_v37 }
 0x270   :  { %v739_v39 = vmul.f32 0.2, %v723_v24 }
 0x271   :  { %v954_v54 = vpop.xlane.xlu0 %953 }
 0x272   :  { %3274 = vrcp.f32 %v954_v54  ;;  %v1247_v54 = vmax.f32 %v1215_v49, %v1231_v57  ;;  %v755_v63 = vmax.f32 %v723_v24, %v739_v39 }
 0x273   :  { %973 = vadd.xlane.f32.xlu1 %v4493_v16  ;;  %979 = vadd.xlane.f32.xlu0 %v4496_v20  ;;  %v5701_v20 = vld [vmem:[#allocation32_spill] sm:$0xff] }
 0x274   :  { %v1216_v16 = vadd.f32 %v4515_v15, %v5701_v20  ;;  %v1395_v33 = vsub.f32 %v1247_v54, %v5704_v5 }
 0x275   :  { %v4521_v53 = vpop.xlane.xlu0 %957 }
 0x277   :  { %983 = vadd.xlane.f32.xlu0 %v4503_v10  ;;  %v753_v10 = vmax.f32 %v721_v30, %v737_v6  ;;  %v1232_v30 = vmul.f32 0.2, %v1216_v16 }
 0x279   :  { %v4534_v51 = vpop.xlane.xlu0 %959  ;;  %v901_v42 = vsub.f32 %v753_v10, %v5702_v4  ;;  %v1248_v38 = vmax.f32 %v1216_v16, %v1232_v30  ;;  %v5705_v10 = vld [vmem:[#allocation40_spill] sm:$0xff] }
 0x27b   :  { %v929_v21 = vmul.f32 1.442695, %v901_v42  ;;  %v1396_v24 = vsub.f32 %v1248_v38, %v5705_v10 }
 0x27c   :  { %v3275_v22 = vpop.eup %3274 }
 0x27d   :  { %v1030_v6 = vpop.permute.xlu0 %1029  ;;  %v1001_v4 = vmul.f32 %v3275_v22, %v4298_v34  ;;  %v5707_v34 = vld [vmem:[#allocation15_spill] sm:$0xff] }
 0x284   :  { %1035 = vrot.lane.b32.xlu1 %v5694_v27, %s3529_s2 }
 0x28d   :  { %1530 = vrot.lane.b32.xlu0 %v4025_v23, %s3530_s25  ;;  %v1719_v23 = vadd.f32 %v4530_v45, %v4424_v55  ;;  %v1412_v55 = vmul.f32 1.442695, %v1395_v33 }
 0x28e   :  { %v956_v27 = vpop.xlane.xlu1 %955 }
 0x28f   :  { %3276 = vrcp.f32 %v956_v27  ;;  %v903_v27 = vsub.f32 %v755_v63, %v5703_v18  ;;  %v1735_v20 = vmul.f32 0.2, %v1719_v23  ;;  %v1414_v63 = vmul.f32 1.442695, %v1396_v24 }
 0x290   :  { %3278 = vpow2.f32 %v929_v21 }
 0x291   :  { %v933_v49 = vmul.f32 1.442695, %v903_v27  ;;  %v1751_v39 = vmax.f32 %v1719_v23, %v1735_v20 }
 0x292   :  { %v1028_v37 = vpop.permute.xlu1 %1027 }
 0x293   :  { %3039 = vmatprep.subr.bf16.mxu1 %v1028_v37  ;;  %3280 = vpow2.f32 %v933_v49  ;;  %v1899_v54 = vsub.f32 %v1751_v39, %v4446_v56  ;;  %v3517_v39 = vld [vmem:[%s5527_s0] sm:$0xff]  }
 0x294   :  { %3040 = vmatpush3.bf16.msra.mxu1 %v1028_v37  ;;  %3282 = vpow2.f32 %v1412_v55  ;;  %v5716_v55 = vld [vmem:[#allocation28_spill] sm:$0xff] }
 0x295   :  { %3041 = vmatprep.subr.bf16.mxu1 %v1030_v6  ;;  %3284 = vpow2.f32 %v1414_v63  ;;  %v1915_v16 = vmul.f32 1.442695, %v1899_v54  ;;  %v5721_v54 = vld [vmem:[#allocation31_spill] sm:$0xff] }
 0x297   :  { %3286 = vpow2.f32 %v1915_v16  ;;  %v1214_v16 = vadd.f32 %v4515_v15, %v5721_v54 }
 0x298   :  { %3042 = vmatpush3.bf16.msra.mxu1 %v1030_v6  ;;  %v5706_v6 = vld [vmem:[#allocation14_spill] sm:$0xff] }
 0x299   :  { %v3277_v57 = vpop.eup %3276 }
 0x29a   :  { %v1002_v37 = vmul.f32 %v3277_v57, %v4357_v9  ;;  %v3279_v30 = vpop.eup %3278 }
 0x29b   :  { %v4546_v33 = vmul.f32 %v3279_v30, %v5706_v6 }
 0x29c   :  { %v1017_v42 = vpack.c.bf16 %v1002_v37, %v1001_v4  ;;  %v4583_v4 = vpop.xlane.xlu0 %963 }
 0x29d   :  { %v3281_v38 = vpop.eup %3280 }
 0x29e   :  { %3053 = vmatprep.mubr.bf16.mxu1 %v1017_v42  ;;  %v3283_v23 = vpop.eup %3282  ;;  %v4550_v22 = vmul.f32 %v3281_v38, %v5707_v34  ;;  %v1230_v38 = vmul.f32 0.2, %v1214_v16 }
 0x29f   :  { %v4553_v9 = vmul.f32 %v3283_v23, %v3897_v35  ;;  %v3285_v21 = vpop.eup %3284  ;;  %v5722_v23 = vld [vmem:[#allocation33_spill] sm:$0xff] }
 0x2a0   :  { %5708 = vst [vmem:[#allocation24_spill] sm:$0xff] %v4550_v22  ;;  %v4558_v56 = vmul.f32 %v3285_v21, %v3909_v44  ;;  %v1217_v21 = vadd.f32 %v4515_v15, %v5722_v23 }
 0x2a1   :  { %5709 = vst [vmem:[#allocation43_spill] sm:$0xff] %v4553_v9  ;;  %v3287_v18 = vpop.eup %3286 }
 0x2a2   :  { %5710 = vst [vmem:[#allocation8_spill] sm:$0xff] %v4558_v56  ;;  %v4562_v27 = vmul.f32 %v3287_v18, %v3992_v12  ;;  %v1233_v23 = vmul.f32 0.2, %v1217_v21 }
 0x2a4   :  { %5711 = vst [vmem:[#allocation44_spill] sm:$0xff] %v4562_v27 }
 0x2a8   :  { %977 = vadd.xlane.f32.xlu1 %v4546_v33 }
 0x2ac   :  { %981 = vadd.xlane.f32.xlu1 %v4550_v22  ;;  %1460 = vadd.xlane.f32.xlu0 %v4553_v9 }
 0x2b0   :  { %1462 = vadd.xlane.f32.xlu0 %v4558_v56  ;;  %v5729_v56 = vld [vmem:[#allocation36_spill] sm:$0xff] }
 0x2b4   :  { %1963 = vadd.xlane.f32.xlu0 %v4562_v27 }
 0x2b7   :  { %v4565_v5 = vpop.f32.mrb[0].mxu0 }
 0x2b8   :  { %5712 = vst [vmem:[#allocation9_spill] sm:$0xff] %v4565_v5  ;;  %v4567_v20 = vpop.f32.mrb[1].mxu0  ;;  %v3519_v5 = vld [vmem:[%s5527_s0 + $0x10] sm:$0xff]  }
 0x2b9   :  { %5713 = vst [vmem:[#allocation32_spill] sm:$0xff] %v4567_v20  ;;  %v4569_v57 = vpop.f32.mrb[2].mxu0  ;;  %v1219_v20 = vadd.f32 %v4515_v15, %v4268_v3  ;;  %v1722_v3 = vadd.f32 %v4530_v45, %v4439_v41  ;;  %v1723_v41 = vadd.f32 %v4530_v45, %v4450_v50 }
 0x2ba   :  { %5714 = vst [vmem:[#allocation29_spill] sm:$0xff] %v4569_v57  ;;  %v4571_v49 = vpop.f32.mrb[3].mxu0 }
 0x2bb   :  { %5715 = vst [vmem:[#allocation30_spill] sm:$0xff] %v4571_v49  ;;  %v5727_v49 = vld [vmem:[#allocation34_spill] sm:$0xff]  ;;  %v1235_v9 = vmul.f32 0.2, %v1219_v20 }
 0x2bd   :  { %1039 = vrot.lane.b32.xlu1 %v5716_v55, %s3529_s2  ;;  %v4599_v55 = vpop.xlane.xlu0 %967 }
 0x2bf   :  { %v4575_v10 = vpop.f32.mrb[4].mxu0 }
 0x2c0   :  { %5717 = vst [vmem:[#allocation46_spill] sm:$0xff] %v4575_v10  ;;  %v4577_v24 = vpop.f32.mrb[5].mxu0  ;;  %v1246_v10 = vmax.f32 %v1214_v16, %v1230_v38  ;;  %v1249_v16 = vmax.f32 %v1217_v21, %v1233_v23  ;;  %v1220_v23 = vadd.f32 %v4515_v15, %v4274_v58 }
 0x2c1   :  { %5718 = vst [vmem:[#allocation40_spill] sm:$0xff] %v4577_v24  ;;  %2035 = vrot.lane.b32.xlu1 %v3517_v39, %s3531_s3  ;;  %v4585_v37 = vpop.f32.mrb[6].mxu0 }
 0x2c2   :  { %5719 = vst [vmem:[#allocation28_spill] sm:$0xff] %v4585_v37  ;;  %v4587_v42 = vpop.f32.mrb[7].mxu0 }
 0x2c3   :  { %5720 = vst [vmem:[#allocation65_spill] sm:$0xff] %v4587_v42  ;;  %v4589_v63 = vpop.xlane.xlu1 %961  ;;  %v4608_v42 = vld [vmem:[%s5527_s0 + $0x8] sm:$0xff]  }
 0x2c7   :  { %v4593_v30 = vpop.xlane.xlu1 %965  ;;  %v4597_v18 = vpop.f32.mrb[8].mxu0 }
 0x2c8   :  { %5723 = vst [vmem:[#allocation31_spill] sm:$0xff] %v4597_v18  ;;  %v4601_v39 = vpop.f32.mrb[9].mxu0  ;;  %v1720_v18 = vadd.f32 %v4530_v45, %v5727_v49  ;;  %v1721_v49 = vadd.f32 %v4530_v45, %v5729_v56 }
 0x2c9   :  { %5724 = vst [vmem:[#allocation33_spill] sm:$0xff] %v4601_v39  ;;  %v4603_v37 = vpop.f32.mrb[10].mxu0  ;;  %v1034_v39 = vpop.permute.xlu0 %1033 }
 0x2ca   :  { %5725 = vst [vmem:[#allocation66_spill] sm:$0xff] %v4603_v37  ;;  %1532 = vrot.lane.b32.xlu0 %v4608_v42, %s3530_s25  ;;  %v4612_v54 = vpop.f32.mrb[11].mxu0  ;;  %v5728_v37 = vld [vmem:[#allocation38_spill] sm:$0xff]  ;;  %v1737_v56 = vmul.f32 0.2, %v1721_v49 }
 0x2cb   :  { %5726 = vst [vmem:[#allocation67_spill] sm:$0xff] %v4612_v54  ;;  %v1032_v57 = vpop.permute.xlu1 %1031  ;;  %v1394_v24 = vsub.f32 %v1246_v10, %v5728_v37  ;;  %v1736_v54 = vmul.f32 0.2, %v1720_v18  ;;  %v5732_v37 = vld [vmem:[#allocation42_spill] sm:$0xff] }
 0x2cc   :  { %3043 = vmatprep.subr.bf16.mxu1 %v1032_v57  ;;  %v1397_v27 = vsub.f32 %v1249_v16, %v5732_v37  ;;  %v1738_v16 = vmul.f32 0.2, %v1722_v3  ;;  %v1251_v37 = vmax.f32 %v1219_v20, %v1235_v9 }
 0x2cd   :  { %3044 = vmatpush3.bf16.msra.mxu1 %v1032_v57  ;;  %v1410_v10 = vmul.f32 1.442695, %v1394_v24  ;;  %v1752_v21 = vmax.f32 %v1720_v18, %v1736_v54  ;;  %v5735_v24 = vld [vmem:[#allocation45_spill] sm:$0xff]  ;;  %v1739_v54 = vmul.f32 0.2, %v1723_v41 }
 0x2ce   :  { %3045 = vmatprep.subr.bf16.mxu1 %v1034_v39  ;;  %1534 = vrot.lane.b32.xlu0 %v3519_v5, %s3530_s25  ;;  %v1754_v22 = vmax.f32 %v1722_v3, %v1738_v16  ;;  %v1399_v18 = vsub.f32 %v1251_v37, %v4280_v29 }
 0x2cf   :  { %v4625_v38 = vpop.f32.mrb[12].mxu0  ;;  %3288 = vpow2.f32 %v1410_v10  ;;  %v1755_v20 = vmax.f32 %v1723_v41, %v1739_v54 }
 0x2d0   :  { %5730 = vst [vmem:[#allocation34_spill] sm:$0xff] %v4625_v38  ;;  %v4627_v57 = vpop.f32.mrb[13].mxu0  ;;  %v1900_v38 = vsub.f32 %v1752_v21, %v5735_v24  ;;  %v1902_v10 = vsub.f32 %v1754_v22, %v4276_v32  ;;  %v1420_v21 = vmul.f32 1.442695, %v1399_v18 }
 0x2d1   :  { %5731 = vst [vmem:[#allocation38_spill] sm:$0xff] %v4627_v57  ;;  %3046 = vmatpush3.bf16.msra.mxu1 %v1034_v39  ;;  %v4632_v6 = vpop.f32.mrb[14].mxu0  ;;  %v1416_v39 = vmul.f32 1.442695, %v1397_v27  ;;  %v1236_v57 = vmul.f32 0.2, %v1220_v23 }
 0x2d2   :  { %5733 = vst [vmem:[#allocation36_spill] sm:$0xff] %v4632_v6  ;;  %2039 = vrot.lane.b32.xlu0 %v3519_v5, %s3531_s3  ;;  %v4635_v34 = vpop.f32.mrb[15].mxu0  ;;  %v1753_v6 = vmax.f32 %v1721_v49, %v1737_v56  ;;  %v1917_v5 = vmul.f32 1.442695, %v1900_v38  ;;  %v1921_v49 = vmul.f32 1.442695, %v1902_v10 }
 0x2d3   :  { %5734 = vst [vmem:[#allocation42_spill] sm:$0xff] %v4635_v34  ;;  %3290 = vpow2.f32 %v1416_v39  ;;  %v1252_v58 = vmax.f32 %v1220_v23, %v1236_v57  ;;  %v4667_v39 = vpop.xlane.xlu0 %971 }
 0x2d4   :  { %v1901_v34 = vsub.f32 %v1753_v6, %v4270_v40  ;;  %3292 = vpow2.f32 %v1917_v5  ;;  %v1903_v40 = vsub.f32 %v1755_v20, %v4470_v25  ;;  %v5737_v20 = vld [vmem:[#allocation48_spill] sm:$0xff] }
 0x2d5   :  { %v1400_v9 = vsub.f32 %v1252_v58, %v4342_v2 }
 0x2d6   :  { %v1919_v27 = vmul.f32 1.442695, %v1901_v34  ;;  %v1923_v32 = vmul.f32 1.442695, %v1903_v40 }
 0x2d7   :  { %v1422_v38 = vmul.f32 1.442695, %v1400_v9  ;;  %v4680_v37 = vpop.xlane.xlu0 %975 }
 0x2d8   :  { %3294 = vpow2.f32 %v1919_v27  ;;  %v5736_v27 = vld [vmem:[#allocation47_spill] sm:$0xff] }
 0x2d9   :  { %v3289_v50 = vpop.eup %3288  ;;  %3296 = vpow2.f32 %v1420_v21  ;;  %v1218_v10 = vadd.f32 %v4515_v15, %v5736_v27 }
 0x2da   :  { %v4648_v6 = vmul.f32 %v3289_v50, %v3992_v12  ;;  %3298 = vpow2.f32 %v1921_v49  ;;  %v1221_v50 = vadd.f32 %v4515_v15, %v5737_v20  ;;  %v4700_v49 = vld [vmem:[%s5527_s0 + $0x18] sm:$0xff]  }
 0x2db   :  { %3300 = vpow2.f32 %v1422_v38  ;;  %v1038_v5 = vpop.permute.xlu0 %1037  ;;  %v1234_v9 = vmul.f32 0.2, %v1218_v10  ;;  %v5738_v38 = vld [vmem:[#allocation49_spill] sm:$0xff] }
 0x2dc   :  { %3302 = vpow2.f32 %v1923_v32  ;;  %v1724_v40 = vadd.f32 %v4530_v45, %v5738_v38 }
 0x2dd   :  { %v3291_v29 = vpop.eup %3290 }
 0x2de   :  { %v4652_v34 = vmul.f32 %v3291_v29, %v4004_v48  ;;  %v3293_v2 = vpop.eup %3292  ;;  %v1250_v29 = vmax.f32 %v1218_v10, %v1234_v9 }
 0x2df   :  { %v4656_v22 = vmul.f32 %v3293_v2, %v3897_v35  ;;  %v3521_v2 = vld [vmem:[%s5527_s0 + $0x20] sm:$0xff]  }
 0x2e0   :  { %v1398_v32 = vsub.f32 %v1250_v29, %v4314_v31  ;;  %v1726_v31 = vadd.f32 %v4530_v45, %v4460_v13 }
 0x2e2   :  { %v3295_v25 = vpop.eup %3294  ;;  %v1742_v20 = vmul.f32 0.2, %v1726_v31 }
 0x2e3   :  { %v3297_v57 = vpop.eup %3296  ;;  %v4660_v12 = vmul.f32 %v3295_v25, %v3909_v44  ;;  %v1740_v25 = vmul.f32 0.2, %v1724_v40 }
 0x2e4   :  { %v3299_v3 = vpop.eup %3298  ;;  %v4663_v56 = vmul.f32 %v3297_v57, %v4017_v26  ;;  %v1725_v57 = vadd.f32 %v4530_v45, %v4301_v62  ;;  %v1727_v62 = vadd.f32 %v4530_v45, %v4478_v46  ;;  %v1758_v29 = vmax.f32 %v1726_v31, %v1742_v20 }
 0x2e5   :  { %1458 = vadd.xlane.f32.xlu1 %v4648_v6  ;;  %v3301_v23 = vpop.eup %3300  ;;  %v4670_v35 = vmul.f32 %v3299_v3, %v4004_v48  ;;  %v1756_v27 = vmax.f32 %v1724_v40, %v1740_v25 }
 0x2e6   :  { %v4673_v24 = vmul.f32 %v3301_v23, %v5657_v1  ;;  %v3303_v16 = vpop.eup %3302  ;;  %v1223_v23 = vadd.f32 %v4515_v15, %v4378_v28  ;;  %v1743_v13 = vmul.f32 0.2, %v1727_v62  ;;  %v1906_v25 = vsub.f32 %v1758_v29, %v4370_v19 }
 0x2e7   :  { %v4678_v44 = vmul.f32 %v3303_v16, %v5655_v11  ;;  %v1418_v16 = vmul.f32 1.442695, %v1398_v32  ;;  %v1904_v28 = vsub.f32 %v1756_v27, %v4350_v59 }
 0x2e8   :  { %v1239_v10 = vmul.f32 0.2, %v1223_v23 }
 0x2e9   :  { %1464 = vadd.xlane.f32.xlu1 %v4652_v34  ;;  %3304 = vpow2.f32 %v1418_v16  ;;  %v1925_v38 = vmul.f32 1.442695, %v1904_v28  ;;  %v1929_v16 = vmul.f32 1.442695, %v1906_v25 }
 0x2ed   :  { %1965 = vadd.xlane.f32.xlu1 %v4656_v22 }
 0x2f1   :  { %1967 = vadd.xlane.f32.xlu1 %v4660_v12  ;;  %1468 = vadd.xlane.f32.xlu0 %v4663_v56 }
 0x2f5   :  { %1969 = vadd.xlane.f32.xlu1 %v4670_v35  ;;  %1470 = vadd.xlane.f32.xlu0 %v4673_v24 }
 0x2f9   :  { %1971 = vadd.xlane.f32.xlu0 %v4678_v44 }
 0x2fc   :  { %v4683_v41 = vpop.xlane.xlu1 %969 }
 0x300   :  { %v4685_v48 = vpop.xlane.xlu1 %973  ;;  %v4687_v18 = vpop.xlane.xlu0 %979 }
 0x304   :  { %v1036_v54 = vpop.permute.xlu1 %1035  ;;  %v4689_v58 = vpop.xlane.xlu0 %983 }
 0x305   :  { %3047 = vmatprep.subr.bf16.mxu1 %v1036_v54 }
 0x306   :  { %2037 = vrot.lane.b32.xlu1 %v4608_v42, %s3531_s3  ;;  %3048 = vmatpush3.bf16.msra.mxu1 %v1036_v54  ;;  %v1237_v42 = vmul.f32 0.2, %v1221_v50  ;;  %v1741_v54 = vmul.f32 0.2, %v1725_v57 }
 0x307   :  { %3049 = vmatprep.subr.bf16.mxu1 %v1038_v5 }
 0x308   :  { %v1531_v21 = vpop.permute.xlu0 %1530  ;;  %v1253_v3 = vmax.f32 %v1221_v50, %v1237_v42  ;;  %v1255_v42 = vmax.f32 %v1223_v23, %v1239_v10 }
 0x309   :  { %3069 = vmatprep.subr.bf16.mxu0 %v1531_v21 }
 0x30a   :  { %3050 = vmatpush3.bf16.msra.mxu1 %v1038_v5  ;;  %3070 = vmatpush3.bf16.msra.mxu0 %v1531_v21  ;;  %v1401_v5 = vsub.f32 %v1253_v3, %v4346_v36  ;;  %v1224_v21 = vadd.f32 %v4515_v15, %v4390_v14  ;;  %v1757_v36 = vmax.f32 %v1725_v57, %v1741_v54  ;;  %v3305_v57 = vpop.eup %3304 }
 0x30b   :  { %v1403_v32 = vsub.f32 %v1255_v42, %v4399_v43  ;;  %v1759_v14 = vmax.f32 %v1727_v62, %v1743_v13 }
 0x30c   :  { %v1424_v9 = vmul.f32 1.442695, %v1401_v5  ;;  %v1240_v50 = vmul.f32 0.2, %v1224_v21  ;;  %v1905_v40 = vsub.f32 %v1757_v36, %v4364_v8  ;;  %v4730_v8 = vmul.f32 %v3305_v57, %v5655_v11  ;;  %v5739_v36 = vld [vmem:[#allocation10_spill] sm:$0xff] }
 0x30d   :  { %v1428_v3 = vmul.f32 1.442695, %v1403_v32  ;;  %v1907_v23 = vsub.f32 %v1759_v14, %v4484_v7  ;;  %v5743_v57 = vld [vmem:[#allocation26_spill] sm:$0xff] }
 0x30e   :  { %3306 = vpow2.f32 %v1424_v9  ;;  %v1927_v46 = vmul.f32 1.442695, %v1905_v40 }
 0x30f   :  { %1536 = vrot.lane.b32.xlu0 %v4700_v49, %s3530_s25  ;;  %3308 = vpow2.f32 %v1925_v38  ;;  %v1931_v31 = vmul.f32 1.442695, %v1907_v23  ;;  %v5741_v38 = vld [vmem:[#allocation52_spill] sm:$0xff] }
 0x310   :  { %3310 = vpow2.f32 %v1927_v46 }
 0x311   :  { %3312 = vpow2.f32 %v1428_v3  ;;  %v5742_v3 = vld [vmem:[#allocation11_spill] sm:$0xff] }
 0x312   :  { %3314 = vpow2.f32 %v1929_v16  ;;  %v5744_v16 = vld [vmem:[#allocation53_spill] sm:$0xff] }
 0x313   :  { %1538 = vrot.lane.b32.xlu0 %v3521_v2, %s3530_s25 }
 0x317   :  { %2043 = vrot.lane.b32.xlu0 %v3521_v2, %s3531_s3  ;;  %v1256_v2 = vmax.f32 %v1224_v21, %v1240_v50 }
 0x318   :  { %v3307_v43 = vpop.eup %3306 }
 0x319   :  { %v1404_v59 = vsub.f32 %v1256_v2, %v4394_v0  ;;  %v4734_v19 = vmul.f32 %v3307_v43, %v4033_v61  ;;  %v3309_v0 = vpop.eup %3308  ;;  %v5745_v43 = vld [vmem:[#allocation16_spill] sm:$0xff] }
 0x31a   :  { %v4740_v11 = vmul.f32 %v3309_v0, %v4017_v26  ;;  %v3311_v7 = vpop.eup %3310 }
 0x31b   :  { %v1430_v5 = vmul.f32 1.442695, %v1404_v59  ;;  %v3313_v54 = vpop.eup %3312  ;;  %v4746_v27 = vmul.f32 %v3311_v7, %v5657_v1 }
 0x31c   :  { %v3315_v10 = vpop.eup %3314 }
 0x31d   :  { %3316 = vpow2.f32 %v1430_v5 }
 0x31e   :  { %3318 = vpow2.f32 %v1931_v31 }
 0x31f   :  { %3320 = vrcp.f32 %v4534_v51  ;;  %v4749_v51 = vmul.f32 %v3313_v54, %v5660_v47 }
 0x320   :  { %3322 = vrcp.f32 %v4589_v63 }
 0x321   :  { %3324 = vrcp.f32 %v4521_v53  ;;  %v4756_v53 = vmul.f32 %v3315_v10, %v4033_v61 }
 0x322   :  { %3326 = vrcp.f32 %v4583_v4 }
 0x323   :  { %3328 = vrcp.f32 %v4593_v30 }
 0x324   :  { %3330 = vrcp.f32 %v4683_v41 }
 0x325   :  { %3332 = vrcp.f32 %v4599_v55 }
 0x326   :  { %3334 = vrcp.f32 %v4667_v39  ;;  %v5740_v39 = vld [vmem:[#allocation50_spill] sm:$0xff] }
 0x327   :  { %v3317_v63 = vpop.eup %3316  ;;  %3336 = vrcp.f32 %v4685_v48 }
 0x328   :  { %v3319_v26 = vpop.eup %3318  ;;  %v4760_v62 = vmul.f32 %v3317_v63, %v5685_v17 }
 0x329   :  { %v3321_v1 = vpop.eup %3320  ;;  %v4769_v55 = vmul.f32 %v3319_v26, %v5682_v60  ;;  %v5746_v26 = vld [vmem:[#allocation25_spill] sm:$0xff] }
 0x32a   :  { %1466 = vadd.xlane.f32.xlu1 %v4730_v8  ;;  %v3323_v9 = vpop.eup %3322  ;;  %v1004_v61 = vmul.f32 %v3321_v1, %v4311_v52 }
 0x32b   :  { %v3325_v30 = vpop.eup %3324  ;;  %v1005_v50 = vmul.f32 %v3323_v9, %v5739_v36  ;;  %v5747_v9 = vld [vmem:[#allocation51_spill] sm:$0xff] }
 0x32c   :  { %v3327_v41 = vpop.eup %3326  ;;  %v1003_v13 = vmul.f32 %v3325_v30, %v5740_v39  ;;  %v1222_v30 = vadd.f32 %v4515_v15, %v5747_v9 }
 0x32d   :  { %v1006_v40 = vmul.f32 %v3327_v41, %v5741_v38  ;;  %v3329_v29 = vpop.eup %3328 }
 0x32e   :  { %1472 = vadd.xlane.f32.xlu1 %v4734_v19  ;;  %v1018_v52 = vpack.c.bf16 %v1004_v61, %v1003_v13  ;;  %v3331_v2 = vpop.eup %3330  ;;  %v1007_v59 = vmul.f32 %v3329_v29, %v5742_v3  ;;  %v5749_v61 = vld [vmem:[#allocation27_spill] sm:$0xff]  ;;  %v1238_v13 = vmul.f32 0.2, %v1222_v30 }
 0x32f   :  { %v1019_v14 = vpack.c.bf16 %v1006_v40, %v1005_v50  ;;  %v3333_v48 = vpop.eup %3332  ;;  %v1009_v23 = vmul.f32 %v3331_v2, %v5743_v57  ;;  %v4801_v29 = vld [vmem:[%s5527_s0 + $0x28] sm:$0xff]  }
 0x330   :  { %v3335_v25 = vpop.eup %3334  ;;  %v1008_v5 = vmul.f32 %v3333_v48, %v5744_v16  ;;  %v1254_v48 = vmax.f32 %v1222_v30, %v1238_v13  ;;  %v3523_v16 = vld [vmem:[%s5527_s0 + $0x30] sm:$0xff]   ;;  %v5761_v13 = vld [vmem:[#allocation5_spill] sm:$0xff] }
 0x331   :  { %v1010_v31 = vmul.f32 %v3335_v25, %v5745_v43  ;;  %v3337_v0 = vpop.eup %3336  ;;  %v5753_v25 = vld [vmem:[#allocation41_spill] sm:$0xff] }
 0x332   :  { %1973 = vadd.xlane.f32.xlu1 %v4740_v11  ;;  %v1011_v1 = vmul.f32 %v3337_v0, %v5746_v26  ;;  %v5759_v26 = vld [vmem:[#allocation20_spill] sm:$0xff] }
 0x333   :  { %v1021_v7 = vpack.c.bf16 %v1010_v31, %v1009_v23 }
 0x335   :  { %v978_v21 = vpop.xlane.xlu1 %977 }
 0x336   :  { %1975 = vadd.xlane.f32.xlu1 %v4746_v27  ;;  %1476 = vadd.xlane.f32.xlu0 %v4749_v51  ;;  %3338 = vrcp.f32 %v978_v21 }
 0x337   :  { %3340 = vrcp.f32 %v4680_v37 }
 0x338   :  { %3342 = vrcp.f32 %v4687_v18  ;;  %v1020_v18 = vpack.c.bf16 %v1008_v5, %v1007_v59  ;;  %v5754_v59 = vld [vmem:[#allocation57_spill] sm:$0xff] }
 0x339   :  { %v982_v4 = vpop.xlane.xlu1 %981  ;;  %v4763_v28 = vpop.xlane.xlu0 %1460  ;;  %v1402_v57 = vsub.f32 %v1254_v48, %v5754_v59 }
 0x33a   :  { %1977 = vadd.xlane.f32.xlu1 %v4756_v53  ;;  %1478 = vadd.xlane.f32.xlu0 %v4760_v62  ;;  %3344 = vrcp.f32 %v982_v4 }
 0x33b   :  { %3346 = vrcp.f32 %v4689_v58  ;;  %v5748_v58 = vld [vmem:[#allocation60_spill] sm:$0xff] }
 0x33d   :  { %v1040_v20 = vpop.permute.xlu1 %1039  ;;  %v4772_v42 = vpop.xlane.xlu0 %1462 }
 0x33e   :  { %3051 = vmatprep.subr.bf16.mxu1 %v1040_v20  ;;  %1979 = vadd.xlane.f32.xlu0 %v4769_v55 }
 0x33f   :  { %3052 = vmatpush3.bf16.msra.mxu1 %v1040_v20 }
 0x340   :  { %v3339_v54 = vpop.eup %3338 }
 0x341   :  { %v2036_v32 = vpop.permute.xlu1 %2035  ;;  %v4780_v46 = vpop.xlane.xlu0 %1963  ;;  %v1013_v4 = vmul.f32 %v3339_v54, %v4546_v33  ;;  %v5757_v54 = vld [vmem:[#allocation2_spill] sm:$0xff] }
 0x342   :  { %3054 = vmatmul.mubr.bf16.vlgmr.msra.gmra.mrb[0].mxu1 %v1018_v52  ;;  %3101 = vmatprep.subr.bf16.mxu1 %v2036_v32  ;;  %v3341_v21 = vpop.eup %3340  ;;  %v5751_v52 = vld [vmem:[#allocation24_spill] sm:$0xff] }
 0x343   :  { %3057 = vmatprep.mubr.bf16.mxu1 %v1019_v14  ;;  %3102 = vmatpush3.bf16.msra.mxu1 %v2036_v32  ;;  %v3343_v63 = vpop.eup %3342  ;;  %v1012_v41 = vmul.f32 %v3341_v21, %v5748_v58  ;;  %v5752_v14 = vld [vmem:[#allocation55_spill] sm:$0xff]  ;;  %v5758_v21 = vld [vmem:[#allocation4_spill] sm:$0xff] }
 0x344   :  { %v1014_v20 = vmul.f32 %v3343_v63, %v5749_v61  ;;  %v3345_v50 = vpop.eup %3344  ;;  %v1728_v2 = vadd.f32 %v4530_v45, %v5752_v14  ;;  %v1730_v63 = vadd.f32 %v4530_v45, %v5758_v21  ;;  %v5767_v21 = vld [vmem:[#allocation18_spill] sm:$0xff] }
 0x345   :  { %v1533_v37 = vpop.permute.xlu0 %1532  ;;  %v1022_v36 = vpack.c.bf16 %v1012_v41, %v1011_v1  ;;  %v3347_v40 = vpop.eup %3346  ;;  %v1015_v33 = vmul.f32 %v3345_v50, %v5751_v52  ;;  %v1228_v1 = vadd.f32 %v4515_v15, %v5759_v26  ;;  %v5760_v41 = vld [vmem:[#allocation3_spill] sm:$0xff] }
 0x346   :  { %3071 = vmatprep.subr.bf16.mxu0 %v1533_v37  ;;  %v1023_v39 = vpack.c.bf16 %v1014_v20, %v1013_v4  ;;  %v1016_v3 = vmul.f32 %v3347_v40, %v5753_v25  ;;  %v1744_v5 = vmul.f32 0.2, %v1728_v2  ;;  %v1746_v20 = vmul.f32 0.2, %v1730_v63  ;;  %v5762_v40 = vld [vmem:[#allocation35_spill] sm:$0xff]  ;;  %v5764_v25 = vld [vmem:[#allocation58_spill] sm:$0xff] }
 0x347   :  { %3072 = vmatpush3.bf16.msra.mxu0 %v1533_v37  ;;  %v5755_v37 = vld [vmem:[#allocation56_spill] sm:$0xff] }
 0x348   :  { %v1024_v23 = vpack.c.bf16 %v1016_v3, %v1015_v33  ;;  %v1729_v43 = vadd.f32 %v4530_v45, %v5755_v37  ;;  %v1760_v9 = vmax.f32 %v1728_v2, %v1744_v5  ;;  %v5763_v33 = vld [vmem:[#allocation37_spill] sm:$0xff]  ;;  %v1762_v14 = vmax.f32 %v1730_v63, %v1746_v20 }
 0x349   :  { %v1535_v10 = vpop.permute.xlu0 %1534  ;;  %v5768_v20 = vld [vmem:[#allocation21_spill] sm:$0xff] }
 0x34a   :  { %3058 = vmatmul.mubr.bf16.gmra.mrb[4].mxu1 %v1020_v18  ;;  %3073 = vmatprep.subr.bf16.mxu0 %v1535_v10  ;;  %v5756_v18 = vld [vmem:[#allocation22_spill] sm:$0xff]  ;;  %v1745_v4 = vmul.f32 0.2, %v1729_v43  ;;  %v1908_v61 = vsub.f32 %v1760_v9, %v5760_v41  ;;  %v1910_v3 = vsub.f32 %v1762_v14, %v5764_v25 }
 0x34b   :  { %2041 = vrot.lane.b32.xlu1 %v4700_v49, %s3531_s3  ;;  %3061 = vmatprep.mubr.bf16.mxu1 %v1021_v7  ;;  %v5750_v49 = vld [vmem:[#allocation54_spill] sm:$0xff]  ;;  %v1227_v0 = vadd.f32 %v4515_v15, %v5756_v18  ;;  %v1426_v7 = vmul.f32 1.442695, %v1402_v57  ;;  %v5765_v57 = vld [vmem:[#allocation64_spill] sm:$0xff] }
 0x34c   :  { %3074 = vmatpush3.bf16.msra.mxu0 %v1535_v10  ;;  %v1225_v38 = vadd.f32 %v4515_v15, %v5750_v49  ;;  %v1761_v50 = vmax.f32 %v1729_v43, %v1745_v4  ;;  %v1731_v49 = vadd.f32 %v4530_v45, %v5761_v13  ;;  %v1937_v43 = vmul.f32 1.442695, %v1910_v3  ;;  %v5766_v18 = vld [vmem:[#allocation12_spill] sm:$0xff] }
 0x34d   :  { %v1243_v30 = vmul.f32 0.2, %v1227_v0  ;;  %3348 = vpow2.f32 %v1426_v7 }
 0x34e   :  { %v1241_v32 = vmul.f32 0.2, %v1225_v38  ;;  %v1909_v52 = vsub.f32 %v1761_v50, %v5762_v40  ;;  %v1747_v48 = vmul.f32 0.2, %v1731_v49  ;;  %v5770_v40 = vld [vmem:[#allocation43_spill] sm:$0xff] }
 0x350   :  { %v1257_v31 = vmax.f32 %v1225_v38, %v1241_v32  ;;  %v1933_v38 = vmul.f32 1.442695, %v1908_v61  ;;  %v1935_v59 = vmul.f32 1.442695, %v1909_v52  ;;  %v1763_v37 = vmax.f32 %v1731_v49, %v1747_v48  ;;  %v5771_v48 = vld [vmem:[#allocation14_spill] sm:$0xff] }
 0x352   :  { %3062 = vmatmul.mubr.bf16.gmra.mrb[8].mxu1 %v1022_v36  ;;  %v1405_v10 = vsub.f32 %v1257_v31, %v5757_v54  ;;  %v1244_v36 = vmul.f32 0.2, %v1228_v1 }
 0x353   :  { %3065 = vmatprep.mubr.bf16.mxu1 %v1023_v39  ;;  %v1259_v39 = vmax.f32 %v1227_v0, %v1243_v30  ;;  %v1911_v0 = vsub.f32 %v1763_v37, %v5766_v18 }
 0x354   :  { %1540 = vrot.lane.b32.xlu0 %v4801_v29, %s3530_s25  ;;  %v1432_v58 = vmul.f32 1.442695, %v1405_v10  ;;  %v1260_v2 = vmax.f32 %v1228_v1, %v1244_v36 }
 0x355   :  { %v1407_v32 = vsub.f32 %v1259_v39, %v5763_v33  ;;  %v1939_v10 = vmul.f32 1.442695, %v1911_v0  ;;  %v5773_v0 = vld [vmem:[#allocation17_spill] sm:$0xff] }
 0x356   :  { %3350 = vpow2.f32 %v1432_v58 }
 0x357   :  { %3352 = vpow2.f32 %v1933_v38  ;;  %v3349_v5 = vpop.eup %3348 }
 0x358   :  { %1542 = vrot.lane.b32.xlu0 %v3523_v16, %s3530_s25  ;;  %3354 = vpow2.f32 %v1935_v59  ;;  %v4832_v7 = vmul.f32 %v3349_v5, %v5682_v60 }
 0x35a   :  { %3066 = vmatmul.mubr.bf16.gmra.mrb[12].mxu1 %v1024_v23  ;;  %v1408_v23 = vsub.f32 %v1260_v2, %v5765_v57 }
 0x35c   :  { %2047 = vrot.lane.b32.xlu0 %v3523_v16, %s3531_s3  ;;  %v1436_v16 = vmul.f32 1.442695, %v1407_v32  ;;  %v1438_v31 = vmul.f32 1.442695, %v1408_v23  ;;  %v5772_v23 = vld [vmem:[#allocation44_spill] sm:$0xff] }
 0x35e   :  { %3356 = vpow2.f32 %v1436_v16 }
 0x35f   :  { %3358 = vpow2.f32 %v1937_v43 }
 0x360   :  { %v3351_v54 = vpop.eup %3350  ;;  %3360 = vpow2.f32 %v1438_v31 }
 0x361   :  { %3362 = vrcp.f32 %v4763_v28  ;;  %v4837_v63 = vmul.f32 %v3351_v54, %v5767_v21  ;;  %v3353_v26 = vpop.eup %3352 }
 0x362   :  { %v4841_v60 = vmul.f32 %v3353_v26, %v5660_v47  ;;  %v3355_v4 = vpop.eup %3354  ;;  %v2040_v47 = vpop.permute.xlu0 %2039  ;;  %v3524_v26 = vld [vmem:[%s5527_s0 + $0x38] sm:$0xff]   ;;  %s3532_s0 = smov 16  }
 0x363   :  { %v4848_v28 = vmul.f32 %v3355_v4, %v5685_v17  ;;  %v5769_v17 = vld [vmem:[#allocation15_spill] sm:$0xff]  ;;  %v5775_v4 = vld [vmem:[#allocation61_spill] sm:$0xff] }
 0x368   :  { %v3357_v30 = vpop.eup %3356 }
 0x369   :  { %v3359_v58 = vpop.eup %3358  ;;  %v4851_v36 = vmul.f32 %v3357_v30, %v5768_v20  ;;  %v1732_v30 = vadd.f32 %v4530_v45, %v5775_v4 }
 0x36a   :  { %v3361_v41 = vpop.eup %3360  ;;  %v4856_v13 = vmul.f32 %v3359_v58, %v5767_v21  ;;  %v5776_v58 = vld [vmem:[#allocation63_spill] sm:$0xff] }
 0x36b   :  { %v3363_v50 = vpop.eup %3362  ;;  %v4861_v49 = vmul.f32 %v3361_v41, %v5769_v17 }
 0x36c   :  { %v1507_v52 = vmul.f32 %v3363_v50, %v5770_v40  ;;  %v5777_v50 = vld [vmem:[#allocation62_spill] sm:$0xff] }
 0x36f   :  { %1474 = vadd.xlane.f32.xlu1 %v4832_v7 }
 0x372   :  { %v1459_v1 = vpop.xlane.xlu1 %1458 }
 0x373   :  { %3364 = vrcp.f32 %v1459_v1  ;;  %1480 = vadd.xlane.f32.xlu1 %v4837_v63 }
 0x374   :  { %3366 = vpow2.f32 %v1939_v10  ;;  %v5774_v10 = vld [vmem:[#allocation59_spill] sm:$0xff] }
 0x375   :  { %3368 = vrcp.f32 %v4780_v46  ;;  %v1229_v21 = vadd.f32 %v4515_v15, %v5774_v10 }
 0x376   :  { %v4843_v9 = vpop.xlane.xlu1 %1464 }
 0x377   :  { %1981 = vadd.xlane.f32.xlu1 %v4841_v60  ;;  %v1245_v1 = vmul.f32 0.2, %v1229_v21 }
 0x37a   :  { %v1966_v61 = vpop.xlane.xlu1 %1965 }
 0x37b   :  { %3370 = vrcp.f32 %v1966_v61  ;;  %1983 = vadd.xlane.f32.xlu1 %v4848_v28  ;;  %1484 = vadd.xlane.f32.xlu0 %v4851_v36  ;;  %v1748_v61 = vmul.f32 0.2, %v1732_v30 }
 0x37d   :  { %v3365_v39 = vpop.eup %3364 }
 0x37e   :  { %v4858_v46 = vpop.xlane.xlu1 %1967  ;;  %v1506_v38 = vmul.f32 %v3365_v39, %v4648_v6  ;;  %v3367_v33 = vpop.eup %3366  ;;  %v1261_v39 = vmax.f32 %v1229_v21, %v1245_v1 }
 0x37f   :  { %v4865_v32 = vpop.xlane.xlu0 %1468  ;;  %1985 = vadd.xlane.f32.xlu1 %v4856_v13  ;;  %1486 = vadd.xlane.f32.xlu0 %v4861_v49  ;;  %v4872_v25 = vmul.f32 %v3367_v33, %v5771_v48  ;;  %v3369_v3 = vpop.eup %3368 }
 0x380   :  { %v1522_v14 = vpack.c.bf16 %v1507_v52, %v1506_v38  ;;  %v2011_v16 = vmul.f32 %v3369_v3, %v5772_v23  ;;  %v5779_v52 = vld [vmem:[#allocation39_spill] sm:$0xff]  ;;  %v1764_v3 = vmax.f32 %v1732_v30, %v1748_v61 }
 0x381   :  { %v1734_v33 = vadd.f32 %v4530_v45, %v5779_v52  ;;  %v5783_v30 = vld [vmem:[#allocation23_spill] sm:$0xff] }
 0x382   :  { %v4869_v2 = vpop.xlane.xlu1 %1969  ;;  %3085 = vmatprep.mubr.bf16.mxu0 %v1522_v14 }
 0x383   :  { %v4874_v59 = vpop.xlane.xlu0 %1470  ;;  %1987 = vadd.xlane.f32.xlu0 %v4872_v25 }
 0x385   :  { %v3371_v6 = vpop.eup %3370 }
 0x386   :  { %v2038_v57 = vpop.permute.xlu1 %2037  ;;  %v2012_v5 = vmul.f32 %v3371_v6, %v4656_v22  ;;  %v1226_v22 = vadd.f32 %v4515_v15, %v5773_v0  ;;  %v5778_v15 = vld [vmem:[#allocation19_spill] sm:$0xff] }
 0x387   :  { %v4879_v37 = vpop.xlane.xlu0 %1971  ;;  %3103 = vmatprep.subr.bf16.mxu1 %v2038_v57  ;;  %v1409_v40 = vsub.f32 %v1261_v39, %v5778_v15 }
 0x388   :  { %3104 = vmatpush3.bf16.msra.mxu1 %v2038_v57  ;;  %v2027_v43 = vpack.c.bf16 %v2012_v5, %v2011_v16  ;;  %v1242_v54 = vmul.f32 0.2, %v1226_v22  ;;  %v5780_v57 = vld [vmem:[#allocation6_spill] sm:$0xff]  ;;  %v1750_v16 = vmul.f32 0.2, %v1734_v33 }
 0x389   :  { %3105 = vmatprep.subr.bf16.mxu1 %v2040_v47  ;;  %v1440_v6 = vmul.f32 1.442695, %v1409_v40  ;;  %v1912_v23 = vsub.f32 %v1764_v3, %v5780_v57 }
 0x38a   :  { %3117 = vmatprep.mubr.bf16.mxu1 %v2027_v43  ;;  %v1766_v0 = vmax.f32 %v1734_v33, %v1750_v16 }
 0x38b   :  { %v1537_v31 = vpop.permute.xlu0 %1536  ;;  %v1941_v43 = vmul.f32 1.442695, %v1912_v23 }
 0x38c   :  { %3106 = vmatpush3.bf16.msra.mxu1 %v2040_v47  ;;  %3075 = vmatprep.subr.bf16.mxu0 %v1537_v31  ;;  %v1733_v47 = vadd.f32 %v4530_v45, %v5777_v50 }
 0x38d   :  { %3076 = vmatpush3.bf16.msra.mxu0 %v1537_v31  ;;  %v5781_v31 = vld [vmem:[#allocation7_spill] sm:$0xff] }
 0x38e   :  { %v1749_v14 = vmul.f32 0.2, %v1733_v47 }
 0x38f   :  { %v1539_v18 = vpop.permute.xlu0 %1538 }
 0x390   :  { %2045 = vrot.lane.b32.xlu1 %v4801_v29, %s3531_s3  ;;  %3077 = vmatprep.subr.bf16.mxu0 %v1539_v18  ;;  %v1258_v29 = vmax.f32 %v1226_v22, %v1242_v54  ;;  %v1765_v5 = vmax.f32 %v1733_v47, %v1749_v14  ;;  %v5782_v22 = vld [vmem:[#allocation13_spill] sm:$0xff] }
 0x391   :  { %3078 = vmatpush3.bf16.msra.mxu0 %v1539_v18  ;;  %v1914_v54 = vsub.f32 %v1766_v0, %v5782_v22 }
 0x392   :  { %v1406_v41 = vsub.f32 %v1258_v29, %v5776_v58  ;;  %v1913_v18 = vsub.f32 %v1765_v5, %v5781_v31 }
 0x393   :  { %v1945_v1 = vmul.f32 1.442695, %v1914_v54  ;;  %v2044_v15 = vpop.permute.xlu0 %2043 }
 0x394   :  { %v1434_v38 = vmul.f32 1.442695, %v1406_v41  ;;  %v1943_v10 = vmul.f32 1.442695, %v1913_v18 }
 0x396   :  { %3372 = vpow2.f32 %v1434_v38 }
 0x397   :  { %3374 = vpow2.f32 %v1440_v6 }
 0x398   :  { %3376 = vpow2.f32 %v1941_v43 }
 0x399   :  { %1544 = vrot.lane.b32.xlu0 %v3524_v26, %s3530_s25  ;;  %3378 = vpow2.f32 %v1943_v10 }
 0x39a   :  { %3380 = vpow2.f32 %v1945_v1 }
 0x3a0   :  { %v3373_v21 = vpop.eup %3372 }
 0x3a1   :  { %v4903_v45 = vmul.f32 %v3373_v21, %v5771_v48  ;;  %v3375_v4 = vpop.eup %3374 }
 0x3a2   :  { %v4907_v29 = vmul.f32 %v3375_v4, %v5783_v30  ;;  %v3377_v58 = vpop.eup %3376 }
 0x3a3   :  { %v4911_v61 = vmul.f32 %v3377_v58, %v5768_v20  ;;  %v3379_v50 = vpop.eup %3378 }
 0x3a4   :  { %v4915_v48 = vmul.f32 %v3379_v50, %v5769_v17  ;;  %v3381_v39 = vpop.eup %3380 }
 0x3a5   :  { %v4921_v40 = vmul.f32 %v3381_v39, %v5783_v30 }
 0x3b4   :  { %1482 = vadd.xlane.f32.xlu1 %v4903_v45 }
 0x3b7   :  { %v1467_v41 = vpop.xlane.xlu1 %1466 }
 0x3b8   :  { %1488 = vadd.xlane.f32.xlu1 %v4907_v29 }
 0x3bb   :  { %v1473_v47 = vpop.xlane.xlu1 %1472 }
 0x3bc   :  { %1989 = vadd.xlane.f32.xlu1 %v4911_v61 }
 0x3bf   :  { %v4917_v38 = vpop.xlane.xlu1 %1973 }
 0x3c0   :  { %1991 = vadd.xlane.f32.xlu1 %v4915_v48 }
 0x3c3   :  { %v4923_v52 = vpop.xlane.xlu1 %1975  ;;  %v1477_v20 = vpop.xlane.xlu0 %1476 }
 0x3c4   :  { %1993 = vadd.xlane.f32.xlu1 %v4921_v40 }
 0x3c7   :  { %v4926_v33 = vpop.xlane.xlu1 %1977  ;;  %v4928_v14 = vpop.xlane.xlu0 %1478 }
 0x3cb   :  { %v2042_v17 = vpop.permute.xlu1 %2041  ;;  %v1980_v3 = vpop.xlane.xlu0 %1979 }
 0x3cc   :  { %3107 = vmatprep.subr.bf16.mxu1 %v2042_v17  ;;  %3382 = vrcp.f32 %v1980_v3 }
 0x3cd   :  { %3108 = vmatpush3.bf16.msra.mxu1 %v2042_v17 }
 0x3ce   :  { %3109 = vmatprep.subr.bf16.mxu1 %v2044_v15 }
 0x3cf   :  { %v1541_v6 = vpop.permute.xlu0 %1540 }
 0x3d0   :  { %3079 = vmatprep.subr.bf16.mxu0 %v1541_v6 }
 0x3d1   :  { %3110 = vmatpush3.bf16.msra.mxu1 %v2044_v15  ;;  %3080 = vmatpush3.bf16.msra.mxu0 %v1541_v6 }
 0x3d3   :  { %v1543_v57 = vpop.permute.xlu0 %1542 }
 0x3d4   :  { %3081 = vmatprep.subr.bf16.mxu0 %v1543_v57 }
 0x3d5   :  { %2049 = vrot.lane.b32.xlu1 %v3524_v26, %s3531_s3  ;;  %3082 = vmatpush3.bf16.msra.mxu0 %v1543_v57 }
 0x3d6   :  { %v3383_v0 = vpop.eup %3382 }
 0x3d7   :  { %v2048_v43 = vpop.permute.xlu0 %2047 }
 0x3fc   :  { %v1475_v23 = vpop.xlane.xlu1 %1474 }
 0x400   :  { %v1481_v16 = vpop.xlane.xlu1 %1480 }
 0x404   :  { %v1982_v5 = vpop.xlane.xlu1 %1981 }
 0x405   :  { %3384 = vrcp.f32 %v1982_v5 }
 0x406   :  { %3386 = vrcp.f32 %v4843_v9  ;;  %v4939_v9 = vmul.f32 %v3383_v0, %v4769_v55 }
 0x407   :  { %3388 = vrcp.f32 %v1467_v41 }
 0x408   :  { %v1984_v31 = vpop.xlane.xlu1 %1983  ;;  %3390 = vrcp.f32 %v4772_v42  ;;  %v4933_v18 = vpop.xlane.xlu0 %1484 }
 0x409   :  { %3392 = vrcp.f32 %v4865_v32 }
 0x40a   :  { %3394 = vrcp.f32 %v1984_v31 }
 0x40c   :  { %v1986_v26 = vpop.xlane.xlu1 %1985  ;;  %v4936_v22 = vpop.xlane.xlu0 %1486 }
 0x40d   :  { %3396 = vrcp.f32 %v1986_v26 }
 0x40e   :  { %3398 = vrcp.f32 %v1473_v47 }
 0x40f   :  { %v3385_v54 = vpop.eup %3384  ;;  %3400 = vrcp.f32 %v1475_v23 }
 0x410   :  { %v2046_v10 = vpop.permute.xlu1 %2045  ;;  %v4942_v21 = vmul.f32 %v3385_v54, %v4841_v60  ;;  %v3387_v42 = vpop.eup %3386  ;;  %3402 = vrcp.f32 %v4874_v59  ;;  %v5784_v59 = vld [vmem:[#allocation8_spill] sm:$0xff] }
 0x411   :  { %v4945_v32 = vpop.xlane.xlu0 %1987  ;;  %3111 = vmatprep.subr.bf16.mxu1 %v2046_v10  ;;  %v3389_v1 = vpop.eup %3388  ;;  %3404 = vrcp.f32 %v1477_v20  ;;  %v1509_v55 = vmul.f32 %v3387_v42, %v4652_v34 }
 0x412   :  { %3112 = vmatpush3.bf16.msra.mxu1 %v2046_v10  ;;  %v2031_v4 = vpack.c.bf16 %v4942_v21, %v4939_v9  ;;  %v3391_v30 = vpop.eup %3390  ;;  %v1510_v47 = vmul.f32 %v3389_v1, %v4730_v8  ;;  %3406 = vrcp.f32 %v1481_v16  ;;  %v5785_v21 = vld [vmem:[#allocation9_spill] sm:$0xff] }
 0x413   :  { %3113 = vmatprep.subr.bf16.mxu1 %v2048_v43  ;;  %v3393_v58 = vpop.eup %3392  ;;  %v1508_v39 = vmul.f32 %v3391_v30, %v5784_v59  ;;  %3408 = vrcp.f32 %v4928_v14 }
 0x414   :  { %v3395_v41 = vpop.eup %3394  ;;  %v1511_v3 = vmul.f32 %v3393_v58, %v4663_v56  ;;  %3410 = vrcp.f32 %v4933_v18 }
 0x415   :  { %v1545_v60 = vpop.permute.xlu0 %1544  ;;  %v3055_v50 = vpop.f32.mrb[0].mxu1  ;;  %v1523_v6 = vpack.c.bf16 %v1509_v55, %v1508_v39  ;;  %v4956_v8 = vmul.f32 %v3395_v41, %v4848_v28 }
 0x416   :  { %3083 = vmatprep.subr.bf16.mxu0 %v1545_v60  ;;  %2176 = vrot.lane.b32.xlu1 %v3055_v50, %s3532_s0  ;;  %v1083_v15 = vpop.f32.mrb[1].mxu1  ;;  %v1524_v5 = vpack.c.bf16 %v1511_v3, %v1510_v47 }
 0x417   :  { %v3397_v20 = vpop.eup %3396  ;;  %3084 = vmatpush3.bf16.msra.mxu0 %v1545_v60  ;;  %3114 = vmatpush3.bf16.msra.mxu1 %v2048_v43  ;;  %v3056_v17 = vpop.f32.mrb[2].mxu1 }
 0x418   :  { %2172 = vrot.lane.b32.xlu0 %v1083_v15, %s3532_s0  ;;  %v1086_v34 = vpop.f32.mrb[3].mxu1  ;;  %v4959_v57 = vmul.f32 %v3397_v20, %v4856_v13  ;;  %v3399_v23 = vpop.eup %3398 }
 0x419   :  { %v3401_v16 = vpop.eup %3400  ;;  %v1513_v28 = vmul.f32 %v3399_v23, %v4734_v19 }
 0x41a   :  { %3086 = vmatmul.mubr.bf16.vlgmr.msra.gmra.mrb[16].mxu0 %v1523_v6  ;;  %v2032_v43 = vpack.c.bf16 %v4959_v57, %v4956_v8  ;;  %v3403_v56 = vpop.eup %3402  ;;  %v1514_v13 = vmul.f32 %v3401_v16, %v4832_v7  ;;  %v5787_v57 = vld [vmem:[#allocation40_spill] sm:$0xff] }
 0x41b   :  { %3089 = vmatprep.mubr.bf16.mxu0 %v1524_v5  ;;  %v3405_v31 = vpop.eup %3404  ;;  %v1512_v54 = vmul.f32 %v3403_v56, %v4673_v24 }
 0x41c   :  { %2174 = vrot.lane.b32.xlu0 %v1086_v34, %s3532_s0  ;;  %v1515_v10 = vmul.f32 %v3405_v31, %v4749_v51  ;;  %v3407_v30 = vpop.eup %3406 }
 0x41d   :  { %v3059_v26 = vpop.f32.mrb[4].mxu1  ;;  %v1525_v1 = vpack.c.bf16 %v1513_v28, %v1512_v54  ;;  %v3409_v55 = vpop.eup %3408  ;;  %v1517_v24 = vmul.f32 %v3407_v30, %v4837_v63 }
 0x41e   :  { %v1099_v0 = vpop.f32.mrb[5].mxu1  ;;  %v1526_v58 = vpack.c.bf16 %v1515_v10, %v1514_v13  ;;  %v1516_v41 = vmul.f32 %v3409_v55, %v4760_v62 }
 0x41f   :  { %2180 = vrot.lane.b32.xlu1 %v1099_v0, %s3532_s0  ;;  %v3060_v14 = vpop.f32.mrb[6].mxu1 }
 0x420   :  { %2178 = vrot.lane.b32.xlu0 %v3056_v17, %s3532_s0  ;;  %v1102_v42 = vpop.f32.mrb[7].mxu1  ;;  %v1527_v50 = vpack.c.bf16 %v1517_v24, %v1516_v41  ;;  %v3411_v17 = vpop.eup %3410 }
 0x421   :  { %v1519_v6 = vmul.f32 %v3411_v17, %v4851_v36 }
 0x422   :  { %3090 = vmatmul.mubr.bf16.gmra.mrb[20].mxu0 %v1525_v1 }
 0x423   :  { %3093 = vmatprep.mubr.bf16.mxu0 %v1526_v58  ;;  %2184 = vrot.lane.b32.xlu1 %v3059_v26, %s3532_s0 }
 0x424   :  { %2182 = vrot.lane.b32.xlu0 %v1102_v42, %s3532_s0 }
 0x425   :  { %v3063_v19 = vpop.f32.mrb[8].mxu1 }
 0x426   :  { %v1115_v7 = vpop.f32.mrb[9].mxu1 }
 0x427   :  { %2188 = vrot.lane.b32.xlu1 %v1115_v7, %s3532_s0  ;;  %v3064_v51 = vpop.f32.mrb[10].mxu1 }
 0x428   :  { %2186 = vrot.lane.b32.xlu0 %v3060_v14, %s3532_s0  ;;  %v1118_v60 = vpop.f32.mrb[11].mxu1 }
 0x42a   :  { %3094 = vmatmul.mubr.bf16.gmra.mrb[24].mxu0 %v1527_v50 }
 0x42b   :  { %2192 = vrot.lane.b32.xlu1 %v3063_v19, %s3532_s0  ;;  %v5789_v19 = vld [vmem:[#allocation33_spill] sm:$0xff] }
 0x42c   :  { %2190 = vrot.lane.b32.xlu0 %v1118_v60, %s3532_s0 }
 0x42d   :  { %v3067_v47 = vpop.f32.mrb[12].mxu1 }
 0x42e   :  { %v1131_v59 = vpop.f32.mrb[13].mxu1 }
 0x42f   :  { %2196 = vrot.lane.b32.xlu1 %v1131_v59, %s3532_s0  ;;  %v3068_v63 = vpop.f32.mrb[14].mxu1 }
 0x430   :  { %2194 = vrot.lane.b32.xlu0 %v3064_v51, %s3532_s0  ;;  %v1134_v62 = vpop.f32.mrb[15].mxu1  ;;  %v5790_v51 = vld [vmem:[#allocation31_spill] sm:$0xff] }
 0x433   :  { %2200 = vrot.lane.b32.xlu1 %v3067_v47, %s3532_s0  ;;  %v5791_v47 = vld [vmem:[#allocation38_spill] sm:$0xff] }
 0x434   :  { %2198 = vrot.lane.b32.xlu0 %v1134_v62, %s3532_s0  ;;  %v5792_v62 = vld [vmem:[#allocation34_spill] sm:$0xff] }
 0x438   :  { %2202 = vrot.lane.b32.xlu0 %v3068_v63, %s3532_s0 }
 0x441   :  { %v1483_v39 = vpop.xlane.xlu1 %1482 }
 0x442   :  { %3412 = vrcp.f32 %v1483_v39 }
 0x443   :  { %3414 = vrcp.f32 %v4936_v22 }
 0x445   :  { %v1489_v15 = vpop.xlane.xlu1 %1488 }
 0x446   :  { %3416 = vrcp.f32 %v1489_v15 }
 0x447   :  { %3418 = vrcp.f32 %v4869_v2 }
 0x448   :  { %3420 = vrcp.f32 %v4917_v38 }
 0x449   :  { %3422 = vrcp.f32 %v4858_v46  ;;  %v1990_v20 = vpop.xlane.xlu1 %1989 }
 0x44a   :  { %3424 = vrcp.f32 %v4879_v37 }
 0x44b   :  { %3426 = vrcp.f32 %v4926_v33 }
 0x44c   :  { %v3413_v3 = vpop.eup %3412  ;;  %3428 = vrcp.f32 %v4923_v52 }
 0x44d   :  { %v1992_v34 = vpop.xlane.xlu1 %1991  ;;  %v1518_v18 = vmul.f32 %v3413_v3, %v4903_v45  ;;  %v3415_v23 = vpop.eup %3414  ;;  %3430 = vrcp.f32 %v1990_v20 }
 0x44e   :  { %v1520_v46 = vmul.f32 %v3415_v23, %v4861_v49  ;;  %3432 = vrcp.f32 %v4945_v32 }
 0x44f   :  { %v1528_v22 = vpack.c.bf16 %v1519_v6, %v1518_v18 }
 0x450   :  { %v3417_v5 = vpop.eup %3416 }
 0x451   :  { %v3419_v2 = vpop.eup %3418  ;;  %v1994_v38 = vpop.xlane.xlu1 %1993  ;;  %3097 = vmatprep.mubr.bf16.mxu0 %v1528_v22  ;;  %v1521_v37 = vmul.f32 %v3417_v5, %v4907_v29 }
 0x452   :  { %v3421_v16 = vpop.eup %3420  ;;  %v2014_v36 = vmul.f32 %v3419_v2, %v4670_v35  ;;  %3434 = vrcp.f32 %v1994_v38 }
 0x453   :  { %v3423_v56 = vpop.eup %3422  ;;  %v1529_v31 = vpack.c.bf16 %v1521_v37, %v1520_v46  ;;  %v2016_v33 = vmul.f32 %v3421_v16, %v4740_v11  ;;  %3436 = vrcp.f32 %v1992_v34 }
 0x454   :  { %v3425_v45 = vpop.eup %3424  ;;  %v2013_v26 = vmul.f32 %v3423_v56, %v4660_v12 }
 0x455   :  { %v2050_v28 = vpop.permute.xlu1 %2049  ;;  %3098 = vmatmul.mubr.bf16.gmra.mrb[28].mxu0 %v1529_v31  ;;  %v2015_v52 = vmul.f32 %v3425_v45, %v4678_v44  ;;  %v3427_v13 = vpop.eup %3426 }
 0x456   :  { %3115 = vmatprep.subr.bf16.mxu1 %v2050_v28  ;;  %v2028_v49 = vpack.c.bf16 %v2014_v36, %v2013_v26  ;;  %v3429_v0 = vpop.eup %3428  ;;  %v2018_v35 = vmul.f32 %v3427_v13, %v4756_v53 }
 0x457   :  { %3116 = vmatpush3.bf16.msra.mxu1 %v2050_v28  ;;  %v2029_v29 = vpack.c.bf16 %v2016_v33, %v2015_v52  ;;  %v2017_v54 = vmul.f32 %v3429_v0, %v4746_v27  ;;  %v3431_v12 = vpop.eup %3430 }
 0x458   :  { %v3433_v44 = vpop.eup %3432  ;;  %v2024_v14 = vmul.f32 %v3431_v12, %v4911_v61 }
 0x459   :  { %v2030_v11 = vpack.c.bf16 %v2018_v35, %v2017_v54  ;;  %v2023_v32 = vmul.f32 %v3433_v44, %v4872_v25 }
 0x45a   :  { %3118 = vmatmul.mubr.bf16.vlgmr.msra.gmra.mrb[16].mxu1 %v2028_v49 }
 0x45b   :  { %3121 = vmatprep.mubr.bf16.mxu1 %v2029_v29  ;;  %v2033_v42 = vpack.c.bf16 %v2024_v14, %v2023_v32 }
 0x45c   :  { %v3435_v10 = vpop.eup %3434 }
 0x45d   :  { %v3437_v27 = vpop.eup %3436  ;;  %v2026_v53 = vmul.f32 %v3435_v10, %v4921_v40 }
 0x45e   :  { %v2025_v1 = vmul.f32 %v3437_v27, %v4915_v48  ;;  %v5788_v48 = vld [vmem:[#allocation46_spill] sm:$0xff] }
 0x460   :  { %v2034_v30 = vpack.c.bf16 %v2026_v53, %v2025_v1 }
 0x462   :  { %3122 = vmatmul.mubr.bf16.gmra.mrb[20].mxu1 %v2030_v11 }
 0x463   :  { %3125 = vmatprep.mubr.bf16.mxu1 %v2031_v4  ;;  %v5786_v4 = vld [vmem:[#allocation32_spill] sm:$0xff] }
 0x46a   :  { %3126 = vmatmul.mubr.bf16.gmra.mrb[24].mxu1 %v2032_v43 }
 0x46b   :  { %3129 = vmatprep.mubr.bf16.mxu1 %v2033_v42 }
 0x472   :  { %3130 = vmatmul.mubr.bf16.gmra.mrb[28].mxu1 %v2034_v30 }
 0x488   :  { %v2177_v9 = vpop.permute.xlu1 %2176 }
 0x489   :  { %v5015_v61 = vsel %vm2348_vm1, %v5785_v21, %v2177_v9 }
 0x48a   :  { %v2173_v25 = vpop.permute.xlu0 %2172 }
 0x48b   :  { %v5019_v58 = vsel %vm2348_vm1, %v5786_v4, %v2173_v25 }
 0x48e   :  { %v2175_v14 = vpop.permute.xlu0 %2174 }
 0x491   :  { %v2181_v8 = vpop.permute.xlu1 %2180 }
 0x492   :  { %v5023_v43 = vsel %vm2348_vm1, %v5787_v57, %v2181_v8  ;;  %v2179_v32 = vpop.permute.xlu0 %2178 }
 0x495   :  { %v2185_v40 = vpop.permute.xlu1 %2184 }
 0x496   :  { %v5027_v55 = vsel %vm2348_vm1, %v5788_v48, %v2185_v40  ;;  %v2183_v10 = vpop.permute.xlu0 %2182 }
 0x499   :  { %v2189_v24 = vpop.permute.xlu1 %2188 }
 0x49a   :  { %v5031_v7 = vsel %vm2348_vm1, %v5789_v19, %v2189_v24  ;;  %v5061_v42 = vpop.permute.xlu0 %2186 }
 0x49d   :  { %v2193_v41 = vpop.permute.xlu1 %2192 }
 0x49e   :  { %v5035_v60 = vsel %vm2348_vm1, %v5790_v51, %v2193_v41  ;;  %v5063_v27 = vpop.permute.xlu0 %2190 }
 0x4a1   :  { %v2197_v50 = vpop.permute.xlu1 %2196 }
 0x4a2   :  { %v5039_v59 = vsel %vm2348_vm1, %v5791_v47, %v2197_v50  ;;  %v5065_v53 = vpop.permute.xlu0 %2194 }
 0x4a5   :  { %v2201_v63 = vpop.permute.xlu1 %2200 }
 0x4a6   :  { %v5043_v39 = vsel %vm2348_vm1, %v5792_v62, %v2201_v63  ;;  %v5067_v1 = vpop.permute.xlu0 %2198 }
 0x4aa   :  { %v5069_v30 = vpop.permute.xlu0 %2202 }
 0x4ed   :  { %v3087_v15 = vpop.f32.mrb[16].mxu0 }
 0x4ee   :  { %v1588_v20 = vpop.f32.mrb[17].mxu0 }
 0x4ef   :  { %2236 = vrot.lane.b32.xlu1 %v1588_v20, %s3533_s19  ;;  %v3088_v17 = vpop.f32.mrb[18].mxu0 }
 0x4f0   :  { %v1591_v3 = vpop.f32.mrb[19].mxu0 }
 0x4f1   :  { %2238 = vrot.lane.b32.xlu0 %v1591_v3, %s3533_s19  ;;  %v5793_v3 = vld [vmem:[#allocation30_spill] sm:$0xff] }
 0x4f3   :  { %2240 = vrot.lane.b32.xlu1 %v3087_v15, %s3533_s19  ;;  %v5088_v15 = vld [vmem:[%s5528_s4] ss:$0 sm:$0xff] }
 0x4f5   :  { %2242 = vrot.lane.b32.xlu0 %v3088_v17, %s3533_s19  ;;  %v3091_v34 = vpop.f32.mrb[20].mxu0 }
 0x4f6   :  { %v1604_v18 = vpop.f32.mrb[21].mxu0 }
 0x4f7   :  { %2244 = vrot.lane.b32.xlu1 %v1604_v18, %s3533_s19  ;;  %v3092_v6 = vpop.f32.mrb[22].mxu0 }
 0x4f8   :  { %v1607_v23 = vpop.f32.mrb[23].mxu0 }
 0x4f9   :  { %2246 = vrot.lane.b32.xlu0 %v1607_v23, %s3533_s19 }
 0x4fb   :  { %2248 = vrot.lane.b32.xlu1 %v3091_v34, %s3533_s19  ;;  %v2350_v34 = vsel %vm2348_vm1, %v5793_v3, %v2175_v14 }
 0x4fd   :  { %2250 = vrot.lane.b32.xlu0 %v3092_v6, %s3533_s19  ;;  %v3095_v22 = vpop.f32.mrb[24].mxu0 }
 0x4fe   :  { %v1620_v5 = vpop.f32.mrb[25].mxu0 }
 0x4ff   :  { %2252 = vrot.lane.b32.xlu1 %v1620_v5, %s3533_s19  ;;  %v3096_v2 = vpop.f32.mrb[26].mxu0 }
 0x500   :  { %v1623_v38 = vpop.f32.mrb[27].mxu0 }
 0x501   :  { %2254 = vrot.lane.b32.xlu0 %v1623_v38, %s3533_s19 }
 0x503   :  { %2256 = vrot.lane.b32.xlu1 %v3095_v22, %s3533_s19 }
 0x505   :  { %2258 = vrot.lane.b32.xlu0 %v3096_v2, %s3533_s19 }
 0x528   :  { %v3099_v46 = vpop.f32.mrb[28].mxu0 }
 0x529   :  { %v1636_v37 = vpop.f32.mrb[29].mxu0 }
 0x52a   :  { %2260 = vrot.lane.b32.xlu1 %v1636_v37, %s3533_s19  ;;  %v3100_v16 = vpop.f32.mrb[30].mxu0  ;;  %v5794_v37 = vld [vmem:[#allocation29_spill] sm:$0xff] }
 0x52b   :  { %v1639_v56 = vpop.f32.mrb[31].mxu0 }
 0x52c   :  { %2262 = vrot.lane.b32.xlu0 %v1639_v56, %s3533_s19 }
 0x52d   :  { %v3119_v31 = vpop.f32.mrb[16].mxu1 }
 0x52e   :  { %v2093_v45 = vpop.f32.mrb[17].mxu1  ;;  %2264 = vrot.lane.b32.xlu1 %v3099_v46, %s3533_s19 }
 0x52f   :  { %v3120_v36 = vpop.f32.mrb[18].mxu1 }
 0x530   :  { %v2096_v28 = vpop.f32.mrb[19].mxu1  ;;  %2266 = vrot.lane.b32.xlu0 %v3100_v16, %s3533_s19  ;;  %v2352_v16 = vsel %vm2348_vm1, %v5794_v37, %v2179_v32 }
 0x532   :  { %2300 = vrot.lane.b32.xlu1 %v2093_v45, %s3534_s20 }
 0x534   :  { %2302 = vrot.lane.b32.xlu0 %v2096_v28, %s3534_s20 }
 0x535   :  { %v3123_v33 = vpop.f32.mrb[20].mxu1 }
 0x536   :  { %v2109_v26 = vpop.f32.mrb[21].mxu1  ;;  %2304 = vrot.lane.b32.xlu1 %v3119_v31, %s3534_s20 }
 0x537   :  { %v3124_v52 = vpop.f32.mrb[22].mxu1 }
 0x538   :  { %v2112_v49 = vpop.f32.mrb[23].mxu1  ;;  %2306 = vrot.lane.b32.xlu0 %v3120_v36, %s3534_s20 }
 0x53a   :  { %2308 = vrot.lane.b32.xlu1 %v2109_v26, %s3534_s20 }
 0x53c   :  { %2310 = vrot.lane.b32.xlu0 %v2112_v49, %s3534_s20  ;;  %v5795_v49 = vld [vmem:[#allocation65_spill] sm:$0xff] }
 0x53d   :  { %v3127_v13 = vpop.f32.mrb[24].mxu1 }
 0x53e   :  { %v2125_v29 = vpop.f32.mrb[25].mxu1  ;;  %2312 = vrot.lane.b32.xlu1 %v3123_v33, %s3534_s20 }
 0x53f   :  { %v3128_v0 = vpop.f32.mrb[26].mxu1 }
 0x540   :  { %v2128_v35 = vpop.f32.mrb[27].mxu1  ;;  %2314 = vrot.lane.b32.xlu0 %v3124_v52, %s3534_s20 }
 0x542   :  { %2316 = vrot.lane.b32.xlu1 %v2125_v29, %s3534_s20 }
 0x544   :  { %2318 = vrot.lane.b32.xlu0 %v2128_v35, %s3534_s20 }
 0x545   :  { %v3131_v54 = vpop.f32.mrb[28].mxu1 }
 0x546   :  { %v2141_v11 = vpop.f32.mrb[29].mxu1  ;;  %2320 = vrot.lane.b32.xlu1 %v3127_v13, %s3534_s20  ;;  %v2354_v13 = vsel %vm2348_vm1, %v5795_v49, %v2183_v10  ;;  %v5796_v10 = vld [vmem:[#allocation28_spill] sm:$0xff] }
 0x547   :  { %v3132_v12 = vpop.f32.mrb[30].mxu1 }
 0x548   :  { %v2144_v44 = vpop.f32.mrb[31].mxu1  ;;  %2322 = vrot.lane.b32.xlu0 %v3128_v0, %s3534_s20 }
 0x54a   :  { %2324 = vrot.lane.b32.xlu1 %v2141_v11, %s3534_s20 }
 0x54c   :  { %2326 = vrot.lane.b32.xlu0 %v2144_v44, %s3534_s20 }
 0x54e   :  { %2328 = vrot.lane.b32.xlu1 %v3131_v54, %s3534_s20 }
 0x550   :  { %2330 = vrot.lane.b32.xlu0 %v3132_v12, %s3534_s20 }
 0x561   :  { %v2237_v9 = vpop.permute.xlu1 %2236 }
 0x562   :  { %v2366_v20 = vsel %vm2365_vm2, %v5019_v58, %v2237_v9  ;;  %v2356_v9 = vsel %vm2348_vm1, %v5796_v10, %v5061_v42 }
 0x563   :  { %v2239_v21 = vpop.permute.xlu0 %2238 }
 0x564   :  { %v2367_v6 = vsel %vm2365_vm2, %v2350_v34, %v2239_v21 }
 0x565   :  { %v2241_v25 = vpop.permute.xlu1 %2240 }
 0x566   :  { %v2368_v2 = vsel %vm2365_vm2, %v5015_v61, %v2241_v25 }
 0x567   :  { %v2243_v4 = vpop.permute.xlu0 %2242 }
 0x568   :  { %v2369_v31 = vsel %vm2365_vm2, %v2352_v16, %v2243_v4 }
 0x569   :  { %v2245_v8 = vpop.permute.xlu1 %2244 }
 0x56a   :  { %v2370_v33 = vsel %vm2365_vm2, %v5023_v43, %v2245_v8 }
 0x56b   :  { %v2247_v57 = vpop.permute.xlu0 %2246 }
 0x56c   :  { %v2371_v0 = vsel %vm2365_vm2, %v2354_v13, %v2247_v57 }
 0x56d   :  { %v2249_v40 = vpop.permute.xlu1 %2248 }
 0x56e   :  { %v2372_v44 = vsel %vm2365_vm2, %v5027_v55, %v2249_v40 }
 0x56f   :  { %v2251_v48 = vpop.permute.xlu0 %2250 }
 0x570   :  { %v2373_v25 = vsel %vm2365_vm2, %v2356_v9, %v2251_v48 }
 0x571   :  { %v2253_v24 = vpop.permute.xlu1 %2252 }
 0x572   :  { %v2374_v42 = vsel %vm2365_vm2, %v5031_v7, %v2253_v24 }
 0x573   :  { %v5071_v19 = vpop.permute.xlu0 %2254 }
 0x575   :  { %v5073_v41 = vpop.permute.xlu1 %2256 }
 0x577   :  { %v5075_v51 = vpop.permute.xlu0 %2258 }
 0x59c   :  { %v5077_v50 = vpop.permute.xlu1 %2260 }
 0x59e   :  { %v5079_v47 = vpop.permute.xlu0 %2262 }
 0x5a0   :  { %v5081_v63 = vpop.permute.xlu1 %2264 }
 0x5a2   :  { %v5083_v62 = vpop.permute.xlu0 %2266 }
 0x5a4   :  { %v2301_v17 = vpop.permute.xlu1 %2300 }
 0x5a5   :  { %v2383_v18 = vsel %vm2382_vm3, %v2366_v20, %v2301_v17  ;;  %v5797_v17 = vld [vmem:[#allocation67_spill] sm:$0xff] }
 0x5a6   :  { %v5097_v23 = vadd.f32 %v5088_v15, %v2383_v18  ;;  %v2303_v22 = vpop.permute.xlu0 %2302  ;;  %v2358_v3 = vsel %vm2348_vm1, %v5797_v17, %v5063_v27  ;;  %v2376_v27 = vsel %vm2365_vm2, %v5035_v60, %v5073_v41 }
 0x5a7   :  { %v2384_v5 = vsel %vm2382_vm3, %v2367_v6, %v2303_v22  ;;  %v2375_v18 = vsel %vm2365_vm2, %v2358_v3, %v5071_v19 }
 0x5a8   :  { %v5103_v58 = vadd.f32 %v5088_v15, %v2384_v5  ;;  %v2305_v38 = vpop.permute.xlu1 %2304  ;;  %v2423_v46 = vsel %vm2422_vm4, %v5097_v23, 0.0 }
 0x5a9   :  { %v2385_v56 = vsel %vm2382_vm3, %v2368_v2, %v2305_v38  ;;  %2424 = vadd.xlane.f32.xlu1 %v2423_v46  ;;  %v5798_v38 = vld [vmem:[#allocation66_spill] sm:$0xff] }
 0x5aa   :  { %v5112_v45 = vadd.f32 %v5088_v15, %v2385_v56  ;;  %v2307_v36 = vpop.permute.xlu0 %2306  ;;  %v2426_v61 = vsel %vm2422_vm4, %v5103_v58, 0.0  ;;  %v2360_v46 = vsel %vm2348_vm1, %v5798_v38, %v5065_v53  ;;  %v2378_v53 = vsel %vm2365_vm2, %v5039_v59, %v5077_v50 }
 0x5ab   :  { %v2386_v28 = vsel %vm2382_vm3, %v2369_v31, %v2307_v36  ;;  %2427 = vadd.xlane.f32.xlu0 %v2426_v61  ;;  %v2377_v16 = vsel %vm2365_vm2, %v2360_v46, %v5075_v51 }
 0x5ac   :  { %v5120_v26 = vadd.f32 %v5088_v15, %v2386_v28  ;;  %v2309_v52 = vpop.permute.xlu1 %2308  ;;  %v2429_v11 = vsel %vm2422_vm4, %v5112_v45, 0.0  ;;  %v5799_v28 = vld [vmem:[#allocation42_spill] sm:$0xff] }
 0x5ad   :  { %v2387_v29 = vsel %vm2382_vm3, %v2370_v33, %v2309_v52  ;;  %v2362_v33 = vsel %vm2348_vm1, %v5799_v28, %v5067_v1  ;;  %v2380_v1 = vsel %vm2365_vm2, %v5043_v39, %v5081_v63 }
 0x5ae   :  { %v5127_v35 = vadd.f32 %v5088_v15, %v2387_v29  ;;  %v2311_v54 = vpop.permute.xlu0 %2310  ;;  %v2432_v43 = vsel %vm2422_vm4, %v5120_v26, 0.0  ;;  %v2379_v49 = vsel %vm2365_vm2, %v2362_v33, %v5079_v47 }
 0x5af   :  { %v2388_v12 = vsel %vm2382_vm3, %v2371_v0, %v2311_v54  ;;  %2430 = vadd.xlane.f32.xlu0 %v2429_v11  ;;  %2433 = vadd.xlane.f32.xlu1 %v2432_v43  ;;  %v5800_v11 = vld [vmem:[#allocation36_spill] sm:$0xff] }
 0x5b0   :  { %v5137_v14 = vadd.f32 %v5088_v15, %v2388_v12  ;;  %v2313_v32 = vpop.permute.xlu1 %2312  ;;  %v2435_v57 = vsel %vm2422_vm4, %v5127_v35, 0.0  ;;  %v2364_v43 = vsel %vm2348_vm1, %v5800_v11, %v5069_v30 }
 0x5b1   :  { %v2389_v21 = vsel %vm2382_vm3, %v2372_v44, %v2313_v32  ;;  %v2381_v44 = vsel %vm2365_vm2, %v2364_v43, %v5083_v62 }
 0x5b2   :  { %v5145_v4 = vadd.f32 %v5088_v15, %v2389_v21  ;;  %v2315_v8 = vpop.permute.xlu0 %2314  ;;  %v2438_v55 = vsel %vm2422_vm4, %v5137_v14, 0.0 }
 0x5b3   :  { %v2390_v40 = vsel %vm2382_vm3, %v2373_v25, %v2315_v8  ;;  %2436 = vadd.xlane.f32.xlu0 %v2435_v57  ;;  %2439 = vadd.xlane.f32.xlu1 %v2438_v55 }
 0x5b4   :  { %v5155_v20 = vadd.f32 %v5088_v15, %v2390_v40  ;;  %v2317_v48 = vpop.permute.xlu1 %2316  ;;  %v2441_v7 = vsel %vm2422_vm4, %v5145_v4, 0.0 }
 0x5b5   :  { %v2391_v34 = vsel %vm2382_vm3, %v2374_v42, %v2317_v48 }
 0x5b6   :  { %v5164_v6 = vadd.f32 %v5088_v15, %v2391_v34  ;;  %v2319_v22 = vpop.permute.xlu0 %2318  ;;  %v2444_v24 = vsel %vm2422_vm4, %v5155_v20, 0.0 }
 0x5b7   :  { %v2392_v5 = vsel %vm2382_vm3, %v2375_v18, %v2319_v22  ;;  %2442 = vadd.xlane.f32.xlu0 %v2441_v7  ;;  %2445 = vadd.xlane.f32.xlu1 %v2444_v24 }
 0x5b8   :  { %v5175_v19 = vadd.f32 %v5088_v15, %v2392_v5  ;;  %v2321_v2 = vpop.permute.xlu1 %2320  ;;  %v2447_v60 = vsel %vm2422_vm4, %v5164_v6, 0.0 }
 0x5b9   :  { %v2393_v37 = vsel %vm2382_vm3, %v2376_v27, %v2321_v2 }
 0x5ba   :  { %v5184_v56 = vadd.f32 %v5088_v15, %v2393_v37  ;;  %v2323_v31 = vpop.permute.xlu0 %2322  ;;  %v2450_v41 = vsel %vm2422_vm4, %v5175_v19, 0.0 }
 0x5bb   :  { %v2394_v36 = vsel %vm2382_vm3, %v2377_v16, %v2323_v31  ;;  %2448 = vadd.xlane.f32.xlu0 %v2447_v60  ;;  %2451 = vadd.xlane.f32.xlu1 %v2450_v41 }
 0x5bc   :  { %v5195_v51 = vadd.f32 %v5088_v15, %v2394_v36  ;;  %v2325_v61 = vpop.permute.xlu1 %2324  ;;  %v2453_v59 = vsel %vm2422_vm4, %v5184_v56, 0.0 }
 0x5bd   :  { %v2395_v52 = vsel %vm2382_vm3, %v2378_v53, %v2325_v61 }
 0x5be   :  { %v5204_v13 = vadd.f32 %v5088_v15, %v2395_v52  ;;  %v2327_v29 = vpop.permute.xlu0 %2326  ;;  %v2456_v50 = vsel %vm2422_vm4, %v5195_v51, 0.0 }
 0x5bf   :  { %v2396_v0 = vsel %vm2382_vm3, %v2379_v49, %v2327_v29  ;;  %2454 = vadd.xlane.f32.xlu0 %v2453_v59  ;;  %2457 = vadd.xlane.f32.xlu1 %v2456_v50 }
 0x5c0   :  { %v5215_v47 = vadd.f32 %v5088_v15, %v2396_v0  ;;  %v2329_v54 = vpop.permute.xlu1 %2328  ;;  %v2459_v39 = vsel %vm2422_vm4, %v5204_v13, 0.0 }
 0x5c1   :  { %v2397_v12 = vsel %vm2382_vm3, %v2380_v1, %v2329_v54 }
 0x5c2   :  { %v5224_v32 = vadd.f32 %v5088_v15, %v2397_v12  ;;  %v2331_v10 = vpop.permute.xlu0 %2330  ;;  %v2462_v63 = vsel %vm2422_vm4, %v5215_v47, 0.0 }
 0x5c3   :  { %v2398_v9 = vsel %vm2382_vm3, %v2381_v44, %v2331_v10  ;;  %2460 = vadd.xlane.f32.xlu0 %v2459_v39  ;;  %2463 = vadd.xlane.f32.xlu1 %v2462_v63 }
 0x5c4   :  { %v5232_v30 = vadd.f32 %v5088_v15, %v2398_v9  ;;  %v2465_v62 = vsel %vm2422_vm4, %v5224_v32, 0.0 }
 0x5c6   :  { %v2468_v21 = vsel %vm2422_vm4, %v5232_v30, 0.0 }
 0x5c7   :  { %2466 = vadd.xlane.f32.xlu0 %v2465_v62  ;;  %2469 = vadd.xlane.f32.xlu1 %v2468_v21 }
 0x636   :  { %v2425_v25 = vpop.xlane.xlu1 %2424 }
 0x637   :  { %v2472_v8 = vmul.f32 0.015625, %v2425_v25 }
 0x638   :  { %v2428_v57 = vpop.xlane.xlu0 %2427 }
 0x639   :  { %v5239_v55 = vsub.f32 %v5097_v23, %v2472_v8  ;;  %v2473_v40 = vmul.f32 0.015625, %v2428_v57 }
 0x63b   :  { %v5242_v42 = vsub.f32 %v5103_v58, %v2473_v40  ;;  %v2504_v15 = vmul.f32 %v5239_v55, %v5239_v55 }
 0x63c   :  { %v2434_v48 = vpop.xlane.xlu1 %2433  ;;  %v2431_v17 = vpop.xlane.xlu0 %2430 }
 0x63d   :  { %v2475_v3 = vmul.f32 0.015625, %v2434_v48  ;;  %v2474_v34 = vmul.f32 0.015625, %v2431_v17  ;;  %v2520_v18 = vsel %vm2422_vm4, %v2504_v15, 0.0  ;;  %v2505_v22 = vmul.f32 %v5242_v42, %v5242_v42 }
 0x63e   :  { %2521 = vadd.xlane.f32.xlu0 %v2520_v18 }
 0x63f   :  { %v5250_v23 = vsub.f32 %v5120_v26, %v2475_v3  ;;  %v5253_v7 = vsub.f32 %v5112_v45, %v2474_v34  ;;  %v2523_v58 = vsel %vm2422_vm4, %v2505_v22, 0.0 }
 0x640   :  { %v2440_v24 = vpop.xlane.xlu1 %2439  ;;  %2524 = vadd.xlane.f32.xlu1 %v2523_v58  ;;  %v2437_v5 = vpop.xlane.xlu0 %2436 }
 0x641   :  { %v2477_v27 = vmul.f32 0.015625, %v2440_v24  ;;  %v2476_v2 = vmul.f32 0.015625, %v2437_v5  ;;  %v2507_v38 = vmul.f32 %v5250_v23, %v5250_v23  ;;  %v2506_v46 = vmul.f32 %v5253_v7, %v5253_v7 }
 0x643   :  { %v5261_v37 = vsub.f32 %v5137_v14, %v2477_v27  ;;  %v5264_v26 = vsub.f32 %v5127_v35, %v2476_v2  ;;  %v2529_v45 = vsel %vm2422_vm4, %v2507_v38, 0.0  ;;  %v2526_v16 = vsel %vm2422_vm4, %v2506_v46, 0.0 }
 0x644   :  { %v2446_v31 = vpop.xlane.xlu1 %2445  ;;  %2530 = vadd.xlane.f32.xlu1 %v2529_v45  ;;  %2527 = vadd.xlane.f32.xlu0 %v2526_v16  ;;  %v2443_v60 = vpop.xlane.xlu0 %2442 }
 0x645   :  { %v2479_v41 = vmul.f32 0.015625, %v2446_v31  ;;  %v2478_v36 = vmul.f32 0.015625, %v2443_v60  ;;  %v2509_v53 = vmul.f32 %v5261_v37, %v5261_v37  ;;  %v2508_v14 = vmul.f32 %v5264_v26, %v5264_v26 }
 0x647   :  { %v5273_v61 = vsub.f32 %v5155_v20, %v2479_v41  ;;  %v5276_v35 = vsub.f32 %v5145_v4, %v2478_v36  ;;  %v2535_v28 = vsel %vm2422_vm4, %v2509_v53, 0.0  ;;  %v2532_v33 = vsel %vm2422_vm4, %v2508_v14, 0.0 }
 0x648   :  { %v2452_v52 = vpop.xlane.xlu1 %2451  ;;  %2536 = vadd.xlane.f32.xlu1 %v2535_v28  ;;  %2533 = vadd.xlane.f32.xlu0 %v2532_v33  ;;  %v2449_v49 = vpop.xlane.xlu0 %2448 }
 0x649   :  { %v2481_v29 = vmul.f32 0.015625, %v2452_v52  ;;  %v2480_v59 = vmul.f32 0.015625, %v2449_v49  ;;  %v2511_v50 = vmul.f32 %v5273_v61, %v5273_v61  ;;  %v2510_v20 = vmul.f32 %v5276_v35, %v5276_v35 }
 0x64b   :  { %v5285_v0 = vsub.f32 %v5175_v19, %v2481_v29  ;;  %v5288_v4 = vsub.f32 %v5164_v6, %v2480_v59  ;;  %v2541_v1 = vsel %vm2422_vm4, %v2511_v50, 0.0  ;;  %v2538_v54 = vsel %vm2422_vm4, %v2510_v20, 0.0 }
 0x64c   :  { %v2458_v11 = vpop.xlane.xlu1 %2457  ;;  %2542 = vadd.xlane.f32.xlu1 %v2541_v1  ;;  %2539 = vadd.xlane.f32.xlu0 %v2538_v54  ;;  %v2455_v43 = vpop.xlane.xlu0 %2454 }
 0x64d   :  { %v2483_v12 = vmul.f32 0.015625, %v2458_v11  ;;  %v2482_v44 = vmul.f32 0.015625, %v2455_v43  ;;  %v2513_v10 = vmul.f32 %v5285_v0, %v5285_v0  ;;  %v2512_v19 = vmul.f32 %v5288_v4, %v5288_v4  ;;  %v5337_v43 = vld [vmem:[%s5529_s5] ss:$0 sm:$0xff] }
 0x64f   :  { %v5297_v39 = vsub.f32 %v5195_v51, %v2483_v12  ;;  %v5300_v6 = vsub.f32 %v5184_v56, %v2482_v44  ;;  %v2547_v63 = vsel %vm2422_vm4, %v2513_v10, 0.0  ;;  %v2544_v9 = vsel %vm2422_vm4, %v2512_v19, 0.0 }
 0x650   :  { %v2464_v62 = vpop.xlane.xlu1 %2463  ;;  %2548 = vadd.xlane.f32.xlu1 %v2547_v63  ;;  %2545 = vadd.xlane.f32.xlu0 %v2544_v9  ;;  %v2461_v21 = vpop.xlane.xlu0 %2460  ;;  %v5343_v63 = vld [vmem:[%s5530_s6] ss:$0 sm:$0xff] }
 0x651   :  { %v2485_v25 = vmul.f32 0.015625, %v2464_v62  ;;  %v2484_v8 = vmul.f32 0.015625, %v2461_v21  ;;  %v2515_v57 = vmul.f32 %v5297_v39, %v5297_v39  ;;  %v2514_v51 = vmul.f32 %v5300_v6, %v5300_v6 }
 0x653   :  { %v5309_v40 = vsub.f32 %v5215_v47, %v2485_v25  ;;  %v5312_v56 = vsub.f32 %v5204_v13, %v2484_v8  ;;  %v2553_v15 = vsel %vm2422_vm4, %v2515_v57, 0.0  ;;  %v2550_v48 = vsel %vm2422_vm4, %v2514_v51, 0.0 }
 0x654   :  { %v2470_v17 = vpop.xlane.xlu1 %2469  ;;  %2554 = vadd.xlane.f32.xlu1 %v2553_v15  ;;  %2551 = vadd.xlane.f32.xlu0 %v2550_v48  ;;  %v2467_v3 = vpop.xlane.xlu0 %2466 }
 0x655   :  { %v2487_v34 = vmul.f32 0.015625, %v2470_v17  ;;  %v2486_v18 = vmul.f32 0.015625, %v2467_v3  ;;  %v2517_v22 = vmul.f32 %v5309_v40, %v5309_v40  ;;  %v2516_v47 = vmul.f32 %v5312_v56, %v5312_v56 }
 0x657   :  { %v5321_v58 = vsub.f32 %v5232_v30, %v2487_v34  ;;  %v5324_v13 = vsub.f32 %v5224_v32, %v2486_v18  ;;  %v2559_v24 = vsel %vm2422_vm4, %v2517_v22, 0.0  ;;  %v2556_v5 = vsel %vm2422_vm4, %v2516_v47, 0.0 }
 0x658   :  { %2560 = vadd.xlane.f32.xlu1 %v2559_v24  ;;  %2557 = vadd.xlane.f32.xlu0 %v2556_v5 }
 0x659   :  { %v2519_v27 = vmul.f32 %v5321_v58, %v5321_v58  ;;  %v2518_v2 = vmul.f32 %v5324_v13, %v5324_v13 }
 0x65b   :  { %v2565_v38 = vsel %vm2422_vm4, %v2519_v27, 0.0  ;;  %v2562_v30 = vsel %vm2422_vm4, %v2518_v2, 0.0 }
 0x65c   :  { %2566 = vadd.xlane.f32.xlu1 %v2565_v38  ;;  %2563 = vadd.xlane.f32.xlu0 %v2562_v30 }
 0x6cb   :  { %v2522_v32 = vpop.xlane.xlu0 %2521 }
 0x6cc   :  { %v2568_v46 = vmul.f32 0.015625, %v2522_v32 }
 0x6cd   :  { %v2525_v45 = vpop.xlane.xlu1 %2524 }
 0x6ce   :  { %v2584_v16 = vadd.f32 1e-05, %v2568_v46  ;;  %v2569_v31 = vmul.f32 0.015625, %v2525_v45 }
 0x6d0   :  { %3438 = vrsqrt.f32 %v2584_v16  ;;  %v2585_v60 = vadd.f32 1e-05, %v2569_v31 }
 0x6d1   :  { %v2531_v41 = vpop.xlane.xlu1 %2530  ;;  %v2528_v36 = vpop.xlane.xlu0 %2527 }
 0x6d2   :  { %3440 = vrsqrt.f32 %v2585_v60  ;;  %v2571_v53 = vmul.f32 0.015625, %v2531_v41  ;;  %v2570_v14 = vmul.f32 0.015625, %v2528_v36 }
 0x6d4   :  { %v2587_v28 = vadd.f32 1e-05, %v2571_v53  ;;  %v2586_v33 = vadd.f32 1e-05, %v2570_v14 }
 0x6d5   :  { %v2537_v52 = vpop.xlane.xlu1 %2536  ;;  %v2534_v49 = vpop.xlane.xlu0 %2533 }
 0x6d6   :  { %3442 = vrsqrt.f32 %v2587_v28  ;;  %v2573_v29 = vmul.f32 0.015625, %v2537_v52  ;;  %v2572_v59 = vmul.f32 0.015625, %v2534_v49 }
 0x6d7   :  { %3444 = vrsqrt.f32 %v2586_v33 }
 0x6d8   :  { %v2589_v50 = vadd.f32 1e-05, %v2573_v29  ;;  %v2588_v20 = vadd.f32 1e-05, %v2572_v59 }
 0x6d9   :  { %v2543_v1 = vpop.xlane.xlu1 %2542  ;;  %v2540_v54 = vpop.xlane.xlu0 %2539 }
 0x6da   :  { %v3439_v11 = vpop.eup %3438  ;;  %3446 = vrsqrt.f32 %v2589_v50  ;;  %v2575_v12 = vmul.f32 0.015625, %v2543_v1  ;;  %v2574_v44 = vmul.f32 0.015625, %v2540_v54 }
 0x6db   :  { %v2616_v10 = vmul.f32 %v3439_v11, %v5239_v55  ;;  %3448 = vrsqrt.f32 %v2588_v20 }
 0x6dc   :  { %v3441_v19 = vpop.eup %3440  ;;  %v2591_v9 = vadd.f32 1e-05, %v2575_v12  ;;  %v2590_v62 = vadd.f32 1e-05, %v2574_v44 }
 0x6dd   :  { %v2639_v21 = vmul.f32 %v5337_v43, %v2616_v10  ;;  %v2617_v25 = vmul.f32 %v3441_v19, %v5242_v42  ;;  %v2549_v8 = vpop.xlane.xlu1 %2548  ;;  %v2546_v57 = vpop.xlane.xlu0 %2545 }
 0x6de   :  { %3450 = vrsqrt.f32 %v2591_v9  ;;  %v2577_v51 = vmul.f32 0.015625, %v2549_v8  ;;  %v2576_v15 = vmul.f32 0.015625, %v2546_v57 }
 0x6df   :  { %v5348_v55 = vadd.f32 %v5343_v63, %v2639_v21  ;;  %v2640_v48 = vmul.f32 %v5337_v43, %v2617_v25  ;;  %3452 = vrsqrt.f32 %v2590_v62 }
 0x6e0   :  { %v3443_v17 = vpop.eup %3442  ;;  %v2593_v3 = vadd.f32 1e-05, %v2577_v51  ;;  %v2592_v34 = vadd.f32 1e-05, %v2576_v15 }
 0x6e1   :  { %v3445_v18 = vpop.eup %3444  ;;  %v2694_v22 = vmul.f32 1.442695, %v5348_v55  ;;  %v5353_v47 = vadd.f32 %v5343_v63, %v2640_v48  ;;  %v2619_v42 = vmul.f32 %v3443_v17, %v5250_v23  ;;  %v2555_v24 = vpop.xlane.xlu1 %2554  ;;  %vm2678_vm6 = vcmp.gt.f32.partialorder %v5348_v55, 0.0 }
 0x6e2   :  { %v2552_v5 = vpop.xlane.xlu0 %2551  ;;  %v2618_v27 = vmul.f32 %v3445_v18, %v5253_v7  ;;  %3454 = vrsqrt.f32 %v2593_v3  ;;  %v2579_v2 = vmul.f32 0.015625, %v2555_v24 }
 0x6e3   :  { %v2578_v38 = vmul.f32 0.015625, %v2552_v5  ;;  %3456 = vpow2.f32 %v2694_v22  ;;  %v2696_v30 = vmul.f32 1.442695, %v5353_v47  ;;  %v2642_v32 = vmul.f32 %v5337_v43, %v2619_v42 }
 0x6e4   :  { %v3447_v46 = vpop.eup %3446  ;;  %v2641_v45 = vmul.f32 %v5337_v43, %v2618_v27  ;;  %3458 = vrsqrt.f32 %v2592_v34  ;;  %v2595_v16 = vadd.f32 1e-05, %v2579_v2  ;;  %vm2679_vm7 = vcmp.gt.f32.partialorder %v5353_v47, 0.0 }
 0x6e5   :  { %v2594_v31 = vadd.f32 1e-05, %v2578_v38  ;;  %v3449_v60 = vpop.eup %3448  ;;  %3460 = vpow2.f32 %v2696_v30  ;;  %v5361_v23 = vadd.f32 %v5343_v63, %v2642_v32  ;;  %v2621_v7 = vmul.f32 %v3447_v46, %v5261_v37  ;;  %v2561_v41 = vpop.xlane.xlu1 %2560 }
 0x6e6   :  { %v5365_v36 = vadd.f32 %v5343_v63, %v2641_v45  ;;  %v2620_v53 = vmul.f32 %v3449_v60, %v5264_v26  ;;  %3462 = vrsqrt.f32 %v2595_v16  ;;  %v2581_v14 = vmul.f32 0.015625, %v2561_v41  ;;  %v2558_v20 = vpop.xlane.xlu0 %2557 }
 0x6e7   :  { %v2700_v28 = vmul.f32 1.442695, %v5361_v23  ;;  %v2644_v33 = vmul.f32 %v5337_v43, %v2621_v7  ;;  %3464 = vrsqrt.f32 %v2594_v31  ;;  %v2580_v19 = vmul.f32 0.015625, %v2558_v20 }
 0x6e8   :  { %v3451_v52 = vpop.eup %3450  ;;  %v2698_v49 = vmul.f32 1.442695, %v5365_v36  ;;  %v2643_v29 = vmul.f32 %v5337_v43, %v2620_v53  ;;  %v2597_v59 = vadd.f32 1e-05, %v2581_v14  ;;  %vm2681_vm8 = vcmp.gt.f32.partialorder %v5361_v23, 0.0 }
 0x6e9   :  { %v3453_v37 = vpop.eup %3452  ;;  %3466 = vpow2.f32 %v2700_v28  ;;  %v5373_v50 = vadd.f32 %v5343_v63, %v2644_v33  ;;  %v2623_v26 = vmul.f32 %v3451_v52, %v5273_v61  ;;  %vm2680_vm9 = vcmp.gt.f32.partialorder %v5365_v36, 0.0  ;;  %v2567_v22 = vpop.xlane.xlu1 %2566 }
 0x6ea   :  { %3468 = vpow2.f32 %v2698_v49  ;;  %v5377_v1 = vadd.f32 %v5343_v63, %v2643_v29  ;;  %v2622_v54 = vmul.f32 %v3453_v37, %v5276_v35  ;;  %v2596_v18 = vadd.f32 1e-05, %v2580_v19  ;;  %v2564_v38 = vpop.xlane.xlu0 %2563 }
 0x6eb   :  { %v2704_v11 = vmul.f32 1.442695, %v5373_v50  ;;  %v2646_v12 = vmul.f32 %v5337_v43, %v2623_v26  ;;  %3470 = vrsqrt.f32 %v2597_v59  ;;  %v2583_v16 = vmul.f32 0.015625, %v2567_v22 }
 0x6ec   :  { %v3455_v44 = vpop.eup %3454  ;;  %v2702_v10 = vmul.f32 1.442695, %v5377_v1  ;;  %v2645_v61 = vmul.f32 %v5337_v43, %v2622_v54  ;;  %v2582_v53 = vmul.f32 0.015625, %v2564_v38  ;;  %vm2683_vm10 = vcmp.gt.f32.partialorder %v5373_v50, 0.0 }
 0x6ed   :  { %v3457_v9 = vpop.eup %3456  ;;  %3472 = vpow2.f32 %v2704_v11  ;;  %v5387_v35 = vadd.f32 %v5343_v63, %v2646_v12  ;;  %v2625_v62 = vmul.f32 %v3455_v44, %v5285_v0  ;;  %v2599_v54 = vadd.f32 1e-05, %v2583_v16 }
 0x6ee   :  { %v3459_v21 = vpop.eup %3458  ;;  %v2854_v25 = vadd.f32 -1.0, %v3457_v9  ;;  %3474 = vpow2.f32 %v2702_v10  ;;  %v5392_v8 = vadd.f32 %v5343_v63, %v2645_v61  ;;  %vm2682_vm11 = vcmp.gt.f32.partialorder %v5377_v1, 0.0 }
 0x6ef   :  { %v3461_v57 = vpop.eup %3460  ;;  %v2708_v51 = vmul.f32 1.442695, %v5387_v35  ;;  %v2648_v15 = vmul.f32 %v5337_v43, %v2625_v62  ;;  %v2624_v48 = vmul.f32 %v3459_v21, %v5288_v4  ;;  %vm2685_vm12 = vcmp.gt.f32.partialorder %v5387_v35, 0.0 }
 0x6f0   :  { %v3463_v17 = vpop.eup %3462  ;;  %v2742_v0 = vsel %vm2678_vm6, %v5348_v55, %v2854_v25  ;;  %v2855_v3 = vadd.f32 -1.0, %v3461_v57  ;;  %v2706_v34 = vmul.f32 1.442695, %v5392_v8  ;;  %vm2684_vm13 = vcmp.gt.f32.partialorder %v5392_v8, 0.0 }
 0x6f1   :  { %v3465_v42 = vpop.eup %3464  ;;  %v2886_v24 = vpack.c.bf16 %v2742_v0, %v2742_v0  ;;  %3476 = vpow2.f32 %v2708_v51  ;;  %v5403_v5 = vadd.f32 %v5343_v63, %v2648_v15  ;;  %v2647_v27 = vmul.f32 %v5337_v43, %v2624_v48 }
 0x6f2   :  { %v2743_v4 = vsel %vm2679_vm7, %v5353_v47, %v2855_v3  ;;  %3478 = vpow2.f32 %v2706_v34  ;;  %v2627_v55 = vmul.f32 %v3463_v17, %v5297_v39  ;;  %v2626_v2 = vmul.f32 %v3465_v42, %v5300_v6 }
 0x6f3   :  { %v3467_v30 = vpop.eup %3466  ;;  %2823 = vst.msk [vmem:[%s5531_s7] sm:$0xf] %vm2822_vm5, %v2886_v24  ;;  %v2887_v32 = vpack.c.bf16 %v2743_v4, %v2743_v4  ;;  %v2712_v46 = vmul.f32 1.442695, %v5403_v5  ;;  %v5417_v45 = vadd.f32 %v5343_v63, %v2647_v27  ;;  %3480 = vrsqrt.f32 %v2596_v18 }
 0x6f4   :  { %v3469_v47 = vpop.eup %3468  ;;  %v2857_v31 = vadd.f32 -1.0, %v3467_v30  ;;  %v2650_v39 = vmul.f32 %v5337_v43, %v2627_v55  ;;  %v2649_v6 = vmul.f32 %v5337_v43, %v2626_v2  ;;  %vm2687_vm14 = vcmp.gt.f32.partialorder %v5403_v5, 0.0 }
 0x6f5   :  { %v3471_v60 = vpop.eup %3470  ;;  %2824 = vst.msk [vmem:[%s5531_s7 + $0x4] sm:$0xf] %vm2822_vm5, %v2887_v32  ;;  %v2856_v7 = vadd.f32 -1.0, %v3469_v47  ;;  %3482 = vpow2.f32 %v2712_v46  ;;  %v2710_v41 = vmul.f32 1.442695, %v5417_v45  ;;  %vm2686_vm15 = vcmp.gt.f32.partialorder %v5417_v45, 0.0 }
 0x6f6   :  { %v2745_v14 = vsel %vm2681_vm8, %v5361_v23, %v2857_v31  ;;  %v5430_v28 = vadd.f32 %v5343_v63, %v2650_v39  ;;  %v5433_v33 = vadd.f32 %v5343_v63, %v2649_v6  ;;  %v2629_v52 = vmul.f32 %v3471_v60, %v5309_v40 }
 0x6f7   :  { %v3473_v49 = vpop.eup %3472  ;;  %v2889_v29 = vpack.c.bf16 %v2745_v14, %v2745_v14  ;;  %v2744_v59 = vsel %vm2680_vm9, %v5365_v36, %v2856_v7  ;;  %3484 = vpow2.f32 %v2710_v41  ;;  %v2598_v36 = vadd.f32 1e-05, %v2582_v53 }
 0x6f8   :  { %v3475_v37 = vpop.eup %3474  ;;  %v2888_v26 = vpack.c.bf16 %v2744_v59, %v2744_v59  ;;  %v2859_v23 = vadd.f32 -1.0, %v3473_v49  ;;  %v2716_v20 = vmul.f32 1.442695, %v5430_v28  ;;  %v2714_v11 = vmul.f32 1.442695, %v5433_v33 }
 0x6f9   :  { %2826 = vst.msk [vmem:[%s5531_s7 + $0xc] sm:$0xf] %vm2822_vm5, %v2889_v29  ;;  %v2858_v40 = vadd.f32 -1.0, %v3475_v37  ;;  %v2652_v12 = vmul.f32 %v5337_v43, %v2629_v52  ;;  %vm2689_vm0 = vcmp.gt.f32.partialorder %v5430_v28, 0.0  ;;  %vm2688_vm1 = vcmp.gt.f32.partialorder %v5433_v33, 0.0 }
 0x6fa   :  { %2825 = vst.msk [vmem:[%s5531_s7 + $0x8] sm:$0xf] %vm2822_vm5, %v2888_v26  ;;  %v2747_v44 = vsel %vm2683_vm10, %v5373_v50, %v2859_v23  ;;  %3486 = vpow2.f32 %v2716_v20 }
 0x6fb   :  { %v3477_v10 = vpop.eup %3476  ;;  %v2891_v61 = vpack.c.bf16 %v2747_v44, %v2747_v44  ;;  %v2746_v19 = vsel %vm2682_vm11, %v5377_v1, %v2858_v40  ;;  %3488 = vpow2.f32 %v2714_v11  ;;  %v2675_v9 = vadd.f32 %v5343_v63, %v2652_v12 }
 0x6fc   :  { %v3479_v62 = vpop.eup %3478  ;;  %v2890_v21 = vpack.c.bf16 %v2746_v19, %v2746_v19  ;;  %v2861_v25 = vadd.f32 -1.0, %v3477_v10  ;;  %3490 = vrsqrt.f32 %v2599_v54 }
 0x6fd   :  { %2828 = vst.msk [vmem:[%s5531_s7 + $0x14] sm:$0xf] %vm2822_vm5, %v2891_v61  ;;  %v2860_v50 = vadd.f32 -1.0, %v3479_v62  ;;  %v2720_v57 = vmul.f32 1.442695, %v2675_v9  ;;  %3492 = vrsqrt.f32 %v2598_v36  ;;  %v3481_v51 = vpop.eup %3480  ;;  %vm2691_vm2 = vcmp.gt.f32.partialorder %v2675_v9, 0.0 }
 0x6fe   :  { %2827 = vst.msk [vmem:[%s5531_s7 + $0x10] sm:$0xf] %vm2822_vm5, %v2890_v21  ;;  %v2749_v1 = vsel %vm2685_vm12, %v5387_v35, %v2861_v25  ;;  %v2628_v0 = vmul.f32 %v3481_v51, %v5312_v56 }
 0x6ff   :  { %v3483_v15 = vpop.eup %3482  ;;  %v2893_v48 = vpack.c.bf16 %v2749_v1, %v2749_v1  ;;  %v2748_v17 = vsel %vm2684_vm13, %v5392_v8, %v2860_v50  ;;  %3494 = vpow2.f32 %v2720_v57 }
 0x700   :  { %v2892_v3 = vpack.c.bf16 %v2748_v17, %v2748_v17  ;;  %v2863_v34 = vadd.f32 -1.0, %v3483_v15  ;;  %v2651_v35 = vmul.f32 %v5337_v43, %v2628_v0 }
 0x701   :  { %v3485_v18 = vpop.eup %3484  ;;  %2830 = vst.msk [vmem:[%s5531_s7 + $0x1c] sm:$0xf] %vm2822_vm5, %v2893_v48 }
 0x702   :  { %2829 = vst.msk [vmem:[%s5531_s7 + $0x18] sm:$0xf] %vm2822_vm5, %v2892_v3  ;;  %v2751_v8 = vsel %vm2687_vm14, %v5403_v5, %v2863_v34  ;;  %v2862_v56 = vadd.f32 -1.0, %v3485_v18  ;;  %v2674_v42 = vadd.f32 %v5343_v63, %v2651_v35 }
 0x703   :  { %v2895_v22 = vpack.c.bf16 %v2751_v8, %v2751_v8 }
 0x704   :  { %v3487_v24 = vpop.eup %3486  ;;  %v2750_v27 = vsel %vm2686_vm15, %v5417_v45, %v2862_v56  ;;  %v2718_v38 = vmul.f32 1.442695, %v2674_v42  ;;  %vm2690_vm3 = vcmp.gt.f32.partialorder %v2674_v42, 0.0 }
 0x705   :  { %v3489_v4 = vpop.eup %3488  ;;  %2832 = vst.msk [vmem:[%s5531_s7 + $0x24] sm:$0xf] %vm2822_vm5, %v2895_v22  ;;  %v2894_v55 = vpack.c.bf16 %v2750_v27, %v2750_v27  ;;  %v2865_v2 = vadd.f32 -1.0, %v3487_v24 }
 0x706   :  { %v3491_v30 = vpop.eup %3490  ;;  %v2864_v5 = vadd.f32 -1.0, %v3489_v4  ;;  %3496 = vpow2.f32 %v2718_v38 }
 0x707   :  { %v3493_v32 = vpop.eup %3492  ;;  %2831 = vst.msk [vmem:[%s5531_s7 + $0x20] sm:$0xf] %vm2822_vm5, %v2894_v55  ;;  %v2753_v46 = vsel %vm2689_vm0, %v5430_v28, %v2865_v2  ;;  %v2631_v45 = vmul.f32 %v3491_v30, %v5321_v58 }
 0x708   :  { %v2897_v16 = vpack.c.bf16 %v2753_v46, %v2753_v46  ;;  %v2752_v47 = vsel %vm2688_vm1, %v5433_v33, %v2864_v5  ;;  %v2630_v31 = vmul.f32 %v3493_v32, %v5324_v13 }
 0x709   :  { %v3495_v39 = vpop.eup %3494  ;;  %v2896_v6 = vpack.c.bf16 %v2752_v47, %v2752_v47  ;;  %v2654_v60 = vmul.f32 %v5337_v43, %v2631_v45 }
 0x70a   :  { %2834 = vst.msk [vmem:[%s5531_s7 + $0x2c] sm:$0xf] %vm2822_vm5, %v2897_v16  ;;  %v2867_v7 = vadd.f32 -1.0, %v3495_v39  ;;  %v2653_v41 = vmul.f32 %v5337_v43, %v2630_v31 }
 0x70b   :  { %2833 = vst.msk [vmem:[%s5531_s7 + $0x28] sm:$0xf] %vm2822_vm5, %v2896_v6  ;;  %v2677_v58 = vadd.f32 %v5343_v63, %v2654_v60 }
 0x70c   :  { %v2755_v13 = vsel %vm2691_vm2, %v2675_v9, %v2867_v7  ;;  %v2676_v53 = vadd.f32 %v5343_v63, %v2653_v41 }
 0x70d   :  { %v2899_v14 = vpack.c.bf16 %v2755_v13, %v2755_v13  ;;  %v2724_v28 = vmul.f32 1.442695, %v2677_v58  ;;  %vm2693_vm4 = vcmp.gt.f32.partialorder %v2677_v58, 0.0 }
 0x70e   :  { %v2722_v33 = vmul.f32 1.442695, %v2676_v53  ;;  %vm2692_vm6 = vcmp.gt.f32.partialorder %v2676_v53, 0.0 }
 0x70f   :  { %2836 = vst.msk [vmem:[%s5531_s7 + $0x34] sm:$0xf] %vm2822_vm5, %v2899_v14  ;;  %3498 = vpow2.f32 %v2724_v28 }
 0x710   :  { %3500 = vpow2.f32 %v2722_v33  ;;  %v3497_v43 = vpop.eup %3496 }
 0x711   :  { %v2866_v52 = vadd.f32 -1.0, %v3497_v43 }
 0x713   :  { %v2754_v49 = vsel %vm2690_vm3, %v2674_v42, %v2866_v52 }
 0x714   :  { %v2898_v29 = vpack.c.bf16 %v2754_v49, %v2754_v49 }
 0x716   :  { %2835 = vst.msk [vmem:[%s5531_s7 + $0x30] sm:$0xf] %vm2822_vm5, %v2898_v29 }
 0x719   :  { %v3499_v63 = vpop.eup %3498 }
 0x71a   :  { %v3501_v59 = vpop.eup %3500  ;;  %v2869_v37 = vadd.f32 -1.0, %v3499_v63 }
 0x71b   :  { %v2868_v26 = vadd.f32 -1.0, %v3501_v59 }
 0x71c   :  { %v2757_v23 = vsel %vm2693_vm4, %v2677_v58, %v2869_v37 }
 0x71d   :  { %v2901_v20 = vpack.c.bf16 %v2757_v23, %v2757_v23  ;;  %v2756_v54 = vsel %vm2692_vm6, %v2676_v53, %v2868_v26 }
 0x71e   :  { %v2900_v40 = vpack.c.bf16 %v2756_v54, %v2756_v54 }
 0x71f   :  { %2838 = vst.msk [vmem:[%s5531_s7 + $0x3c] sm:$0xf] %vm2822_vm5, %v2901_v20 }
 0x720   :  { %2837 = vst.msk [vmem:[%s5531_s7 + $0x38] sm:$0xf] %vm2822_vm5, %v2900_v40 }

// kernel: gat_forward.11
= control target key start
LH: loop header
LB: loop body
LE: loop exit
PB: predicated region body
PF: predicated region fallthrough
CT: control target
= control target key end

     0   :  { %vm76_vm0 = vcmask 1041408   ;;  %v2091_v1 = vmov 0   ;;  %v2092_v3 = vmov 1   ;;  %v160_v23 = vlaneseq  ;;  %s2093_s15 = smov 120   ;;  %s3268_s1 = inlined_call_operand.vmem [shape: f32[2,128], index: 1, kind: input, shape index: {}]   ;;  %s3269_s2 = inlined_call_operand.vmem [shape: f32[128,2], index: 2, kind: input, shape index: {}]   ;;  %s3270_s0 = inlined_call_operand.vmem [shape: bf16[128,16], index: 0, kind: input, shape index: {}]   ;;  %s3271_s3 = inlined_call_operand.vmem [shape: bf16[128,128], index: 3, kind: input, shape index: {}]   ;;  %s3272_s4 = inlined_call_operand.vmem [shape: f32[1,8], index: 4, kind: input, shape index: {}]   ;;  %s3273_s5 = inlined_call_operand.vmem [shape: f32[1,8], index: 5, kind: input, shape index: {}]   ;;  %s3274_s6 = inlined_call_operand.vmem [shape: f32[1,8], index: 6, kind: input, shape index: {}]   ;;  %s3275_s7 = inlined_call_operand.vmem [shape: f32[128,8], index: 7, kind: output, shape index: {}]  }
   0x1   :  { %v2137_v0 = vld [vmem:[%s3268_s1] sm:$0x3]  ;;  %1818 = vset.pattern.permute.xlu1 %v2091_v1  ;;  %v2143_v2 = vld [vmem:[%s3269_s2 + $0x8] sm:$0xff]  ;;  %1823 = vset.pattern.permute.xlu0 %v2092_v3  ;;  %v2159_v6 = vld [vmem:[%s3269_s2 + $0x10] sm:$0xff]  ;;  %vm1185_vm1 = vcmask 64512  }
   0x2   :  { %v77_v4 = vsel %vm76_vm0, %v2137_v0, -inf  ;;  %87 = vperm.xlu1 %1818, %v2143_v2   ;;  %v2151_v5 = vld [vmem:[%s3269_s2] sm:$0xff]  ;;  %v2166_v7 = vld [vmem:[%s3269_s2 + $0x18] sm:$0xff]  ;;  %v2195_v11 = vld [vmem:[%s3269_s2 + $0x28] sm:$0xff]  ;;  %v2290_v24 = vshrl.u32 %v160_v23, 7 }
   0x3   :  { %78 = vmax.xlane.f32.xlu0 %v77_v4  ;;  %v2173_v8 = vld [vmem:[%s3269_s2 + $0x20] sm:$0xff]  ;;  %v2180_v9 = vld [vmem:[%s3269_s2 + $0x38] sm:$0xff]  ;;  %v2211_v13 = vld [vmem:[%s3269_s2 + $0x30] sm:$0xff] }
   0x4   :  { %v2187_v10 = vld [vmem:[%s3269_s2 + $0x40] sm:$0xff]  ;;  %v2200_v12 = vld [vmem:[%s3269_s2 + $0x58] sm:$0xff]  ;;  %v2219_v14 = vld [vmem:[%s3269_s2 + $0x50] sm:$0xff]  ;;  %v162_v25 = vsub.s32 0, %v2290_v24  ;;  %v562_v26 = vsub.s32 1, %v2290_v24 }
   0x5   :  { %v2227_v15 = vld [vmem:[%s3269_s2 + $0x70] sm:$0xff]  ;;  %v2235_v16 = vld [vmem:[%s3269_s2 + $0x48] sm:$0xff]  ;;  %v2247_v17 = vld [vmem:[%s3269_s2 + $0x60] sm:$0xff] }
   0x6   :  { %1819 = vset.pattern.permute.xlu1 %v2092_v3  ;;  %v2254_v18 = vld [vmem:[%s3269_s2 + $0x68] sm:$0xff]  ;;  %v2262_v19 = vld [vmem:[%s3269_s2 + $0x78] sm:$0xff]  ;;  %v2272_v20 = vld [vmem:[%s3270_s0] sm:$0xff]  }
   0x7   :  { %497 = vperm.xlu1 %1819, %v2151_v5   ;;  %1767 = vmatprep.subr.bf16.mxu0 %v2272_v20  ;;  %v2279_v21 = vld [vmem:[%s3270_s0 + $0x8] sm:$0xff]   ;;  %v2284_v22 = vld [vmem:[%s3270_s0 + $0x10] sm:$0xff]  }
   0x8   :  { %1768 = vmatpush3.bf16.msra.mxu0 %v2272_v20 }
   0x9   :  { %1769 = vmatprep.subr.bf16.mxu0 %v2279_v21 }
   0xb   :  { %501 = vperm.xlu1 %1819, %v2143_v2  }
   0xc   :  { %1770 = vmatpush3.bf16.msra.mxu0 %v2279_v21 }
   0xd   :  { %1771 = vmatprep.subr.bf16.mxu0 %v2284_v22 }
   0xf   :  { %1820 = vset.pattern.permute.xlu1 %v2091_v1 }
  0x10   :  { %92 = vperm.xlu1 %1820, %v2159_v6   ;;  %1772 = vmatpush3.bf16.msra.mxu0 %v2284_v22 }
  0x14   :  { %97 = vperm.xlu1 %1820, %v2166_v7  }
  0x18   :  { %1821 = vset.pattern.permute.xlu1 %v2092_v3 }
  0x19   :  { %505 = vperm.xlu1 %1821, %v2159_v6   ;;  %513 = vperm.xlu0 %1823, %v2173_v8  }
  0x1d   :  { %509 = vperm.xlu1 %1821, %v2166_v7   ;;  %525 = vperm.xlu0 %1823, %v2180_v9  }
  0x21   :  { %1822 = vset.pattern.permute.xlu1 %v2091_v1  ;;  %529 = vperm.xlu0 %1823, %v2187_v10  }
  0x22   :  { %102 = vperm.xlu1 %1822, %v2173_v8  }
  0x25   :  { %541 = vperm.xlu0 %1823, %v2200_v12  }
  0x26   :  { %107 = vperm.xlu1 %1822, %v2195_v11  }
  0x29   :  { %1831 = vset.pattern.permute.xlu0 %v2091_v1 }
  0x2a   :  { %1824 = vset.pattern.permute.xlu1 %v2092_v3  ;;  %82 = vperm.xlu0 %1831, %v2151_v5  }
  0x2b   :  { %517 = vperm.xlu1 %1824, %v2195_v11  }
  0x2e   :  { %112 = vperm.xlu0 %1831, %v2211_v13  }
  0x2f   :  { %1825 = vset.pattern.permute.xlu1 %v2091_v1 }
  0x30   :  { %117 = vperm.xlu1 %1825, %v2180_v9  }
  0x32   :  { %132 = vperm.xlu0 %1831, %v2219_v14  }
  0x34   :  { %1826 = vset.pattern.permute.xlu1 %v2092_v3 }
  0x35   :  { %521 = vperm.xlu1 %1826, %v2211_v13  }
  0x36   :  { %152 = vperm.xlu0 %1831, %v2227_v15  }
  0x39   :  { %1827 = vset.pattern.permute.xlu1 %v2091_v1 }
  0x3a   :  { %122 = vperm.xlu1 %1827, %v2187_v10  }
  0x3e   :  { %127 = vperm.xlu1 %1827, %v2235_v16  }
  0x42   :  { %1828 = vset.pattern.permute.xlu1 %v2092_v3 }
  0x43   :  { %533 = vperm.xlu1 %1828, %v2235_v16  }
  0x47   :  { %1829 = vset.pattern.permute.xlu1 %v2091_v1 }
  0x48   :  { %137 = vperm.xlu1 %1829, %v2200_v12  }
  0x4c   :  { %1830 = vset.pattern.permute.xlu1 %v2092_v3 }
  0x4d   :  { %537 = vperm.xlu1 %1830, %v2219_v14  }
  0x51   :  { %1832 = vset.pattern.permute.xlu1 %v2091_v1 }
  0x52   :  { %142 = vperm.xlu1 %1832, %v2247_v17  }
  0x56   :  { %147 = vperm.xlu1 %1832, %v2254_v18  }
  0x5a   :  { %1833 = vset.pattern.permute.xlu1 %v2092_v3 }
  0x5b   :  { %549 = vperm.xlu1 %1833, %v2254_v18  }
  0x5f   :  { %1834 = vset.pattern.permute.xlu1 %v2091_v1 }
  0x60   :  { %157 = vperm.xlu1 %1834, %v2262_v19  }
  0x64   :  { %1835 = vset.pattern.permute.xlu1 %v2092_v3 }
  0x65   :  { %553 = vperm.xlu1 %1835, %v2227_v15  }
  0x69   :  { %1836 = vset.pattern.permute.xlu1 %v2091_v1 }
  0x81   :  { %v2316_v47 = vpop.permute.xlu1 %87 }
  0x86   :  { %v2326_v55 = vpop.permute.xlu1 %497 }
  0x8a   :  { %v2333_v62 = vpop.permute.xlu1 %501 }
  0x90   :  { %v79_v27 = vpop.xlane.xlu0 %78 }
  0x91   :  { %v2296_v28 = vrot.slane %v79_v27, %v162_v25  ;;  %v2300_v29 = vrot.slane %v79_v27, %v562_v26 }
  0x93   :  { %v219_v30 = vadd.f32 %v2296_v28, %v2166_v7  ;;  %v216_v31 = vadd.f32 %v2296_v28, %v2151_v5  ;;  %v217_v32 = vadd.f32 %v2296_v28, %v2143_v2  ;;  %v619_v33 = vadd.f32 %v2300_v29, %v2166_v7 }
  0x94   :  { %v620_v40 = vadd.f32 %v2300_v29, %v2173_v8  ;;  %v616_v41 = vadd.f32 %v2300_v29, %v2151_v5  ;;  %v617_v46 = vadd.f32 %v2300_v29, %v2143_v2  ;;  %v222_v48 = vadd.f32 %v2296_v28, %v2211_v13 }
  0x95   :  { %v235_v34 = vmul.f32 0.2, %v219_v30  ;;  %v232_v35 = vmul.f32 0.2, %v216_v31  ;;  %v233_v38 = vmul.f32 0.2, %v217_v32  ;;  %v218_v53 = vadd.f32 %v2296_v28, %v2159_v6 }
  0x96   :  { %v635_v39 = vmul.f32 0.2, %v619_v33  ;;  %v636_v44 = vmul.f32 0.2, %v620_v40  ;;  %v632_v45 = vmul.f32 0.2, %v616_v41  ;;  %v623_v54 = vadd.f32 %v2300_v29, %v2180_v9 }
  0x97   :  { %v251_v36 = vmax.f32 %v219_v30, %v235_v34  ;;  %v248_v37 = vmax.f32 %v216_v31, %v232_v35  ;;  %v249_v42 = vmax.f32 %v217_v32, %v233_v38  ;;  %v633_v51 = vmul.f32 0.2, %v617_v46  ;;  %v2341_v30 = vpop.permute.xlu1 %92 }
  0x98   :  { %v651_v43 = vmax.f32 %v619_v33, %v635_v39  ;;  %v652_v49 = vmax.f32 %v620_v40, %v636_v44  ;;  %v648_v50 = vmax.f32 %v616_v41, %v632_v45  ;;  %v238_v52 = vmul.f32 0.2, %v222_v48 }
  0x99   :  { %281 = vperm.xlu0 %1831, %v251_v36   ;;  %266 = vperm.xlu1 %1836, %v248_v37   ;;  %v649_v56 = vmax.f32 %v617_v46, %v633_v51  ;;  %v234_v58 = vmul.f32 0.2, %v218_v53  ;;  %v639_v59 = vmul.f32 0.2, %v623_v54  ;;  %v624_v60 = vadd.f32 %v2300_v29, %v2187_v10 }
  0x9a   :  { %v254_v57 = vmax.f32 %v222_v48, %v238_v52  ;;  %v618_v61 = vadd.f32 %v2300_v29, %v2159_v6  ;;  %v226_v7 = vadd.f32 %v2296_v28, %v2219_v14  ;;  %v220_v23 = vadd.f32 %v2296_v28, %v2173_v8 }
  0x9b   :  { %v250_v63 = vmax.f32 %v218_v53, %v234_v58  ;;  %v655_v2 = vmax.f32 %v623_v54, %v639_v59  ;;  %v640_v4 = vmul.f32 0.2, %v624_v60  ;;  %v221_v33 = vadd.f32 %v2296_v28, %v2195_v11  ;;  %v2350_v38 = vpop.permute.xlu1 %97 }
  0x9c   :  { %v634_v5 = vmul.f32 0.2, %v618_v61  ;;  %v242_v31 = vmul.f32 0.2, %v226_v7  ;;  %v236_v32 = vmul.f32 0.2, %v220_v23  ;;  %v627_v34 = vadd.f32 %v2300_v29, %v2200_v12 }
  0x9d   :  { %1840 = vset.pattern.permute.xlu0 %v2092_v3  ;;  %271 = vperm.xlu1 %1836, %v249_v42   ;;  %v656_v6 = vmax.f32 %v624_v60, %v640_v4  ;;  %v237_v8 = vmul.f32 0.2, %v221_v33  ;;  %v621_v39 = vadd.f32 %v2300_v29, %v2195_v11  ;;  %v230_v40 = vadd.f32 %v2296_v28, %v2227_v15 }
  0x9e   :  { %681 = vperm.xlu0 %1840, %v651_v43   ;;  %v650_v27 = vmax.f32 %v618_v61, %v634_v5  ;;  %v258_v35 = vmax.f32 %v226_v7, %v242_v31  ;;  %v252_v36 = vmax.f32 %v220_v23, %v236_v32  ;;  %v643_v37 = vmul.f32 0.2, %v627_v34 }
  0x9f   :  { %v253_v41 = vmax.f32 %v221_v33, %v237_v8  ;;  %v637_v43 = vmul.f32 0.2, %v621_v39  ;;  %v246_v44 = vmul.f32 0.2, %v230_v40  ;;  %v223_v45 = vadd.f32 %v2296_v28, %v2180_v9  ;;  %v2359_v46 = vpop.permute.xlu1 %505 }
  0xa0   :  { %v659_v42 = vmax.f32 %v627_v34, %v643_v37  ;;  %v628_v53 = vadd.f32 %v2300_v29, %v2247_v17  ;;  %v224_v54 = vadd.f32 %v2296_v28, %v2187_v10  ;;  %v631_v58 = vadd.f32 %v2300_v29, %v2262_v19 }
  0xa1   :  { %1837 = vset.pattern.permute.xlu1 %v2092_v3  ;;  %v653_v48 = vmax.f32 %v621_v39, %v637_v43  ;;  %v262_v11 = vmax.f32 %v230_v40, %v246_v44  ;;  %v225_v60 = vadd.f32 %v2296_v28, %v2235_v16  ;;  %v625_v5 = vadd.f32 %v2300_v29, %v2235_v16 }
  0xa2   :  { %686 = vperm.xlu0 %1840, %v652_v49   ;;  %666 = vperm.xlu1 %1837, %v648_v50   ;;  %v239_v49 = vmul.f32 0.2, %v223_v45  ;;  %v622_v50 = vadd.f32 %v2300_v29, %v2211_v13  ;;  %v240_v59 = vmul.f32 0.2, %v224_v54  ;;  %v647_v10 = vmul.f32 0.2, %v631_v58 }
  0xa3   :  { %v2365_v51 = vpop.permute.xlu1 %509  ;;  %v227_v31 = vadd.f32 %v2296_v28, %v2200_v12  ;;  %v626_v34 = vadd.f32 %v2300_v29, %v2219_v14  ;;  %v228_v12 = vadd.f32 %v2296_v28, %v2247_v17  ;;  %v229_v39 = vadd.f32 %v2296_v28, %v2254_v18 }
  0xa4   :  { %v255_v52 = vmax.f32 %v223_v45, %v239_v49  ;;  %v638_v9 = vmul.f32 0.2, %v622_v50  ;;  %v663_v7 = vmax.f32 %v631_v58, %v647_v10  ;;  %v2413_v45 = vpop.permute.xlu0 %513 }
  0xa5   :  { %v243_v33 = vmul.f32 0.2, %v227_v31  ;;  %v244_v37 = vmul.f32 0.2, %v228_v12 }
  0xa6   :  { %1843 = vset.pattern.permute.xlu0 %v2091_v1  ;;  %671 = vperm.xlu1 %1837, %v649_v56   ;;  %v654_v56 = vmax.f32 %v622_v50, %v638_v9 }
  0xa7   :  { %296 = vperm.xlu0 %1843, %v254_v57   ;;  %v2374_v13 = vpop.permute.xlu1 %102  ;;  %v644_v57 = vmul.f32 0.2, %v628_v53  ;;  %v260_v14 = vmax.f32 %v228_v12, %v244_v37 }
  0xa9   :  { %v660_v61 = vmax.f32 %v628_v53, %v644_v57 }
  0xaa   :  { %1838 = vset.pattern.permute.xlu1 %v2091_v1 }
  0xab   :  { %1846 = vset.pattern.permute.xlu0 %v2092_v3  ;;  %276 = vperm.xlu1 %1838, %v250_v63   ;;  %v256_v63 = vmax.f32 %v224_v54, %v240_v59  ;;  %v2383_v4 = vpop.permute.xlu1 %107 }
  0xac   :  { %701 = vperm.xlu0 %1846, %v655_v2   ;;  %v241_v2 = vmul.f32 0.2, %v225_v60 }
  0xae   :  { %v257_v23 = vmax.f32 %v225_v60, %v241_v2 }
  0xaf   :  { %1839 = vset.pattern.permute.xlu1 %v2092_v3 }
  0xb0   :  { %706 = vperm.xlu0 %1846, %v656_v6   ;;  %676 = vperm.xlu1 %1839, %v650_v27   ;;  %v2387_v6 = vpop.permute.xlu1 %517  ;;  %v641_v27 = vmul.f32 0.2, %v625_v5 }
  0xb2   :  { %v657_v32 = vmax.f32 %v625_v5, %v641_v27 }
  0xb4   :  { %1849 = vset.pattern.permute.xlu0 %v2091_v1  ;;  %1841 = vset.pattern.permute.xlu1 %v2091_v1  ;;  %v2394_v16 = vpop.permute.xlu1 %117 }
  0xb5   :  { %316 = vperm.xlu0 %1849, %v258_v35   ;;  %286 = vperm.xlu1 %1841, %v252_v36   ;;  %v259_v35 = vmax.f32 %v227_v31, %v243_v33  ;;  %v642_v36 = vmul.f32 0.2, %v626_v34 }
  0xb8   :  { %v2401_v8 = vpop.permute.xlu1 %521 }
  0xb9   :  { %1852 = vset.pattern.permute.xlu0 %v2092_v3  ;;  %291 = vperm.xlu1 %1841, %v253_v41   ;;  %v245_v41 = vmul.f32 0.2, %v229_v39 }
  0xba   :  { %721 = vperm.xlu0 %1852, %v659_v42   ;;  %v629_v42 = vadd.f32 %v2300_v29, %v2254_v18  ;;  %v630_v18 = vadd.f32 %v2300_v29, %v2227_v15  ;;  %v2437_v15 = vld [vmem:[%s3270_s0 + $0x20] sm:$0xff]  }
  0xbc   :  { %v2406_v40 = vpop.permute.xlu1 %122  ;;  %v645_v44 = vmul.f32 0.2, %v629_v42  ;;  %v646_v54 = vmul.f32 0.2, %v630_v18 }
  0xbd   :  { %1842 = vset.pattern.permute.xlu1 %v2092_v3 }
  0xbe   :  { %1855 = vset.pattern.permute.xlu0 %v2091_v1  ;;  %691 = vperm.xlu1 %1842, %v653_v48   ;;  %v231_v48 = vadd.f32 %v2296_v28, %v2262_v19  ;;  %v661_v49 = vmax.f32 %v629_v42, %v645_v44  ;;  %v662_v29 = vmax.f32 %v630_v18, %v646_v54 }
  0xbf   :  { %336 = vperm.xlu0 %1855, %v262_v11  }
  0xc0   :  { %v2411_v43 = vpop.permute.xlu1 %127  ;;  %v247_v50 = vmul.f32 0.2, %v231_v48 }
  0xc2   :  { %1844 = vset.pattern.permute.xlu1 %v2091_v1  ;;  %v263_v9 = vmax.f32 %v231_v48, %v247_v50 }
  0xc3   :  { %1856 = vset.pattern.permute.xlu0 %v2092_v3  ;;  %301 = vperm.xlu1 %1844, %v255_v52   ;;  %v2422_v52 = vpop.permute.xlu0 %525 }
  0xc4   :  { %545 = vperm.xlu0 %1856, %v2247_v17   ;;  %v261_v17 = vmax.f32 %v229_v39, %v245_v41  ;;  %v2417_v11 = vpop.permute.xlu1 %533 }
  0xc7   :  { %1845 = vset.pattern.permute.xlu1 %v2092_v3  ;;  %v2432_v28 = vpop.permute.xlu0 %529 }
  0xc8   :  { %557 = vperm.xlu0 %1856, %v2262_v19   ;;  %696 = vperm.xlu1 %1845, %v654_v56   ;;  %v2424_v53 = vpop.permute.xlu1 %137  ;;  %v2430_v19 = vld [vmem:[%s3270_s0 + $0x18] sm:$0xff]  }
  0xc9   :  { %1773 = vmatprep.subr.bf16.mxu0 %v2430_v19 }
  0xca   :  { %1774 = vmatpush3.bf16.msra.mxu0 %v2430_v19 }
  0xcb   :  { %1775 = vmatprep.subr.bf16.mxu0 %v2437_v15  ;;  %v2446_v56 = vpop.permute.xlu0 %541 }
  0xcc   :  { %726 = vperm.xlu0 %1856, %v660_v61   ;;  %1847 = vset.pattern.permute.xlu1 %v2091_v1  ;;  %v2463_v61 = vrot.slane %v2137_v0, %v162_v25 }
  0xcd   :  { %306 = vperm.xlu1 %1847, %v256_v63  }
  0xce   :  { %1776 = vmatpush3.bf16.msra.mxu0 %v2437_v15  ;;  %v165_v5 = vadd.f32 %v2463_v61, %v2316_v47 }
  0xcf   :  { %v83_v58 = vpop.permute.xlu0 %82 }
  0xd0   :  { %741 = vperm.xlu0 %1856, %v663_v7   ;;  %v2477_v7 = vrot.slane %v2137_v0, %v562_v26  ;;  %v181_v27 = vmul.f32 0.2, %v165_v5 }
  0xd1   :  { %311 = vperm.xlu1 %1847, %v257_v23  }
  0xd2   :  { %v564_v31 = vadd.f32 %v2477_v7, %v2326_v55  ;;  %v197_v47 = vmax.f32 %v165_v5, %v181_v27  ;;  %v565_v0 = vadd.f32 %v2477_v7, %v2333_v62  ;;  %v567_v55 = vadd.f32 %v2477_v7, %v2365_v51  ;;  %v2496_v62 = vld [vmem:[%s3271_s3] sm:$0xff]  }
  0xd3   :  { %v2456_v60 = vpop.permute.xlu0 %112 }
  0xd4   :  { %922 = vrot.lane.b32.xlu0 %v2279_v21, %s2093_s15  ;;  %v658_v21 = vmax.f32 %v626_v34, %v642_v36  ;;  %v580_v12 = vmul.f32 0.2, %v564_v31  ;;  %v583_v44 = vmul.f32 0.2, %v567_v55 }
  0xd5   :  { %1848 = vset.pattern.permute.xlu1 %v2092_v3 }
  0xd6   :  { %711 = vperm.xlu1 %1848, %v657_v32   ;;  %v596_v41 = vmax.f32 %v564_v31, %v580_v12  ;;  %v168_v12 = vadd.f32 %v2463_v61, %v2374_v13 }
  0xd7   :  { %v2465_v10 = vpop.permute.xlu0 %132 }
  0xda   :  { %1850 = vset.pattern.permute.xlu1 %v2091_v1 }
  0xdb   :  { %321 = vperm.xlu1 %1850, %v259_v35   ;;  %v167_v35 = vadd.f32 %v2463_v61, %v2350_v38  ;;  %v166_v38 = vadd.f32 %v2463_v61, %v2341_v30  ;;  %v566_v30 = vadd.f32 %v2477_v7, %v2359_v46  ;;  %v2510_v46 = vld [vmem:[%s3270_s0 + $0x28] sm:$0xff]  }
  0xdc   :  { %1777 = vmatprep.subr.bf16.mxu0 %v2510_v46 }
  0xdd   :  { %v183_v37 = vmul.f32 0.2, %v167_v35  ;;  %v182_v54 = vmul.f32 0.2, %v166_v38  ;;  %1778 = vmatpush3.bf16.msra.mxu0 %v2510_v46 }
  0xdf   :  { %1851 = vset.pattern.permute.xlu1 %v2092_v3  ;;  %v199_v48 = vmax.f32 %v167_v35, %v183_v37  ;;  %v582_v35 = vmul.f32 0.2, %v566_v30  ;;  %v2521_v37 = vld [vmem:[%s3270_s0 + $0x30] sm:$0xff]  }
  0xe0   :  { %716 = vperm.xlu1 %1851, %v658_v21   ;;  %1779 = vmatprep.subr.bf16.mxu0 %v2521_v37 }
  0xe1   :  { %v598_v13 = vmax.f32 %v566_v30, %v582_v35  ;;  %1780 = vmatpush3.bf16.msra.mxu0 %v2521_v37 }
  0xe4   :  { %1853 = vset.pattern.permute.xlu1 %v2091_v1 }
  0xe5   :  { %326 = vperm.xlu1 %1853, %v260_v14   ;;  %v581_v14 = vmul.f32 0.2, %v565_v0 }
  0xe7   :  { %v597_v18 = vmax.f32 %v565_v0, %v581_v14  ;;  %v184_v14 = vmul.f32 0.2, %v168_v12 }
  0xe9   :  { %331 = vperm.xlu1 %1853, %v261_v17  }
  0xed   :  { %1854 = vset.pattern.permute.xlu1 %v2092_v3 }
  0xee   :  { %731 = vperm.xlu1 %1854, %v661_v49  }
  0xf2   :  { %1857 = vset.pattern.permute.xlu1 %v2091_v1  ;;  %v2443_v1 = vpop.permute.xlu1 %537 }
  0xf3   :  { %341 = vperm.xlu1 %1857, %v263_v9   ;;  %v1666_v9 = vunpack.c.l.bf16 %v2496_v62 }
  0xf6   :  { %v2450_v57 = vpop.permute.xlu1 %142 }
  0xf7   :  { %1858 = vset.pattern.permute.xlu1 %v2092_v3 }
  0xf8   :  { %736 = vperm.xlu1 %1858, %v662_v29  }
  0xfa   :  { %v2454_v59 = vpop.permute.xlu1 %147 }
  0xfc   :  { %920 = vrot.lane.b32.xlu1 %v2272_v20, %s2093_s15  ;;  %v164_v20 = vadd.f32 %v2463_v61, %v83_v58  ;;  %v599_v58 = vmax.f32 %v567_v55, %v583_v44  ;;  %v568_v55 = vadd.f32 %v2477_v7, %v2413_v45 }
  0xfe   :  { %v2458_v3 = vpop.permute.xlu1 %549  ;;  %v180_v2 = vmul.f32 0.2, %v164_v20 }
 0x100   :  { %924 = vrot.lane.b32.xlu1 %v2284_v22, %s2093_s15  ;;  %v2470_v22 = vpop.permute.xlu0 %152  ;;  %v196_v25 = vmax.f32 %v164_v20, %v180_v2 }
 0x102   :  { %v2468_v63 = vpop.permute.xlu1 %157 }
 0x106   :  { %v2479_v23 = vpop.permute.xlu1 %553 }
 0x118   :  { %v267_v32 = vpop.permute.xlu1 %266  ;;  %v282_v33 = vpop.permute.xlu0 %281 }
 0x119   :  { %v344_v34 = vsub.f32 %v196_v25, %v267_v32  ;;  %v347_v50 = vsub.f32 %v199_v48, %v282_v33  ;;  %v1667_v25 = vunpack.c.h.bf16 %v2496_v62  ;;  %v584_v48 = vmul.f32 0.2, %v568_v55 }
 0x11b   :  { %v360_v36 = vmul.f32 1.442695, %v344_v34  ;;  %v366_v27 = vmul.f32 1.442695, %v347_v50  ;;  %v198_v34 = vmax.f32 %v166_v38, %v182_v54  ;;  %v170_v38 = vadd.f32 %v2463_v61, %v2456_v60 }
 0x11c   :  { %v272_v24 = vpop.permute.xlu1 %271  ;;  %v200_v60 = vmax.f32 %v168_v12, %v184_v14 }
 0x11d   :  { %1867 = vpow2.f32 %v360_v36  ;;  %v345_v26 = vsub.f32 %v197_v47, %v272_v24  ;;  %v682_v21 = vpop.permute.xlu0 %681 }
 0x11e   :  { %v747_v31 = vsub.f32 %v599_v58, %v682_v21  ;;  %v600_v58 = vmax.f32 %v568_v55, %v584_v48 }
 0x11f   :  { %v362_v39 = vmul.f32 1.442695, %v345_v26 }
 0x120   :  { %v766_v26 = vmul.f32 1.442695, %v747_v31 }
 0x121   :  { %1869 = vpow2.f32 %v362_v39  ;;  %v667_v42 = vpop.permute.xlu1 %666  ;;  %v2491_v17 = vpop.permute.xlu0 %686 }
 0x122   :  { %v744_v49 = vsub.f32 %v596_v41, %v667_v42  ;;  %v169_v41 = vadd.f32 %v2463_v61, %v2383_v4  ;;  %v1696_v4 = vld [vmem:[%s3271_s3 + $0x8] sm:$0xff]   ;;  %v748_v35 = vsub.f32 %v600_v58, %v2491_v17 }
 0x124   :  { %v760_v51 = vmul.f32 1.442695, %v744_v49 }
 0x125   :  { %v672_v29 = vpop.permute.xlu1 %671 }
 0x126   :  { %1871 = vpow2.f32 %v760_v51  ;;  %v745_v20 = vsub.f32 %v597_v18, %v672_v29  ;;  %v2501_v2 = vpop.permute.xlu0 %296  ;;  %v185_v51 = vmul.f32 0.2, %v169_v41  ;;  %v186_v18 = vmul.f32 0.2, %v170_v38 }
 0x127   :  { %v1868_v5 = vpop.eup %1867  ;;  %v569_v29 = vadd.f32 %v2477_v7, %v2387_v6 }
 0x128   :  { %v762_v32 = vmul.f32 1.442695, %v745_v20  ;;  %v2504_v33 = vmul.f32 %v1868_v5, %v1666_v9  ;;  %v201_v6 = vmax.f32 %v169_v41, %v185_v51 }
 0x129   :  { %v585_v12 = vmul.f32 0.2, %v569_v29 }
 0x12a   :  { %1873 = vpow2.f32 %v762_v32  ;;  %v277_v36 = vpop.permute.xlu1 %276  ;;  %408 = vadd.xlane.f32.xlu1 %v2504_v33  ;;  %v571_v32 = vadd.f32 %v2477_v7, %v2422_v52 }
 0x12b   :  { %v1870_v47 = vpop.eup %1869  ;;  %v346_v0 = vsub.f32 %v198_v34, %v277_v36  ;;  %v2514_v24 = vpop.permute.xlu0 %701  ;;  %1875 = vpow2.f32 %v366_v27  ;;  %v1671_v27 = vunpack.c.h.bf16 %v1696_v4  ;;  %v1670_v34 = vunpack.c.l.bf16 %v1696_v4 }
 0x12c   :  { %v2516_v21 = vmul.f32 %v1870_v47, %v1667_v25  ;;  %v202_v36 = vmax.f32 %v170_v38, %v186_v18  ;;  %v587_v17 = vmul.f32 0.2, %v571_v32  ;;  %v768_v38 = vmul.f32 1.442695, %v748_v35 }
 0x12d   :  { %v364_v39 = vmul.f32 1.442695, %v346_v0  ;;  %v570_v4 = vadd.f32 %v2477_v7, %v2401_v8 }
 0x12e   :  { %410 = vadd.xlane.f32.xlu0 %v2516_v21 }
 0x12f   :  { %1877 = vpow2.f32 %v364_v39  ;;  %v677_v42 = vpop.permute.xlu1 %676  ;;  %v2533_v62 = vpop.permute.xlu0 %706 }
 0x130   :  { %v1872_v45 = vpop.eup %1871  ;;  %1879 = vpow2.f32 %v766_v26  ;;  %v746_v44 = vsub.f32 %v598_v13, %v677_v42  ;;  %v350_v42 = vsub.f32 %v202_v36, %v2501_v2 }
 0x131   :  { %v2535_v49 = vmul.f32 %v1872_v45, %v1666_v9  ;;  %v601_v45 = vmax.f32 %v569_v29, %v585_v12  ;;  %v1697_v29 = vld [vmem:[%s3271_s3 + $0x10] sm:$0xff]  }
 0x132   :  { %v764_v50 = vmul.f32 1.442695, %v746_v44  ;;  %v372_v2 = vmul.f32 1.442695, %v350_v42 }
 0x133   :  { %808 = vadd.xlane.f32.xlu0 %v2535_v49 }
 0x134   :  { %v1874_v54 = vpop.eup %1873  ;;  %1881 = vpow2.f32 %v764_v50  ;;  %v287_v30 = vpop.permute.xlu1 %286 }
 0x135   :  { %v2544_v9 = vpop.permute.xlu0 %316  ;;  %v348_v20 = vsub.f32 %v200_v60, %v287_v30  ;;  %v2546_v5 = vmul.f32 %v1874_v54, %v1667_v25  ;;  %v1876_v31 = vpop.eup %1875  ;;  %v171_v25 = vadd.f32 %v2463_v61, %v2394_v16  ;;  %v603_v60 = vmax.f32 %v571_v32, %v587_v17 }
 0x136   :  { %v2556_v13 = vmul.f32 %v1876_v31, %v1671_v27  ;;  %v1674_v31 = vunpack.c.l.bf16 %v1697_v29 }
 0x137   :  { %v368_v47 = vmul.f32 1.442695, %v348_v20  ;;  %810 = vadd.xlane.f32.xlu1 %v2546_v5  ;;  %v187_v16 = vmul.f32 0.2, %v171_v25  ;;  %v751_v58 = vsub.f32 %v603_v60, %v2514_v24  ;;  %v586_v20 = vmul.f32 0.2, %v570_v4 }
 0x138   :  { %v292_v0 = vpop.permute.xlu1 %291 }
 0x139   :  { %v1878_v26 = vpop.eup %1877  ;;  %1883 = vpow2.f32 %v368_v47  ;;  %v349_v55 = vsub.f32 %v201_v6, %v292_v0  ;;  %v2554_v39 = vpop.permute.xlu0 %721  ;;  %v203_v8 = vmax.f32 %v171_v25, %v187_v16  ;;  %v1675_v6 = vunpack.c.h.bf16 %v1697_v29 }
 0x13a   :  { %v1880_v52 = vpop.eup %1879  ;;  %v2558_v14 = vmul.f32 %v1878_v26, %v1670_v34  ;;  %v774_v12 = vmul.f32 1.442695, %v751_v58  ;;  %v602_v24 = vmax.f32 %v570_v4, %v586_v20 }
 0x13b   :  { %v370_v41 = vmul.f32 1.442695, %v349_v55  ;;  %414 = vadd.xlane.f32.xlu1 %v2556_v13  ;;  %v2563_v48 = vmul.f32 %v1880_v52, %v1671_v27 }
 0x13c   :  { %412 = vadd.xlane.f32.xlu0 %v2558_v14 }
 0x13d   :  { %1885 = vpow2.f32 %v370_v41  ;;  %v692_v44 = vpop.permute.xlu1 %691  ;;  %3283 = vst [vmem:[#allocation2_spill] sm:$0xff] %v2563_v48 }
 0x13e   :  { %v1882_v50 = vpop.eup %1881  ;;  %v749_v51 = vsub.f32 %v601_v45, %v692_v44  ;;  %v2567_v18 = vpop.permute.xlu0 %336  ;;  %1887 = vpow2.f32 %v768_v38  ;;  %v1698_v45 = vld [vmem:[%s3271_s3 + $0x18] sm:$0xff]  }
 0x13f   :  { %814 = vadd.xlane.f32.xlu1 %v2563_v48  ;;  %v2570_v54 = vmul.f32 %v1882_v50, %v1670_v34 }
 0x140   :  { %v770_v30 = vmul.f32 1.442695, %v749_v51  ;;  %v1678_v51 = vunpack.c.l.bf16 %v1698_v45 }
 0x141   :  { %3284 = vst [vmem:[#allocation3_spill] sm:$0xff] %v2570_v54  ;;  %812 = vadd.xlane.f32.xlu0 %v2570_v54 }
 0x142   :  { %1889 = vpow2.f32 %v770_v30  ;;  %v302_v27 = vpop.permute.xlu1 %301 }
 0x143   :  { %v1884_v35 = vpop.eup %1883  ;;  %1891 = vpow2.f32 %v372_v2  ;;  %v351_v32 = vsub.f32 %v203_v8, %v302_v27  ;;  %v546_v36 = vpop.permute.xlu0 %545 }
 0x144   :  { %v576_v34 = vadd.f32 %v2477_v7, %v546_v36  ;;  %v2578_v47 = vmul.f32 %v1884_v35, %v1674_v31 }
 0x145   :  { %v374_v0 = vmul.f32 1.442695, %v351_v32 }
 0x146   :  { %v592_v26 = vmul.f32 0.2, %v576_v34  ;;  %416 = vadd.xlane.f32.xlu1 %v2578_v47 }
 0x147   :  { %v1886_v25 = vpop.eup %1885  ;;  %1893 = vpow2.f32 %v374_v0  ;;  %v697_v55 = vpop.permute.xlu1 %696 }
 0x148   :  { %v558_v52 = vpop.permute.xlu0 %557  ;;  %v750_v17 = vsub.f32 %v602_v24, %v697_v55  ;;  %v2582_v42 = vmul.f32 %v1886_v25, %v1675_v6  ;;  %v608_v41 = vmax.f32 %v576_v34, %v592_v26  ;;  %v1888_v16 = vpop.eup %1887  ;;  %1895 = vpow2.f32 %v774_v12  ;;  %v2603_v24 = vld [vmem:[%s3271_s3 + $0x30] sm:$0xff]   ;;  %v2608_v25 = vld [vmem:[%s3270_s0 + $0x38] sm:$0xff]  }
 0x149   :  { %v579_v38 = vadd.f32 %v2477_v7, %v558_v52  ;;  %v2588_v30 = vmul.f32 %v1888_v16, %v1674_v31  ;;  %v1679_v34 = vunpack.c.h.bf16 %v1698_v45  ;;  %1781 = vmatprep.subr.bf16.mxu0 %v2608_v25 }
 0x14a   :  { %v772_v44 = vmul.f32 1.442695, %v750_v17  ;;  %418 = vadd.xlane.f32.xlu0 %v2582_v42  ;;  %1782 = vmatpush3.bf16.msra.mxu0 %v2608_v25 }
 0x14b   :  { %v595_v50 = vmul.f32 0.2, %v579_v38  ;;  %3285 = vst [vmem:[#allocation4_spill] sm:$0xff] %v2588_v30 }
 0x14c   :  { %v727_v4 = vpop.permute.xlu0 %726  ;;  %v1890_v2 = vpop.eup %1889  ;;  %1897 = vpow2.f32 %v772_v44  ;;  %v2622_v44 = vld [vmem:[%s3271_s3 + $0x38] sm:$0xff]  }
 0x14d   :  { %v756_v60 = vsub.f32 %v608_v41, %v727_v4  ;;  %v307_v29 = vpop.permute.xlu1 %306  ;;  %v611_v58 = vmax.f32 %v579_v38, %v595_v50  ;;  %v1892_v8 = vpop.eup %1891  ;;  %v2590_v20 = vmul.f32 %v1890_v2, %v1675_v6  ;;  %v3277_v41 = vunpack.c.l.bf16 %v2603_v24 }
 0x14e   :  { %816 = vadd.xlane.f32.xlu0 %v2588_v30  ;;  %v2594_v12 = vmul.f32 %v1892_v8, %v1678_v51  ;;  %v3276_v4 = vunpack.c.h.bf16 %v2622_v44  ;;  %v574_v30 = vadd.f32 %v2477_v7, %v2443_v1 }
 0x14f   :  { %3286 = vst [vmem:[#allocation5_spill] sm:$0xff] %v2590_v20  ;;  %v784_v27 = vmul.f32 1.442695, %v756_v60  ;;  %818 = vadd.xlane.f32.xlu1 %v2590_v20 }
 0x150   :  { %v742_v35 = vpop.permute.xlu0 %741 }
 0x151   :  { %1899 = vpow2.f32 %v784_v27  ;;  %v759_v32 = vsub.f32 %v611_v58, %v742_v35  ;;  %v312_v36 = vpop.permute.xlu1 %311  ;;  %v1894_v0 = vpop.eup %1893  ;;  %v172_v27 = vadd.f32 %v2463_v61, %v2406_v40  ;;  %v173_v35 = vadd.f32 %v2463_v61, %v2411_v43 }
 0x152   :  { %420 = vadd.xlane.f32.xlu0 %v2594_v12  ;;  %v2597_v31 = vmul.f32 %v1894_v0, %v1679_v34  ;;  %v1896_v6 = vpop.eup %1895  ;;  %v573_v0 = vadd.f32 %v2477_v7, %v2417_v11  ;;  %v175_v40 = vadd.f32 %v2463_v61, %v2424_v53 }
 0x153   :  { %v790_v26 = vmul.f32 1.442695, %v759_v32  ;;  %v2610_v17 = vmul.f32 %v1896_v6, %v1679_v34  ;;  %v188_v34 = vmul.f32 0.2, %v172_v27  ;;  %v572_v6 = vadd.f32 %v2477_v7, %v2432_v28 }
 0x154   :  { %422 = vadd.xlane.f32.xlu1 %v2597_v31  ;;  %v191_v11 = vmul.f32 0.2, %v175_v40  ;;  %v575_v28 = vadd.f32 %v2477_v7, %v2446_v56 }
 0x155   :  { %1901 = vpow2.f32 %v790_v26  ;;  %v712_v55 = vpop.permute.xlu1 %711  ;;  %v189_v26 = vmul.f32 0.2, %v173_v35  ;;  %v204_v43 = vmax.f32 %v172_v27, %v188_v34 }
 0x156   :  { %v1898_v52 = vpop.eup %1897 }
 0x157   :  { %v2613_v38 = vmul.f32 %v1898_v52, %v1678_v51  ;;  %v589_v52 = vmul.f32 0.2, %v573_v0 }
 0x158   :  { %822 = vadd.xlane.f32.xlu1 %v2610_v17 }
 0x159   :  { %3287 = vst [vmem:[#allocation6_spill] sm:$0xff] %v2613_v38  ;;  %820 = vadd.xlane.f32.xlu0 %v2613_v38  ;;  %v605_v20 = vmax.f32 %v573_v0, %v589_v52 }
 0x15a   :  { %v322_v16 = vpop.permute.xlu1 %321 }
 0x15b   :  { %v1900_v45 = vpop.eup %1899  ;;  %v753_v34 = vsub.f32 %v605_v20, %v712_v55 }
 0x15c   :  { %v2626_v50 = vmul.f32 %v1900_v45, %v3277_v41  ;;  %v588_v45 = vmul.f32 0.2, %v572_v6 }
 0x15d   :  { %v778_v56 = vmul.f32 1.442695, %v753_v34 }
 0x15e   :  { %v604_v53 = vmax.f32 %v572_v6, %v588_v45 }
 0x15f   :  { %v1902_v51 = vpop.eup %1901  ;;  %v717_v2 = vpop.permute.xlu1 %716 }
 0x160   :  { %v2631_v60 = vmul.f32 %v1902_v51, %v3276_v4  ;;  %v174_v51 = vadd.f32 %v2463_v61, %v2465_v10  ;;  %v352_v4 = vsub.f32 %v204_v43, %v307_v29  ;;  %v752_v38 = vsub.f32 %v604_v53, %v2533_v62  ;;  %v923_v29 = vpop.permute.xlu0 %922  ;;  %v1700_v53 = vld [vmem:[%s3271_s3 + $0x28] sm:$0xff]  }
 0x161   :  { %v590_v43 = vmul.f32 0.2, %v574_v30 }
 0x162   :  { %v190_v54 = vmul.f32 0.2, %v174_v51  ;;  %v376_v27 = vmul.f32 1.442695, %v352_v4  ;;  %v776_v1 = vmul.f32 1.442695, %v752_v38 }
 0x163   :  { %v606_v62 = vmax.f32 %v574_v30, %v590_v43 }
 0x164   :  { %v2633_v58 = vpop.permute.xlu1 %326  ;;  %1903 = vpow2.f32 %v376_v27 }
 0x165   :  { %v754_v52 = vsub.f32 %v606_v62, %v717_v2 }
 0x167   :  { %v780_v38 = vmul.f32 1.442695, %v754_v52 }
 0x168   :  { %v2635_v8 = vpop.permute.xlu1 %331 }
 0x169   :  { %928 = vrot.lane.b32.xlu1 %v2437_v15, %s2093_s15 }
 0x16d   :  { %v2643_v32 = vpop.permute.xlu1 %731 }
 0x16f   :  { %926 = vrot.lane.b32.xlu0 %v2430_v19, %s2093_s15  ;;  %v205_v19 = vmax.f32 %v173_v35, %v189_v26  ;;  %v207_v26 = vmax.f32 %v175_v40, %v191_v11 }
 0x171   :  { %v353_v41 = vsub.f32 %v205_v19, %v312_v36  ;;  %v591_v36 = vmul.f32 0.2, %v575_v28  ;;  %v206_v19 = vmax.f32 %v174_v51, %v190_v54  ;;  %v355_v0 = vsub.f32 %v207_v26, %v322_v16  ;;  %v1904_v16 = vpop.eup %1903 }
 0x172   :  { %v2651_v15 = vpop.permute.xlu1 %341 }
 0x173   :  { %v378_v10 = vmul.f32 1.442695, %v353_v41  ;;  %v354_v6 = vsub.f32 %v206_v19, %v2544_v9  ;;  %v607_v55 = vmax.f32 %v575_v28, %v591_v36  ;;  %v382_v4 = vmul.f32 1.442695, %v355_v0  ;;  %v1699_v9 = vld [vmem:[%s3271_s3 + $0x20] sm:$0xff]  }
 0x174   :  { %v1683_v30 = vunpack.c.h.bf16 %v1699_v9  ;;  %v1682_v51 = vunpack.c.l.bf16 %v1699_v9  ;;  %v1687_v36 = vunpack.c.h.bf16 %v1700_v53 }
 0x175   :  { %1905 = vpow2.f32 %v378_v10  ;;  %v755_v41 = vsub.f32 %v607_v55, %v2554_v39  ;;  %v380_v54 = vmul.f32 1.442695, %v354_v6  ;;  %v176_v6 = vadd.f32 %v2463_v61, %v2450_v57 }
 0x176   :  { %1907 = vpow2.f32 %v778_v56  ;;  %v2669_v39 = vmul.f32 %v1904_v16, %v1682_v51  ;;  %v577_v55 = vadd.f32 %v2477_v7, %v2458_v3 }
 0x177   :  { %v2657_v48 = vpop.permute.xlu1 %736  ;;  %1909 = vpow2.f32 %v776_v1  ;;  %v782_v40 = vmul.f32 1.442695, %v755_v41  ;;  %v192_v62 = vmul.f32 0.2, %v176_v6 }
 0x178   :  { %1911 = vpow2.f32 %v382_v4  ;;  %v593_v4 = vmul.f32 0.2, %v577_v55 }
 0x179   :  { %1913 = vpow2.f32 %v380_v54  ;;  %v179_v54 = vadd.f32 %v2463_v61, %v2468_v63  ;;  %v208_v52 = vmax.f32 %v176_v6, %v192_v62  ;;  %v1691_v62 = vunpack.c.h.bf16 %v2603_v24 }
 0x17a   :  { %1915 = vpow2.f32 %v782_v40  ;;  %v609_v3 = vmax.f32 %v577_v55, %v593_v4  ;;  %v3288_v4 = vunpack.c.l.bf16 %v2603_v24  ;;  %v1694_v24 = vunpack.c.l.bf16 %v2622_v44 }
 0x17b   :  { %v921_v35 = vpop.permute.xlu1 %920  ;;  %1917 = vpow2.f32 %v780_v38  ;;  %v356_v40 = vsub.f32 %v208_v52, %v2633_v58  ;;  %v195_v38 = vmul.f32 0.2, %v179_v54 }
 0x17c   :  { %1735 = vmatprep.subr.bf16.mxu1 %v921_v35 }
 0x17d   :  { %1736 = vmatpush3.bf16.msra.mxu1 %v921_v35  ;;  %v1686_v35 = vunpack.c.l.bf16 %v1700_v53  ;;  %v384_v63 = vmul.f32 1.442695, %v356_v40 }
 0x17e   :  { %1737 = vmatprep.subr.bf16.mxu1 %v923_v29 }
 0x17f   :  { %v925_v20 = vpop.permute.xlu1 %924  ;;  %v1906_v45 = vpop.eup %1905 }
 0x180   :  { %v1908_v11 = vpop.eup %1907  ;;  %v2671_v28 = vmul.f32 %v1906_v45, %v1683_v30 }
 0x181   :  { %1738 = vmatpush3.bf16.msra.mxu1 %v923_v29  ;;  %v1910_v2 = vpop.eup %1909  ;;  %v2678_v27 = vmul.f32 %v1908_v11, %v1683_v30  ;;  %v757_v30 = vsub.f32 %v609_v3, %v2643_v32 }
 0x182   :  { %1739 = vmatprep.subr.bf16.mxu1 %v925_v20  ;;  %v1912_v34 = vpop.eup %1911  ;;  %v2680_v10 = vmul.f32 %v1910_v2, %v1682_v51 }
 0x183   :  { %v1914_v29 = vpop.eup %1913  ;;  %v2684_v26 = vmul.f32 %v1912_v34, %v1687_v36  ;;  %v786_v58 = vmul.f32 1.442695, %v757_v30 }
 0x184   :  { %v1916_v43 = vpop.eup %1915  ;;  %v2686_v19 = vmul.f32 %v1914_v29, %v1686_v35 }
 0x185   :  { %1740 = vmatpush3.bf16.msra.mxu1 %v925_v20  ;;  %v1918_v56 = vpop.eup %1917  ;;  %v2690_v0 = vmul.f32 %v1916_v43, %v1687_v36  ;;  %v177_v20 = vadd.f32 %v2463_v61, %v2454_v59 }
 0x186   :  { %v2692_v1 = vmul.f32 %v1918_v56, %v1686_v35 }
 0x187   :  { %v193_v41 = vmul.f32 0.2, %v177_v20 }
 0x189   :  { %v209_v57 = vmax.f32 %v177_v20, %v193_v41 }
 0x18b   :  { %v357_v9 = vsub.f32 %v209_v57, %v2635_v8 }
 0x18d   :  { %424 = vadd.xlane.f32.xlu1 %v2669_v39  ;;  %v386_v51 = vmul.f32 1.442695, %v357_v9 }
 0x18e   :  { %426 = vadd.xlane.f32.xlu0 %v2671_v28 }
 0x191   :  { %826 = vadd.xlane.f32.xlu1 %v2678_v27 }
 0x192   :  { %824 = vadd.xlane.f32.xlu0 %v2680_v10 }
 0x195   :  { %430 = vadd.xlane.f32.xlu1 %v2684_v26 }
 0x196   :  { %428 = vadd.xlane.f32.xlu0 %v2686_v19 }
 0x199   :  { %830 = vadd.xlane.f32.xlu1 %v2690_v0 }
 0x19a   :  { %828 = vadd.xlane.f32.xlu0 %v2692_v1 }
 0x1aa   :  { %932 = vrot.lane.b32.xlu1 %v2521_v37, %s2093_s15  ;;  %v178_v37 = vadd.f32 %v2463_v61, %v2470_v22  ;;  %v211_v61 = vmax.f32 %v179_v54, %v195_v38 }
 0x1ac   :  { %v194_v16 = vmul.f32 0.2, %v178_v37  ;;  %v359_v8 = vsub.f32 %v211_v61, %v2651_v15 }
 0x1ae   :  { %v210_v11 = vmax.f32 %v178_v37, %v194_v16 }
 0x1b0   :  { %930 = vrot.lane.b32.xlu0 %v2510_v46, %s2093_s15  ;;  %v578_v46 = vadd.f32 %v2477_v7, %v2479_v23  ;;  %v358_v2 = vsub.f32 %v210_v11, %v2567_v18  ;;  %v390_v23 = vmul.f32 1.442695, %v359_v8 }
 0x1b2   :  { %v594_v22 = vmul.f32 0.2, %v578_v46  ;;  %v388_v34 = vmul.f32 1.442695, %v358_v2 }
 0x1b4   :  { %v610_v7 = vmax.f32 %v578_v46, %v594_v22 }
 0x1b6   :  { %v758_v35 = vsub.f32 %v610_v7, %v2657_v48 }
 0x1b7   :  { %v409_v59 = vpop.xlane.xlu1 %408 }
 0x1b8   :  { %1919 = vrcp.f32 %v409_v59  ;;  %v788_v18 = vmul.f32 1.442695, %v758_v35 }
 0x1bb   :  { %v411_v45 = vpop.xlane.xlu0 %410 }
 0x1bc   :  { %1921 = vrcp.f32 %v411_v45  ;;  %v3289_v45 = vunpack.c.h.bf16 %v2622_v44 }
 0x1bd   :  { %1923 = vpow2.f32 %v384_v63 }
 0x1be   :  { %1925 = vpow2.f32 %v386_v51 }
 0x1bf   :  { %1927 = vpow2.f32 %v786_v58 }
 0x1c0   :  { %v809_v53 = vpop.xlane.xlu0 %808 }
 0x1c1   :  { %1929 = vrcp.f32 %v809_v53 }
 0x1c2   :  { %v1920_v32 = vpop.eup %1919 }
 0x1c3   :  { %v456_v43 = vmul.f32 %v1920_v32, %v2504_v33 }
 0x1c4   :  { %v811_v29 = vpop.xlane.xlu1 %810 }
 0x1c5   :  { %1931 = vrcp.f32 %v811_v29 }
 0x1c6   :  { %v1922_v36 = vpop.eup %1921  ;;  %1933 = vpow2.f32 %v390_v23 }
 0x1c7   :  { %v457_v15 = vmul.f32 %v1922_v36, %v2516_v21  ;;  %1935 = vpow2.f32 %v388_v34  ;;  %v1924_v6 = vpop.eup %1923 }
 0x1c8   :  { %v415_v56 = vpop.xlane.xlu1 %414  ;;  %v1926_v41 = vpop.eup %1925  ;;  %v2723_v54 = vmul.f32 %v1924_v6, %v3288_v4 }
 0x1c9   :  { %1937 = vrcp.f32 %v415_v56  ;;  %v413_v20 = vpop.xlane.xlu0 %412  ;;  %v472_v55 = vpack.c.bf16 %v457_v15, %v456_v43  ;;  %v1928_v48 = vpop.eup %1927  ;;  %v2725_v21 = vmul.f32 %v1926_v41, %v1691_v62 }
 0x1ca   :  { %1939 = vrcp.f32 %v413_v20  ;;  %v2731_v57 = vmul.f32 %v1928_v48, %v1691_v62  ;;  %v3290_v62 = vld [vmem:[#allocation6_spill] sm:$0xff] }
 0x1cb   :  { %1783 = vmatprep.mubr.bf16.mxu0 %v472_v55  ;;  %1941 = vpow2.f32 %v788_v18  ;;  %v1930_v33 = vpop.eup %1929 }
 0x1cc   :  { %v2728_v37 = vpop.xlane.xlu1 %814  ;;  %v856_v40 = vmul.f32 %v1930_v33, %v2535_v49 }
 0x1ce   :  { %432 = vadd.xlane.f32.xlu1 %v2723_v54  ;;  %v2737_v16 = vpop.xlane.xlu0 %812 }
 0x1cf   :  { %v1932_v52 = vpop.eup %1931  ;;  %434 = vadd.xlane.f32.xlu0 %v2725_v21 }
 0x1d0   :  { %v857_v59 = vmul.f32 %v1932_v52, %v2546_v5  ;;  %v1934_v9 = vpop.eup %1933 }
 0x1d1   :  { %v1936_v3 = vpop.eup %1935  ;;  %v2742_v49 = vmul.f32 %v1934_v9, %v3289_v45 }
 0x1d2   :  { %834 = vadd.xlane.f32.xlu1 %v2731_v57  ;;  %v872_v38 = vpack.c.bf16 %v857_v59, %v856_v40  ;;  %v2745_v51 = vmul.f32 %v1936_v3, %v1694_v24 }
 0x1d3   :  { %v1938_v46 = vpop.eup %1937  ;;  %832 = vadd.xlane.f32.xlu0 %v2626_v50  ;;  %v417_v30 = vpop.xlane.xlu1 %416 }
 0x1d4   :  { %v1940_v63 = vpop.eup %1939  ;;  %1751 = vmatprep.mubr.bf16.mxu1 %v872_v38  ;;  %v459_v5 = vmul.f32 %v1938_v46, %v2556_v13  ;;  %1943 = vrcp.f32 %v417_v30 }
 0x1d5   :  { %v458_v61 = vmul.f32 %v1940_v63, %v2558_v14  ;;  %v1942_v22 = vpop.eup %1941 }
 0x1d6   :  { %438 = vadd.xlane.f32.xlu1 %v2742_v49  ;;  %v2750_v8 = vmul.f32 %v1942_v22, %v1694_v24 }
 0x1d7   :  { %436 = vadd.xlane.f32.xlu0 %v2745_v51  ;;  %v419_v11 = vpop.xlane.xlu0 %418  ;;  %v473_v58 = vpack.c.bf16 %v459_v5, %v458_v61 }
 0x1d8   :  { %1945 = vrcp.f32 %v419_v11 }
 0x1d9   :  { %1784 = vmatmul.mubr.bf16.vlgmr.msra.gmra.mrb[0].mxu0 %v473_v58 }
 0x1da   :  { %838 = vadd.xlane.f32.xlu1 %v2631_v60 }
 0x1db   :  { %836 = vadd.xlane.f32.xlu0 %v2750_v8  ;;  %v2754_v13 = vpop.xlane.xlu0 %816 }
 0x1dc   :  { %v2756_v44 = vpop.xlane.xlu1 %818 }
 0x1de   :  { %v1944_v2 = vpop.eup %1943 }
 0x1df   :  { %v421_v14 = vpop.xlane.xlu0 %420  ;;  %v460_v23 = vmul.f32 %v1944_v2, %v2578_v47 }
 0x1e0   :  { %1947 = vrcp.f32 %v421_v14 }
 0x1e1   :  { %v423_v53 = vpop.xlane.xlu1 %422 }
 0x1e2   :  { %v1946_v7 = vpop.eup %1945  ;;  %1949 = vrcp.f32 %v423_v53 }
 0x1e3   :  { %v461_v32 = vmul.f32 %v1946_v7, %v2582_v42 }
 0x1e5   :  { %v823_v34 = vpop.xlane.xlu1 %822  ;;  %v474_v35 = vpack.c.bf16 %v461_v32, %v460_v23 }
 0x1e6   :  { %1951 = vrcp.f32 %v823_v34  ;;  %v821_v29 = vpop.xlane.xlu0 %820 }
 0x1e7   :  { %1953 = vrcp.f32 %v821_v29  ;;  %1787 = vmatprep.mubr.bf16.mxu0 %v474_v35 }
 0x1e9   :  { %v929_v15 = vpop.permute.xlu1 %928 }
 0x1ea   :  { %v1948_v36 = vpop.eup %1947  ;;  %v927_v43 = vpop.permute.xlu0 %926 }
 0x1eb   :  { %1741 = vmatprep.subr.bf16.mxu1 %v927_v43  ;;  %v462_v56 = vmul.f32 %v1948_v36, %v2594_v12 }
 0x1ec   :  { %v1950_v18 = vpop.eup %1949  ;;  %1742 = vmatpush3.bf16.msra.mxu1 %v927_v43 }
 0x1ed   :  { %v463_v6 = vmul.f32 %v1950_v18, %v2597_v31  ;;  %1743 = vmatprep.subr.bf16.mxu1 %v929_v15 }
 0x1ef   :  { %v475_v47 = vpack.c.bf16 %v463_v6, %v462_v56  ;;  %v3291_v56 = vld [vmem:[#allocation3_spill] sm:$0xff] }
 0x1f0   :  { %v1952_v20 = vpop.eup %1951  ;;  %1744 = vmatpush3.bf16.msra.mxu1 %v929_v15 }
 0x1f1   :  { %v1954_v42 = vpop.eup %1953  ;;  %1788 = vmatmul.mubr.bf16.gmra.mrb[4].mxu0 %v475_v47  ;;  %934 = vrot.lane.b32.xlu0 %v2608_v25, %s2093_s15  ;;  %v2765_v55 = vmul.f32 %v1952_v20, %v2610_v17  ;;  %v3292_v47 = vld [vmem:[#allocation4_spill] sm:$0xff] }
 0x1f2   :  { %v2768_v41 = vmul.f32 %v1954_v42, %v3290_v62  ;;  %v3293_v42 = vld [vmem:[#allocation5_spill] sm:$0xff] }
 0x1f4   :  { %v875_v12 = vpack.c.bf16 %v2765_v55, %v2768_v41 }
 0x21a   :  { %v425_v48 = vpop.xlane.xlu1 %424 }
 0x21b   :  { %1955 = vrcp.f32 %v425_v48  ;;  %v427_v31 = vpop.xlane.xlu0 %426  ;;  %v3294_v48 = vld [vmem:[#allocation2_spill] sm:$0xff] }
 0x21c   :  { %1957 = vrcp.f32 %v427_v31 }
 0x21e   :  { %v827_v4 = vpop.xlane.xlu1 %826 }
 0x21f   :  { %1959 = vrcp.f32 %v827_v4  ;;  %v825_v33 = vpop.xlane.xlu0 %824 }
 0x220   :  { %1961 = vrcp.f32 %v825_v33 }
 0x222   :  { %v431_v52 = vpop.xlane.xlu1 %430 }
 0x223   :  { %1963 = vrcp.f32 %v431_v52  ;;  %v429_v25 = vpop.xlane.xlu0 %428 }
 0x224   :  { %1965 = vrcp.f32 %v429_v25 }
 0x225   :  { %v1956_v17 = vpop.eup %1955 }
 0x226   :  { %v1958_v40 = vpop.eup %1957  ;;  %v831_v59 = vpop.xlane.xlu1 %830  ;;  %v464_v9 = vmul.f32 %v1956_v17, %v2669_v39 }
 0x227   :  { %1967 = vrcp.f32 %v831_v59  ;;  %v829_v24 = vpop.xlane.xlu0 %828  ;;  %v465_v3 = vmul.f32 %v1958_v40, %v2671_v28 }
 0x228   :  { %1969 = vrcp.f32 %v829_v24 }
 0x229   :  { %v1960_v38 = vpop.eup %1959  ;;  %v476_v46 = vpack.c.bf16 %v465_v3, %v464_v9  ;;  %1971 = vrcp.f32 %v2737_v16 }
 0x22a   :  { %v1962_v30 = vpop.eup %1961  ;;  %v2775_v63 = vmul.f32 %v1960_v38, %v2678_v27  ;;  %v933_v5 = vpop.permute.xlu1 %932 }
 0x22b   :  { %v931_v45 = vpop.permute.xlu0 %930  ;;  %1791 = vmatprep.mubr.bf16.mxu0 %v476_v46  ;;  %v2778_v61 = vmul.f32 %v1962_v30, %v2680_v10 }
 0x22c   :  { %1745 = vmatprep.subr.bf16.mxu1 %v931_v45 }
 0x22d   :  { %v1964_v22 = vpop.eup %1963  ;;  %1746 = vmatpush3.bf16.msra.mxu1 %v931_v45  ;;  %v876_v39 = vpack.c.bf16 %v2775_v63, %v2778_v61 }
 0x22e   :  { %v1966_v28 = vpop.eup %1965  ;;  %v467_v11 = vmul.f32 %v1964_v22, %v2684_v26  ;;  %1747 = vmatprep.subr.bf16.mxu1 %v933_v5 }
 0x22f   :  { %v466_v58 = vmul.f32 %v1966_v28, %v2686_v19 }
 0x231   :  { %v1968_v27 = vpop.eup %1967  ;;  %v477_v14 = vpack.c.bf16 %v467_v11, %v466_v58  ;;  %1748 = vmatpush3.bf16.msra.mxu1 %v933_v5 }
 0x232   :  { %v1970_v2 = vpop.eup %1969  ;;  %v867_v53 = vmul.f32 %v1968_v27, %v2690_v0 }
 0x233   :  { %1792 = vmatmul.mubr.bf16.gmra.mrb[8].mxu0 %v477_v14  ;;  %v866_v10 = vmul.f32 %v1970_v2, %v2692_v1  ;;  %v1972_v35 = vpop.eup %1971 }
 0x234   :  { %v858_v6 = vmul.f32 %v1972_v35, %v3291_v56 }
 0x235   :  { %v877_v7 = vpack.c.bf16 %v867_v53, %v866_v10 }
 0x25b   :  { %v433_v23 = vpop.xlane.xlu1 %432 }
 0x25c   :  { %1973 = vrcp.f32 %v433_v23  ;;  %v435_v32 = vpop.xlane.xlu0 %434 }
 0x25d   :  { %1975 = vrcp.f32 %v435_v32 }
 0x25e   :  { %1977 = vrcp.f32 %v2754_v13 }
 0x25f   :  { %1979 = vrcp.f32 %v2756_v44  ;;  %v835_v26 = vpop.xlane.xlu1 %834 }
 0x260   :  { %1981 = vrcp.f32 %v2728_v37  ;;  %v833_v19 = vpop.xlane.xlu0 %832 }
 0x263   :  { %v439_v34 = vpop.xlane.xlu1 %438 }
 0x264   :  { %1983 = vrcp.f32 %v439_v34  ;;  %v437_v0 = vpop.xlane.xlu0 %436 }
 0x265   :  { %1985 = vrcp.f32 %v437_v0 }
 0x266   :  { %v1974_v1 = vpop.eup %1973  ;;  %1987 = vrcp.f32 %v835_v26 }
 0x267   :  { %v1976_v29 = vpop.eup %1975  ;;  %v468_v16 = vmul.f32 %v1974_v1, %v2723_v54  ;;  %1989 = vrcp.f32 %v833_v19  ;;  %v839_v17 = vpop.xlane.xlu1 %838 }
 0x268   :  { %v1978_v36 = vpop.eup %1977  ;;  %v837_v43 = vpop.xlane.xlu0 %836  ;;  %v469_v15 = vmul.f32 %v1976_v29, %v2725_v21  ;;  %1991 = vrcp.f32 %v839_v17 }
 0x269   :  { %v1980_v13 = vpop.eup %1979  ;;  %v860_v20 = vmul.f32 %v1978_v36, %v3292_v47  ;;  %1993 = vrcp.f32 %v837_v43 }
 0x26a   :  { %v1982_v18 = vpop.eup %1981  ;;  %v478_v44 = vpack.c.bf16 %v469_v15, %v468_v16  ;;  %v861_v62 = vmul.f32 %v1980_v13, %v3293_v42 }
 0x26b   :  { %v859_v31 = vmul.f32 %v1982_v18, %v3294_v48 }
 0x26c   :  { %v935_v37 = vpop.permute.xlu0 %934  ;;  %1795 = vmatprep.mubr.bf16.mxu0 %v478_v44  ;;  %v874_v52 = vpack.c.bf16 %v861_v62, %v860_v20 }
 0x26d   :  { %1749 = vmatprep.subr.bf16.mxu1 %v935_v37  ;;  %v873_v21 = vpack.c.bf16 %v859_v31, %v858_v6 }
 0x26e   :  { %v1984_v4 = vpop.eup %1983  ;;  %1750 = vmatpush3.bf16.msra.mxu1 %v935_v37 }
 0x26f   :  { %v1986_v54 = vpop.eup %1985  ;;  %v471_v33 = vmul.f32 %v1984_v4, %v2742_v49 }
 0x270   :  { %v470_v25 = vmul.f32 %v1986_v54, %v2745_v51  ;;  %v1988_v59 = vpop.eup %1987 }
 0x271   :  { %1752 = vmatmul.mubr.bf16.vlgmr.msra.gmra.mrb[0].mxu1 %v873_v21  ;;  %v1990_v9 = vpop.eup %1989  ;;  %v869_v49 = vmul.f32 %v1988_v59, %v2731_v57 }
 0x272   :  { %1755 = vmatprep.mubr.bf16.mxu1 %v874_v52  ;;  %v479_v40 = vpack.c.bf16 %v471_v33, %v470_v25  ;;  %v868_v24 = vmul.f32 %v1990_v9, %v2626_v50  ;;  %v1992_v3 = vpop.eup %1991 }
 0x273   :  { %v1994_v51 = vpop.eup %1993  ;;  %v871_v30 = vmul.f32 %v1992_v3, %v2631_v60  ;;  %v2808_v60 = vld [vmem:[%s3272_s4] ss:$0 sm:$0xff] }
 0x274   :  { %1796 = vmatmul.mubr.bf16.gmra.mrb[12].mxu0 %v479_v40  ;;  %v878_v38 = vpack.c.bf16 %v869_v49, %v868_v24  ;;  %v870_v46 = vmul.f32 %v1994_v51, %v2750_v8 }
 0x276   :  { %v879_v63 = vpack.c.bf16 %v871_v30, %v870_v46 }
 0x279   :  { %1756 = vmatmul.mubr.bf16.gmra.mrb[4].mxu1 %v875_v12 }
 0x27a   :  { %1759 = vmatprep.mubr.bf16.mxu1 %v876_v39 }
 0x281   :  { %1760 = vmatmul.mubr.bf16.gmra.mrb[8].mxu1 %v877_v7 }
 0x282   :  { %1763 = vmatprep.mubr.bf16.mxu1 %v878_v38 }
 0x289   :  { %1764 = vmatmul.mubr.bf16.gmra.mrb[12].mxu1 %v879_v63 }
 0x2ac   :  { %v1785_v45 = vpop.f32.mrb[0].mxu0 }
 0x2ad   :  { %v1083_v5 = vpop.f32.mrb[1].mxu0 }
 0x2ae   :  { %v1786_v55 = vpop.f32.mrb[2].mxu0 }
 0x2af   :  { %v1086_v41 = vpop.f32.mrb[3].mxu0 }
 0x2c4   :  { %v1789_v12 = vpop.f32.mrb[4].mxu0 }
 0x2c5   :  { %v1099_v61 = vpop.f32.mrb[5].mxu0 }
 0x2c6   :  { %v1790_v50 = vpop.f32.mrb[6].mxu0 }
 0x2c7   :  { %v1102_v22 = vpop.f32.mrb[7].mxu0 }
 0x306   :  { %v1793_v57 = vpop.f32.mrb[8].mxu0 }
 0x307   :  { %v1115_v39 = vpop.f32.mrb[9].mxu0 }
 0x308   :  { %v1794_v28 = vpop.f32.mrb[10].mxu0 }
 0x309   :  { %v1118_v11 = vpop.f32.mrb[11].mxu0 }
 0x344   :  { %v1753_v58 = vpop.f32.mrb[0].mxu1 }
 0x345   :  { %v1092_v27 = vadd.f32 %v1785_v45, %v1753_v58  ;;  %v978_v14 = vpop.f32.mrb[1].mxu1 }
 0x346   :  { %v1084_v8 = vadd.f32 %v1083_v5, %v978_v14  ;;  %v1754_v2 = vpop.f32.mrb[2].mxu1 }
 0x347   :  { %v1148_v53 = vmul.f32 0.5, %v1092_v27  ;;  %v1095_v10 = vadd.f32 %v1786_v55, %v1754_v2  ;;  %v981_v7 = vpop.f32.mrb[3].mxu1  ;;  %v1797_v23 = vpop.f32.mrb[12].mxu0 }
 0x348   :  { %v1146_v32 = vmul.f32 0.5, %v1084_v8  ;;  %v1087_v26 = vadd.f32 %v1086_v41, %v981_v7  ;;  %v1131_v19 = vpop.f32.mrb[13].mxu0 }
 0x349   :  { %v2811_v34 = vadd.f32 %v2808_v60, %v1148_v53  ;;  %v1798_v0 = vpop.f32.mrb[14].mxu0  ;;  %v1149_v29 = vmul.f32 0.5, %v1095_v10 }
 0x34a   :  { %v1134_v35 = vpop.f32.mrb[15].mxu0  ;;  %v2814_v1 = vadd.f32 %v2808_v60, %v1146_v32  ;;  %v1147_v13 = vmul.f32 0.5, %v1087_v26 }
 0x34b   :  { %v1192_v16 = vsel %vm1185_vm1, %v2811_v34, 0.0  ;;  %v2819_v56 = vadd.f32 %v2808_v60, %v1149_v29 }
 0x34c   :  { %v1757_v36 = vpop.f32.mrb[4].mxu1  ;;  %1193 = vadd.xlane.f32.xlu1 %v1192_v16  ;;  %v1186_v20 = vsel %vm1185_vm1, %v2814_v1, 0.0  ;;  %v2827_v48 = vadd.f32 %v2808_v60, %v1147_v13 }
 0x34d   :  { %v1108_v43 = vadd.f32 %v1789_v12, %v1757_v36  ;;  %v994_v15 = vpop.f32.mrb[5].mxu1  ;;  %v1195_v54 = vsel %vm1185_vm1, %v2819_v56, 0.0 }
 0x34e   :  { %v1100_v18 = vadd.f32 %v1099_v61, %v994_v15  ;;  %v1758_v44 = vpop.f32.mrb[6].mxu1  ;;  %v1189_v49 = vsel %vm1185_vm1, %v2827_v48, 0.0 }
 0x34f   :  { %v1152_v6 = vmul.f32 0.5, %v1108_v43  ;;  %v1111_v37 = vadd.f32 %v1790_v50, %v1758_v44  ;;  %v997_v47 = vpop.f32.mrb[7].mxu1 }
 0x350   :  { %v1103_v42 = vadd.f32 %v1102_v22, %v997_v47  ;;  %1187 = vadd.xlane.f32.xlu1 %v1186_v20  ;;  %v1150_v31 = vmul.f32 0.5, %v1100_v18 }
 0x351   :  { %v2824_v62 = vadd.f32 %v2808_v60, %v1152_v6  ;;  %v1153_v59 = vmul.f32 0.5, %v1111_v37 }
 0x352   :  { %v2834_v40 = vadd.f32 %v2808_v60, %v1150_v31  ;;  %v1151_v51 = vmul.f32 0.5, %v1103_v42 }
 0x353   :  { %v1204_v4 = vsel %vm1185_vm1, %v2824_v62, 0.0  ;;  %v2839_v38 = vadd.f32 %v2808_v60, %v1153_v59 }
 0x354   :  { %v1761_v21 = vpop.f32.mrb[8].mxu1  ;;  %1205 = vadd.xlane.f32.xlu0 %v1204_v4  ;;  %1196 = vadd.xlane.f32.xlu1 %v1195_v54  ;;  %v1198_v46 = vsel %vm1185_vm1, %v2834_v40, 0.0  ;;  %v2844_v5 = vadd.f32 %v2808_v60, %v1151_v51 }
 0x355   :  { %v1124_v33 = vadd.f32 %v1793_v57, %v1761_v21  ;;  %v1010_v52 = vpop.f32.mrb[9].mxu1  ;;  %v1207_v57 = vsel %vm1185_vm1, %v2839_v38, 0.0 }
 0x356   :  { %v1116_v25 = vadd.f32 %v1115_v39, %v1010_v52  ;;  %v1762_v17 = vpop.f32.mrb[10].mxu1  ;;  %v1201_v14 = vsel %vm1185_vm1, %v2844_v5, 0.0 }
 0x357   :  { %v1127_v9 = vadd.f32 %v1794_v28, %v1762_v17  ;;  %v1013_v24 = vpop.f32.mrb[11].mxu1  ;;  %v1156_v12 = vmul.f32 0.5, %v1124_v33 }
 0x358   :  { %v1119_v3 = vadd.f32 %v1118_v11, %v1013_v24  ;;  %1190 = vadd.xlane.f32.xlu1 %v1189_v49  ;;  %v1154_v58 = vmul.f32 0.5, %v1116_v25 }
 0x359   :  { %v2852_v11 = vadd.f32 %v2808_v60, %v1156_v12  ;;  %v1157_v2 = vmul.f32 0.5, %v1127_v9 }
 0x35a   :  { %v2859_v8 = vadd.f32 %v2808_v60, %v1154_v58  ;;  %v1155_v7 = vmul.f32 0.5, %v1119_v3 }
 0x35b   :  { %v1216_v53 = vsel %vm1185_vm1, %v2852_v11, 0.0  ;;  %v2864_v10 = vadd.f32 %v2808_v60, %v1157_v2 }
 0x35c   :  { %v1765_v30 = vpop.f32.mrb[12].mxu1  ;;  %1199 = vadd.xlane.f32.xlu1 %v1198_v46  ;;  %v2869_v32 = vadd.f32 %v2808_v60, %v1155_v7 }
 0x35d   :  { %v1140_v63 = vadd.f32 %v1797_v23, %v1765_v30  ;;  %v1026_v45 = vpop.f32.mrb[13].mxu1  ;;  %v1210_v23 = vsel %vm1185_vm1, %v2859_v8, 0.0 }
 0x35e   :  { %v1132_v55 = vadd.f32 %v1131_v19, %v1026_v45  ;;  %v1766_v41 = vpop.f32.mrb[14].mxu1  ;;  %v1219_v19 = vsel %vm1185_vm1, %v2864_v10, 0.0  ;;  %v1213_v29 = vsel %vm1185_vm1, %v2869_v32, 0.0 }
 0x35f   :  { %v1160_v61 = vmul.f32 0.5, %v1140_v63  ;;  %v1143_v50 = vadd.f32 %v1798_v0, %v1766_v41  ;;  %v1029_v22 = vpop.f32.mrb[15].mxu1 }
 0x360   :  { %v1135_v39 = vadd.f32 %v1134_v35, %v1029_v22  ;;  %1208 = vadd.xlane.f32.xlu1 %v1207_v57  ;;  %v1158_v26 = vmul.f32 0.5, %v1132_v55 }
 0x361   :  { %v2849_v28 = vadd.f32 %v2808_v60, %v1160_v61  ;;  %v1161_v16 = vmul.f32 0.5, %v1143_v50 }
 0x362   :  { %v2874_v0 = vadd.f32 %v2808_v60, %v1158_v26  ;;  %v1159_v35 = vmul.f32 0.5, %v1135_v39 }
 0x363   :  { %v1228_v27 = vsel %vm1185_vm1, %v2849_v28, 0.0  ;;  %v2884_v15 = vadd.f32 %v2808_v60, %v1161_v16 }
 0x364   :  { %1229 = vadd.xlane.f32.xlu0 %v1228_v27  ;;  %1202 = vadd.xlane.f32.xlu1 %v1201_v14  ;;  %v2879_v36 = vadd.f32 %v2808_v60, %v1159_v35  ;;  %v1222_v43 = vsel %vm1185_vm1, %v2874_v0, 0.0 }
 0x365   :  { %v1231_v18 = vsel %vm1185_vm1, %v2884_v15, 0.0 }
 0x366   :  { %v1225_v13 = vsel %vm1185_vm1, %v2879_v36, 0.0 }
 0x368   :  { %1217 = vadd.xlane.f32.xlu1 %v1216_v53 }
 0x36c   :  { %1211 = vadd.xlane.f32.xlu1 %v1210_v23 }
 0x370   :  { %1220 = vadd.xlane.f32.xlu1 %v1219_v19 }
 0x374   :  { %1214 = vadd.xlane.f32.xlu1 %v1213_v29 }
 0x378   :  { %1223 = vadd.xlane.f32.xlu1 %v1222_v43 }
 0x37c   :  { %1226 = vadd.xlane.f32.xlu1 %v1225_v13 }
 0x380   :  { %1232 = vadd.xlane.f32.xlu1 %v1231_v18 }
 0x3d9   :  { %v1194_v44 = vpop.xlane.xlu1 %1193 }
 0x3da   :  { %v1237_v6 = vmul.f32 0.125, %v1194_v44 }
 0x3dc   :  { %v2891_v37 = vsub.f32 %v2811_v34, %v1237_v6 }
 0x3dd   :  { %v1188_v47 = vpop.xlane.xlu1 %1187 }
 0x3de   :  { %v1235_v20 = vmul.f32 0.125, %v1188_v47  ;;  %v1269_v42 = vmul.f32 %v2891_v37, %v2891_v37 }
 0x3e0   :  { %v2896_v60 = vsub.f32 %v2814_v1, %v1235_v20  ;;  %v1289_v31 = vsel %vm1185_vm1, %v1269_v42, 0.0 }
 0x3e1   :  { %v1206_v4 = vpop.xlane.xlu0 %1205  ;;  %1290 = vadd.xlane.f32.xlu0 %v1289_v31  ;;  %v1197_v54 = vpop.xlane.xlu1 %1196 }
 0x3e2   :  { %v1241_v21 = vmul.f32 0.125, %v1206_v4  ;;  %v1238_v33 = vmul.f32 0.125, %v1197_v54  ;;  %v1267_v52 = vmul.f32 %v2896_v60, %v2896_v60 }
 0x3e4   :  { %v2902_v34 = vsub.f32 %v2824_v62, %v1241_v21  ;;  %v2905_v25 = vsub.f32 %v2819_v56, %v1238_v33  ;;  %v1283_v17 = vsel %vm1185_vm1, %v1267_v52, 0.0 }
 0x3e5   :  { %1284 = vadd.xlane.f32.xlu0 %v1283_v17  ;;  %v1191_v1 = vpop.xlane.xlu1 %1190 }
 0x3e6   :  { %v1236_v59 = vmul.f32 0.125, %v1191_v1  ;;  %v1273_v9 = vmul.f32 %v2902_v34, %v2902_v34  ;;  %v1270_v24 = vmul.f32 %v2905_v25, %v2905_v25 }
 0x3e8   :  { %v2913_v49 = vsub.f32 %v2827_v48, %v1236_v59  ;;  %v1301_v62 = vsel %vm1185_vm1, %v1273_v9, 0.0  ;;  %v1292_v3 = vsel %vm1185_vm1, %v1270_v24, 0.0 }
 0x3e9   :  { %1302 = vadd.xlane.f32.xlu0 %v1301_v62  ;;  %1293 = vadd.xlane.f32.xlu1 %v1292_v3  ;;  %v1200_v56 = vpop.xlane.xlu1 %1199 }
 0x3ea   :  { %v1239_v51 = vmul.f32 0.125, %v1200_v56  ;;  %v1268_v46 = vmul.f32 %v2913_v49, %v2913_v49 }
 0x3ec   :  { %v2920_v30 = vsub.f32 %v2834_v40, %v1239_v51  ;;  %v1286_v63 = vsel %vm1185_vm1, %v1268_v46, 0.0 }
 0x3ed   :  { %1287 = vadd.xlane.f32.xlu1 %v1286_v63  ;;  %v1209_v45 = vpop.xlane.xlu1 %1208 }
 0x3ee   :  { %v1242_v48 = vmul.f32 0.125, %v1209_v45  ;;  %v1271_v55 = vmul.f32 %v2920_v30, %v2920_v30 }
 0x3f0   :  { %v2926_v41 = vsub.f32 %v2839_v38, %v1242_v48  ;;  %v1295_v12 = vsel %vm1185_vm1, %v1271_v55, 0.0 }
 0x3f1   :  { %1296 = vadd.xlane.f32.xlu0 %v1295_v12  ;;  %v1203_v61 = vpop.xlane.xlu1 %1202  ;;  %v1230_v16 = vpop.xlane.xlu0 %1229 }
 0x3f2   :  { %v1240_v50 = vmul.f32 0.125, %v1203_v61  ;;  %v1274_v40 = vmul.f32 %v2926_v41, %v2926_v41  ;;  %v1249_v18 = vmul.f32 0.125, %v1230_v16 }
 0x3f4   :  { %v2932_v22 = vsub.f32 %v2844_v5, %v1240_v50  ;;  %v1304_v57 = vsel %vm1185_vm1, %v1274_v40, 0.0  ;;  %v2962_v42 = vsub.f32 %v2849_v28, %v1249_v18 }
 0x3f5   :  { %1305 = vadd.xlane.f32.xlu1 %v1304_v57  ;;  %v1218_v39 = vpop.xlane.xlu1 %1217 }
 0x3f6   :  { %v1245_v58 = vmul.f32 0.125, %v1218_v39  ;;  %v1272_v38 = vmul.f32 %v2932_v22, %v2932_v22  ;;  %v1281_v28 = vmul.f32 %v2962_v42, %v2962_v42 }
 0x3f8   :  { %v2938_v27 = vsub.f32 %v2852_v11, %v1245_v58  ;;  %v1298_v14 = vsel %vm1185_vm1, %v1272_v38, 0.0  ;;  %v1325_v9 = vsel %vm1185_vm1, %v1281_v28, 0.0  ;;  %v2989_v38 = vld [vmem:[%s3273_s5] ss:$0 sm:$0xff] }
 0x3f9   :  { %1299 = vadd.xlane.f32.xlu1 %v1298_v14  ;;  %v1212_v2 = vpop.xlane.xlu1 %1211 }
 0x3fa   :  { %v1243_v53 = vmul.f32 0.125, %v1212_v2  ;;  %v1277_v5 = vmul.f32 %v2938_v27, %v2938_v27 }
 0x3fc   :  { %v2944_v7 = vsub.f32 %v2859_v8, %v1243_v53  ;;  %v1313_v23 = vsel %vm1185_vm1, %v1277_v5, 0.0  ;;  %v2995_v5 = vld [vmem:[%s3274_s6] ss:$0 sm:$0xff] }
 0x3fd   :  { %1314 = vadd.xlane.f32.xlu0 %v1313_v23  ;;  %v1221_v26 = vpop.xlane.xlu1 %1220 }
 0x3fe   :  { %v1246_v19 = vmul.f32 0.125, %v1221_v26  ;;  %v1275_v11 = vmul.f32 %v2944_v7, %v2944_v7 }
 0x400   :  { %v2950_v35 = vsub.f32 %v2864_v10, %v1246_v19  ;;  %v1307_v29 = vsel %vm1185_vm1, %v1275_v11, 0.0 }
 0x401   :  { %1308 = vadd.xlane.f32.xlu0 %v1307_v29  ;;  %v1215_v43 = vpop.xlane.xlu1 %1214 }
 0x402   :  { %v1244_v13 = vmul.f32 0.125, %v1215_v43  ;;  %v1278_v8 = vmul.f32 %v2950_v35, %v2950_v35 }
 0x404   :  { %v2956_v44 = vsub.f32 %v2869_v32, %v1244_v13  ;;  %v1316_v6 = vsel %vm1185_vm1, %v1278_v8, 0.0 }
 0x405   :  { %1317 = vadd.xlane.f32.xlu1 %v1316_v6  ;;  %v1224_v47 = vpop.xlane.xlu1 %1223 }
 0x406   :  { %v1247_v20 = vmul.f32 0.125, %v1224_v47  ;;  %v1276_v10 = vmul.f32 %v2956_v44, %v2956_v44 }
 0x408   :  { %v2965_v31 = vsub.f32 %v2874_v0, %v1247_v20  ;;  %v1310_v4 = vsel %vm1185_vm1, %v1276_v10, 0.0 }
 0x409   :  { %1311 = vadd.xlane.f32.xlu1 %v1310_v4  ;;  %v1227_v54 = vpop.xlane.xlu1 %1226 }
 0x40a   :  { %v1248_v32 = vmul.f32 0.125, %v1227_v54  ;;  %v1279_v21 = vmul.f32 %v2965_v31, %v2965_v31 }
 0x40c   :  { %v2971_v33 = vsub.f32 %v2879_v36, %v1248_v32  ;;  %v1319_v52 = vsel %vm1185_vm1, %v1279_v21, 0.0 }
 0x40d   :  { %1320 = vadd.xlane.f32.xlu0 %v1319_v52  ;;  %v1233_v17 = vpop.xlane.xlu1 %1232 }
 0x40e   :  { %v1250_v0 = vmul.f32 0.125, %v1233_v17  ;;  %v1280_v1 = vmul.f32 %v2971_v33, %v2971_v33 }
 0x410   :  { %v2979_v59 = vsub.f32 %v2884_v15, %v1250_v0  ;;  %v1322_v24 = vsel %vm1185_vm1, %v1280_v1, 0.0 }
 0x411   :  { %1326 = vadd.xlane.f32.xlu0 %v1325_v9  ;;  %1323 = vadd.xlane.f32.xlu1 %v1322_v24 }
 0x412   :  { %v1282_v36 = vmul.f32 %v2979_v59, %v2979_v59 }
 0x414   :  { %v1328_v62 = vsel %vm1185_vm1, %v1282_v36, 0.0 }
 0x415   :  { %1329 = vadd.xlane.f32.xlu1 %v1328_v62 }
 0x46e   :  { %v1291_v3 = vpop.xlane.xlu0 %1290 }
 0x46f   :  { %v1333_v56 = vmul.f32 0.125, %v1291_v3 }
 0x471   :  { %v1349_v51 = vadd.f32 1e-05, %v1333_v56 }
 0x472   :  { %v1285_v46 = vpop.xlane.xlu0 %1284 }
 0x473   :  { %1995 = vrsqrt.f32 %v1349_v51  ;;  %v1331_v63 = vmul.f32 0.125, %v1285_v46 }
 0x475   :  { %v1347_v15 = vadd.f32 1e-05, %v1331_v63 }
 0x476   :  { %v1303_v45 = vpop.xlane.xlu0 %1302  ;;  %v1294_v48 = vpop.xlane.xlu1 %1293 }
 0x477   :  { %1997 = vrsqrt.f32 %v1347_v15  ;;  %v1337_v55 = vmul.f32 0.125, %v1303_v45  ;;  %v1334_v12 = vmul.f32 0.125, %v1294_v48 }
 0x479   :  { %v1353_v61 = vadd.f32 1e-05, %v1337_v55  ;;  %v1350_v50 = vadd.f32 1e-05, %v1334_v12 }
 0x47a   :  { %v1288_v40 = vpop.xlane.xlu1 %1287 }
 0x47b   :  { %1999 = vrsqrt.f32 %v1353_v61  ;;  %v1332_v57 = vmul.f32 0.125, %v1288_v40 }
 0x47c   :  { %2001 = vrsqrt.f32 %v1350_v50 }
 0x47d   :  { %v1996_v39 = vpop.eup %1995  ;;  %v1348_v58 = vadd.f32 1e-05, %v1332_v57 }
 0x47e   :  { %v1297_v14 = vpop.xlane.xlu0 %1296  ;;  %v1381_v2 = vmul.f32 %v1996_v39, %v2891_v37 }
 0x47f   :  { %2003 = vrsqrt.f32 %v1348_v58  ;;  %v1335_v53 = vmul.f32 0.125, %v1297_v14 }
 0x480   :  { %v1404_v23 = vmul.f32 %v2989_v38, %v1381_v2 }
 0x481   :  { %v1998_v26 = vpop.eup %1997  ;;  %v1351_v19 = vadd.f32 1e-05, %v1335_v53 }
 0x482   :  { %v1306_v11 = vpop.xlane.xlu1 %1305  ;;  %v2999_v29 = vadd.f32 %v2995_v5, %v1404_v23  ;;  %v1379_v16 = vmul.f32 %v1998_v26, %v2896_v60 }
 0x483   :  { %2005 = vrsqrt.f32 %v1351_v19  ;;  %v1338_v43 = vmul.f32 0.125, %v1306_v11 }
 0x484   :  { %v1447_v37 = vsel %vm1185_vm1, %v2999_v29, -inf  ;;  %v1402_v13 = vmul.f32 %v2989_v38, %v1379_v16 }
 0x485   :  { %v2000_v8 = vpop.eup %1999  ;;  %v1354_v18 = vadd.f32 1e-05, %v1338_v43  ;;  %1448 = vmax.xlane.f32.xlu0 %v1447_v37 }
 0x486   :  { %v2002_v6 = vpop.eup %2001  ;;  %v1300_v47 = vpop.xlane.xlu1 %1299  ;;  %v3006_v20 = vadd.f32 %v2995_v5, %v1402_v13  ;;  %v1385_v10 = vmul.f32 %v2000_v8, %v2902_v34 }
 0x487   :  { %2007 = vrsqrt.f32 %v1354_v18  ;;  %v1336_v4 = vmul.f32 0.125, %v1300_v47  ;;  %v1382_v60 = vmul.f32 %v2002_v6, %v2905_v25 }
 0x488   :  { %v1441_v54 = vsel %vm1185_vm1, %v3006_v20, -inf  ;;  %v1408_v32 = vmul.f32 %v2989_v38, %v1385_v10 }
 0x489   :  { %v2004_v21 = vpop.eup %2003  ;;  %v1352_v52 = vadd.f32 1e-05, %v1336_v4  ;;  %1442 = vmax.xlane.f32.xlu0 %v1441_v54  ;;  %v1405_v28 = vmul.f32 %v2989_v38, %v1382_v60 }
 0x48a   :  { %v1315_v17 = vpop.xlane.xlu0 %1314  ;;  %v3015_v0 = vadd.f32 %v2995_v5, %v1408_v32  ;;  %v1380_v34 = vmul.f32 %v2004_v21, %v2913_v49 }
 0x48b   :  { %2009 = vrsqrt.f32 %v1352_v52  ;;  %v1341_v1 = vmul.f32 0.125, %v1315_v17  ;;  %v3019_v25 = vadd.f32 %v2995_v5, %v1405_v28 }
 0x48c   :  { %v1459_v9 = vsel %vm1185_vm1, %v3015_v0, -inf  ;;  %v1403_v24 = vmul.f32 %v2989_v38, %v1380_v34 }
 0x48d   :  { %v2006_v36 = vpop.eup %2005  ;;  %v1357_v62 = vadd.f32 1e-05, %v1341_v1  ;;  %1460 = vmax.xlane.f32.xlu0 %v1459_v9  ;;  %v1450_v3 = vsel %vm1185_vm1, %v3019_v25, -inf }
 0x48e   :  { %1451 = vmax.xlane.f32.xlu1 %v1450_v3  ;;  %v1309_v56 = vpop.xlane.xlu0 %1308  ;;  %v3027_v49 = vadd.f32 %v2995_v5, %v1403_v24  ;;  %v1383_v51 = vmul.f32 %v2006_v36, %v2920_v30 }
 0x48f   :  { %2011 = vrsqrt.f32 %v1357_v62  ;;  %v1339_v46 = vmul.f32 0.125, %v1309_v56 }
 0x490   :  { %v1444_v63 = vsel %vm1185_vm1, %v3027_v49, -inf  ;;  %v1406_v15 = vmul.f32 %v2989_v38, %v1383_v51 }
 0x491   :  { %v2008_v45 = vpop.eup %2007  ;;  %v1355_v48 = vadd.f32 1e-05, %v1339_v46 }
 0x492   :  { %1445 = vmax.xlane.f32.xlu1 %v1444_v63  ;;  %v1318_v55 = vpop.xlane.xlu1 %1317  ;;  %v3034_v12 = vadd.f32 %v2995_v5, %v1406_v15  ;;  %v1386_v61 = vmul.f32 %v2008_v45, %v2926_v41 }
 0x493   :  { %2013 = vrsqrt.f32 %v1355_v48  ;;  %v1342_v50 = vmul.f32 0.125, %v1318_v55 }
 0x494   :  { %v1453_v30 = vsel %vm1185_vm1, %v3034_v12, -inf  ;;  %v1409_v40 = vmul.f32 %v2989_v38, %v1386_v61 }
 0x495   :  { %v2010_v57 = vpop.eup %2009  ;;  %v1358_v39 = vadd.f32 1e-05, %v1342_v50  ;;  %1454 = vmax.xlane.f32.xlu0 %v1453_v30 }
 0x496   :  { %v1312_v58 = vpop.xlane.xlu1 %1311  ;;  %v3041_v14 = vadd.f32 %v2995_v5, %v1409_v40  ;;  %v1384_v2 = vmul.f32 %v2010_v57, %v2932_v22 }
 0x497   :  { %2015 = vrsqrt.f32 %v1358_v39  ;;  %v1340_v53 = vmul.f32 0.125, %v1312_v58 }
 0x498   :  { %v1462_v41 = vsel %vm1185_vm1, %v3041_v14, -inf  ;;  %v1407_v23 = vmul.f32 %v2989_v38, %v1384_v2 }
 0x499   :  { %v2012_v26 = vpop.eup %2011  ;;  %v1356_v19 = vadd.f32 1e-05, %v1340_v53  ;;  %1463 = vmax.xlane.f32.xlu1 %v1462_v41 }
 0x49a   :  { %v1321_v11 = vpop.xlane.xlu0 %1320  ;;  %v3048_v16 = vadd.f32 %v2995_v5, %v1407_v23  ;;  %v1389_v43 = vmul.f32 %v2012_v26, %v2938_v27 }
 0x49b   :  { %2017 = vrsqrt.f32 %v1356_v19  ;;  %v1343_v37 = vmul.f32 0.125, %v1321_v11 }
 0x49c   :  { %v1456_v22 = vsel %vm1185_vm1, %v3048_v16, -inf  ;;  %v1412_v13 = vmul.f32 %v2989_v38, %v1389_v43 }
 0x49d   :  { %v2014_v8 = vpop.eup %2013  ;;  %v1359_v18 = vadd.f32 1e-05, %v1343_v37  ;;  %1457 = vmax.xlane.f32.xlu1 %v1456_v22 }
 0x49e   :  { %v1327_v6 = vpop.xlane.xlu0 %1326  ;;  %v1324_v47 = vpop.xlane.xlu1 %1323  ;;  %v3055_v10 = vadd.f32 %v2995_v5, %v1412_v13  ;;  %v1387_v4 = vmul.f32 %v2014_v8, %v2944_v7 }
 0x49f   :  { %2019 = vrsqrt.f32 %v1359_v18  ;;  %v1345_v60 = vmul.f32 0.125, %v1327_v6  ;;  %v1344_v27 = vmul.f32 0.125, %v1324_v47 }
 0x4a0   :  { %v1471_v54 = vsel %vm1185_vm1, %v3055_v10, -inf  ;;  %v1410_v32 = vmul.f32 %v2989_v38, %v1387_v4 }
 0x4a1   :  { %v2016_v21 = vpop.eup %2015  ;;  %v1361_v52 = vadd.f32 1e-05, %v1345_v60  ;;  %v1360_v28 = vadd.f32 1e-05, %v1344_v27  ;;  %1472 = vmax.xlane.f32.xlu0 %v1471_v54 }
 0x4a2   :  { %v1330_v17 = vpop.xlane.xlu1 %1329  ;;  %v3062_v34 = vadd.f32 %v2995_v5, %v1410_v32  ;;  %v1390_v1 = vmul.f32 %v2016_v21, %v2950_v35 }
 0x4a3   :  { %2021 = vrsqrt.f32 %v1361_v52  ;;  %v1346_v7 = vmul.f32 0.125, %v1330_v17 }
 0x4a4   :  { %2023 = vrsqrt.f32 %v1360_v28  ;;  %v1465_v9 = vsel %vm1185_vm1, %v3062_v34, -inf  ;;  %v1413_v24 = vmul.f32 %v2989_v38, %v1390_v1 }
 0x4a5   :  { %v2018_v36 = vpop.eup %2017  ;;  %v1362_v62 = vadd.f32 1e-05, %v1346_v7  ;;  %1466 = vmax.xlane.f32.xlu0 %v1465_v9 }
 0x4a6   :  { %v3069_v3 = vadd.f32 %v2995_v5, %v1413_v24  ;;  %v1388_v56 = vmul.f32 %v2018_v36, %v2956_v44 }
 0x4a7   :  { %2025 = vrsqrt.f32 %v1362_v62 }
 0x4a8   :  { %v1474_v35 = vsel %vm1185_vm1, %v3069_v3, -inf  ;;  %v1411_v51 = vmul.f32 %v2989_v38, %v1388_v56 }
 0x4a9   :  { %v2020_v46 = vpop.eup %2019  ;;  %1475 = vmax.xlane.f32.xlu1 %v1474_v35 }
 0x4aa   :  { %v3076_v63 = vadd.f32 %v2995_v5, %v1411_v51  ;;  %v1391_v15 = vmul.f32 %v2020_v46, %v2965_v31 }
 0x4ac   :  { %v1468_v45 = vsel %vm1185_vm1, %v3076_v63, -inf  ;;  %v1414_v48 = vmul.f32 %v2989_v38, %v1391_v15 }
 0x4ad   :  { %v2022_v55 = vpop.eup %2021  ;;  %1469 = vmax.xlane.f32.xlu1 %v1468_v45 }
 0x4ae   :  { %v2024_v44 = vpop.eup %2023  ;;  %v3083_v61 = vadd.f32 %v2995_v5, %v1414_v48  ;;  %v1393_v50 = vmul.f32 %v2022_v55, %v2962_v42 }
 0x4af   :  { %v1392_v30 = vmul.f32 %v2024_v44, %v2971_v33 }
 0x4b0   :  { %v1477_v40 = vsel %vm1185_vm1, %v3083_v61, -inf  ;;  %v1416_v31 = vmul.f32 %v2989_v38, %v1393_v50 }
 0x4b1   :  { %v2026_v57 = vpop.eup %2025  ;;  %1478 = vmax.xlane.f32.xlu0 %v1477_v40  ;;  %v1415_v39 = vmul.f32 %v2989_v38, %v1392_v30 }
 0x4b2   :  { %v3092_v58 = vadd.f32 %v2995_v5, %v1416_v31  ;;  %v1394_v2 = vmul.f32 %v2026_v57, %v2979_v59 }
 0x4b3   :  { %v3096_v53 = vadd.f32 %v2995_v5, %v1415_v39 }
 0x4b4   :  { %v1483_v42 = vsel %vm1185_vm1, %v3092_v58, -inf  ;;  %v1417_v33 = vmul.f32 %v2989_v38, %v1394_v2 }
 0x4b5   :  { %1484 = vmax.xlane.f32.xlu0 %v1483_v42  ;;  %v1480_v41 = vsel %vm1185_vm1, %v3096_v53, -inf }
 0x4b6   :  { %1481 = vmax.xlane.f32.xlu1 %v1480_v41  ;;  %v3104_v23 = vadd.f32 %v2995_v5, %v1417_v33 }
 0x4b8   :  { %v1486_v26 = vsel %vm1185_vm1, %v3104_v23, -inf }
 0x4ba   :  { %1487 = vmax.xlane.f32.xlu1 %v1486_v26 }
 0x512   :  { %v1449_v59 = vpop.xlane.xlu0 %1448 }
 0x513   :  { %v3109_v19 = vsub.f32 %v2999_v29, %v1449_v59 }
 0x515   :  { %v1509_v11 = vmul.f32 1.442695, %v3109_v19 }
 0x516   :  { %v1443_v43 = vpop.xlane.xlu0 %1442 }
 0x517   :  { %2027 = vpow2.f32 %v1509_v11  ;;  %v3113_v38 = vsub.f32 %v3006_v20, %v1443_v43 }
 0x519   :  { %v1505_v37 = vmul.f32 1.442695, %v3113_v38 }
 0x51a   :  { %v1461_v22 = vpop.xlane.xlu0 %1460 }
 0x51b   :  { %2029 = vpow2.f32 %v1505_v37  ;;  %v3117_v5 = vsub.f32 %v3015_v0, %v1461_v22  ;;  %v1452_v13 = vpop.xlane.xlu1 %1451 }
 0x51c   :  { %v3120_v8 = vsub.f32 %v3019_v25, %v1452_v13 }
 0x51d   :  { %v1517_v29 = vmul.f32 1.442695, %v3117_v5 }
 0x51e   :  { %v1511_v18 = vmul.f32 1.442695, %v3120_v8 }
 0x51f   :  { %2031 = vpow2.f32 %v1517_v29  ;;  %v1446_v6 = vpop.xlane.xlu1 %1445 }
 0x520   :  { %2033 = vpow2.f32 %v1511_v18  ;;  %v3125_v20 = vsub.f32 %v3027_v49, %v1446_v6 }
 0x521   :  { %v2028_v47 = vpop.eup %2027 }
 0x522   :  { %v1507_v4 = vmul.f32 1.442695, %v3125_v20  ;;  %v1455_v60 = vpop.xlane.xlu0 %1454  ;;  %v1543_v0 = vsel %vm1185_vm1, %v2028_v47, 0.0 }
 0x523   :  { %v3130_v27 = vsub.f32 %v3034_v12, %v1455_v60  ;;  %1544 = vadd.xlane.f32.xlu0 %v1543_v0 }
 0x524   :  { %2035 = vpow2.f32 %v1507_v4 }
 0x525   :  { %v2030_v25 = vpop.eup %2029  ;;  %v1513_v54 = vmul.f32 1.442695, %v3130_v27 }
 0x526   :  { %v1464_v32 = vpop.xlane.xlu1 %1463  ;;  %v1537_v21 = vsel %vm1185_vm1, %v2030_v25, 0.0 }
 0x527   :  { %2037 = vpow2.f32 %v1513_v54  ;;  %v3135_v49 = vsub.f32 %v3041_v14, %v1464_v32  ;;  %1538 = vadd.xlane.f32.xlu0 %v1537_v21 }
 0x529   :  { %v2032_v52 = vpop.eup %2031  ;;  %v1519_v28 = vmul.f32 1.442695, %v3135_v49 }
 0x52a   :  { %v2034_v17 = vpop.eup %2033  ;;  %v1458_v1 = vpop.xlane.xlu1 %1457  ;;  %v1555_v12 = vsel %vm1185_vm1, %v2032_v52, 0.0 }
 0x52b   :  { %2039 = vpow2.f32 %v1519_v28  ;;  %v3140_v7 = vsub.f32 %v3048_v16, %v1458_v1  ;;  %1556 = vadd.xlane.f32.xlu0 %v1555_v12  ;;  %v1546_v9 = vsel %vm1185_vm1, %v2034_v17, 0.0 }
 0x52c   :  { %1547 = vadd.xlane.f32.xlu1 %v1546_v9 }
 0x52d   :  { %v1515_v24 = vmul.f32 1.442695, %v3140_v7 }
 0x52e   :  { %v2036_v14 = vpop.eup %2035  ;;  %v1473_v36 = vpop.xlane.xlu0 %1472 }
 0x52f   :  { %2041 = vpow2.f32 %v1515_v24  ;;  %v3145_v62 = vsub.f32 %v3055_v10, %v1473_v36  ;;  %v1540_v56 = vsel %vm1185_vm1, %v2036_v14, 0.0 }
 0x530   :  { %1541 = vadd.xlane.f32.xlu1 %v1540_v56 }
 0x531   :  { %v2038_v35 = vpop.eup %2037  ;;  %v1525_v51 = vmul.f32 1.442695, %v3145_v62 }
 0x532   :  { %v1467_v16 = vpop.xlane.xlu0 %1466  ;;  %v1549_v46 = vsel %vm1185_vm1, %v2038_v35, 0.0 }
 0x533   :  { %2043 = vpow2.f32 %v1525_v51  ;;  %v3151_v15 = vsub.f32 %v3062_v34, %v1467_v16  ;;  %1550 = vadd.xlane.f32.xlu0 %v1549_v46 }
 0x535   :  { %v2040_v45 = vpop.eup %2039  ;;  %v1521_v48 = vmul.f32 1.442695, %v3151_v15 }
 0x536   :  { %v1476_v55 = vpop.xlane.xlu1 %1475  ;;  %v1558_v10 = vsel %vm1185_vm1, %v2040_v45, 0.0 }
 0x537   :  { %2045 = vpow2.f32 %v1521_v48  ;;  %v3156_v44 = vsub.f32 %v3069_v3, %v1476_v55  ;;  %1559 = vadd.xlane.f32.xlu1 %v1558_v10 }
 0x539   :  { %v2042_v50 = vpop.eup %2041  ;;  %v1527_v30 = vmul.f32 1.442695, %v3156_v44 }
 0x53a   :  { %v1470_v40 = vpop.xlane.xlu1 %1469  ;;  %v1552_v31 = vsel %vm1185_vm1, %v2042_v50, 0.0 }
 0x53b   :  { %2047 = vpow2.f32 %v1527_v30  ;;  %v3161_v34 = vsub.f32 %v3076_v63, %v1470_v40  ;;  %1553 = vadd.xlane.f32.xlu1 %v1552_v31 }
 0x53d   :  { %v2044_v57 = vpop.eup %2043  ;;  %v1523_v39 = vmul.f32 1.442695, %v3161_v34 }
 0x53e   :  { %v1479_v2 = vpop.xlane.xlu0 %1478  ;;  %v1567_v42 = vsel %vm1185_vm1, %v2044_v57, 0.0 }
 0x53f   :  { %2049 = vpow2.f32 %v1523_v39  ;;  %v3166_v3 = vsub.f32 %v3083_v61, %v1479_v2  ;;  %1568 = vadd.xlane.f32.xlu0 %v1567_v42 }
 0x541   :  { %v2046_v33 = vpop.eup %2045  ;;  %v1529_v41 = vmul.f32 1.442695, %v3166_v3 }
 0x542   :  { %v1485_v26 = vpop.xlane.xlu0 %1484  ;;  %v1561_v59 = vsel %vm1185_vm1, %v2046_v33, 0.0 }
 0x543   :  { %2051 = vpow2.f32 %v1529_v41  ;;  %v3171_v63 = vsub.f32 %v3092_v58, %v1485_v26  ;;  %v1482_v11 = vpop.xlane.xlu1 %1481  ;;  %1562 = vadd.xlane.f32.xlu0 %v1561_v59 }
 0x544   :  { %v3174_v43 = vsub.f32 %v3096_v53, %v1482_v11 }
 0x545   :  { %v2048_v37 = vpop.eup %2047  ;;  %v1533_v61 = vmul.f32 1.442695, %v3171_v63 }
 0x546   :  { %v1531_v22 = vmul.f32 1.442695, %v3174_v43  ;;  %v1570_v13 = vsel %vm1185_vm1, %v2048_v37, 0.0 }
 0x547   :  { %2053 = vpow2.f32 %v1533_v61  ;;  %v1488_v29 = vpop.xlane.xlu1 %1487  ;;  %1571 = vadd.xlane.f32.xlu1 %v1570_v13 }
 0x548   :  { %2055 = vpow2.f32 %v1531_v22  ;;  %v3180_v18 = vsub.f32 %v3104_v23, %v1488_v29 }
 0x549   :  { %v2050_v58 = vpop.eup %2049 }
 0x54a   :  { %v1535_v6 = vmul.f32 1.442695, %v3180_v18  ;;  %v1564_v53 = vsel %vm1185_vm1, %v2050_v58, 0.0 }
 0x54b   :  { %1565 = vadd.xlane.f32.xlu1 %v1564_v53 }
 0x54c   :  { %2057 = vpow2.f32 %v1535_v6 }
 0x54d   :  { %v2052_v47 = vpop.eup %2051 }
 0x54e   :  { %v1573_v4 = vsel %vm1185_vm1, %v2052_v47, 0.0 }
 0x54f   :  { %1574 = vadd.xlane.f32.xlu0 %v1573_v4 }
 0x551   :  { %v2054_v60 = vpop.eup %2053 }
 0x552   :  { %v2056_v0 = vpop.eup %2055  ;;  %v1579_v25 = vsel %vm1185_vm1, %v2054_v60, 0.0 }
 0x553   :  { %1580 = vadd.xlane.f32.xlu0 %v1579_v25  ;;  %v1576_v54 = vsel %vm1185_vm1, %v2056_v0, 0.0 }
 0x554   :  { %1577 = vadd.xlane.f32.xlu1 %v1576_v54 }
 0x556   :  { %v2058_v23 = vpop.eup %2057 }
 0x557   :  { %v1582_v32 = vsel %vm1185_vm1, %v2058_v23, 0.0 }
 0x558   :  { %1583 = vadd.xlane.f32.xlu1 %v1582_v32 }
 0x5b0   :  { %v1545_v21 = vpop.xlane.xlu0 %1544 }
 0x5b1   :  { %2059 = vlog2.f32 %v1545_v21 }
 0x5b4   :  { %v1539_v52 = vpop.xlane.xlu0 %1538 }
 0x5b5   :  { %2061 = vlog2.f32 %v1539_v52 }
 0x5b8   :  { %v1557_v28 = vpop.xlane.xlu0 %1556 }
 0x5b9   :  { %2063 = vlog2.f32 %v1557_v28  ;;  %v1548_v17 = vpop.xlane.xlu1 %1547 }
 0x5ba   :  { %2065 = vlog2.f32 %v1548_v17 }
 0x5bb   :  { %v2060_v1 = vpop.eup %2059 }
 0x5bc   :  { %v1590_v12 = vmul.f32 0.6931472, %v2060_v1 }
 0x5bd   :  { %v1542_v9 = vpop.xlane.xlu1 %1541 }
 0x5be   :  { %v1619_v24 = vsub.f32 %v3109_v19, %v1590_v12  ;;  %2067 = vlog2.f32 %v1542_v9 }
 0x5bf   :  { %v2062_v14 = vpop.eup %2061 }
 0x5c0   :  { %1635 = vst.msk [vmem:[%s3275_s7 + $0x10] sm:$0xff] %vm1185_vm1, %v1619_v24  ;;  %v1586_v36 = vmul.f32 0.6931472, %v2062_v14  ;;  %v1551_v56 = vpop.xlane.xlu0 %1550 }
 0x5c1   :  { %2069 = vlog2.f32 %v1551_v56 }
 0x5c2   :  { %v1617_v35 = vsub.f32 %v3113_v38, %v1586_v36 }
 0x5c3   :  { %v2064_v51 = vpop.eup %2063 }
 0x5c4   :  { %v2066_v16 = vpop.eup %2065  ;;  %1633 = vst.msk [vmem:[%s3275_s7] sm:$0xff] %vm1185_vm1, %v1617_v35  ;;  %v1598_v19 = vmul.f32 0.6931472, %v2064_v51  ;;  %v1560_v46 = vpop.xlane.xlu1 %1559 }
 0x5c5   :  { %v1592_v45 = vmul.f32 0.6931472, %v2066_v16  ;;  %2071 = vlog2.f32 %v1560_v46 }
 0x5c6   :  { %v1623_v48 = vsub.f32 %v3117_v5, %v1598_v19 }
 0x5c7   :  { %v1620_v55 = vsub.f32 %v3120_v8, %v1592_v45 }
 0x5c8   :  { %v2068_v10 = vpop.eup %2067  ;;  %1639 = vst.msk [vmem:[%s3275_s7 + $0x30] sm:$0xff] %vm1185_vm1, %v1623_v48  ;;  %v1554_v38 = vpop.xlane.xlu1 %1553 }
 0x5c9   :  { %1636 = vst.msk [vmem:[%s3275_s7 + $0x18] sm:$0xff] %vm1185_vm1, %v1620_v55  ;;  %v1588_v50 = vmul.f32 0.6931472, %v2068_v10  ;;  %2073 = vlog2.f32 %v1554_v38 }
 0x5cb   :  { %v2070_v30 = vpop.eup %2069  ;;  %v1618_v40 = vsub.f32 %v3125_v20, %v1588_v50 }
 0x5cc   :  { %v1594_v5 = vmul.f32 0.6931472, %v2070_v30  ;;  %v1569_v31 = vpop.xlane.xlu0 %1568 }
 0x5cd   :  { %1634 = vst.msk [vmem:[%s3275_s7 + $0x8] sm:$0xff] %vm1185_vm1, %v1618_v40  ;;  %2075 = vlog2.f32 %v1569_v31 }
 0x5ce   :  { %v1621_v8 = vsub.f32 %v3130_v27, %v1594_v5 }
 0x5cf   :  { %v2072_v57 = vpop.eup %2071 }
 0x5d0   :  { %1637 = vst.msk [vmem:[%s3275_s7 + $0x20] sm:$0xff] %vm1185_vm1, %v1621_v8  ;;  %v1600_v39 = vmul.f32 0.6931472, %v2072_v57  ;;  %v1563_v2 = vpop.xlane.xlu0 %1562 }
 0x5d1   :  { %2077 = vlog2.f32 %v1563_v2 }
 0x5d2   :  { %v1624_v20 = vsub.f32 %v3135_v49, %v1600_v39 }
 0x5d3   :  { %v2074_v42 = vpop.eup %2073 }
 0x5d4   :  { %1640 = vst.msk [vmem:[%s3275_s7 + $0x38] sm:$0xff] %vm1185_vm1, %v1624_v20  ;;  %v1596_v33 = vmul.f32 0.6931472, %v2074_v42  ;;  %v1572_v41 = vpop.xlane.xlu1 %1571 }
 0x5d5   :  { %2079 = vlog2.f32 %v1572_v41 }
 0x5d6   :  { %v1622_v27 = vsub.f32 %v3140_v7, %v1596_v33 }
 0x5d7   :  { %v2076_v26 = vpop.eup %2075 }
 0x5d8   :  { %1638 = vst.msk [vmem:[%s3275_s7 + $0x28] sm:$0xff] %vm1185_vm1, %v1622_v27  ;;  %v1606_v59 = vmul.f32 0.6931472, %v2076_v26  ;;  %v1566_v11 = vpop.xlane.xlu1 %1565 }
 0x5d9   :  { %2081 = vlog2.f32 %v1566_v11 }
 0x5da   :  { %v1627_v49 = vsub.f32 %v3145_v62, %v1606_v59 }
 0x5db   :  { %v2078_v37 = vpop.eup %2077 }
 0x5dc   :  { %1643 = vst.msk [vmem:[%s3275_s7 + $0x50] sm:$0xff] %vm1185_vm1, %v1627_v49  ;;  %v1602_v61 = vmul.f32 0.6931472, %v2078_v37  ;;  %v1575_v22 = vpop.xlane.xlu0 %1574 }
 0x5dd   :  { %2083 = vlog2.f32 %v1575_v22 }
 0x5de   :  { %v1625_v7 = vsub.f32 %v3151_v15, %v1602_v61 }
 0x5df   :  { %v2080_v13 = vpop.eup %2079 }
 0x5e0   :  { %1641 = vst.msk [vmem:[%s3275_s7 + $0x40] sm:$0xff] %vm1185_vm1, %v1625_v7  ;;  %v1608_v29 = vmul.f32 0.6931472, %v2080_v13  ;;  %v1581_v58 = vpop.xlane.xlu0 %1580 }
 0x5e1   :  { %2085 = vlog2.f32 %v1581_v58  ;;  %v1578_v62 = vpop.xlane.xlu1 %1577 }
 0x5e2   :  { %v1628_v6 = vsub.f32 %v3156_v44, %v1608_v29  ;;  %2087 = vlog2.f32 %v1578_v62 }
 0x5e3   :  { %v2082_v53 = vpop.eup %2081 }
 0x5e4   :  { %1644 = vst.msk [vmem:[%s3275_s7 + $0x58] sm:$0xff] %vm1185_vm1, %v1628_v6  ;;  %v1604_v15 = vmul.f32 0.6931472, %v2082_v53 }
 0x5e5   :  { %v1584_v47 = vpop.xlane.xlu1 %1583 }
 0x5e6   :  { %v1626_v4 = vsub.f32 %v3161_v34, %v1604_v15  ;;  %2089 = vlog2.f32 %v1584_v47 }
 0x5e7   :  { %v2084_v60 = vpop.eup %2083 }
 0x5e8   :  { %1642 = vst.msk [vmem:[%s3275_s7 + $0x48] sm:$0xff] %vm1185_vm1, %v1626_v4  ;;  %v1610_v0 = vmul.f32 0.6931472, %v2084_v60 }
 0x5ea   :  { %v1629_v44 = vsub.f32 %v3166_v3, %v1610_v0 }
 0x5eb   :  { %v2086_v25 = vpop.eup %2085 }
 0x5ec   :  { %v2088_v54 = vpop.eup %2087  ;;  %1645 = vst.msk [vmem:[%s3275_s7 + $0x60] sm:$0xff] %vm1185_vm1, %v1629_v44  ;;  %v1614_v23 = vmul.f32 0.6931472, %v2086_v25 }
 0x5ed   :  { %v1612_v32 = vmul.f32 0.6931472, %v2088_v54 }
 0x5ee   :  { %v1631_v34 = vsub.f32 %v3171_v63, %v1614_v23 }
 0x5ef   :  { %v1630_v21 = vsub.f32 %v3174_v43, %v1612_v32 }
 0x5f0   :  { %v2090_v52 = vpop.eup %2089  ;;  %1647 = vst.msk [vmem:[%s3275_s7 + $0x70] sm:$0xff] %vm1185_vm1, %v1631_v34 }
 0x5f1   :  { %1646 = vst.msk [vmem:[%s3275_s7 + $0x68] sm:$0xff] %vm1185_vm1, %v1630_v21  ;;  %v1616_v3 = vmul.f32 0.6931472, %v2090_v52 }
 0x5f3   :  { %v1632_v28 = vsub.f32 %v3180_v18, %v1616_v3 }
 0x5f5   :  { %1648 = vst.msk [vmem:[%s3275_s7 + $0x78] sm:$0xff] %vm1185_vm1, %v1632_v28 }

</bundles_post_ra>
